<compile_context>
chip_gen: v6e
topology: v6e:2x2x1
jax: 0.10.0
libtpu: 0.0.40
codegen_flags: <defaults>
</compile_context>

<pallas_src>
import math
import jax
import jax.numpy as jnp
from jax import lax
from jax.experimental import pallas as pl
from jax.experimental.pallas import tpu as pltpu

HIDDEN_SIZE = 64
INPUT_SIZE = 1
NUM_LAYERS = 2
OUTPUT_SIZE = 1

_HP = 128        # hidden padded to one full lane width -> lane-aligned gate tiles
_BP_MIN = 8      # batch padded to a full sublane group


def _lstm_kernel(x_ref,      # (T, BP, 1)   time-major input
                 wih0_ref,   # (1, 4*HP)    layer-0 input weight row (input_size == 1)
                 whh0_ref,   # (HP, 4*HP)   layer-0 recurrent weights
                 b0_ref,     # (1, 4*HP)    layer-0 fused bias (b_ih + b_hh)
                 w1_ref,     # (2*HP, 4*HP) layer-1 fused [W_ih^T ; W_hh^T]
                 b1_ref,     # (1, 4*HP)    layer-1 fused bias
                 wfc_ref,    # (HP, OUT)
                 bfc_ref,    # (1, OUT)
                 out_ref):   # (BP, OUT)
    T, BP, _ = x_ref.shape
    HP = whh0_ref.shape[0]
    G = 4 * HP

    # Loop-invariant broadcasts hoisted out of the time loop
    # (JAX does not CSE broadcast_in_dim across iterations).
    wih0b = jnp.broadcast_to(wih0_ref[...], (BP, G))
    b0b = jnp.broadcast_to(b0_ref[...], (BP, G))
    b1b = jnp.broadcast_to(b1_ref[...], (BP, G))

    def gates_to_hc(gates, c):
        # PyTorch gate order [i, f, g, o]; each slice is a full 128-lane tile.
        i = jax.nn.sigmoid(gates[:, 0 * HP:1 * HP])
        f = jax.nn.sigmoid(gates[:, 1 * HP:2 * HP])
        g = jnp.tanh(gates[:, 2 * HP:3 * HP])
        o = jax.nn.sigmoid(gates[:, 3 * HP:4 * HP])
        c_new = f * c + i * g
        h_new = o * jnp.tanh(c_new)
        return h_new, c_new

    def step(t, carry):
        h1, c1, h2, c2 = carry
        x_t = x_ref[t]                                        # (BP, 1)

        # Layer 0: input contribution is a broadcast-multiply (VPU), not a K=1 matmul.
        gates0 = (x_t * wih0b
                  + jnp.dot(h1, whh0_ref[...],
                            preferred_element_type=jnp.float32)
                  + b0b)                                      # (BP, 4*HP)
        h1n, c1n = gates_to_hc(gates0, c1)

        # Layer 1: single fused matmul over [h1(t) ; h2(t-1)], K = 2*HP = 256.
        inp1 = jnp.concatenate([h1n, h2], axis=1)             # (BP, 2*HP)
        gates1 = (jnp.dot(inp1, w1_ref[...],
                          preferred_element_type=jnp.float32)
                  + b1b)                                      # (BP, 4*HP)
        h2n, c2n = gates_to_hc(gates1, c2)

        return (h1n, c1n, h2n, c2n)

    zeros = jnp.zeros((BP, HP), jnp.float32)
    carry = (zeros, zeros, zeros, zeros)
    _, _, h2, _ = lax.fori_loop(0, T, step, carry, unroll=(T <= 64))

    # Final linear layer on the last hidden state of layer 1.
    out_ref[...] = (jnp.dot(h2, wfc_ref[...], preferred_element_type=jnp.float32)
                    + bfc_ref[...])


# ----------------------------- wrapper / padding -----------------------------

def _pad_gate_cols(w_t, H, HP):
    """(K, 4H) -> (K, 4*HP): zero-pad each gate's column block from H to HP lanes."""
    K = w_t.shape[0]
    w4 = w_t.reshape(K, 4, H)
    w4 = jnp.pad(w4, ((0, 0), (0, 0), (0, HP - H)))
    return w4.reshape(K, 4 * HP)


def _pad_rows(w, KP):
    K = w.shape[0]
    return jnp.pad(w, ((0, KP - K), (0, 0)))


def _pad_gate_bias(b, H, HP):
    return jnp.pad(b.reshape(4, H), ((0, 0), (0, HP - H))).reshape(1, 4 * HP)


def lstm_model_forward(x, params):
    """x: (B, T, I=1) float32, batch_first like PyTorch. Returns (B, 1)."""
    B, T, I = x.shape
    assert I == INPUT_SIZE == 1
    H, HP = HIDDEN_SIZE, _HP
    BP = max(_BP_MIN, ((B + 7) // 8) * 8)

    # Time-major, batch padded to a full sublane group (padded rows are sliced away).
    x_tm = jnp.transpose(x, (1, 0, 2)).astype(jnp.float32)          # (T, B, 1)
    x_tm = jnp.pad(x_tm, ((0, 0), (0, BP - B), (0, 0)))             # (T, BP, 1)

    # Layer 0 (input_size == 1): W_ih^T is a single row, used as a broadcast vector.
    wih0 = _pad_gate_cols(params["weight_ih_l0"].T, H, HP)                       # (1, 4*HP)
    whh0 = _pad_rows(_pad_gate_cols(params["weight_hh_l0"].T, H, HP), HP)        # (HP, 4*HP)
    b0 = _pad_gate_bias(params["bias_ih_l0"] + params["bias_hh_l0"], H, HP)      # (1, 4*HP)

    # Layer 1: fuse [W_ih^T ; W_hh^T] so the per-step matmul has K = 2*HP = 256.
    wih1 = _pad_rows(_pad_gate_cols(params["weight_ih_l1"].T, H, HP), HP)        # (HP, 4*HP)
    whh1 = _pad_rows(_pad_gate_cols(params["weight_hh_l1"].T, H, HP), HP)        # (HP, 4*HP)
    w1 = jnp.concatenate([wih1, whh1], axis=0)                                   # (2*HP, 4*HP)
    b1 = _pad_gate_bias(params["bias_ih_l1"] + params["bias_hh_l1"], H, HP)      # (1, 4*HP)

    wfc = _pad_rows(params["fc_weight"].T, HP)                                   # (HP, OUT)
    bfc = params["fc_bias"].reshape(1, OUTPUT_SIZE)

    vmem_spec = pl.BlockSpec(memory_space=pltpu.MemorySpace.VMEM)
    out = pl.pallas_call(
        _lstm_kernel,
        out_shape=jax.ShapeDtypeStruct((BP, OUTPUT_SIZE), jnp.float32),
        in_specs=[vmem_spec] * 8,
        out_specs=vmem_spec,
    )(x_tm, wih0, whh0, b0, w1, b1, wfc, bfc)
    return out[:B]


# ------------------------------- test harness --------------------------------

def init_params(key):
    """Deterministic init matching PyTorch parameter shapes (uniform +-1/sqrt(H))."""
    H, I = HIDDEN_SIZE, INPUT_SIZE
    bound = 1.0 / math.sqrt(H)
    names_shapes = [
        ("weight_ih_l0", (4 * H, I)),
        ("weight_hh_l0", (4 * H, H)),
        ("bias_ih_l0", (4 * H,)),
        ("bias_hh_l0", (4 * H,)),
        ("weight_ih_l1", (4 * H, H)),
        ("weight_hh_l1", (4 * H, H)),
        ("bias_ih_l1", (4 * H,)),
        ("bias_hh_l1", (4 * H,)),
        ("fc_weight", (OUTPUT_SIZE, H)),
        ("fc_bias", (OUTPUT_SIZE,)),
    ]
    params = {}
    keys = jax.random.split(key, len(names_shapes))
    for k, (name, shape) in zip(keys, names_shapes):
        params[name] = jax.random.uniform(k, shape, jnp.float32, -bound, bound)
    return params


def reference_forward(x, params):
    """Pure-JAX reference replicating nn.LSTM(batch_first, 2 layers) + nn.Linear."""
    B, T, I = x.shape
    H = HIDDEN_SIZE
    h1 = jnp.zeros((B, H), jnp.float32)
    c1 = jnp.zeros((B, H), jnp.float32)
    h2 = jnp.zeros((B, H), jnp.float32)
    c2 = jnp.zeros((B, H), jnp.float32)

    def cell(inp, h, c, wih, whh, bih, bhh):
        gates = inp @ wih.T + h @ whh.T + bih + bhh
        i = jax.nn.sigmoid(gates[:, 0 * H:1 * H])
        f = jax.nn.sigmoid(gates[:, 1 * H:2 * H])
        g = jnp.tanh(gates[:, 2 * H:3 * H])
        o = jax.nn.sigmoid(gates[:, 3 * H:4 * H])
        c_new = f * c + i * g
        return o * jnp.tanh(c_new), c_new

    for t in range(T):
        x_t = x[:, t, :]
        h1, c1 = cell(x_t, h1, c1, params["weight_ih_l0"], params["weight_hh_l0"],
                      params["bias_ih_l0"], params["bias_hh_l0"])
        h2, c2 = cell(h1, h2, c2, params["weight_ih_l1"], params["weight_hh_l1"],
                      params["bias_ih_l1"], params["bias_hh_l1"])
    return h2 @ params["fc_weight"].T + params["fc_bias"]


if __name__ == "__main__":
    key = jax.random.PRNGKey(0)
    k_param, k_x = jax.random.split(key)
    params = init_params(k_param)

    B, T = 4, 8
    x = jax.random.normal(k_x, (B, T, INPUT_SIZE), jnp.float32)

    out = lstm_model_forward(x, params)
    out = jax.block_until_ready(out)

    ref = reference_forward(x, params)
    assert out.shape == (B, OUTPUT_SIZE)
    assert jnp.allclose(out, ref, atol=1e-5, rtol=1e-5), (out, ref)

    print("KERNEL_OK")
</pallas_src>

<mosaic_0001>
module attributes {stable_mosaic.version = 11 : i64} {
  func.func @_lstm_kernel(%arg0: memref<8x8x1xf32, #tpu.memory_space<vmem>>, %arg1: memref<1x512xf32, #tpu.memory_space<vmem>>, %arg2: memref<128x512xf32, #tpu.memory_space<vmem>>, %arg3: memref<1x512xf32, #tpu.memory_space<vmem>>, %arg4: memref<256x512xf32, #tpu.memory_space<vmem>>, %arg5: memref<1x512xf32, #tpu.memory_space<vmem>>, %arg6: memref<128x1xf32, #tpu.memory_space<vmem>>, %arg7: memref<1x1xf32, #tpu.memory_space<vmem>>, %arg8: memref<8x1xf32, #tpu.memory_space<vmem>>) attributes {dimension_semantics = [], scalar_prefetch = 0 : i64, scratch_operands = 0 : i64, tpu.core_type = #tpu.core_type<tc>} {
    %c0 = arith.constant 0 : index
    %c0_0 = arith.constant 0 : index
    %0 = vector.load %arg1[%c0, %c0_0] : memref<1x512xf32, #tpu.memory_space<vmem>>, vector<1x512xf32>
    %1 = vector.shape_cast %0 : vector<1x512xf32> to vector<1x512xf32>
    %2 = vector.broadcast %1 : vector<1x512xf32> to vector<8x512xf32>
    %c0_1 = arith.constant 0 : index
    %c0_2 = arith.constant 0 : index
    %3 = vector.load %arg3[%c0_1, %c0_2] : memref<1x512xf32, #tpu.memory_space<vmem>>, vector<1x512xf32>
    %4 = vector.shape_cast %3 : vector<1x512xf32> to vector<1x512xf32>
    %5 = vector.broadcast %4 : vector<1x512xf32> to vector<8x512xf32>
    %c0_3 = arith.constant 0 : index
    %c0_4 = arith.constant 0 : index
    %6 = vector.load %arg5[%c0_3, %c0_4] : memref<1x512xf32, #tpu.memory_space<vmem>>, vector<1x512xf32>
    %7 = vector.shape_cast %6 : vector<1x512xf32> to vector<1x512xf32>
    %8 = vector.broadcast %7 : vector<1x512xf32> to vector<8x512xf32>
    %cst = arith.constant 0.000000e+00 : f32
    %9 = vector.broadcast %cst : f32 to vector<8x128xf32>
    %c0_i32 = arith.constant 0 : i32
    %10 = arith.index_cast %c0_i32 : i32 to index
    %c0_5 = arith.constant 0 : index
    %c0_6 = arith.constant 0 : index
    %11 = vector.load %arg0[%10, %c0_5, %c0_6] : memref<8x8x1xf32, #tpu.memory_space<vmem>>, vector<1x8x1xf32>
    %12 = vector.shape_cast %11 : vector<1x8x1xf32> to vector<8x1xf32>
    %13 = vector.broadcast %12 : vector<8x1xf32> to vector<8x512xf32>
    %14 = arith.mulf %13, %2 : vector<8x512xf32>
    %c0_7 = arith.constant 0 : index
    %c0_8 = arith.constant 0 : index
    %15 = vector.load %arg2[%c0_7, %c0_8] : memref<128x512xf32, #tpu.memory_space<vmem>>, vector<128x512xf32>
    %cst_9 = arith.constant dense<0.000000e+00> : vector<8x512xf32>
    %16 = tpu.matmul %9, %15, %cst_9 {dimension_numbers = #tpu.dot_dimension_numbers<[1], [0], [0], [1], [0, 0, 1, 1], [], []>} : vector<8x128xf32>, vector<128x512xf32>, vector<8x512xf32> -> vector<8x512xf32>
    %17 = arith.addf %14, %16 : vector<8x512xf32>
    %18 = arith.addf %17, %5 : vector<8x512xf32>
    %19 = vector.extract_strided_slice %18 {offsets = [0, 0], sizes = [8, 128], strides = [1, 1]} : vector<8x512xf32> to vector<8x128xf32>
    %20 = arith.negf %19 : vector<8x128xf32>
    %21 = math.exp %20 : vector<8x128xf32>
    %cst_10 = arith.constant 1.000000e+00 : f32
    %22 = vector.broadcast %cst_10 : f32 to vector<8x128xf32>
    %23 = arith.addf %22, %21 : vector<8x128xf32>
    %24 = arith.divf %22, %23 : vector<8x128xf32>
    %25 = vector.extract_strided_slice %18 {offsets = [0, 128], sizes = [8, 128], strides = [1, 1]} : vector<8x512xf32> to vector<8x128xf32>
    %26 = arith.negf %25 : vector<8x128xf32>
    %27 = math.exp %26 : vector<8x128xf32>
    %cst_11 = arith.constant 1.000000e+00 : f32
    %28 = vector.broadcast %cst_11 : f32 to vector<8x128xf32>
    %29 = arith.addf %28, %27 : vector<8x128xf32>
    %30 = arith.divf %28, %29 : vector<8x128xf32>
    %31 = vector.extract_strided_slice %18 {offsets = [0, 256], sizes = [8, 128], strides = [1, 1]} : vector<8x512xf32> to vector<8x128xf32>
    %32 = math.tanh %31 : vector<8x128xf32>
    %33 = vector.extract_strided_slice %18 {offsets = [0, 384], sizes = [8, 128], strides = [1, 1]} : vector<8x512xf32> to vector<8x128xf32>
    %34 = arith.negf %33 : vector<8x128xf32>
    %35 = math.exp %34 : vector<8x128xf32>
    %cst_12 = arith.constant 1.000000e+00 : f32
    %36 = vector.broadcast %cst_12 : f32 to vector<8x128xf32>
    %37 = arith.addf %36, %35 : vector<8x128xf32>
    %38 = arith.divf %36, %37 : vector<8x128xf32>
    %39 = arith.mulf %30, %9 : vector<8x128xf32>
    %40 = arith.mulf %24, %32 : vector<8x128xf32>
    %41 = arith.addf %39, %40 : vector<8x128xf32>
    %42 = math.tanh %41 : vector<8x128xf32>
    %43 = arith.mulf %38, %42 : vector<8x128xf32>
    %44 = tpu.concatenate %43, %9 in 1 : vector<8x128xf32>, vector<8x128xf32> -> vector<8x256xf32>
    %c0_13 = arith.constant 0 : index
    %c0_14 = arith.constant 0 : index
    %45 = vector.load %arg4[%c0_13, %c0_14] : memref<256x512xf32, #tpu.memory_space<vmem>>, vector<256x512xf32>
    %cst_15 = arith.constant dense<0.000000e+00> : vector<8x512xf32>
    %46 = tpu.matmul %44, %45, %cst_15 {dimension_numbers = #tpu.dot_dimension_numbers<[1], [0], [0], [1], [0, 0, 1, 1], [], []>} : vector<8x256xf32>, vector<256x512xf32>, vector<8x512xf32> -> vector<8x512xf32>
    %47 = arith.addf %46, %8 : vector<8x512xf32>
    %48 = vector.extract_strided_slice %47 {offsets = [0, 0], sizes = [8, 128], strides = [1, 1]} : vector<8x512xf32> to vector<8x128xf32>
    %49 = arith.negf %48 : vector<8x128xf32>
    %50 = math.exp %49 : vector<8x128xf32>
    %cst_16 = arith.constant 1.000000e+00 : f32
    %51 = vector.broadcast %cst_16 : f32 to vector<8x128xf32>
    %52 = arith.addf %51, %50 : vector<8x128xf32>
    %53 = arith.divf %51, %52 : vector<8x128xf32>
    %54 = vector.extract_strided_slice %47 {offsets = [0, 128], sizes = [8, 128], strides = [1, 1]} : vector<8x512xf32> to vector<8x128xf32>
    %55 = arith.negf %54 : vector<8x128xf32>
    %56 = math.exp %55 : vector<8x128xf32>
    %cst_17 = arith.constant 1.000000e+00 : f32
    %57 = vector.broadcast %cst_17 : f32 to vector<8x128xf32>
    %58 = arith.addf %57, %56 : vector<8x128xf32>
    %59 = arith.divf %57, %58 : vector<8x128xf32>
    %60 = vector.extract_strided_slice %47 {offsets = [0, 256], sizes = [8, 128], strides = [1, 1]} : vector<8x512xf32> to vector<8x128xf32>
    %61 = math.tanh %60 : vector<8x128xf32>
    %62 = vector.extract_strided_slice %47 {offsets = [0, 384], sizes = [8, 128], strides = [1, 1]} : vector<8x512xf32> to vector<8x128xf32>
    %63 = arith.negf %62 : vector<8x128xf32>
    %64 = math.exp %63 : vector<8x128xf32>
    %cst_18 = arith.constant 1.000000e+00 : f32
    %65 = vector.broadcast %cst_18 : f32 to vector<8x128xf32>
    %66 = arith.addf %65, %64 : vector<8x128xf32>
    %67 = arith.divf %65, %66 : vector<8x128xf32>
    %68 = arith.mulf %59, %9 : vector<8x128xf32>
    %69 = arith.mulf %53, %61 : vector<8x128xf32>
    %70 = arith.addf %68, %69 : vector<8x128xf32>
    %71 = math.tanh %70 : vector<8x128xf32>
    %72 = arith.mulf %67, %71 : vector<8x128xf32>
    %c1_i32 = arith.constant 1 : i32
    %73 = arith.index_cast %c1_i32 : i32 to index
    %c0_19 = arith.constant 0 : index
    %c0_20 = arith.constant 0 : index
    %74 = vector.load %arg0[%73, %c0_19, %c0_20] : memref<8x8x1xf32, #tpu.memory_space<vmem>>, vector<1x8x1xf32>
    %75 = vector.shape_cast %74 : vector<1x8x1xf32> to vector<8x1xf32>
    %76 = vector.broadcast %75 : vector<8x1xf32> to vector<8x512xf32>
    %77 = arith.mulf %76, %2 : vector<8x512xf32>
    %c0_21 = arith.constant 0 : index
    %c0_22 = arith.constant 0 : index
    %78 = vector.load %arg2[%c0_21, %c0_22] : memref<128x512xf32, #tpu.memory_space<vmem>>, vector<128x512xf32>
    %cst_23 = arith.constant dense<0.000000e+00> : vector<8x512xf32>
    %79 = tpu.matmul %43, %78, %cst_23 {dimension_numbers = #tpu.dot_dimension_numbers<[1], [0], [0], [1], [0, 0, 1, 1], [], []>} : vector<8x128xf32>, vector<128x512xf32>, vector<8x512xf32> -> vector<8x512xf32>
    %80 = arith.addf %77, %79 : vector<8x512xf32>
    %81 = arith.addf %80, %5 : vector<8x512xf32>
    %82 = vector.extract_strided_slice %81 {offsets = [0, 0], sizes = [8, 128], strides = [1, 1]} : vector<8x512xf32> to vector<8x128xf32>
    %83 = arith.negf %82 : vector<8x128xf32>
    %84 = math.exp %83 : vector<8x128xf32>
    %cst_24 = arith.constant 1.000000e+00 : f32
    %85 = vector.broadcast %cst_24 : f32 to vector<8x128xf32>
    %86 = arith.addf %85, %84 : vector<8x128xf32>
    %87 = arith.divf %85, %86 : vector<8x128xf32>
    %88 = vector.extract_strided_slice %81 {offsets = [0, 128], sizes = [8, 128], strides = [1, 1]} : vector<8x512xf32> to vector<8x128xf32>
    %89 = arith.negf %88 : vector<8x128xf32>
    %90 = math.exp %89 : vector<8x128xf32>
    %cst_25 = arith.constant 1.000000e+00 : f32
    %91 = vector.broadcast %cst_25 : f32 to vector<8x128xf32>
    %92 = arith.addf %91, %90 : vector<8x128xf32>
    %93 = arith.divf %91, %92 : vector<8x128xf32>
    %94 = vector.extract_strided_slice %81 {offsets = [0, 256], sizes = [8, 128], strides = [1, 1]} : vector<8x512xf32> to vector<8x128xf32>
    %95 = math.tanh %94 : vector<8x128xf32>
    %96 = vector.extract_strided_slice %81 {offsets = [0, 384], sizes = [8, 128], strides = [1, 1]} : vector<8x512xf32> to vector<8x128xf32>
    %97 = arith.negf %96 : vector<8x128xf32>
    %98 = math.exp %97 : vector<8x128xf32>
    %cst_26 = arith.constant 1.000000e+00 : f32
    %99 = vector.broadcast %cst_26 : f32 to vector<8x128xf32>
    %100 = arith.addf %99, %98 : vector<8x128xf32>
    %101 = arith.divf %99, %100 : vector<8x128xf32>
    %102 = arith.mulf %93, %41 : vector<8x128xf32>
    %103 = arith.mulf %87, %95 : vector<8x128xf32>
    %104 = arith.addf %102, %103 : vector<8x128xf32>
    %105 = math.tanh %104 : vector<8x128xf32>
    %106 = arith.mulf %101, %105 : vector<8x128xf32>
    %107 = tpu.concatenate %106, %72 in 1 : vector<8x128xf32>, vector<8x128xf32> -> vector<8x256xf32>
    %c0_27 = arith.constant 0 : index
    %c0_28 = arith.constant 0 : index
    %108 = vector.load %arg4[%c0_27, %c0_28] : memref<256x512xf32, #tpu.memory_space<vmem>>, vector<256x512xf32>
    %cst_29 = arith.constant dense<0.000000e+00> : vector<8x512xf32>
    %109 = tpu.matmul %107, %108, %cst_29 {dimension_numbers = #tpu.dot_dimension_numbers<[1], [0], [0], [1], [0, 0, 1, 1], [], []>} : vector<8x256xf32>, vector<256x512xf32>, vector<8x512xf32> -> vector<8x512xf32>
    %110 = arith.addf %109, %8 : vector<8x512xf32>
    %111 = vector.extract_strided_slice %110 {offsets = [0, 0], sizes = [8, 128], strides = [1, 1]} : vector<8x512xf32> to vector<8x128xf32>
    %112 = arith.negf %111 : vector<8x128xf32>
    %113 = math.exp %112 : vector<8x128xf32>
    %cst_30 = arith.constant 1.000000e+00 : f32
    %114 = vector.broadcast %cst_30 : f32 to vector<8x128xf32>
    %115 = arith.addf %114, %113 : vector<8x128xf32>
    %116 = arith.divf %114, %115 : vector<8x128xf32>
    %117 = vector.extract_strided_slice %110 {offsets = [0, 128], sizes = [8, 128], strides = [1, 1]} : vector<8x512xf32> to vector<8x128xf32>
    %118 = arith.negf %117 : vector<8x128xf32>
    %119 = math.exp %118 : vector<8x128xf32>
    %cst_31 = arith.constant 1.000000e+00 : f32
    %120 = vector.broadcast %cst_31 : f32 to vector<8x128xf32>
    %121 = arith.addf %120, %119 : vector<8x128xf32>
    %122 = arith.divf %120, %121 : vector<8x128xf32>
    %123 = vector.extract_strided_slice %110 {offsets = [0, 256], sizes = [8, 128], strides = [1, 1]} : vector<8x512xf32> to vector<8x128xf32>
    %124 = math.tanh %123 : vector<8x128xf32>
    %125 = vector.extract_strided_slice %110 {offsets = [0, 384], sizes = [8, 128], strides = [1, 1]} : vector<8x512xf32> to vector<8x128xf32>
    %126 = arith.negf %125 : vector<8x128xf32>
    %127 = math.exp %126 : vector<8x128xf32>
    %cst_32 = arith.constant 1.000000e+00 : f32
    %128 = vector.broadcast %cst_32 : f32 to vector<8x128xf32>
    %129 = arith.addf %128, %127 : vector<8x128xf32>
    %130 = arith.divf %128, %129 : vector<8x128xf32>
    %131 = arith.mulf %122, %70 : vector<8x128xf32>
    %132 = arith.mulf %116, %124 : vector<8x128xf32>
    %133 = arith.addf %131, %132 : vector<8x128xf32>
    %134 = math.tanh %133 : vector<8x128xf32>
    %135 = arith.mulf %130, %134 : vector<8x128xf32>
    %c2_i32 = arith.constant 2 : i32
    %136 = arith.index_cast %c2_i32 : i32 to index
    %c0_33 = arith.constant 0 : index
    %c0_34 = arith.constant 0 : index
    %137 = vector.load %arg0[%136, %c0_33, %c0_34] : memref<8x8x1xf32, #tpu.memory_space<vmem>>, vector<1x8x1xf32>
    %138 = vector.shape_cast %137 : vector<1x8x1xf32> to vector<8x1xf32>
    %139 = vector.broadcast %138 : vector<8x1xf32> to vector<8x512xf32>
    %140 = arith.mulf %139, %2 : vector<8x512xf32>
    %c0_35 = arith.constant 0 : index
    %c0_36 = arith.constant 0 : index
    %141 = vector.load %arg2[%c0_35, %c0_36] : memref<128x512xf32, #tpu.memory_space<vmem>>, vector<128x512xf32>
    %cst_37 = arith.constant dense<0.000000e+00> : vector<8x512xf32>
    %142 = tpu.matmul %106, %141, %cst_37 {dimension_numbers = #tpu.dot_dimension_numbers<[1], [0], [0], [1], [0, 0, 1, 1], [], []>} : vector<8x128xf32>, vector<128x512xf32>, vector<8x512xf32> -> vector<8x512xf32>
    %143 = arith.addf %140, %142 : vector<8x512xf32>
    %144 = arith.addf %143, %5 : vector<8x512xf32>
    %145 = vector.extract_strided_slice %144 {offsets = [0, 0], sizes = [8, 128], strides = [1, 1]} : vector<8x512xf32> to vector<8x128xf32>
    %146 = arith.negf %145 : vector<8x128xf32>
    %147 = math.exp %146 : vector<8x128xf32>
    %cst_38 = arith.constant 1.000000e+00 : f32
    %148 = vector.broadcast %cst_38 : f32 to vector<8x128xf32>
    %149 = arith.addf %148, %147 : vector<8x128xf32>
    %150 = arith.divf %148, %149 : vector<8x128xf32>
    %151 = vector.extract_strided_slice %144 {offsets = [0, 128], sizes = [8, 128], strides = [1, 1]} : vector<8x512xf32> to vector<8x128xf32>
    %152 = arith.negf %151 : vector<8x128xf32>
    %153 = math.exp %152 : vector<8x128xf32>
    %cst_39 = arith.constant 1.000000e+00 : f32
    %154 = vector.broadcast %cst_39 : f32 to vector<8x128xf32>
    %155 = arith.addf %154, %153 : vector<8x128xf32>
    %156 = arith.divf %154, %155 : vector<8x128xf32>
    %157 = vector.extract_strided_slice %144 {offsets = [0, 256], sizes = [8, 128], strides = [1, 1]} : vector<8x512xf32> to vector<8x128xf32>
    %158 = math.tanh %157 : vector<8x128xf32>
    %159 = vector.extract_strided_slice %144 {offsets = [0, 384], sizes = [8, 128], strides = [1, 1]} : vector<8x512xf32> to vector<8x128xf32>
    %160 = arith.negf %159 : vector<8x128xf32>
    %161 = math.exp %160 : vector<8x128xf32>
    %cst_40 = arith.constant 1.000000e+00 : f32
    %162 = vector.broadcast %cst_40 : f32 to vector<8x128xf32>
    %163 = arith.addf %162, %161 : vector<8x128xf32>
    %164 = arith.divf %162, %163 : vector<8x128xf32>
    %165 = arith.mulf %156, %104 : vector<8x128xf32>
    %166 = arith.mulf %150, %158 : vector<8x128xf32>
    %167 = arith.addf %165, %166 : vector<8x128xf32>
    %168 = math.tanh %167 : vector<8x128xf32>
    %169 = arith.mulf %164, %168 : vector<8x128xf32>
    %170 = tpu.concatenate %169, %135 in 1 : vector<8x128xf32>, vector<8x128xf32> -> vector<8x256xf32>
    %c0_41 = arith.constant 0 : index
    %c0_42 = arith.constant 0 : index
    %171 = vector.load %arg4[%c0_41, %c0_42] : memref<256x512xf32, #tpu.memory_space<vmem>>, vector<256x512xf32>
    %cst_43 = arith.constant dense<0.000000e+00> : vector<8x512xf32>
    %172 = tpu.matmul %170, %171, %cst_43 {dimension_numbers = #tpu.dot_dimension_numbers<[1], [0], [0], [1], [0, 0, 1, 1], [], []>} : vector<8x256xf32>, vector<256x512xf32>, vector<8x512xf32> -> vector<8x512xf32>
    %173 = arith.addf %172, %8 : vector<8x512xf32>
    %174 = vector.extract_strided_slice %173 {offsets = [0, 0], sizes = [8, 128], strides = [1, 1]} : vector<8x512xf32> to vector<8x128xf32>
    %175 = arith.negf %174 : vector<8x128xf32>
    %176 = math.exp %175 : vector<8x128xf32>
    %cst_44 = arith.constant 1.000000e+00 : f32
    %177 = vector.broadcast %cst_44 : f32 to vector<8x128xf32>
    %178 = arith.addf %177, %176 : vector<8x128xf32>
    %179 = arith.divf %177, %178 : vector<8x128xf32>
    %180 = vector.extract_strided_slice %173 {offsets = [0, 128], sizes = [8, 128], strides = [1, 1]} : vector<8x512xf32> to vector<8x128xf32>
    %181 = arith.negf %180 : vector<8x128xf32>
    %182 = math.exp %181 : vector<8x128xf32>
    %cst_45 = arith.constant 1.000000e+00 : f32
    %183 = vector.broadcast %cst_45 : f32 to vector<8x128xf32>
    %184 = arith.addf %183, %182 : vector<8x128xf32>
    %185 = arith.divf %183, %184 : vector<8x128xf32>
    %186 = vector.extract_strided_slice %173 {offsets = [0, 256], sizes = [8, 128], strides = [1, 1]} : vector<8x512xf32> to vector<8x128xf32>
    %187 = math.tanh %186 : vector<8x128xf32>
    %188 = vector.extract_strided_slice %173 {offsets = [0, 384], sizes = [8, 128], strides = [1, 1]} : vector<8x512xf32> to vector<8x128xf32>
    %189 = arith.negf %188 : vector<8x128xf32>
    %190 = math.exp %189 : vector<8x128xf32>
    %cst_46 = arith.constant 1.000000e+00 : f32
    %191 = vector.broadcast %cst_46 : f32 to vector<8x128xf32>
    %192 = arith.addf %191, %190 : vector<8x128xf32>
    %193 = arith.divf %191, %192 : vector<8x128xf32>
    %194 = arith.mulf %185, %133 : vector<8x128xf32>
    %195 = arith.mulf %179, %187 : vector<8x128xf32>
    %196 = arith.addf %194, %195 : vector<8x128xf32>
    %197 = math.tanh %196 : vector<8x128xf32>
    %198 = arith.mulf %193, %197 : vector<8x128xf32>
    %c3_i32 = arith.constant 3 : i32
    %199 = arith.index_cast %c3_i32 : i32 to index
    %c0_47 = arith.constant 0 : index
    %c0_48 = arith.constant 0 : index
    %200 = vector.load %arg0[%199, %c0_47, %c0_48] : memref<8x8x1xf32, #tpu.memory_space<vmem>>, vector<1x8x1xf32>
    %201 = vector.shape_cast %200 : vector<1x8x1xf32> to vector<8x1xf32>
    %202 = vector.broadcast %201 : vector<8x1xf32> to vector<8x512xf32>
    %203 = arith.mulf %202, %2 : vector<8x512xf32>
    %c0_49 = arith.constant 0 : index
    %c0_50 = arith.constant 0 : index
    %204 = vector.load %arg2[%c0_49, %c0_50] : memref<128x512xf32, #tpu.memory_space<vmem>>, vector<128x512xf32>
    %cst_51 = arith.constant dense<0.000000e+00> : vector<8x512xf32>
    %205 = tpu.matmul %169, %204, %cst_51 {dimension_numbers = #tpu.dot_dimension_numbers<[1], [0], [0], [1], [0, 0, 1, 1], [], []>} : vector<8x128xf32>, vector<128x512xf32>, vector<8x512xf32> -> vector<8x512xf32>
    %206 = arith.addf %203, %205 : vector<8x512xf32>
    %207 = arith.addf %206, %5 : vector<8x512xf32>
    %208 = vector.extract_strided_slice %207 {offsets = [0, 0], sizes = [8, 128], strides = [1, 1]} : vector<8x512xf32> to vector<8x128xf32>
    %209 = arith.negf %208 : vector<8x128xf32>
    %210 = math.exp %209 : vector<8x128xf32>
    %cst_52 = arith.constant 1.000000e+00 : f32
    %211 = vector.broadcast %cst_52 : f32 to vector<8x128xf32>
    %212 = arith.addf %211, %210 : vector<8x128xf32>
    %213 = arith.divf %211, %212 : vector<8x128xf32>
    %214 = vector.extract_strided_slice %207 {offsets = [0, 128], sizes = [8, 128], strides = [1, 1]} : vector<8x512xf32> to vector<8x128xf32>
    %215 = arith.negf %214 : vector<8x128xf32>
    %216 = math.exp %215 : vector<8x128xf32>
    %cst_53 = arith.constant 1.000000e+00 : f32
    %217 = vector.broadcast %cst_53 : f32 to vector<8x128xf32>
    %218 = arith.addf %217, %216 : vector<8x128xf32>
    %219 = arith.divf %217, %218 : vector<8x128xf32>
    %220 = vector.extract_strided_slice %207 {offsets = [0, 256], sizes = [8, 128], strides = [1, 1]} : vector<8x512xf32> to vector<8x128xf32>
    %221 = math.tanh %220 : vector<8x128xf32>
    %222 = vector.extract_strided_slice %207 {offsets = [0, 384], sizes = [8, 128], strides = [1, 1]} : vector<8x512xf32> to vector<8x128xf32>
    %223 = arith.negf %222 : vector<8x128xf32>
    %224 = math.exp %223 : vector<8x128xf32>
    %cst_54 = arith.constant 1.000000e+00 : f32
    %225 = vector.broadcast %cst_54 : f32 to vector<8x128xf32>
    %226 = arith.addf %225, %224 : vector<8x128xf32>
    %227 = arith.divf %225, %226 : vector<8x128xf32>
    %228 = arith.mulf %219, %167 : vector<8x128xf32>
    %229 = arith.mulf %213, %221 : vector<8x128xf32>
    %230 = arith.addf %228, %229 : vector<8x128xf32>
    %231 = math.tanh %230 : vector<8x128xf32>
    %232 = arith.mulf %227, %231 : vector<8x128xf32>
    %233 = tpu.concatenate %232, %198 in 1 : vector<8x128xf32>, vector<8x128xf32> -> vector<8x256xf32>
    %c0_55 = arith.constant 0 : index
    %c0_56 = arith.constant 0 : index
    %234 = vector.load %arg4[%c0_55, %c0_56] : memref<256x512xf32, #tpu.memory_space<vmem>>, vector<256x512xf32>
    %cst_57 = arith.constant dense<0.000000e+00> : vector<8x512xf32>
    %235 = tpu.matmul %233, %234, %cst_57 {dimension_numbers = #tpu.dot_dimension_numbers<[1], [0], [0], [1], [0, 0, 1, 1], [], []>} : vector<8x256xf32>, vector<256x512xf32>, vector<8x512xf32> -> vector<8x512xf32>
    %236 = arith.addf %235, %8 : vector<8x512xf32>
    %237 = vector.extract_strided_slice %236 {offsets = [0, 0], sizes = [8, 128], strides = [1, 1]} : vector<8x512xf32> to vector<8x128xf32>
    %238 = arith.negf %237 : vector<8x128xf32>
    %239 = math.exp %238 : vector<8x128xf32>
    %cst_58 = arith.constant 1.000000e+00 : f32
    %240 = vector.broadcast %cst_58 : f32 to vector<8x128xf32>
    %241 = arith.addf %240, %239 : vector<8x128xf32>
    %242 = arith.divf %240, %241 : vector<8x128xf32>
    %243 = vector.extract_strided_slice %236 {offsets = [0, 128], sizes = [8, 128], strides = [1, 1]} : vector<8x512xf32> to vector<8x128xf32>
    %244 = arith.negf %243 : vector<8x128xf32>
    %245 = math.exp %244 : vector<8x128xf32>
    %cst_59 = arith.constant 1.000000e+00 : f32
    %246 = vector.broadcast %cst_59 : f32 to vector<8x128xf32>
    %247 = arith.addf %246, %245 : vector<8x128xf32>
    %248 = arith.divf %246, %247 : vector<8x128xf32>
    %249 = vector.extract_strided_slice %236 {offsets = [0, 256], sizes = [8, 128], strides = [1, 1]} : vector<8x512xf32> to vector<8x128xf32>
    %250 = math.tanh %249 : vector<8x128xf32>
    %251 = vector.extract_strided_slice %236 {offsets = [0, 384], sizes = [8, 128], strides = [1, 1]} : vector<8x512xf32> to vector<8x128xf32>
    %252 = arith.negf %251 : vector<8x128xf32>
    %253 = math.exp %252 : vector<8x128xf32>
    %cst_60 = arith.constant 1.000000e+00 : f32
    %254 = vector.broadcast %cst_60 : f32 to vector<8x128xf32>
    %255 = arith.addf %254, %253 : vector<8x128xf32>
    %256 = arith.divf %254, %255 : vector<8x128xf32>
    %257 = arith.mulf %248, %196 : vector<8x128xf32>
    %258 = arith.mulf %242, %250 : vector<8x128xf32>
    %259 = arith.addf %257, %258 : vector<8x128xf32>
    %260 = math.tanh %259 : vector<8x128xf32>
    %261 = arith.mulf %256, %260 : vector<8x128xf32>
    %c4_i32 = arith.constant 4 : i32
    %262 = arith.index_cast %c4_i32 : i32 to index
    %c0_61 = arith.constant 0 : index
    %c0_62 = arith.constant 0 : index
    %263 = vector.load %arg0[%262, %c0_61, %c0_62] : memref<8x8x1xf32, #tpu.memory_space<vmem>>, vector<1x8x1xf32>
    %264 = vector.shape_cast %263 : vector<1x8x1xf32> to vector<8x1xf32>
    %265 = vector.broadcast %264 : vector<8x1xf32> to vector<8x512xf32>
    %266 = arith.mulf %265, %2 : vector<8x512xf32>
    %c0_63 = arith.constant 0 : index
    %c0_64 = arith.constant 0 : index
    %267 = vector.load %arg2[%c0_63, %c0_64] : memref<128x512xf32, #tpu.memory_space<vmem>>, vector<128x512xf32>
    %cst_65 = arith.constant dense<0.000000e+00> : vector<8x512xf32>
    %268 = tpu.matmul %232, %267, %cst_65 {dimension_numbers = #tpu.dot_dimension_numbers<[1], [0], [0], [1], [0, 0, 1, 1], [], []>} : vector<8x128xf32>, vector<128x512xf32>, vector<8x512xf32> -> vector<8x512xf32>
    %269 = arith.addf %266, %268 : vector<8x512xf32>
    %270 = arith.addf %269, %5 : vector<8x512xf32>
    %271 = vector.extract_strided_slice %270 {offsets = [0, 0], sizes = [8, 128], strides = [1, 1]} : vector<8x512xf32> to vector<8x128xf32>
    %272 = arith.negf %271 : vector<8x128xf32>
    %273 = math.exp %272 : vector<8x128xf32>
    %cst_66 = arith.constant 1.000000e+00 : f32
    %274 = vector.broadcast %cst_66 : f32 to vector<8x128xf32>
    %275 = arith.addf %274, %273 : vector<8x128xf32>
    %276 = arith.divf %274, %275 : vector<8x128xf32>
    %277 = vector.extract_strided_slice %270 {offsets = [0, 128], sizes = [8, 128], strides = [1, 1]} : vector<8x512xf32> to vector<8x128xf32>
    %278 = arith.negf %277 : vector<8x128xf32>
    %279 = math.exp %278 : vector<8x128xf32>
    %cst_67 = arith.constant 1.000000e+00 : f32
    %280 = vector.broadcast %cst_67 : f32 to vector<8x128xf32>
    %281 = arith.addf %280, %279 : vector<8x128xf32>
    %282 = arith.divf %280, %281 : vector<8x128xf32>
    %283 = vector.extract_strided_slice %270 {offsets = [0, 256], sizes = [8, 128], strides = [1, 1]} : vector<8x512xf32> to vector<8x128xf32>
    %284 = math.tanh %283 : vector<8x128xf32>
    %285 = vector.extract_strided_slice %270 {offsets = [0, 384], sizes = [8, 128], strides = [1, 1]} : vector<8x512xf32> to vector<8x128xf32>
    %286 = arith.negf %285 : vector<8x128xf32>
    %287 = math.exp %286 : vector<8x128xf32>
    %cst_68 = arith.constant 1.000000e+00 : f32
    %288 = vector.broadcast %cst_68 : f32 to vector<8x128xf32>
    %289 = arith.addf %288, %287 : vector<8x128xf32>
    %290 = arith.divf %288, %289 : vector<8x128xf32>
    %291 = arith.mulf %282, %230 : vector<8x128xf32>
    %292 = arith.mulf %276, %284 : vector<8x128xf32>
    %293 = arith.addf %291, %292 : vector<8x128xf32>
    %294 = math.tanh %293 : vector<8x128xf32>
    %295 = arith.mulf %290, %294 : vector<8x128xf32>
    %296 = tpu.concatenate %295, %261 in 1 : vector<8x128xf32>, vector<8x128xf32> -> vector<8x256xf32>
    %c0_69 = arith.constant 0 : index
    %c0_70 = arith.constant 0 : index
    %297 = vector.load %arg4[%c0_69, %c0_70] : memref<256x512xf32, #tpu.memory_space<vmem>>, vector<256x512xf32>
    %cst_71 = arith.constant dense<0.000000e+00> : vector<8x512xf32>
    %298 = tpu.matmul %296, %297, %cst_71 {dimension_numbers = #tpu.dot_dimension_numbers<[1], [0], [0], [1], [0, 0, 1, 1], [], []>} : vector<8x256xf32>, vector<256x512xf32>, vector<8x512xf32> -> vector<8x512xf32>
    %299 = arith.addf %298, %8 : vector<8x512xf32>
    %300 = vector.extract_strided_slice %299 {offsets = [0, 0], sizes = [8, 128], strides = [1, 1]} : vector<8x512xf32> to vector<8x128xf32>
    %301 = arith.negf %300 : vector<8x128xf32>
    %302 = math.exp %301 : vector<8x128xf32>
    %cst_72 = arith.constant 1.000000e+00 : f32
    %303 = vector.broadcast %cst_72 : f32 to vector<8x128xf32>
    %304 = arith.addf %303, %302 : vector<8x128xf32>
    %305 = arith.divf %303, %304 : vector<8x128xf32>
    %306 = vector.extract_strided_slice %299 {offsets = [0, 128], sizes = [8, 128], strides = [1, 1]} : vector<8x512xf32> to vector<8x128xf32>
    %307 = arith.negf %306 : vector<8x128xf32>
    %308 = math.exp %307 : vector<8x128xf32>
    %cst_73 = arith.constant 1.000000e+00 : f32
    %309 = vector.broadcast %cst_73 : f32 to vector<8x128xf32>
    %310 = arith.addf %309, %308 : vector<8x128xf32>
    %311 = arith.divf %309, %310 : vector<8x128xf32>
    %312 = vector.extract_strided_slice %299 {offsets = [0, 256], sizes = [8, 128], strides = [1, 1]} : vector<8x512xf32> to vector<8x128xf32>
    %313 = math.tanh %312 : vector<8x128xf32>
    %314 = vector.extract_strided_slice %299 {offsets = [0, 384], sizes = [8, 128], strides = [1, 1]} : vector<8x512xf32> to vector<8x128xf32>
    %315 = arith.negf %314 : vector<8x128xf32>
    %316 = math.exp %315 : vector<8x128xf32>
    %cst_74 = arith.constant 1.000000e+00 : f32
    %317 = vector.broadcast %cst_74 : f32 to vector<8x128xf32>
    %318 = arith.addf %317, %316 : vector<8x128xf32>
    %319 = arith.divf %317, %318 : vector<8x128xf32>
    %320 = arith.mulf %311, %259 : vector<8x128xf32>
    %321 = arith.mulf %305, %313 : vector<8x128xf32>
    %322 = arith.addf %320, %321 : vector<8x128xf32>
    %323 = math.tanh %322 : vector<8x128xf32>
    %324 = arith.mulf %319, %323 : vector<8x128xf32>
    %c5_i32 = arith.constant 5 : i32
    %325 = arith.index_cast %c5_i32 : i32 to index
    %c0_75 = arith.constant 0 : index
    %c0_76 = arith.constant 0 : index
    %326 = vector.load %arg0[%325, %c0_75, %c0_76] : memref<8x8x1xf32, #tpu.memory_space<vmem>>, vector<1x8x1xf32>
    %327 = vector.shape_cast %326 : vector<1x8x1xf32> to vector<8x1xf32>
    %328 = vector.broadcast %327 : vector<8x1xf32> to vector<8x512xf32>
    %329 = arith.mulf %328, %2 : vector<8x512xf32>
    %c0_77 = arith.constant 0 : index
    %c0_78 = arith.constant 0 : index
    %330 = vector.load %arg2[%c0_77, %c0_78] : memref<128x512xf32, #tpu.memory_space<vmem>>, vector<128x512xf32>
    %cst_79 = arith.constant dense<0.000000e+00> : vector<8x512xf32>
    %331 = tpu.matmul %295, %330, %cst_79 {dimension_numbers = #tpu.dot_dimension_numbers<[1], [0], [0], [1], [0, 0, 1, 1], [], []>} : vector<8x128xf32>, vector<128x512xf32>, vector<8x512xf32> -> vector<8x512xf32>
    %332 = arith.addf %329, %331 : vector<8x512xf32>
    %333 = arith.addf %332, %5 : vector<8x512xf32>
    %334 = vector.extract_strided_slice %333 {offsets = [0, 0], sizes = [8, 128], strides = [1, 1]} : vector<8x512xf32> to vector<8x128xf32>
    %335 = arith.negf %334 : vector<8x128xf32>
    %336 = math.exp %335 : vector<8x128xf32>
    %cst_80 = arith.constant 1.000000e+00 : f32
    %337 = vector.broadcast %cst_80 : f32 to vector<8x128xf32>
    %338 = arith.addf %337, %336 : vector<8x128xf32>
    %339 = arith.divf %337, %338 : vector<8x128xf32>
    %340 = vector.extract_strided_slice %333 {offsets = [0, 128], sizes = [8, 128], strides = [1, 1]} : vector<8x512xf32> to vector<8x128xf32>
    %341 = arith.negf %340 : vector<8x128xf32>
    %342 = math.exp %341 : vector<8x128xf32>
    %cst_81 = arith.constant 1.000000e+00 : f32
    %343 = vector.broadcast %cst_81 : f32 to vector<8x128xf32>
    %344 = arith.addf %343, %342 : vector<8x128xf32>
    %345 = arith.divf %343, %344 : vector<8x128xf32>
    %346 = vector.extract_strided_slice %333 {offsets = [0, 256], sizes = [8, 128], strides = [1, 1]} : vector<8x512xf32> to vector<8x128xf32>
    %347 = math.tanh %346 : vector<8x128xf32>
    %348 = vector.extract_strided_slice %333 {offsets = [0, 384], sizes = [8, 128], strides = [1, 1]} : vector<8x512xf32> to vector<8x128xf32>
    %349 = arith.negf %348 : vector<8x128xf32>
    %350 = math.exp %349 : vector<8x128xf32>
    %cst_82 = arith.constant 1.000000e+00 : f32
    %351 = vector.broadcast %cst_82 : f32 to vector<8x128xf32>
    %352 = arith.addf %351, %350 : vector<8x128xf32>
    %353 = arith.divf %351, %352 : vector<8x128xf32>
    %354 = arith.mulf %345, %293 : vector<8x128xf32>
    %355 = arith.mulf %339, %347 : vector<8x128xf32>
    %356 = arith.addf %354, %355 : vector<8x128xf32>
    %357 = math.tanh %356 : vector<8x128xf32>
    %358 = arith.mulf %353, %357 : vector<8x128xf32>
    %359 = tpu.concatenate %358, %324 in 1 : vector<8x128xf32>, vector<8x128xf32> -> vector<8x256xf32>
    %c0_83 = arith.constant 0 : index
    %c0_84 = arith.constant 0 : index
    %360 = vector.load %arg4[%c0_83, %c0_84] : memref<256x512xf32, #tpu.memory_space<vmem>>, vector<256x512xf32>
    %cst_85 = arith.constant dense<0.000000e+00> : vector<8x512xf32>
    %361 = tpu.matmul %359, %360, %cst_85 {dimension_numbers = #tpu.dot_dimension_numbers<[1], [0], [0], [1], [0, 0, 1, 1], [], []>} : vector<8x256xf32>, vector<256x512xf32>, vector<8x512xf32> -> vector<8x512xf32>
    %362 = arith.addf %361, %8 : vector<8x512xf32>
    %363 = vector.extract_strided_slice %362 {offsets = [0, 0], sizes = [8, 128], strides = [1, 1]} : vector<8x512xf32> to vector<8x128xf32>
    %364 = arith.negf %363 : vector<8x128xf32>
    %365 = math.exp %364 : vector<8x128xf32>
    %cst_86 = arith.constant 1.000000e+00 : f32
    %366 = vector.broadcast %cst_86 : f32 to vector<8x128xf32>
    %367 = arith.addf %366, %365 : vector<8x128xf32>
    %368 = arith.divf %366, %367 : vector<8x128xf32>
    %369 = vector.extract_strided_slice %362 {offsets = [0, 128], sizes = [8, 128], strides = [1, 1]} : vector<8x512xf32> to vector<8x128xf32>
    %370 = arith.negf %369 : vector<8x128xf32>
    %371 = math.exp %370 : vector<8x128xf32>
    %cst_87 = arith.constant 1.000000e+00 : f32
    %372 = vector.broadcast %cst_87 : f32 to vector<8x128xf32>
    %373 = arith.addf %372, %371 : vector<8x128xf32>
    %374 = arith.divf %372, %373 : vector<8x128xf32>
    %375 = vector.extract_strided_slice %362 {offsets = [0, 256], sizes = [8, 128], strides = [1, 1]} : vector<8x512xf32> to vector<8x128xf32>
    %376 = math.tanh %375 : vector<8x128xf32>
    %377 = vector.extract_strided_slice %362 {offsets = [0, 384], sizes = [8, 128], strides = [1, 1]} : vector<8x512xf32> to vector<8x128xf32>
    %378 = arith.negf %377 : vector<8x128xf32>
    %379 = math.exp %378 : vector<8x128xf32>
    %cst_88 = arith.constant 1.000000e+00 : f32
    %380 = vector.broadcast %cst_88 : f32 to vector<8x128xf32>
    %381 = arith.addf %380, %379 : vector<8x128xf32>
    %382 = arith.divf %380, %381 : vector<8x128xf32>
    %383 = arith.mulf %374, %322 : vector<8x128xf32>
    %384 = arith.mulf %368, %376 : vector<8x128xf32>
    %385 = arith.addf %383, %384 : vector<8x128xf32>
    %386 = math.tanh %385 : vector<8x128xf32>
    %387 = arith.mulf %382, %386 : vector<8x128xf32>
    %c6_i32 = arith.constant 6 : i32
    %388 = arith.index_cast %c6_i32 : i32 to index
    %c0_89 = arith.constant 0 : index
    %c0_90 = arith.constant 0 : index
    %389 = vector.load %arg0[%388, %c0_89, %c0_90] : memref<8x8x1xf32, #tpu.memory_space<vmem>>, vector<1x8x1xf32>
    %390 = vector.shape_cast %389 : vector<1x8x1xf32> to vector<8x1xf32>
    %391 = vector.broadcast %390 : vector<8x1xf32> to vector<8x512xf32>
    %392 = arith.mulf %391, %2 : vector<8x512xf32>
    %c0_91 = arith.constant 0 : index
    %c0_92 = arith.constant 0 : index
    %393 = vector.load %arg2[%c0_91, %c0_92] : memref<128x512xf32, #tpu.memory_space<vmem>>, vector<128x512xf32>
    %cst_93 = arith.constant dense<0.000000e+00> : vector<8x512xf32>
    %394 = tpu.matmul %358, %393, %cst_93 {dimension_numbers = #tpu.dot_dimension_numbers<[1], [0], [0], [1], [0, 0, 1, 1], [], []>} : vector<8x128xf32>, vector<128x512xf32>, vector<8x512xf32> -> vector<8x512xf32>
    %395 = arith.addf %392, %394 : vector<8x512xf32>
    %396 = arith.addf %395, %5 : vector<8x512xf32>
    %397 = vector.extract_strided_slice %396 {offsets = [0, 0], sizes = [8, 128], strides = [1, 1]} : vector<8x512xf32> to vector<8x128xf32>
    %398 = arith.negf %397 : vector<8x128xf32>
    %399 = math.exp %398 : vector<8x128xf32>
    %cst_94 = arith.constant 1.000000e+00 : f32
    %400 = vector.broadcast %cst_94 : f32 to vector<8x128xf32>
    %401 = arith.addf %400, %399 : vector<8x128xf32>
    %402 = arith.divf %400, %401 : vector<8x128xf32>
    %403 = vector.extract_strided_slice %396 {offsets = [0, 128], sizes = [8, 128], strides = [1, 1]} : vector<8x512xf32> to vector<8x128xf32>
    %404 = arith.negf %403 : vector<8x128xf32>
    %405 = math.exp %404 : vector<8x128xf32>
    %cst_95 = arith.constant 1.000000e+00 : f32
    %406 = vector.broadcast %cst_95 : f32 to vector<8x128xf32>
    %407 = arith.addf %406, %405 : vector<8x128xf32>
    %408 = arith.divf %406, %407 : vector<8x128xf32>
    %409 = vector.extract_strided_slice %396 {offsets = [0, 256], sizes = [8, 128], strides = [1, 1]} : vector<8x512xf32> to vector<8x128xf32>
    %410 = math.tanh %409 : vector<8x128xf32>
    %411 = vector.extract_strided_slice %396 {offsets = [0, 384], sizes = [8, 128], strides = [1, 1]} : vector<8x512xf32> to vector<8x128xf32>
    %412 = arith.negf %411 : vector<8x128xf32>
    %413 = math.exp %412 : vector<8x128xf32>
    %cst_96 = arith.constant 1.000000e+00 : f32
    %414 = vector.broadcast %cst_96 : f32 to vector<8x128xf32>
    %415 = arith.addf %414, %413 : vector<8x128xf32>
    %416 = arith.divf %414, %415 : vector<8x128xf32>
    %417 = arith.mulf %408, %356 : vector<8x128xf32>
    %418 = arith.mulf %402, %410 : vector<8x128xf32>
    %419 = arith.addf %417, %418 : vector<8x128xf32>
    %420 = math.tanh %419 : vector<8x128xf32>
    %421 = arith.mulf %416, %420 : vector<8x128xf32>
    %422 = tpu.concatenate %421, %387 in 1 : vector<8x128xf32>, vector<8x128xf32> -> vector<8x256xf32>
    %c0_97 = arith.constant 0 : index
    %c0_98 = arith.constant 0 : index
    %423 = vector.load %arg4[%c0_97, %c0_98] : memref<256x512xf32, #tpu.memory_space<vmem>>, vector<256x512xf32>
    %cst_99 = arith.constant dense<0.000000e+00> : vector<8x512xf32>
    %424 = tpu.matmul %422, %423, %cst_99 {dimension_numbers = #tpu.dot_dimension_numbers<[1], [0], [0], [1], [0, 0, 1, 1], [], []>} : vector<8x256xf32>, vector<256x512xf32>, vector<8x512xf32> -> vector<8x512xf32>
    %425 = arith.addf %424, %8 : vector<8x512xf32>
    %426 = vector.extract_strided_slice %425 {offsets = [0, 0], sizes = [8, 128], strides = [1, 1]} : vector<8x512xf32> to vector<8x128xf32>
    %427 = arith.negf %426 : vector<8x128xf32>
    %428 = math.exp %427 : vector<8x128xf32>
    %cst_100 = arith.constant 1.000000e+00 : f32
    %429 = vector.broadcast %cst_100 : f32 to vector<8x128xf32>
    %430 = arith.addf %429, %428 : vector<8x128xf32>
    %431 = arith.divf %429, %430 : vector<8x128xf32>
    %432 = vector.extract_strided_slice %425 {offsets = [0, 128], sizes = [8, 128], strides = [1, 1]} : vector<8x512xf32> to vector<8x128xf32>
    %433 = arith.negf %432 : vector<8x128xf32>
    %434 = math.exp %433 : vector<8x128xf32>
    %cst_101 = arith.constant 1.000000e+00 : f32
    %435 = vector.broadcast %cst_101 : f32 to vector<8x128xf32>
    %436 = arith.addf %435, %434 : vector<8x128xf32>
    %437 = arith.divf %435, %436 : vector<8x128xf32>
    %438 = vector.extract_strided_slice %425 {offsets = [0, 256], sizes = [8, 128], strides = [1, 1]} : vector<8x512xf32> to vector<8x128xf32>
    %439 = math.tanh %438 : vector<8x128xf32>
    %440 = vector.extract_strided_slice %425 {offsets = [0, 384], sizes = [8, 128], strides = [1, 1]} : vector<8x512xf32> to vector<8x128xf32>
    %441 = arith.negf %440 : vector<8x128xf32>
    %442 = math.exp %441 : vector<8x128xf32>
    %cst_102 = arith.constant 1.000000e+00 : f32
    %443 = vector.broadcast %cst_102 : f32 to vector<8x128xf32>
    %444 = arith.addf %443, %442 : vector<8x128xf32>
    %445 = arith.divf %443, %444 : vector<8x128xf32>
    %446 = arith.mulf %437, %385 : vector<8x128xf32>
    %447 = arith.mulf %431, %439 : vector<8x128xf32>
    %448 = arith.addf %446, %447 : vector<8x128xf32>
    %449 = math.tanh %448 : vector<8x128xf32>
    %450 = arith.mulf %445, %449 : vector<8x128xf32>
    %c7_i32 = arith.constant 7 : i32
    %451 = arith.index_cast %c7_i32 : i32 to index
    %c0_103 = arith.constant 0 : index
    %c0_104 = arith.constant 0 : index
    %452 = vector.load %arg0[%451, %c0_103, %c0_104] : memref<8x8x1xf32, #tpu.memory_space<vmem>>, vector<1x8x1xf32>
    %453 = vector.shape_cast %452 : vector<1x8x1xf32> to vector<8x1xf32>
    %454 = vector.broadcast %453 : vector<8x1xf32> to vector<8x512xf32>
    %455 = arith.mulf %454, %2 : vector<8x512xf32>
    %c0_105 = arith.constant 0 : index
    %c0_106 = arith.constant 0 : index
    %456 = vector.load %arg2[%c0_105, %c0_106] : memref<128x512xf32, #tpu.memory_space<vmem>>, vector<128x512xf32>
    %cst_107 = arith.constant dense<0.000000e+00> : vector<8x512xf32>
    %457 = tpu.matmul %421, %456, %cst_107 {dimension_numbers = #tpu.dot_dimension_numbers<[1], [0], [0], [1], [0, 0, 1, 1], [], []>} : vector<8x128xf32>, vector<128x512xf32>, vector<8x512xf32> -> vector<8x512xf32>
    %458 = arith.addf %455, %457 : vector<8x512xf32>
    %459 = arith.addf %458, %5 : vector<8x512xf32>
    %460 = vector.extract_strided_slice %459 {offsets = [0, 0], sizes = [8, 128], strides = [1, 1]} : vector<8x512xf32> to vector<8x128xf32>
    %461 = arith.negf %460 : vector<8x128xf32>
    %462 = math.exp %461 : vector<8x128xf32>
    %cst_108 = arith.constant 1.000000e+00 : f32
    %463 = vector.broadcast %cst_108 : f32 to vector<8x128xf32>
    %464 = arith.addf %463, %462 : vector<8x128xf32>
    %465 = arith.divf %463, %464 : vector<8x128xf32>
    %466 = vector.extract_strided_slice %459 {offsets = [0, 128], sizes = [8, 128], strides = [1, 1]} : vector<8x512xf32> to vector<8x128xf32>
    %467 = arith.negf %466 : vector<8x128xf32>
    %468 = math.exp %467 : vector<8x128xf32>
    %cst_109 = arith.constant 1.000000e+00 : f32
    %469 = vector.broadcast %cst_109 : f32 to vector<8x128xf32>
    %470 = arith.addf %469, %468 : vector<8x128xf32>
    %471 = arith.divf %469, %470 : vector<8x128xf32>
    %472 = vector.extract_strided_slice %459 {offsets = [0, 256], sizes = [8, 128], strides = [1, 1]} : vector<8x512xf32> to vector<8x128xf32>
    %473 = math.tanh %472 : vector<8x128xf32>
    %474 = vector.extract_strided_slice %459 {offsets = [0, 384], sizes = [8, 128], strides = [1, 1]} : vector<8x512xf32> to vector<8x128xf32>
    %475 = arith.negf %474 : vector<8x128xf32>
    %476 = math.exp %475 : vector<8x128xf32>
    %cst_110 = arith.constant 1.000000e+00 : f32
    %477 = vector.broadcast %cst_110 : f32 to vector<8x128xf32>
    %478 = arith.addf %477, %476 : vector<8x128xf32>
    %479 = arith.divf %477, %478 : vector<8x128xf32>
    %480 = arith.mulf %471, %419 : vector<8x128xf32>
    %481 = arith.mulf %465, %473 : vector<8x128xf32>
    %482 = arith.addf %480, %481 : vector<8x128xf32>
    %483 = math.tanh %482 : vector<8x128xf32>
    %484 = arith.mulf %479, %483 : vector<8x128xf32>
    %485 = tpu.concatenate %484, %450 in 1 : vector<8x128xf32>, vector<8x128xf32> -> vector<8x256xf32>
    %c0_111 = arith.constant 0 : index
    %c0_112 = arith.constant 0 : index
    %486 = vector.load %arg4[%c0_111, %c0_112] : memref<256x512xf32, #tpu.memory_space<vmem>>, vector<256x512xf32>
    %cst_113 = arith.constant dense<0.000000e+00> : vector<8x512xf32>
    %487 = tpu.matmul %485, %486, %cst_113 {dimension_numbers = #tpu.dot_dimension_numbers<[1], [0], [0], [1], [0, 0, 1, 1], [], []>} : vector<8x256xf32>, vector<256x512xf32>, vector<8x512xf32> -> vector<8x512xf32>
    %488 = arith.addf %487, %8 : vector<8x512xf32>
    %489 = vector.extract_strided_slice %488 {offsets = [0, 0], sizes = [8, 128], strides = [1, 1]} : vector<8x512xf32> to vector<8x128xf32>
    %490 = arith.negf %489 : vector<8x128xf32>
    %491 = math.exp %490 : vector<8x128xf32>
    %cst_114 = arith.constant 1.000000e+00 : f32
    %492 = vector.broadcast %cst_114 : f32 to vector<8x128xf32>
    %493 = arith.addf %492, %491 : vector<8x128xf32>
    %494 = arith.divf %492, %493 : vector<8x128xf32>
    %495 = vector.extract_strided_slice %488 {offsets = [0, 128], sizes = [8, 128], strides = [1, 1]} : vector<8x512xf32> to vector<8x128xf32>
    %496 = arith.negf %495 : vector<8x128xf32>
    %497 = math.exp %496 : vector<8x128xf32>
    %cst_115 = arith.constant 1.000000e+00 : f32
    %498 = vector.broadcast %cst_115 : f32 to vector<8x128xf32>
    %499 = arith.addf %498, %497 : vector<8x128xf32>
    %500 = arith.divf %498, %499 : vector<8x128xf32>
    %501 = vector.extract_strided_slice %488 {offsets = [0, 256], sizes = [8, 128], strides = [1, 1]} : vector<8x512xf32> to vector<8x128xf32>
    %502 = math.tanh %501 : vector<8x128xf32>
    %503 = vector.extract_strided_slice %488 {offsets = [0, 384], sizes = [8, 128], strides = [1, 1]} : vector<8x512xf32> to vector<8x128xf32>
    %504 = arith.negf %503 : vector<8x128xf32>
    %505 = math.exp %504 : vector<8x128xf32>
    %cst_116 = arith.constant 1.000000e+00 : f32
    %506 = vector.broadcast %cst_116 : f32 to vector<8x128xf32>
    %507 = arith.addf %506, %505 : vector<8x128xf32>
    %508 = arith.divf %506, %507 : vector<8x128xf32>
    %509 = arith.mulf %500, %448 : vector<8x128xf32>
    %510 = arith.mulf %494, %502 : vector<8x128xf32>
    %511 = arith.addf %509, %510 : vector<8x128xf32>
    %512 = math.tanh %511 : vector<8x128xf32>
    %513 = arith.mulf %508, %512 : vector<8x128xf32>
    %c8_i32 = arith.constant 8 : i32
    %c0_117 = arith.constant 0 : index
    %c0_118 = arith.constant 0 : index
    %514 = vector.load %arg6[%c0_117, %c0_118] : memref<128x1xf32, #tpu.memory_space<vmem>>, vector<128x1xf32>
    %cst_119 = arith.constant dense<0.000000e+00> : vector<8x1xf32>
    %515 = tpu.matmul %513, %514, %cst_119 {dimension_numbers = #tpu.dot_dimension_numbers<[1], [0], [0], [1], [0, 0, 1, 1], [], []>} : vector<8x128xf32>, vector<128x1xf32>, vector<8x1xf32> -> vector<8x1xf32>
    %c0_120 = arith.constant 0 : index
    %c0_121 = arith.constant 0 : index
    %516 = vector.load %arg7[%c0_120, %c0_121] : memref<1x1xf32, #tpu.memory_space<vmem>>, vector<1x1xf32>
    %517 = vector.broadcast %516 : vector<1x1xf32> to vector<8x1xf32>
    %518 = arith.addf %515, %517 : vector<8x1xf32>
    %c0_122 = arith.constant 0 : index
    %c0_123 = arith.constant 0 : index
    %519 = vector.load %arg8[%c0_122, %c0_123] : memref<8x1xf32, #tpu.memory_space<vmem>>, vector<8x1xf32>
    tpu.vector_store %arg8[%c0_122, %c0_123], %518 {strides = array<i32>} : memref<8x1xf32, #tpu.memory_space<vmem>>, vector<8x1xf32>,
    return
  }
}

</mosaic_0001>

<bundles_post_ra>
// kernel: tpu_custom_call.1
= control target key start
LH: loop header
LB: loop body
LE: loop exit
PB: predicated region body
PF: predicated region fallthrough
CT: control target
= control target key end

     0   :  { %s7710_s0 = inlined_call_operand.vmem [shape: f32[8,8,1], index: 0, kind: input, shape index: {}]   ;;  %s7711_s1 = inlined_call_operand.vmem [shape: f32[1,512], index: 1, kind: input, shape index: {}]   ;;  %s7712_s2 = inlined_call_operand.hbm [shape: f32[128,512], index: 2, kind: input, shape index: {}]   ;;  %s7713_s3 = inlined_call_operand.vmem [shape: f32[1,512], index: 3, kind: input, shape index: {}]   ;;  %s7714_s4 = inlined_call_operand.hbm [shape: f32[256,512], index: 4, kind: input, shape index: {}]   ;;  %s7715_s5 = inlined_call_operand.vmem [shape: f32[1,512], index: 5, kind: input, shape index: {}]   ;;  %s7716_s6 = inlined_call_operand.vmem [shape: f32[128,1], index: 6, kind: input, shape index: {}]   ;;  %s7717_s7 = inlined_call_operand.<no memory space> [shape: f32[1,1], index: 7, kind: input, shape index: {}]   ;;  %s7718_s8 = inlined_call_operand.vmem [shape: f32[8,1], index: 8, kind: output, shape index: {}]  }
   0x1   :  { %v13_v0 = vstv %s7717_s7 }
   0x2   :  { %14 = vst [vmem:[#allocation2] sm:$0x1] %v13_v0 }
   0x3   :  { %15 = vsyncpa [#allocation4], 0 }
   0x4   :  { %16 = vsyncpa [#allocation6], 0  ;;  %s4218_s29 = smov [#allocation3]  }
   0x5   :  { %s26_s30 = sshll.u32 %s4218_s29, 4  ;;  %s27_s30 = int_to_ptr.vmem [resolvable:$true] %s26_s30 }
   0x6   :  { %s4182_s9 = scalar_lea.vmem %s27_s30, 8192  ;;  %p4187_p1 = scmp.lt.s32.totalorder %s27_s30, %s27_s30 }
   0x7   :  { %p4183_p0 = scmp.ne.s32.totalorder %s27_s30, %s4182_s9  ;;  %p4188_p2 = scmp.lt.s32.totalorder %s4182_s9, %s4182_s9 }
   0x9   :  { %p4189_p3 = por %p4188_p2, %p4187_p1 }
   0xb   :  { %p4190_p4 = pnand %p4189_p3, %p4183_p0 }
   0xd   :  { %4193 = shalt.err (!%p4190_p4)
}
   0xe   :  { %s4219_s10 = smov 512   ;;  %s4220_s11 = smov 32  }
   0xf   :  { %32 = dma.hbm_to_vmem [thread:$0]  %s7712_s2, 8192, %s27_s30, [#allocation4], %s4219_s10, %s4219_s10, %s4220_s11  }
  0x10   :  { %s4221_s7 = smov [#allocation5]  }
  0x11   :  { %s40_s14 = sshll.u32 %s4221_s7, 4  ;;  %s41_s14 = int_to_ptr.vmem [resolvable:$true] %s40_s14 }
  0x12   :  { %s4202_s15 = scalar_lea.vmem %s41_s14, 16384  ;;  %p4207_p6 = scmp.lt.s32.totalorder %s41_s14, %s41_s14 }
  0x13   :  { %p4203_p5 = scmp.ne.s32.totalorder %s41_s14, %s4202_s15  ;;  %p4208_p7 = scmp.lt.s32.totalorder %s4202_s15, %s4202_s15 }
  0x15   :  { %p4209_p8 = por %p4208_p7, %p4207_p6 }
  0x17   :  { %p4210_p9 = pnand %p4209_p8, %p4203_p5 }
  0x19   :  { %4213 = shalt.err (!%p4210_p9)
}
  0x1a   :  { %46 = dma.hbm_to_vmem [thread:$0]  %s7714_s4, 16384, %s41_s14, [#allocation6], %s4219_s10, %s4219_s10, %s4220_s11  }
  0x1b   :  { %4214 = dma.done.wait [#allocation4], 8192  }
  0x1c   :  { %4215 = vsyncadd [#allocation4], 4294959104 }
  0x1d   :  { %4216 = dma.done.wait [#allocation6], 16384  }
  0x1e   :  { %4217 = vsyncadd [#allocation6], 4294950912  ;;  %v7719_v1 = vmov 0.0   ;;  %v4223_v2 = vmov 0   ;;  %v4281_v3 = vld [vmem:[#allocation3 + $0x1e8] sm:$0xff]  ;;  %v4283_v4 = vld [vmem:[#allocation3 + $0x1f8] sm:$0xff] }
  0x1f   :  { %263 = vmatprep.mubr.f32.mxu0 %v7719_v1  ;;  %334 = vmatprep.mubr.f32.mxu1 %v7719_v1  ;;  %v4285_v5 = vld [vmem:[#allocation3 + $0x1e0] sm:$0xff]  ;;  %v4289_v6 = vld [vmem:[#allocation3 + $0x1f0] sm:$0xff]  ;;  %v4291_v7 = vld [vmem:[#allocation3 + $0x1c8] sm:$0xff]  ;;  %vm4224_vm0 = vmmov 0   ;;  %vm3217_vm1 = vcmask 7168  }
  0x20   :  { %3340 = vset.pattern.permute.xlu0 %v4223_v2  ;;  %3341 = vset.pattern.permute.xlu1 %v4223_v2  ;;  %v4293_v8 = vld [vmem:[#allocation3 + $0x1d8] sm:$0xff]  ;;  %v4297_v9 = vld [vmem:[#allocation3 + $0x1c0] sm:$0xff]  ;;  %v4299_v10 = vld [vmem:[#allocation3 + $0x1d0] sm:$0xff] }
  0x21   :  { %199 = vmatprep.subr.mxu0 %v4281_v3  ;;  %270 = vmatprep.subr.mxu1 %v4283_v4  ;;  %v4301_v11 = vld [vmem:[#allocation3 + $0x1a8] sm:$0xff]  ;;  %v4305_v12 = vld [vmem:[#allocation3 + $0x1b8] sm:$0xff]  ;;  %v4307_v13 = vld [vmem:[#allocation3 + $0x1a0] sm:$0xff] }
  0x22   :  { %200 = vmatpush1.msra.mxu0 %v4285_v5  ;;  %271 = vmatpush1.msra.mxu1 %v4289_v6  ;;  %v4309_v14 = vld [vmem:[#allocation3 + $0x1b0] sm:$0xff]  ;;  %v4313_v15 = vld [vmem:[#allocation3 + $0x188] sm:$0xff]  ;;  %v4315_v16 = vld [vmem:[#allocation3 + $0x198] sm:$0xff] }
  0x23   :  { %201 = vmatprep.subr.mxu0 %v4291_v7  ;;  %272 = vmatprep.subr.mxu1 %v4293_v8  ;;  %v4319_v17 = vld [vmem:[#allocation3 + $0x180] sm:$0xff]  ;;  %v4321_v18 = vld [vmem:[#allocation3 + $0x190] sm:$0xff]  ;;  %v4325_v19 = vld [vmem:[#allocation3 + $0x168] sm:$0xff] }
  0x24   :  { %202 = vmatpush1.msra.mxu0 %v4297_v9  ;;  %273 = vmatpush1.msra.mxu1 %v4299_v10  ;;  %v4327_v20 = vld [vmem:[#allocation3 + $0x178] sm:$0xff]  ;;  %v4331_v21 = vld [vmem:[#allocation3 + $0x160] sm:$0xff]  ;;  %v4333_v22 = vld [vmem:[#allocation3 + $0x170] sm:$0xff] }
  0x25   :  { %203 = vmatprep.subr.mxu0 %v4301_v11  ;;  %274 = vmatprep.subr.mxu1 %v4305_v12  ;;  %v4337_v23 = vld [vmem:[#allocation3 + $0x148] sm:$0xff]  ;;  %v4339_v24 = vld [vmem:[#allocation3 + $0x158] sm:$0xff]  ;;  %v4343_v25 = vld [vmem:[#allocation3 + $0x140] sm:$0xff] }
  0x26   :  { %204 = vmatpush1.msra.mxu0 %v4307_v13  ;;  %275 = vmatpush1.msra.mxu1 %v4309_v14  ;;  %v4345_v26 = vld [vmem:[#allocation3 + $0x150] sm:$0xff]  ;;  %v4349_v27 = vld [vmem:[#allocation3 + $0x128] sm:$0xff]  ;;  %v4351_v28 = vld [vmem:[#allocation3 + $0x138] sm:$0xff] }
  0x27   :  { %205 = vmatprep.subr.mxu0 %v4313_v15  ;;  %276 = vmatprep.subr.mxu1 %v4315_v16  ;;  %v4355_v29 = vld [vmem:[#allocation3 + $0x120] sm:$0xff]  ;;  %v4357_v30 = vld [vmem:[#allocation3 + $0x130] sm:$0xff]  ;;  %v4361_v31 = vld [vmem:[#allocation3 + $0x108] sm:$0xff] }
  0x28   :  { %206 = vmatpush1.msra.mxu0 %v4319_v17  ;;  %277 = vmatpush1.msra.mxu1 %v4321_v18  ;;  %v4363_v32 = vld [vmem:[#allocation3 + $0x118] sm:$0xff]  ;;  %v4367_v33 = vld [vmem:[#allocation3 + $0x100] sm:$0xff]  ;;  %v4369_v34 = vld [vmem:[#allocation3 + $0x110] sm:$0xff] }
  0x29   :  { %207 = vmatprep.subr.mxu0 %v4325_v19  ;;  %278 = vmatprep.subr.mxu1 %v4327_v20  ;;  %v4373_v35 = vld [vmem:[#allocation3 + $0xe8] sm:$0xff]  ;;  %v4375_v36 = vld [vmem:[#allocation3 + $0xf8] sm:$0xff]  ;;  %v4379_v37 = vld [vmem:[#allocation3 + $0xe0] sm:$0xff] }
  0x2a   :  { %208 = vmatpush1.msra.mxu0 %v4331_v21  ;;  %279 = vmatpush1.msra.mxu1 %v4333_v22  ;;  %v4381_v38 = vld [vmem:[#allocation3 + $0xf0] sm:$0xff]  ;;  %v4385_v39 = vld [vmem:[#allocation3 + $0xc8] sm:$0xff]  ;;  %v4387_v40 = vld [vmem:[#allocation3 + $0xd8] sm:$0xff] }
  0x2b   :  { %209 = vmatprep.subr.mxu0 %v4337_v23  ;;  %280 = vmatprep.subr.mxu1 %v4339_v24  ;;  %v4391_v41 = vld [vmem:[#allocation3 + $0xc0] sm:$0xff]  ;;  %v4393_v42 = vld [vmem:[#allocation3 + $0xd0] sm:$0xff]  ;;  %v4397_v43 = vld [vmem:[#allocation3 + $0xa8] sm:$0xff] }
  0x2c   :  { %210 = vmatpush1.msra.mxu0 %v4343_v25  ;;  %281 = vmatpush1.msra.mxu1 %v4345_v26  ;;  %v4399_v44 = vld [vmem:[#allocation3 + $0xb8] sm:$0xff]  ;;  %v4403_v45 = vld [vmem:[#allocation3 + $0xa0] sm:$0xff]  ;;  %v4405_v46 = vld [vmem:[#allocation3 + $0xb0] sm:$0xff] }
  0x2d   :  { %211 = vmatprep.subr.mxu0 %v4349_v27  ;;  %282 = vmatprep.subr.mxu1 %v4351_v28  ;;  %v4409_v47 = vld [vmem:[#allocation3 + $0x88] sm:$0xff]  ;;  %v4411_v48 = vld [vmem:[#allocation3 + $0x98] sm:$0xff]  ;;  %v4415_v49 = vld [vmem:[#allocation3 + $0x80] sm:$0xff] }
  0x2e   :  { %212 = vmatpush1.msra.mxu0 %v4355_v29  ;;  %283 = vmatpush1.msra.mxu1 %v4357_v30  ;;  %8369 = vst [vmem:[#allocation9_spill] sm:$0xff] %v4409_v47  ;;  %8370 = vst [vmem:[#allocation10_spill] sm:$0xff] %v4411_v48  ;;  %v4417_v50 = vld [vmem:[#allocation3 + $0x90] sm:$0xff]  ;;  %v4421_v51 = vld [vmem:[#allocation3 + $0x68] sm:$0xff] }
  0x2f   :  { %213 = vmatprep.subr.mxu0 %v4361_v31  ;;  %284 = vmatprep.subr.mxu1 %v4363_v32  ;;  %8371 = vst [vmem:[#allocation11_spill] sm:$0xff] %v4415_v49  ;;  %8372 = vst [vmem:[#allocation12_spill] sm:$0xff] %v4417_v50  ;;  %v4423_v52 = vld [vmem:[#allocation3 + $0x78] sm:$0xff]  ;;  %v4427_v53 = vld [vmem:[#allocation3 + $0x60] sm:$0xff] }
  0x30   :  { %214 = vmatpush1.msra.mxu0 %v4367_v33  ;;  %285 = vmatpush1.msra.mxu1 %v4369_v34  ;;  %8373 = vst [vmem:[#allocation13_spill] sm:$0xff] %v4421_v51  ;;  %8374 = vst [vmem:[#allocation14_spill] sm:$0xff] %v4423_v52  ;;  %v4429_v54 = vld [vmem:[#allocation3 + $0x70] sm:$0xff]  ;;  %v4433_v55 = vld [vmem:[#allocation3 + $0x48] sm:$0xff] }
  0x31   :  { %215 = vmatprep.subr.mxu0 %v4373_v35  ;;  %286 = vmatprep.subr.mxu1 %v4375_v36  ;;  %8375 = vst [vmem:[#allocation15_spill] sm:$0xff] %v4427_v53  ;;  %8376 = vst [vmem:[#allocation16_spill] sm:$0xff] %v4429_v54  ;;  %v4435_v56 = vld [vmem:[#allocation3 + $0x58] sm:$0xff]  ;;  %v4439_v57 = vld [vmem:[#allocation3 + $0x40] sm:$0xff] }
  0x32   :  { %216 = vmatpush1.msra.mxu0 %v4379_v37  ;;  %287 = vmatpush1.msra.mxu1 %v4381_v38  ;;  %8377 = vst [vmem:[#allocation17_spill] sm:$0xff] %v4433_v55  ;;  %8378 = vst [vmem:[#allocation18_spill] sm:$0xff] %v4435_v56  ;;  %v4441_v58 = vld [vmem:[#allocation3 + $0x50] sm:$0xff]  ;;  %v4445_v59 = vld [vmem:[#allocation3 + $0x28] sm:$0xff] }
  0x33   :  { %217 = vmatprep.subr.mxu0 %v4385_v39  ;;  %288 = vmatprep.subr.mxu1 %v4387_v40  ;;  %8379 = vst [vmem:[#allocation19_spill] sm:$0xff] %v4439_v57  ;;  %8380 = vst [vmem:[#allocation20_spill] sm:$0xff] %v4441_v58  ;;  %v4447_v60 = vld [vmem:[#allocation3 + $0x38] sm:$0xff]  ;;  %v4451_v61 = vld [vmem:[#allocation3 + $0x20] sm:$0xff] }
  0x34   :  { %218 = vmatpush1.msra.mxu0 %v4391_v41  ;;  %289 = vmatpush1.msra.mxu1 %v4393_v42  ;;  %8381 = vst [vmem:[#allocation21_spill] sm:$0xff] %v4445_v59  ;;  %8382 = vst [vmem:[#allocation22_spill] sm:$0xff] %v4447_v60  ;;  %v4453_v62 = vld [vmem:[#allocation3 + $0x30] sm:$0xff]  ;;  %v4457_v63 = vld [vmem:[#allocation3 + $0x8] sm:$0xff] }
  0x35   :  { %219 = vmatprep.subr.mxu0 %v4397_v43  ;;  %290 = vmatprep.subr.mxu1 %v4399_v44  ;;  %8383 = vst [vmem:[#allocation23_spill] sm:$0xff] %v4451_v61  ;;  %8384 = vst [vmem:[#allocation24_spill] sm:$0xff] %v4453_v62  ;;  %v4459_v0 = vld [vmem:[#allocation3 + $0x18] sm:$0xff]  ;;  %v4463_v2 = vld [vmem:[#allocation3] sm:$0xff] }
  0x36   :  { %220 = vmatpush1.msra.mxu0 %v4403_v45  ;;  %291 = vmatpush1.msra.mxu1 %v4405_v46  ;;  %8385 = vst [vmem:[#allocation25_spill] sm:$0xff] %v4457_v63  ;;  %8386 = vst [vmem:[#allocation26_spill] sm:$0xff] %v4459_v0  ;;  %v4465_v1 = vld [vmem:[#allocation3 + $0x10] sm:$0xff] }
  0x37   :  { %221 = vmatprep.subr.mxu0 %v4409_v47  ;;  %292 = vmatprep.subr.mxu1 %v4411_v48  ;;  %8387 = vst [vmem:[#allocation27_spill] sm:$0xff] %v4463_v2  ;;  %8388 = vst [vmem:[#allocation28_spill] sm:$0xff] %v4465_v1 }
  0x38   :  { %222 = vmatpush1.msra.mxu0 %v4415_v49  ;;  %293 = vmatpush1.msra.mxu1 %v4417_v50 }
  0x39   :  { %223 = vmatprep.subr.mxu0 %v4421_v51  ;;  %294 = vmatprep.subr.mxu1 %v4423_v52 }
  0x3a   :  { %224 = vmatpush1.msra.mxu0 %v4427_v53  ;;  %295 = vmatpush1.msra.mxu1 %v4429_v54 }
  0x3b   :  { %225 = vmatprep.subr.mxu0 %v4433_v55  ;;  %296 = vmatprep.subr.mxu1 %v4435_v56  ;;  %v4827_v56 = vld [vmem:[#allocation5 + $0x260] sm:$0xff] }
  0x3c   :  { %226 = vmatpush1.msra.mxu0 %v4439_v57  ;;  %297 = vmatpush1.msra.mxu1 %v4441_v58  ;;  %v125_v58 = vld [vmem:[%s7710_s0] sm:$0xff]  ;;  %v4503_v57 = vld [vmem:[#allocation5 + $0x1a8] sm:$0xff]  ;;  %8504 = vst [vmem:[#allocation143_spill] sm:$0xff] %v4827_v56 }
  0x3d   :  { %227 = vmatprep.subr.mxu0 %v4445_v59  ;;  %298 = vmatprep.subr.mxu1 %v4447_v60  ;;  %v8389_v60 = vmov 0.0   ;;  %v4478_v59 = vld [vmem:[#allocation5 + $0x1e8] sm:$0xff]  ;;  %8398 = vst [vmem:[#allocation37_spill] sm:$0xff] %v4503_v57 }
  0x3e   :  { %228 = vmatpush1.msra.mxu0 %v4451_v61  ;;  %299 = vmatpush1.msra.mxu1 %v4453_v62  ;;  %8390 = vst [vmem:[#allocation29_spill] sm:$0xff] %v4478_v59  ;;  %v4480_v61 = vld [vmem:[#allocation5 + $0x1f8] sm:$0xff]  ;;  %v4482_v62 = vld [vmem:[#allocation5 + $0x1e0] sm:$0xff] }
  0x3f   :  { %229 = vmatprep.subr.mxu0 %v4457_v63  ;;  %300 = vmatprep.subr.mxu1 %v4459_v0  ;;  %8391 = vst [vmem:[#allocation30_spill] sm:$0xff] %v4480_v61  ;;  %8392 = vst [vmem:[#allocation31_spill] sm:$0xff] %v4482_v62  ;;  %v4485_v0 = vld [vmem:[#allocation5 + $0x1f0] sm:$0xff]  ;;  %v4487_v63 = vld [vmem:[#allocation5 + $0x1c8] sm:$0xff] }
  0x40   :  { %230 = vmatpush1.msra.mxu0 %v4463_v2  ;;  %301 = vmatpush1.msra.mxu1 %v4465_v1  ;;  %8393 = vst [vmem:[#allocation32_spill] sm:$0xff] %v4485_v0  ;;  %8394 = vst [vmem:[#allocation33_spill] sm:$0xff] %v4487_v63  ;;  %v4489_v2 = vld [vmem:[#allocation5 + $0x1d8] sm:$0xff]  ;;  %v3231_v1 = vld [vmem:[%s7710_s0 + $0x8] sm:$0xff] }
  0x41   :  { %264 = vmatmul.mubr.f32.vlgmr.msra.gmra.mxu0 %v8389_v60  ;;  %335 = vmatmul.mubr.f32.vlgmr.msra.gmra.mxu1 %v8389_v60  ;;  %8395 = vst [vmem:[#allocation34_spill] sm:$0xff] %v4489_v2 }
  0x42   :  { %128 = vperm.xlu0 %3340, %v125_v58   ;;  %501 = vmatprep.subr.mxu0 %v4478_v59  ;;  %v4499_v58 = vld [vmem:[#allocation5 + $0x1c0] sm:$0xff]  ;;  %v4501_v59 = vld [vmem:[#allocation5 + $0x1d0] sm:$0xff] }
  0x43   :  { %572 = vmatprep.subr.mxu1 %v4480_v61  ;;  %502 = vmatpush1.msra.mxu0 %v4482_v62  ;;  %8396 = vst [vmem:[#allocation35_spill] sm:$0xff] %v4499_v58  ;;  %8397 = vst [vmem:[#allocation36_spill] sm:$0xff] %v4501_v59  ;;  %v4507_v61 = vld [vmem:[#allocation5 + $0x1b8] sm:$0xff]  ;;  %v4509_v62 = vld [vmem:[#allocation5 + $0x1a0] sm:$0xff] }
  0x44   :  { %573 = vmatpush1.msra.mxu1 %v4485_v0  ;;  %503 = vmatprep.subr.mxu0 %v4487_v63  ;;  %8399 = vst [vmem:[#allocation38_spill] sm:$0xff] %v4507_v61  ;;  %8400 = vst [vmem:[#allocation39_spill] sm:$0xff] %v4509_v62  ;;  %v4511_v0 = vld [vmem:[#allocation5 + $0x1b0] sm:$0xff]  ;;  %v4527_v63 = vld [vmem:[#allocation5 + $0x198] sm:$0xff] }
  0x45   :  { %574 = vmatprep.subr.mxu1 %v4489_v2  ;;  %565 = vmatprep.mubr.f32.mxu0 %v8389_v60  ;;  %8401 = vst [vmem:[#allocation40_spill] sm:$0xff] %v4511_v0  ;;  %v3252_v2 = vld [vmem:[%s7710_s0 + $0x20] sm:$0xff]  ;;  %8403 = vst [vmem:[#allocation42_spill] sm:$0xff] %v4527_v63 }
  0x46   :  { %671 = vperm.xlu0 %3340, %v3231_v1   ;;  %504 = vmatpush1.msra.mxu0 %v4499_v58  ;;  %v3266_v1 = vld [vmem:[%s7710_s0 + $0x30] sm:$0xff] }
  0x47   :  { %575 = vmatpush1.msra.mxu1 %v4501_v59  ;;  %505 = vmatprep.subr.mxu0 %v4503_v57  ;;  %v4525_v58 = vld [vmem:[#allocation5 + $0x188] sm:$0xff]  ;;  %v4795_v57 = vld [vmem:[#allocation5 + $0x2d0] sm:$0xff]  ;;  %v4803_v59 = vld [vmem:[#allocation5 + $0x2a0] sm:$0xff] }
  0x48   :  { %576 = vmatprep.subr.mxu1 %v4507_v61  ;;  %506 = vmatpush1.msra.mxu0 %v4509_v62  ;;  %8402 = vst [vmem:[#allocation41_spill] sm:$0xff] %v4525_v58  ;;  %v4531_v61 = vld [vmem:[#allocation5 + $0x180] sm:$0xff]  ;;  %v4533_v62 = vld [vmem:[#allocation5 + $0x190] sm:$0xff]  ;;  %8493 = vst [vmem:[#allocation132_spill] sm:$0xff] %v4795_v57 }
  0x49   :  { %577 = vmatpush1.msra.mxu1 %v4511_v0  ;;  %636 = vmatprep.mubr.f32.mxu1 %v8389_v60  ;;  %8404 = vst [vmem:[#allocation43_spill] sm:$0xff] %v4531_v61  ;;  %8405 = vst [vmem:[#allocation44_spill] sm:$0xff] %v4533_v62  ;;  %v4539_v0 = vld [vmem:[#allocation5 + $0x178] sm:$0xff] }
  0x4a   :  { %1724 = vperm.xlu0 %3340, %v3252_v2   ;;  %507 = vmatprep.subr.mxu0 %v4525_v58  ;;  %v4537_v2 = vld [vmem:[#allocation5 + $0x168] sm:$0xff]  ;;  %8407 = vst [vmem:[#allocation46_spill] sm:$0xff] %v4539_v0  ;;  %v4545_v58 = vld [vmem:[#allocation5 + $0x170] sm:$0xff]  ;;  %8496 = vst [vmem:[#allocation135_spill] sm:$0xff] %v4803_v59 }
  0x4b   :  { %578 = vmatprep.subr.mxu1 %v4527_v63  ;;  %508 = vmatpush1.msra.mxu0 %v4531_v61  ;;  %8406 = vst [vmem:[#allocation45_spill] sm:$0xff] %v4537_v2  ;;  %8409 = vst [vmem:[#allocation48_spill] sm:$0xff] %v4545_v58  ;;  %v4549_v63 = vld [vmem:[#allocation5 + $0x148] sm:$0xff]  ;;  %v4551_v61 = vld [vmem:[#allocation5 + $0x158] sm:$0xff] }
  0x4c   :  { %579 = vmatpush1.msra.mxu1 %v4533_v62  ;;  %509 = vmatprep.subr.mxu0 %v4537_v2  ;;  %8410 = vst [vmem:[#allocation49_spill] sm:$0xff] %v4549_v63  ;;  %8411 = vst [vmem:[#allocation50_spill] sm:$0xff] %v4551_v61  ;;  %v4555_v62 = vld [vmem:[#allocation5 + $0x140] sm:$0xff]  ;;  %v4557_v2 = vld [vmem:[#allocation5 + $0x150] sm:$0xff] }
  0x4d   :  { %580 = vmatprep.subr.mxu1 %v4539_v0  ;;  %8412 = vst [vmem:[#allocation51_spill] sm:$0xff] %v4555_v62  ;;  %8413 = vst [vmem:[#allocation52_spill] sm:$0xff] %v4557_v2  ;;  %v4561_v0 = vld [vmem:[#allocation5 + $0x128] sm:$0xff]  ;;  %v4811_v60 = vld [vmem:[#allocation5 + $0x298] sm:$0xff] }
  0x4e   :  { %2426 = vperm.xlu0 %3340, %v3266_v1   ;;  %v4543_v1 = vld [vmem:[#allocation5 + $0x160] sm:$0xff]  ;;  %581 = vmatpush1.msra.mxu1 %v4545_v58  ;;  %8414 = vst [vmem:[#allocation53_spill] sm:$0xff] %v4561_v0  ;;  %8499 = vst [vmem:[#allocation138_spill] sm:$0xff] %v4811_v60 }
  0x4f   :  { %8408 = vst [vmem:[#allocation47_spill] sm:$0xff] %v4543_v1  ;;  %510 = vmatpush1.msra.mxu0 %v4543_v1  ;;  %582 = vmatprep.subr.mxu1 %v4551_v61  ;;  %v4563_v1 = vld [vmem:[#allocation5 + $0x138] sm:$0xff]  ;;  %v4567_v58 = vld [vmem:[#allocation5 + $0x120] sm:$0xff]  ;;  %v4573_v61 = vld [vmem:[#allocation5 + $0x108] sm:$0xff] }
  0x50   :  { %511 = vmatprep.subr.mxu0 %v4549_v63  ;;  %583 = vmatpush1.msra.mxu1 %v4557_v2  ;;  %8415 = vst [vmem:[#allocation54_spill] sm:$0xff] %v4563_v1  ;;  %8416 = vst [vmem:[#allocation55_spill] sm:$0xff] %v4567_v58  ;;  %v4569_v63 = vld [vmem:[#allocation5 + $0x130] sm:$0xff]  ;;  %v4579_v2 = vld [vmem:[#allocation5 + $0x100] sm:$0xff] }
  0x51   :  { %512 = vmatpush1.msra.mxu0 %v4555_v62  ;;  %584 = vmatprep.subr.mxu1 %v4563_v1  ;;  %8417 = vst [vmem:[#allocation56_spill] sm:$0xff] %v4569_v63  ;;  %8418 = vst [vmem:[#allocation57_spill] sm:$0xff] %v4573_v61  ;;  %v4575_v62 = vld [vmem:[#allocation5 + $0x118] sm:$0xff]  ;;  %v4585_v1 = vld [vmem:[#allocation5 + $0xe8] sm:$0xff] }
  0x52   :  { %513 = vmatprep.subr.mxu0 %v4561_v0  ;;  %585 = vmatpush1.msra.mxu1 %v4569_v63  ;;  %8419 = vst [vmem:[#allocation58_spill] sm:$0xff] %v4575_v62  ;;  %8420 = vst [vmem:[#allocation59_spill] sm:$0xff] %v4579_v2  ;;  %v4581_v0 = vld [vmem:[#allocation5 + $0x110] sm:$0xff]  ;;  %v4591_v63 = vld [vmem:[#allocation5 + $0xe0] sm:$0xff] }
  0x53   :  { %514 = vmatpush1.msra.mxu0 %v4567_v58  ;;  %586 = vmatprep.subr.mxu1 %v4575_v62  ;;  %8421 = vst [vmem:[#allocation60_spill] sm:$0xff] %v4581_v0  ;;  %8422 = vst [vmem:[#allocation61_spill] sm:$0xff] %v4585_v1  ;;  %v4587_v58 = vld [vmem:[#allocation5 + $0xf8] sm:$0xff]  ;;  %v4597_v62 = vld [vmem:[#allocation5 + $0xc8] sm:$0xff] }
  0x54   :  { %515 = vmatprep.subr.mxu0 %v4573_v61  ;;  %587 = vmatpush1.msra.mxu1 %v4581_v0  ;;  %8423 = vst [vmem:[#allocation62_spill] sm:$0xff] %v4587_v58  ;;  %8424 = vst [vmem:[#allocation63_spill] sm:$0xff] %v4591_v63  ;;  %v4593_v61 = vld [vmem:[#allocation5 + $0xf0] sm:$0xff]  ;;  %v4603_v0 = vld [vmem:[#allocation5 + $0xc0] sm:$0xff] }
  0x55   :  { %516 = vmatpush1.msra.mxu0 %v4579_v2  ;;  %588 = vmatprep.subr.mxu1 %v4587_v58  ;;  %8425 = vst [vmem:[#allocation64_spill] sm:$0xff] %v4593_v61  ;;  %8426 = vst [vmem:[#allocation65_spill] sm:$0xff] %v4597_v62  ;;  %v4599_v2 = vld [vmem:[#allocation5 + $0xd8] sm:$0xff]  ;;  %v4609_v58 = vld [vmem:[#allocation5 + $0xa8] sm:$0xff] }
  0x56   :  { %517 = vmatprep.subr.mxu0 %v4585_v1  ;;  %589 = vmatpush1.msra.mxu1 %v4593_v61  ;;  %8427 = vst [vmem:[#allocation66_spill] sm:$0xff] %v4599_v2  ;;  %8428 = vst [vmem:[#allocation67_spill] sm:$0xff] %v4603_v0  ;;  %v4605_v1 = vld [vmem:[#allocation5 + $0xd0] sm:$0xff]  ;;  %v4615_v61 = vld [vmem:[#allocation5 + $0xa0] sm:$0xff] }
  0x57   :  { %518 = vmatpush1.msra.mxu0 %v4591_v63  ;;  %590 = vmatprep.subr.mxu1 %v4599_v2  ;;  %8429 = vst [vmem:[#allocation68_spill] sm:$0xff] %v4605_v1  ;;  %8430 = vst [vmem:[#allocation69_spill] sm:$0xff] %v4609_v58  ;;  %v4611_v63 = vld [vmem:[#allocation5 + $0xb8] sm:$0xff]  ;;  %v4621_v2 = vld [vmem:[#allocation5 + $0x88] sm:$0xff] }
  0x58   :  { %519 = vmatprep.subr.mxu0 %v4597_v62  ;;  %591 = vmatpush1.msra.mxu1 %v4605_v1  ;;  %8431 = vst [vmem:[#allocation70_spill] sm:$0xff] %v4611_v63  ;;  %8432 = vst [vmem:[#allocation71_spill] sm:$0xff] %v4615_v61  ;;  %v4617_v62 = vld [vmem:[#allocation5 + $0xb0] sm:$0xff]  ;;  %v4627_v1 = vld [vmem:[#allocation5 + $0x80] sm:$0xff] }
  0x59   :  { %520 = vmatpush1.msra.mxu0 %v4603_v0  ;;  %592 = vmatprep.subr.mxu1 %v4611_v63  ;;  %8433 = vst [vmem:[#allocation72_spill] sm:$0xff] %v4617_v62  ;;  %8434 = vst [vmem:[#allocation73_spill] sm:$0xff] %v4621_v2  ;;  %v4623_v0 = vld [vmem:[#allocation5 + $0x98] sm:$0xff]  ;;  %v4633_v63 = vld [vmem:[#allocation5 + $0x68] sm:$0xff] }
  0x5a   :  { %521 = vmatprep.subr.mxu0 %v4609_v58  ;;  %593 = vmatpush1.msra.mxu1 %v4617_v62  ;;  %8435 = vst [vmem:[#allocation74_spill] sm:$0xff] %v4623_v0  ;;  %8436 = vst [vmem:[#allocation75_spill] sm:$0xff] %v4627_v1  ;;  %v4629_v58 = vld [vmem:[#allocation5 + $0x90] sm:$0xff]  ;;  %v4639_v62 = vld [vmem:[#allocation5 + $0x60] sm:$0xff] }
  0x5b   :  { %522 = vmatpush1.msra.mxu0 %v4615_v61  ;;  %594 = vmatprep.subr.mxu1 %v4623_v0  ;;  %8437 = vst [vmem:[#allocation76_spill] sm:$0xff] %v4629_v58  ;;  %8438 = vst [vmem:[#allocation77_spill] sm:$0xff] %v4633_v63  ;;  %v4635_v61 = vld [vmem:[#allocation5 + $0x78] sm:$0xff]  ;;  %v4645_v0 = vld [vmem:[#allocation5 + $0x48] sm:$0xff] }
  0x5c   :  { %523 = vmatprep.subr.mxu0 %v4621_v2  ;;  %595 = vmatpush1.msra.mxu1 %v4629_v58  ;;  %8439 = vst [vmem:[#allocation78_spill] sm:$0xff] %v4635_v61  ;;  %8440 = vst [vmem:[#allocation79_spill] sm:$0xff] %v4639_v62  ;;  %v4641_v2 = vld [vmem:[#allocation5 + $0x70] sm:$0xff]  ;;  %v4651_v58 = vld [vmem:[#allocation5 + $0x40] sm:$0xff] }
  0x5d   :  { %524 = vmatpush1.msra.mxu0 %v4627_v1  ;;  %596 = vmatprep.subr.mxu1 %v4635_v61  ;;  %8441 = vst [vmem:[#allocation80_spill] sm:$0xff] %v4641_v2  ;;  %8442 = vst [vmem:[#allocation81_spill] sm:$0xff] %v4645_v0  ;;  %v4647_v1 = vld [vmem:[#allocation5 + $0x58] sm:$0xff]  ;;  %v4657_v61 = vld [vmem:[#allocation5 + $0x28] sm:$0xff] }
  0x5e   :  { %525 = vmatprep.subr.mxu0 %v4633_v63  ;;  %597 = vmatpush1.msra.mxu1 %v4641_v2  ;;  %8443 = vst [vmem:[#allocation82_spill] sm:$0xff] %v4647_v1  ;;  %8444 = vst [vmem:[#allocation83_spill] sm:$0xff] %v4651_v58  ;;  %v4653_v63 = vld [vmem:[#allocation5 + $0x50] sm:$0xff]  ;;  %v4663_v2 = vld [vmem:[#allocation5 + $0x20] sm:$0xff] }
  0x5f   :  { %526 = vmatpush1.msra.mxu0 %v4639_v62  ;;  %598 = vmatprep.subr.mxu1 %v4647_v1  ;;  %8445 = vst [vmem:[#allocation84_spill] sm:$0xff] %v4653_v63  ;;  %8446 = vst [vmem:[#allocation85_spill] sm:$0xff] %v4657_v61  ;;  %v4659_v62 = vld [vmem:[#allocation5 + $0x38] sm:$0xff]  ;;  %v4669_v1 = vld [vmem:[#allocation5 + $0x8] sm:$0xff] }
  0x60   :  { %527 = vmatprep.subr.mxu0 %v4645_v0  ;;  %599 = vmatpush1.msra.mxu1 %v4653_v63  ;;  %8447 = vst [vmem:[#allocation86_spill] sm:$0xff] %v4659_v62  ;;  %8448 = vst [vmem:[#allocation87_spill] sm:$0xff] %v4663_v2  ;;  %v4665_v0 = vld [vmem:[#allocation5 + $0x30] sm:$0xff]  ;;  %v4675_v63 = vld [vmem:[#allocation5] sm:$0xff] }
  0x61   :  { %528 = vmatpush1.msra.mxu0 %v4651_v58  ;;  %600 = vmatprep.subr.mxu1 %v4659_v62  ;;  %8449 = vst [vmem:[#allocation88_spill] sm:$0xff] %v4665_v0  ;;  %8450 = vst [vmem:[#allocation89_spill] sm:$0xff] %v4669_v1  ;;  %v4671_v58 = vld [vmem:[#allocation5 + $0x18] sm:$0xff]  ;;  %v4681_v62 = vld [vmem:[#allocation5 + $0x3e8] sm:$0xff] }
  0x62   :  { %529 = vmatprep.subr.mxu0 %v4657_v61  ;;  %601 = vmatpush1.msra.mxu1 %v4665_v0  ;;  %8451 = vst [vmem:[#allocation90_spill] sm:$0xff] %v4671_v58  ;;  %8452 = vst [vmem:[#allocation91_spill] sm:$0xff] %v4675_v63  ;;  %v4677_v61 = vld [vmem:[#allocation5 + $0x10] sm:$0xff]  ;;  %v4687_v0 = vld [vmem:[#allocation5 + $0x3e0] sm:$0xff] }
  0x63   :  { %530 = vmatpush1.msra.mxu0 %v4663_v2  ;;  %602 = vmatprep.subr.mxu1 %v4671_v58  ;;  %8453 = vst [vmem:[#allocation92_spill] sm:$0xff] %v4677_v61  ;;  %8454 = vst [vmem:[#allocation93_spill] sm:$0xff] %v4681_v62  ;;  %v4683_v2 = vld [vmem:[#allocation5 + $0x3f8] sm:$0xff]  ;;  %v4693_v58 = vld [vmem:[#allocation5 + $0x3c8] sm:$0xff] }
  0x64   :  { %531 = vmatprep.subr.mxu0 %v4669_v1  ;;  %603 = vmatpush1.msra.mxu1 %v4677_v61  ;;  %8455 = vst [vmem:[#allocation94_spill] sm:$0xff] %v4683_v2  ;;  %8456 = vst [vmem:[#allocation95_spill] sm:$0xff] %v4687_v0  ;;  %v4689_v1 = vld [vmem:[#allocation5 + $0x3f0] sm:$0xff]  ;;  %v4699_v61 = vld [vmem:[#allocation5 + $0x3c0] sm:$0xff] }
  0x65   :  { %532 = vmatpush1.msra.mxu0 %v4675_v63  ;;  %604 = vmatprep.subr.mxu1 %v4683_v2  ;;  %8457 = vst [vmem:[#allocation96_spill] sm:$0xff] %v4689_v1  ;;  %8458 = vst [vmem:[#allocation97_spill] sm:$0xff] %v4693_v58  ;;  %v4695_v63 = vld [vmem:[#allocation5 + $0x3d8] sm:$0xff]  ;;  %v4705_v2 = vld [vmem:[#allocation5 + $0x3a8] sm:$0xff] }
  0x66   :  { %533 = vmatprep.subr.mxu0 %v4681_v62  ;;  %605 = vmatpush2.msra.mxu1 %v4689_v1  ;;  %8459 = vst [vmem:[#allocation98_spill] sm:$0xff] %v4695_v63  ;;  %8460 = vst [vmem:[#allocation99_spill] sm:$0xff] %v4699_v61  ;;  %v4701_v62 = vld [vmem:[#allocation5 + $0x3d0] sm:$0xff]  ;;  %v4711_v1 = vld [vmem:[#allocation5 + $0x3a0] sm:$0xff] }
  0x67   :  { %534 = vmatpush2.msra.mxu0 %v4687_v0  ;;  %606 = vmatprep.subr.mxu1 %v4695_v63  ;;  %8461 = vst [vmem:[#allocation100_spill] sm:$0xff] %v4701_v62  ;;  %8462 = vst [vmem:[#allocation101_spill] sm:$0xff] %v4705_v2  ;;  %v4707_v0 = vld [vmem:[#allocation5 + $0x3b8] sm:$0xff]  ;;  %v4717_v63 = vld [vmem:[#allocation5 + $0x388] sm:$0xff] }
  0x68   :  { %535 = vmatprep.subr.mxu0 %v4693_v58  ;;  %607 = vmatpush2.msra.mxu1 %v4701_v62  ;;  %8463 = vst [vmem:[#allocation102_spill] sm:$0xff] %v4707_v0  ;;  %8464 = vst [vmem:[#allocation103_spill] sm:$0xff] %v4711_v1  ;;  %v4713_v58 = vld [vmem:[#allocation5 + $0x3b0] sm:$0xff]  ;;  %v4723_v62 = vld [vmem:[#allocation5 + $0x380] sm:$0xff] }
  0x69   :  { %536 = vmatpush2.msra.mxu0 %v4699_v61  ;;  %608 = vmatprep.subr.mxu1 %v4707_v0  ;;  %8465 = vst [vmem:[#allocation104_spill] sm:$0xff] %v4713_v58  ;;  %8466 = vst [vmem:[#allocation105_spill] sm:$0xff] %v4717_v63  ;;  %v4719_v61 = vld [vmem:[#allocation5 + $0x398] sm:$0xff]  ;;  %v4729_v0 = vld [vmem:[#allocation5 + $0x368] sm:$0xff] }
  0x6a   :  { %537 = vmatprep.subr.mxu0 %v4705_v2  ;;  %609 = vmatpush2.msra.mxu1 %v4713_v58  ;;  %8467 = vst [vmem:[#allocation106_spill] sm:$0xff] %v4719_v61  ;;  %8468 = vst [vmem:[#allocation107_spill] sm:$0xff] %v4723_v62  ;;  %v4725_v2 = vld [vmem:[#allocation5 + $0x390] sm:$0xff]  ;;  %v4735_v58 = vld [vmem:[#allocation5 + $0x360] sm:$0xff] }
  0x6b   :  { %538 = vmatpush2.msra.mxu0 %v4711_v1  ;;  %610 = vmatprep.subr.mxu1 %v4719_v61  ;;  %8469 = vst [vmem:[#allocation108_spill] sm:$0xff] %v4725_v2  ;;  %8470 = vst [vmem:[#allocation109_spill] sm:$0xff] %v4729_v0  ;;  %v4731_v1 = vld [vmem:[#allocation5 + $0x378] sm:$0xff]  ;;  %v4741_v61 = vld [vmem:[#allocation5 + $0x348] sm:$0xff] }
  0x6c   :  { %539 = vmatprep.subr.mxu0 %v4717_v63  ;;  %611 = vmatpush2.msra.mxu1 %v4725_v2  ;;  %8471 = vst [vmem:[#allocation110_spill] sm:$0xff] %v4731_v1  ;;  %8472 = vst [vmem:[#allocation111_spill] sm:$0xff] %v4735_v58  ;;  %v4737_v63 = vld [vmem:[#allocation5 + $0x370] sm:$0xff]  ;;  %v4747_v2 = vld [vmem:[#allocation5 + $0x340] sm:$0xff] }
  0x6d   :  { %540 = vmatpush2.msra.mxu0 %v4723_v62  ;;  %612 = vmatprep.subr.mxu1 %v4731_v1  ;;  %8473 = vst [vmem:[#allocation112_spill] sm:$0xff] %v4737_v63  ;;  %8474 = vst [vmem:[#allocation113_spill] sm:$0xff] %v4741_v61  ;;  %v4743_v62 = vld [vmem:[#allocation5 + $0x358] sm:$0xff]  ;;  %v4753_v1 = vld [vmem:[#allocation5 + $0x328] sm:$0xff] }
  0x6e   :  { %541 = vmatprep.subr.mxu0 %v4729_v0  ;;  %613 = vmatpush2.msra.mxu1 %v4737_v63  ;;  %8475 = vst [vmem:[#allocation114_spill] sm:$0xff] %v4743_v62  ;;  %8476 = vst [vmem:[#allocation115_spill] sm:$0xff] %v4747_v2  ;;  %v4749_v0 = vld [vmem:[#allocation5 + $0x350] sm:$0xff]  ;;  %v4759_v63 = vld [vmem:[#allocation5 + $0x320] sm:$0xff] }
  0x6f   :  { %542 = vmatpush2.msra.mxu0 %v4735_v58  ;;  %614 = vmatprep.subr.mxu1 %v4743_v62  ;;  %8477 = vst [vmem:[#allocation116_spill] sm:$0xff] %v4749_v0  ;;  %8478 = vst [vmem:[#allocation117_spill] sm:$0xff] %v4753_v1  ;;  %v4755_v58 = vld [vmem:[#allocation5 + $0x338] sm:$0xff]  ;;  %v4765_v62 = vld [vmem:[#allocation5 + $0x308] sm:$0xff] }
  0x70   :  { %543 = vmatprep.subr.mxu0 %v4741_v61  ;;  %615 = vmatpush2.msra.mxu1 %v4749_v0  ;;  %8479 = vst [vmem:[#allocation118_spill] sm:$0xff] %v4755_v58  ;;  %8480 = vst [vmem:[#allocation119_spill] sm:$0xff] %v4759_v63  ;;  %v4761_v61 = vld [vmem:[#allocation5 + $0x330] sm:$0xff]  ;;  %v4771_v0 = vld [vmem:[#allocation5 + $0x300] sm:$0xff] }
  0x71   :  { %544 = vmatpush2.msra.mxu0 %v4747_v2  ;;  %616 = vmatprep.subr.mxu1 %v4755_v58  ;;  %8481 = vst [vmem:[#allocation120_spill] sm:$0xff] %v4761_v61  ;;  %8482 = vst [vmem:[#allocation121_spill] sm:$0xff] %v4765_v62  ;;  %v4767_v2 = vld [vmem:[#allocation5 + $0x318] sm:$0xff]  ;;  %v4777_v58 = vld [vmem:[#allocation5 + $0x2e8] sm:$0xff] }
  0x72   :  { %545 = vmatprep.subr.mxu0 %v4753_v1  ;;  %617 = vmatpush2.msra.mxu1 %v4761_v61  ;;  %8483 = vst [vmem:[#allocation122_spill] sm:$0xff] %v4767_v2  ;;  %8484 = vst [vmem:[#allocation123_spill] sm:$0xff] %v4771_v0  ;;  %v4773_v1 = vld [vmem:[#allocation5 + $0x310] sm:$0xff]  ;;  %v4783_v61 = vld [vmem:[#allocation5 + $0x2e0] sm:$0xff] }
  0x73   :  { %546 = vmatpush2.msra.mxu0 %v4759_v63  ;;  %618 = vmatprep.subr.mxu1 %v4767_v2  ;;  %8485 = vst [vmem:[#allocation124_spill] sm:$0xff] %v4773_v1  ;;  %8486 = vst [vmem:[#allocation125_spill] sm:$0xff] %v4777_v58  ;;  %v4779_v63 = vld [vmem:[#allocation5 + $0x2f8] sm:$0xff]  ;;  %v4787_v2 = vld [vmem:[#allocation5 + $0x2c8] sm:$0xff] }
  0x74   :  { %547 = vmatprep.subr.mxu0 %v4765_v62  ;;  %619 = vmatpush2.msra.mxu1 %v4773_v1  ;;  %8487 = vst [vmem:[#allocation126_spill] sm:$0xff] %v4779_v63  ;;  %8488 = vst [vmem:[#allocation127_spill] sm:$0xff] %v4783_v61  ;;  %v4785_v62 = vld [vmem:[#allocation5 + $0x2f0] sm:$0xff]  ;;  %v4793_v1 = vld [vmem:[#allocation5 + $0x2c0] sm:$0xff] }
  0x75   :  { %548 = vmatpush2.msra.mxu0 %v4771_v0  ;;  %620 = vmatprep.subr.mxu1 %v4779_v63  ;;  %8489 = vst [vmem:[#allocation128_spill] sm:$0xff] %v4785_v62  ;;  %8490 = vst [vmem:[#allocation129_spill] sm:$0xff] %v4787_v2  ;;  %v4791_v0 = vld [vmem:[#allocation5 + $0x2d8] sm:$0xff]  ;;  %v4799_v63 = vld [vmem:[#allocation5 + $0x2a8] sm:$0xff] }
  0x76   :  { %549 = vmatprep.subr.mxu0 %v4777_v58  ;;  %621 = vmatpush2.msra.mxu1 %v4785_v62  ;;  %8491 = vst [vmem:[#allocation130_spill] sm:$0xff] %v4791_v0  ;;  %8492 = vst [vmem:[#allocation131_spill] sm:$0xff] %v4793_v1  ;;  %v4801_v58 = vld [vmem:[#allocation5 + $0x2b8] sm:$0xff]  ;;  %v4807_v62 = vld [vmem:[#allocation5 + $0x2b0] sm:$0xff] }
  0x77   :  { %550 = vmatpush2.msra.mxu0 %v4783_v61  ;;  %622 = vmatprep.subr.mxu1 %v4791_v0  ;;  %8494 = vst [vmem:[#allocation133_spill] sm:$0xff] %v4799_v63  ;;  %8495 = vst [vmem:[#allocation134_spill] sm:$0xff] %v4801_v58  ;;  %v4809_v61 = vld [vmem:[#allocation5 + $0x288] sm:$0xff]  ;;  %v4815_v0 = vld [vmem:[#allocation5 + $0x280] sm:$0xff] }
  0x78   :  { %551 = vmatprep.subr.mxu0 %v4787_v2  ;;  %623 = vmatpush2.msra.mxu1 %v4795_v57  ;;  %8497 = vst [vmem:[#allocation136_spill] sm:$0xff] %v4807_v62  ;;  %8498 = vst [vmem:[#allocation137_spill] sm:$0xff] %v4809_v61  ;;  %v4817_v2 = vld [vmem:[#allocation5 + $0x290] sm:$0xff]  ;;  %v4823_v57 = vld [vmem:[#allocation5 + $0x278] sm:$0xff] }
  0x79   :  { %552 = vmatpush2.msra.mxu0 %v4793_v1  ;;  %624 = vmatprep.subr.mxu1 %v4801_v58  ;;  %8500 = vst [vmem:[#allocation139_spill] sm:$0xff] %v4815_v0  ;;  %8501 = vst [vmem:[#allocation140_spill] sm:$0xff] %v4817_v2  ;;  %v4821_v1 = vld [vmem:[#allocation5 + $0x268] sm:$0xff] }
  0x7a   :  { %553 = vmatprep.subr.mxu0 %v4799_v63  ;;  %625 = vmatpush2.msra.mxu1 %v4807_v62  ;;  %8502 = vst [vmem:[#allocation141_spill] sm:$0xff] %v4821_v1  ;;  %8503 = vst [vmem:[#allocation142_spill] sm:$0xff] %v4823_v57  ;;  %v4829_v63 = vld [vmem:[#allocation5 + $0x270] sm:$0xff]  ;;  %v4833_v58 = vld [vmem:[#allocation5 + $0x248] sm:$0xff] }
  0x7b   :  { %554 = vmatpush2.msra.mxu0 %v4803_v59  ;;  %626 = vmatprep.subr.mxu1 %v4811_v60  ;;  %8505 = vst [vmem:[#allocation144_spill] sm:$0xff] %v4829_v63  ;;  %8506 = vst [vmem:[#allocation145_spill] sm:$0xff] %v4833_v58  ;;  %v4835_v59 = vld [vmem:[#allocation5 + $0x258] sm:$0xff]  ;;  %v4839_v62 = vld [vmem:[#allocation5 + $0x240] sm:$0xff] }
  0x7c   :  { %555 = vmatprep.subr.mxu0 %v4809_v61  ;;  %627 = vmatpush2.msra.mxu1 %v4817_v2  ;;  %8507 = vst [vmem:[#allocation146_spill] sm:$0xff] %v4835_v59  ;;  %8508 = vst [vmem:[#allocation147_spill] sm:$0xff] %v4839_v62  ;;  %v4841_v61 = vld [vmem:[#allocation5 + $0x250] sm:$0xff]  ;;  %v4845_v60 = vld [vmem:[#allocation5 + $0x228] sm:$0xff] }
  0x7d   :  { %556 = vmatpush2.msra.mxu0 %v4815_v0  ;;  %628 = vmatprep.subr.mxu1 %v4823_v57  ;;  %8509 = vst [vmem:[#allocation148_spill] sm:$0xff] %v4841_v61  ;;  %8510 = vst [vmem:[#allocation149_spill] sm:$0xff] %v4845_v60  ;;  %v4847_v0 = vld [vmem:[#allocation5 + $0x238] sm:$0xff]  ;;  %v4851_v2 = vld [vmem:[#allocation5 + $0x220] sm:$0xff] }
  0x7e   :  { %557 = vmatprep.subr.mxu0 %v4821_v1  ;;  %629 = vmatpush2.msra.mxu1 %v4829_v63  ;;  %8511 = vst [vmem:[#allocation150_spill] sm:$0xff] %v4847_v0  ;;  %8512 = vst [vmem:[#allocation151_spill] sm:$0xff] %v4851_v2  ;;  %v4853_v1 = vld [vmem:[#allocation5 + $0x230] sm:$0xff]  ;;  %v4857_v57 = vld [vmem:[#allocation5 + $0x208] sm:$0xff] }
  0x7f   :  { %558 = vmatpush2.msra.mxu0 %v4827_v56  ;;  %630 = vmatprep.subr.mxu1 %v4835_v59  ;;  %8513 = vst [vmem:[#allocation152_spill] sm:$0xff] %v4853_v1  ;;  %8514 = vst [vmem:[#allocation153_spill] sm:$0xff] %v4857_v57  ;;  %v4859_v56 = vld [vmem:[#allocation5 + $0x218] sm:$0xff]  ;;  %v4863_v63 = vld [vmem:[#allocation5 + $0x200] sm:$0xff] }
  0x80   :  { %559 = vmatprep.subr.mxu0 %v4833_v58  ;;  %631 = vmatpush2.msra.mxu1 %v4841_v61  ;;  %8515 = vst [vmem:[#allocation154_spill] sm:$0xff] %v4859_v56  ;;  %8516 = vst [vmem:[#allocation155_spill] sm:$0xff] %v4863_v63  ;;  %v4865_v58 = vld [vmem:[#allocation5 + $0x210] sm:$0xff] }
  0x81   :  { %560 = vmatpush2.msra.mxu0 %v4839_v62  ;;  %632 = vmatprep.subr.mxu1 %v4847_v0  ;;  %8517 = vst [vmem:[#allocation156_spill] sm:$0xff] %v4865_v58  ;;  %v61_v0 = vlaneseq }
  0x82   :  { %561 = vmatprep.subr.mxu0 %v4845_v60  ;;  %633 = vmatpush2.msra.mxu1 %v4853_v1  ;;  %v59_v1 = vld [vmem:[%s7711_s1] sm:$0xf] }
  0x83   :  { %562 = vmatpush2.msra.mxu0 %v4851_v2  ;;  %634 = vmatprep.subr.mxu1 %v4859_v56  ;;  %v62_v60 = vshrl.u32 %v61_v0, 7 }
  0x84   :  { %563 = vmatprep.subr.mxu0 %v4857_v57  ;;  %635 = vmatpush2.msra.mxu1 %v4865_v58 }
  0x85   :  { %564 = vmatpush2.msra.mxu0 %v4863_v63  ;;  %749 = vmatprep.subr.mxu1 %v4283_v4  ;;  %v4875_v61 = vsub.s32 0, %v62_v60  ;;  %v4880_v2 = vsub.s32 1, %v62_v60  ;;  %v4892_v0 = vsub.s32 3, %v62_v60  ;;  %v4905_v49 = vsub.s32 2, %v62_v60 }
  0x86   :  { %678 = vmatprep.subr.mxu0 %v4281_v3  ;;  %v81_v3 = vld [vmem:[%s7713_s3] sm:$0xf] }
  0x87   :  { %8518 = vst [vmem:[#allocation157_spill] sm:$0xff] %v4875_v61  ;;  %8519 = vst [vmem:[#allocation158_spill] sm:$0xff] %v4880_v2  ;;  %v4883_v56 = vrot.slane %v59_v1, %v4875_v61  ;;  %v4886_v63 = vrot.slane %v59_v1, %v4880_v2  ;;  %v4895_v57 = vrot.slane %v81_v3, %v4875_v61 }
  0x88   :  { %v4899_v54 = vrot.slane %v81_v3, %v4880_v2  ;;  %v4902_v52 = vrot.slane %v59_v1, %v4892_v0  ;;  %v4910_v2 = vrot.slane %v59_v1, %v4905_v49  ;;  %v4913_v47 = vrot.slane %v81_v3, %v4892_v0 }
  0x89   :  { %8520 = vst [vmem:[#allocation159_spill] sm:$0xff] %v4883_v56  ;;  %8521 = vst [vmem:[#allocation160_spill] sm:$0xff] %v4886_v63 }
  0x8a   :  { %8522 = vst [vmem:[#allocation161_spill] sm:$0xff] %v4899_v54  ;;  %8523 = vst [vmem:[#allocation162_spill] sm:$0xff] %v4902_v52 }
  0x8b   :  { %8524 = vst [vmem:[#allocation163_spill] sm:$0xff] %v4910_v2  ;;  %8525 = vst [vmem:[#allocation164_spill] sm:$0xff] %v4913_v47 }
  0xbd   :  { %v129_v58 = vpop.permute.xlu0 %128 }
  0xbe   :  { %v131_v4 = vmul.f32 %v129_v58, %v4883_v56  ;;  %v132_v62 = vmul.f32 %v129_v58, %v4886_v63  ;;  %v134_v63 = vmul.f32 %v129_v58, %v4902_v52 }
 0x101   :  { %v265_v59 = vpop.f32.mrf.mxu0  ;;  %v336_v50 = vpop.f32.mrf.mxu1 }
 0x102   :  { %v341_v55 = vadd.f32 %v265_v59, %v131_v4 }
 0x103   :  { %v267_v53 = vpop.f32.mrf.mxu0  ;;  %v338_v4 = vpop.f32.mrf.mxu1 }
 0x104   :  { %v345_v51 = vadd.f32 %v341_v55, %v4895_v57  ;;  %v342_v56 = vadd.f32 %v267_v53, %v132_v62  ;;  %v344_v55 = vadd.f32 %v338_v4, %v134_v63  ;;  %v133_v53 = vmul.f32 %v129_v58, %v4910_v2 }
 0x106   :  { %v3225_v48 = vmul.f32 -1.442695, %v345_v51  ;;  %v346_v61 = vadd.f32 %v342_v56, %v4899_v54  ;;  %v348_v60 = vadd.f32 %v344_v55, %v4913_v47  ;;  %v4918_v51 = vrot.slane %v81_v3, %v4905_v49 }
 0x107   :  { %v343_v56 = vadd.f32 %v336_v50, %v133_v53 }
 0x108   :  { %3342 = vpow2.f32 %v3225_v48  ;;  %v3226_v59 = vmul.f32 -1.442695, %v346_v61  ;;  %v3227_v62 = vmul.f32 -1.442695, %v348_v60 }
 0x109   :  { %v347_v61 = vadd.f32 %v343_v56, %v4918_v51  ;;  %v8571_v56 = vld [vmem:[#allocation53_spill] sm:$0xff] }
 0x10a   :  { %3344 = vpow2.f32 %v3226_v59 }
 0x10b   :  { %3346 = vpow2.f32 %v3227_v62  ;;  %v8572_v62 = vld [vmem:[#allocation54_spill] sm:$0xff] }
 0x115   :  { %v3343_v48 = vpop.eup %3342 }
 0x116   :  { %v352_v52 = vadd.f32 1.0, %v3343_v48  ;;  %v8573_v48 = vld [vmem:[#allocation55_spill] sm:$0xff] }
 0x117   :  { %v3345_v1 = vpop.eup %3344 }
 0x118   :  { %3348 = vrcp.f32 %v352_v52  ;;  %v358_v59 = vadd.f32 1.0, %v3345_v1  ;;  %v3347_v63 = vpop.eup %3346  ;;  %v8569_v52 = vld [vmem:[#allocation51_spill] sm:$0xff]  ;;  %v8575_v1 = vld [vmem:[#allocation57_spill] sm:$0xff] }
 0x119   :  { %3350 = vtanh.f32 %v347_v61  ;;  %v365_v55 = vadd.f32 1.0, %v3347_v63  ;;  %v8574_v61 = vld [vmem:[#allocation56_spill] sm:$0xff]  ;;  %v8577_v63 = vld [vmem:[#allocation59_spill] sm:$0xff] }
 0x11a   :  { %3352 = vrcp.f32 %v358_v59  ;;  %v8576_v59 = vld [vmem:[#allocation58_spill] sm:$0xff] }
 0x11b   :  { %3354 = vrcp.f32 %v365_v55  ;;  %v8580_v55 = vld [vmem:[#allocation62_spill] sm:$0xff] }
 0x125   :  { %v3349_v4 = vpop.eup %3348 }
 0x126   :  { %v3351_v58 = vpop.eup %3350 }
 0x127   :  { %v3353_v2 = vpop.eup %3352  ;;  %v369_v3 = vmul.f32 %v3351_v58, %v3349_v4  ;;  %v8578_v4 = vld [vmem:[#allocation60_spill] sm:$0xff]  ;;  %v8579_v58 = vld [vmem:[#allocation61_spill] sm:$0xff] }
 0x128   :  { %v368_v47 = vmul.f32 0.0, %v3353_v2  ;;  %v3355_v50 = vpop.eup %3354  ;;  %v8570_v2 = vld [vmem:[#allocation52_spill] sm:$0xff] }
 0x12a   :  { %v4921_v54 = vadd.f32 %v369_v3, %v368_v47  ;;  %v8568_v47 = vld [vmem:[#allocation50_spill] sm:$0xff]  ;;  %v8581_v3 = vld [vmem:[#allocation63_spill] sm:$0xff] }
 0x12c   :  { %3356 = vtanh.f32 %v4921_v54 }
 0x139   :  { %v3357_v53 = vpop.eup %3356 }
 0x13a   :  { %v4924_v60 = vmul.f32 %v3357_v53, %v3355_v50  ;;  %v8582_v50 = vld [vmem:[#allocation64_spill] sm:$0xff]  ;;  %v8583_v53 = vld [vmem:[#allocation65_spill] sm:$0xff] }
 0x13c   :  { %566 = vmatmul.mubr.f32.vlgmr.msra.gmra.mxu0 %v4924_v60  ;;  %637 = vmatmul.mubr.f32.vlgmr.msra.gmra.mxu1 %v4924_v60 }
 0x13d   :  { %679 = vmatpush1.msra.mxu0 %v4285_v5  ;;  %750 = vmatpush1.msra.mxu1 %v4289_v6  ;;  %v8526_v5 = vld [vmem:[#allocation9_spill] sm:$0xff]  ;;  %v8527_v6 = vld [vmem:[#allocation10_spill] sm:$0xff] }
 0x13e   :  { %680 = vmatprep.subr.mxu0 %v4291_v7  ;;  %751 = vmatprep.subr.mxu1 %v4293_v8  ;;  %v8528_v7 = vld [vmem:[#allocation11_spill] sm:$0xff]  ;;  %v8529_v8 = vld [vmem:[#allocation12_spill] sm:$0xff] }
 0x13f   :  { %681 = vmatpush1.msra.mxu0 %v4297_v9  ;;  %752 = vmatpush1.msra.mxu1 %v4299_v10  ;;  %v8530_v9 = vld [vmem:[#allocation13_spill] sm:$0xff]  ;;  %v8531_v10 = vld [vmem:[#allocation14_spill] sm:$0xff] }
 0x140   :  { %682 = vmatprep.subr.mxu0 %v4301_v11  ;;  %753 = vmatprep.subr.mxu1 %v4305_v12  ;;  %v8532_v11 = vld [vmem:[#allocation15_spill] sm:$0xff]  ;;  %v8533_v12 = vld [vmem:[#allocation16_spill] sm:$0xff] }
 0x141   :  { %683 = vmatpush1.msra.mxu0 %v4307_v13  ;;  %754 = vmatpush1.msra.mxu1 %v4309_v14  ;;  %v8534_v13 = vld [vmem:[#allocation17_spill] sm:$0xff]  ;;  %v8535_v14 = vld [vmem:[#allocation18_spill] sm:$0xff] }
 0x142   :  { %684 = vmatprep.subr.mxu0 %v4313_v15  ;;  %755 = vmatprep.subr.mxu1 %v4315_v16  ;;  %v8536_v15 = vld [vmem:[#allocation19_spill] sm:$0xff]  ;;  %v8537_v16 = vld [vmem:[#allocation20_spill] sm:$0xff] }
 0x143   :  { %685 = vmatpush1.msra.mxu0 %v4319_v17  ;;  %756 = vmatpush1.msra.mxu1 %v4321_v18  ;;  %v8538_v17 = vld [vmem:[#allocation21_spill] sm:$0xff]  ;;  %v8539_v18 = vld [vmem:[#allocation22_spill] sm:$0xff] }
 0x144   :  { %686 = vmatprep.subr.mxu0 %v4325_v19  ;;  %757 = vmatprep.subr.mxu1 %v4327_v20  ;;  %v8540_v19 = vld [vmem:[#allocation23_spill] sm:$0xff]  ;;  %v8541_v20 = vld [vmem:[#allocation24_spill] sm:$0xff] }
 0x145   :  { %687 = vmatpush1.msra.mxu0 %v4331_v21  ;;  %758 = vmatpush1.msra.mxu1 %v4333_v22  ;;  %v8542_v21 = vld [vmem:[#allocation25_spill] sm:$0xff]  ;;  %v8543_v22 = vld [vmem:[#allocation26_spill] sm:$0xff] }
 0x146   :  { %688 = vmatprep.subr.mxu0 %v4337_v23  ;;  %759 = vmatprep.subr.mxu1 %v4339_v24  ;;  %v8544_v23 = vld [vmem:[#allocation27_spill] sm:$0xff]  ;;  %v8545_v24 = vmov 0.0  }
 0x147   :  { %689 = vmatpush1.msra.mxu0 %v4343_v25  ;;  %760 = vmatpush1.msra.mxu1 %v4345_v26  ;;  %v8546_v25 = vld [vmem:[#allocation28_spill] sm:$0xff]  ;;  %v8547_v26 = vld [vmem:[#allocation29_spill] sm:$0xff] }
 0x148   :  { %690 = vmatprep.subr.mxu0 %v4349_v27  ;;  %761 = vmatprep.subr.mxu1 %v4351_v28  ;;  %v8548_v27 = vld [vmem:[#allocation30_spill] sm:$0xff]  ;;  %v8549_v28 = vld [vmem:[#allocation31_spill] sm:$0xff] }
 0x149   :  { %691 = vmatpush1.msra.mxu0 %v4355_v29  ;;  %762 = vmatpush1.msra.mxu1 %v4357_v30  ;;  %v8550_v29 = vld [vmem:[#allocation32_spill] sm:$0xff]  ;;  %v8551_v30 = vld [vmem:[#allocation33_spill] sm:$0xff] }
 0x14a   :  { %692 = vmatprep.subr.mxu0 %v4361_v31  ;;  %763 = vmatprep.subr.mxu1 %v4363_v32  ;;  %v8552_v31 = vld [vmem:[#allocation34_spill] sm:$0xff]  ;;  %v8553_v32 = vld [vmem:[#allocation35_spill] sm:$0xff] }
 0x14b   :  { %693 = vmatpush1.msra.mxu0 %v4367_v33  ;;  %764 = vmatpush1.msra.mxu1 %v4369_v34  ;;  %v8554_v33 = vld [vmem:[#allocation36_spill] sm:$0xff]  ;;  %v8555_v34 = vld [vmem:[#allocation37_spill] sm:$0xff] }
 0x14c   :  { %694 = vmatprep.subr.mxu0 %v4373_v35  ;;  %765 = vmatprep.subr.mxu1 %v4375_v36  ;;  %v8556_v35 = vld [vmem:[#allocation38_spill] sm:$0xff]  ;;  %v8557_v36 = vld [vmem:[#allocation39_spill] sm:$0xff] }
 0x14d   :  { %695 = vmatpush1.msra.mxu0 %v4379_v37  ;;  %766 = vmatpush1.msra.mxu1 %v4381_v38  ;;  %v8558_v37 = vld [vmem:[#allocation40_spill] sm:$0xff]  ;;  %v8559_v38 = vld [vmem:[#allocation41_spill] sm:$0xff] }
 0x14e   :  { %696 = vmatprep.subr.mxu0 %v4385_v39  ;;  %767 = vmatprep.subr.mxu1 %v4387_v40  ;;  %v8560_v39 = vld [vmem:[#allocation42_spill] sm:$0xff]  ;;  %v8561_v40 = vld [vmem:[#allocation43_spill] sm:$0xff] }
 0x14f   :  { %697 = vmatpush1.msra.mxu0 %v4391_v41  ;;  %768 = vmatpush1.msra.mxu1 %v4393_v42  ;;  %v8562_v41 = vld [vmem:[#allocation44_spill] sm:$0xff]  ;;  %v8563_v42 = vld [vmem:[#allocation45_spill] sm:$0xff] }
 0x150   :  { %698 = vmatprep.subr.mxu0 %v4397_v43  ;;  %769 = vmatprep.subr.mxu1 %v4399_v44  ;;  %v8564_v43 = vld [vmem:[#allocation46_spill] sm:$0xff]  ;;  %v8565_v44 = vld [vmem:[#allocation47_spill] sm:$0xff] }
 0x151   :  { %699 = vmatpush1.msra.mxu0 %v4403_v45  ;;  %770 = vmatpush1.msra.mxu1 %v4405_v46  ;;  %v8566_v45 = vld [vmem:[#allocation48_spill] sm:$0xff]  ;;  %v8567_v46 = vld [vmem:[#allocation49_spill] sm:$0xff] }
 0x152   :  { %700 = vmatprep.subr.mxu0 %v8526_v5  ;;  %771 = vmatprep.subr.mxu1 %v8527_v6  ;;  %v8585_v5 = vld [vmem:[#allocation67_spill] sm:$0xff]  ;;  %v8586_v6 = vld [vmem:[#allocation68_spill] sm:$0xff] }
 0x153   :  { %701 = vmatpush1.msra.mxu0 %v8528_v7  ;;  %772 = vmatpush1.msra.mxu1 %v8529_v8  ;;  %v8587_v7 = vld [vmem:[#allocation69_spill] sm:$0xff]  ;;  %v8588_v8 = vld [vmem:[#allocation70_spill] sm:$0xff] }
 0x154   :  { %702 = vmatprep.subr.mxu0 %v8530_v9  ;;  %773 = vmatprep.subr.mxu1 %v8531_v10  ;;  %v8589_v9 = vld [vmem:[#allocation71_spill] sm:$0xff]  ;;  %v8590_v10 = vld [vmem:[#allocation72_spill] sm:$0xff] }
 0x155   :  { %703 = vmatpush1.msra.mxu0 %v8532_v11  ;;  %774 = vmatpush1.msra.mxu1 %v8533_v12  ;;  %v8591_v11 = vld [vmem:[#allocation73_spill] sm:$0xff]  ;;  %v8592_v12 = vld [vmem:[#allocation74_spill] sm:$0xff] }
 0x156   :  { %704 = vmatprep.subr.mxu0 %v8534_v13  ;;  %775 = vmatprep.subr.mxu1 %v8535_v14  ;;  %v8593_v13 = vld [vmem:[#allocation75_spill] sm:$0xff]  ;;  %v8594_v14 = vld [vmem:[#allocation76_spill] sm:$0xff] }
 0x157   :  { %705 = vmatpush1.msra.mxu0 %v8536_v15  ;;  %776 = vmatpush1.msra.mxu1 %v8537_v16  ;;  %v8595_v15 = vld [vmem:[#allocation77_spill] sm:$0xff]  ;;  %v8596_v16 = vld [vmem:[#allocation78_spill] sm:$0xff] }
 0x158   :  { %706 = vmatprep.subr.mxu0 %v8538_v17  ;;  %777 = vmatprep.subr.mxu1 %v8539_v18  ;;  %v8597_v17 = vld [vmem:[#allocation79_spill] sm:$0xff]  ;;  %v8598_v18 = vld [vmem:[#allocation80_spill] sm:$0xff] }
 0x159   :  { %707 = vmatpush1.msra.mxu0 %v8540_v19  ;;  %778 = vmatpush1.msra.mxu1 %v8541_v20  ;;  %v8599_v19 = vld [vmem:[#allocation81_spill] sm:$0xff]  ;;  %v8600_v20 = vld [vmem:[#allocation82_spill] sm:$0xff] }
 0x15a   :  { %708 = vmatprep.subr.mxu0 %v8542_v21  ;;  %779 = vmatprep.subr.mxu1 %v8543_v22  ;;  %v8601_v21 = vld [vmem:[#allocation83_spill] sm:$0xff]  ;;  %v8602_v22 = vld [vmem:[#allocation84_spill] sm:$0xff] }
 0x15b   :  { %709 = vmatpush1.msra.mxu0 %v8544_v23  ;;  %742 = vmatprep.mubr.f32.mxu0 %v8545_v24  ;;  %v8603_v23 = vld [vmem:[#allocation85_spill] sm:$0xff] }
 0x15c   :  { %780 = vmatpush1.msra.mxu1 %v8546_v25  ;;  %813 = vmatprep.mubr.f32.mxu1 %v8545_v24  ;;  %v8604_v25 = vld [vmem:[#allocation86_spill] sm:$0xff] }
 0x15d   :  { %743 = vmatmul.mubr.f32.vlgmr.msra.gmra.mxu0 %v4924_v60  ;;  %814 = vmatmul.mubr.f32.vlgmr.msra.gmra.mxu1 %v4924_v60  ;;  %v8584_v60 = vld [vmem:[#allocation66_spill] sm:$0xff] }
 0x15e   :  { %852 = vmatprep.subr.mxu0 %v8547_v26  ;;  %923 = vmatprep.subr.mxu1 %v8548_v27  ;;  %v8605_v26 = vld [vmem:[#allocation87_spill] sm:$0xff]  ;;  %v8606_v27 = vld [vmem:[#allocation88_spill] sm:$0xff] }
 0x15f   :  { %853 = vmatpush1.msra.mxu0 %v8549_v28  ;;  %924 = vmatpush1.msra.mxu1 %v8550_v29  ;;  %v8607_v28 = vld [vmem:[#allocation89_spill] sm:$0xff]  ;;  %v8608_v29 = vld [vmem:[#allocation90_spill] sm:$0xff] }
 0x160   :  { %854 = vmatprep.subr.mxu0 %v8551_v30  ;;  %925 = vmatprep.subr.mxu1 %v8552_v31  ;;  %v8609_v30 = vld [vmem:[#allocation91_spill] sm:$0xff]  ;;  %v8610_v31 = vld [vmem:[#allocation92_spill] sm:$0xff] }
 0x161   :  { %855 = vmatpush1.msra.mxu0 %v8553_v32  ;;  %926 = vmatpush1.msra.mxu1 %v8554_v33  ;;  %v8611_v32 = vld [vmem:[#allocation93_spill] sm:$0xff]  ;;  %v8612_v33 = vld [vmem:[#allocation94_spill] sm:$0xff] }
 0x162   :  { %856 = vmatprep.subr.mxu0 %v8555_v34  ;;  %927 = vmatprep.subr.mxu1 %v8556_v35  ;;  %v8613_v34 = vld [vmem:[#allocation95_spill] sm:$0xff]  ;;  %v8614_v35 = vld [vmem:[#allocation96_spill] sm:$0xff] }
 0x163   :  { %857 = vmatpush1.msra.mxu0 %v8557_v36  ;;  %928 = vmatpush1.msra.mxu1 %v8558_v37  ;;  %v8615_v36 = vld [vmem:[#allocation97_spill] sm:$0xff]  ;;  %v8616_v37 = vld [vmem:[#allocation98_spill] sm:$0xff] }
 0x164   :  { %858 = vmatprep.subr.mxu0 %v8559_v38  ;;  %929 = vmatprep.subr.mxu1 %v8560_v39  ;;  %v8617_v38 = vld [vmem:[#allocation99_spill] sm:$0xff]  ;;  %v8618_v39 = vld [vmem:[#allocation100_spill] sm:$0xff] }
 0x165   :  { %859 = vmatpush1.msra.mxu0 %v8561_v40  ;;  %930 = vmatpush1.msra.mxu1 %v8562_v41  ;;  %v8619_v40 = vld [vmem:[#allocation101_spill] sm:$0xff]  ;;  %v8620_v41 = vld [vmem:[#allocation102_spill] sm:$0xff] }
 0x166   :  { %860 = vmatprep.subr.mxu0 %v8563_v42  ;;  %931 = vmatprep.subr.mxu1 %v8564_v43  ;;  %v8621_v42 = vld [vmem:[#allocation103_spill] sm:$0xff]  ;;  %v8622_v43 = vld [vmem:[#allocation104_spill] sm:$0xff] }
 0x167   :  { %861 = vmatpush1.msra.mxu0 %v8565_v44  ;;  %932 = vmatpush1.msra.mxu1 %v8566_v45  ;;  %v8623_v44 = vld [vmem:[#allocation105_spill] sm:$0xff]  ;;  %v8624_v45 = vld [vmem:[#allocation106_spill] sm:$0xff] }
 0x168   :  { %862 = vmatprep.subr.mxu0 %v8567_v46  ;;  %933 = vmatprep.subr.mxu1 %v8568_v47  ;;  %v8625_v46 = vld [vmem:[#allocation107_spill] sm:$0xff]  ;;  %v8626_v47 = vld [vmem:[#allocation108_spill] sm:$0xff] }
 0x169   :  { %863 = vmatpush1.msra.mxu0 %v8569_v52  ;;  %934 = vmatpush1.msra.mxu1 %v8570_v2  ;;  %v8627_v52 = vld [vmem:[#allocation109_spill] sm:$0xff]  ;;  %v8628_v2 = vld [vmem:[#allocation110_spill] sm:$0xff] }
 0x16a   :  { %864 = vmatprep.subr.mxu0 %v8571_v56  ;;  %935 = vmatprep.subr.mxu1 %v8572_v62  ;;  %v8629_v56 = vld [vmem:[#allocation111_spill] sm:$0xff]  ;;  %v8630_v62 = vld [vmem:[#allocation112_spill] sm:$0xff] }
 0x16b   :  { %865 = vmatpush1.msra.mxu0 %v8573_v48  ;;  %936 = vmatpush1.msra.mxu1 %v8574_v61  ;;  %v8631_v48 = vld [vmem:[#allocation113_spill] sm:$0xff]  ;;  %v8632_v61 = vld [vmem:[#allocation114_spill] sm:$0xff] }
 0x16c   :  { %866 = vmatprep.subr.mxu0 %v8575_v1  ;;  %937 = vmatprep.subr.mxu1 %v8576_v59  ;;  %v8633_v1 = vld [vmem:[#allocation115_spill] sm:$0xff]  ;;  %v8634_v59 = vld [vmem:[#allocation116_spill] sm:$0xff] }
 0x16d   :  { %867 = vmatpush1.msra.mxu0 %v8577_v63  ;;  %938 = vmatpush1.msra.mxu1 %v8578_v4  ;;  %v8635_v63 = vld [vmem:[#allocation117_spill] sm:$0xff]  ;;  %v8636_v4 = vld [vmem:[#allocation118_spill] sm:$0xff] }
 0x16e   :  { %868 = vmatprep.subr.mxu0 %v8579_v58  ;;  %939 = vmatprep.subr.mxu1 %v8580_v55  ;;  %v8637_v58 = vld [vmem:[#allocation119_spill] sm:$0xff]  ;;  %v8638_v55 = vld [vmem:[#allocation120_spill] sm:$0xff] }
 0x16f   :  { %869 = vmatpush1.msra.mxu0 %v8581_v3  ;;  %940 = vmatpush1.msra.mxu1 %v8582_v50  ;;  %v8639_v3 = vld [vmem:[#allocation121_spill] sm:$0xff]  ;;  %v8640_v50 = vld [vmem:[#allocation122_spill] sm:$0xff] }
 0x170   :  { %870 = vmatprep.subr.mxu0 %v8583_v53  ;;  %941 = vmatprep.subr.mxu1 %v8584_v60  ;;  %v8641_v53 = vld [vmem:[#allocation123_spill] sm:$0xff]  ;;  %v8642_v60 = vld [vmem:[#allocation124_spill] sm:$0xff] }
 0x171   :  { %871 = vmatpush1.msra.mxu0 %v8585_v5  ;;  %942 = vmatpush1.msra.mxu1 %v8586_v6  ;;  %v8643_v5 = vld [vmem:[#allocation125_spill] sm:$0xff]  ;;  %v8644_v6 = vld [vmem:[#allocation126_spill] sm:$0xff] }
 0x172   :  { %872 = vmatprep.subr.mxu0 %v8587_v7  ;;  %943 = vmatprep.subr.mxu1 %v8588_v8  ;;  %v8645_v7 = vld [vmem:[#allocation127_spill] sm:$0xff]  ;;  %v8646_v8 = vld [vmem:[#allocation128_spill] sm:$0xff] }
 0x173   :  { %873 = vmatpush1.msra.mxu0 %v8589_v9  ;;  %944 = vmatpush1.msra.mxu1 %v8590_v10  ;;  %v8647_v9 = vld [vmem:[#allocation129_spill] sm:$0xff]  ;;  %v8648_v10 = vld [vmem:[#allocation130_spill] sm:$0xff] }
 0x174   :  { %874 = vmatprep.subr.mxu0 %v8591_v11  ;;  %945 = vmatprep.subr.mxu1 %v8592_v12  ;;  %v8649_v11 = vld [vmem:[#allocation131_spill] sm:$0xff]  ;;  %v8650_v12 = vld [vmem:[#allocation132_spill] sm:$0xff] }
 0x175   :  { %875 = vmatpush1.msra.mxu0 %v8593_v13  ;;  %946 = vmatpush1.msra.mxu1 %v8594_v14  ;;  %v8651_v13 = vld [vmem:[#allocation133_spill] sm:$0xff]  ;;  %v8652_v14 = vld [vmem:[#allocation134_spill] sm:$0xff] }
 0x176   :  { %876 = vmatprep.subr.mxu0 %v8595_v15  ;;  %947 = vmatprep.subr.mxu1 %v8596_v16  ;;  %v8653_v15 = vld [vmem:[#allocation135_spill] sm:$0xff]  ;;  %v8654_v16 = vld [vmem:[#allocation136_spill] sm:$0xff] }
 0x177   :  { %877 = vmatpush1.msra.mxu0 %v8597_v17  ;;  %948 = vmatpush1.msra.mxu1 %v8598_v18  ;;  %v8655_v17 = vld [vmem:[#allocation137_spill] sm:$0xff]  ;;  %v8656_v18 = vld [vmem:[#allocation138_spill] sm:$0xff] }
 0x178   :  { %878 = vmatprep.subr.mxu0 %v8599_v19  ;;  %949 = vmatprep.subr.mxu1 %v8600_v20  ;;  %v8657_v19 = vld [vmem:[#allocation139_spill] sm:$0xff]  ;;  %v8658_v20 = vld [vmem:[#allocation140_spill] sm:$0xff] }
 0x179   :  { %879 = vmatpush1.msra.mxu0 %v8601_v21  ;;  %950 = vmatpush1.msra.mxu1 %v8602_v22  ;;  %v8659_v21 = vld [vmem:[#allocation141_spill] sm:$0xff]  ;;  %v8660_v22 = vld [vmem:[#allocation142_spill] sm:$0xff] }
 0x17a   :  { %880 = vmatprep.subr.mxu0 %v8603_v23  ;;  %951 = vmatprep.subr.mxu1 %v8604_v25  ;;  %v8661_v23 = vld [vmem:[#allocation143_spill] sm:$0xff]  ;;  %v8662_v25 = vld [vmem:[#allocation144_spill] sm:$0xff] }
 0x17b   :  { %881 = vmatpush1.msra.mxu0 %v8605_v26  ;;  %952 = vmatpush1.msra.mxu1 %v8606_v27  ;;  %v8663_v26 = vld [vmem:[#allocation145_spill] sm:$0xff]  ;;  %v8664_v27 = vld [vmem:[#allocation146_spill] sm:$0xff] }
 0x17c   :  { %882 = vmatprep.subr.mxu0 %v8607_v28  ;;  %953 = vmatprep.subr.mxu1 %v8608_v29  ;;  %v8665_v28 = vld [vmem:[#allocation147_spill] sm:$0xff]  ;;  %v8666_v29 = vld [vmem:[#allocation148_spill] sm:$0xff] }
 0x17d   :  { %883 = vmatpush1.msra.mxu0 %v8609_v30  ;;  %954 = vmatpush1.msra.mxu1 %v8610_v31  ;;  %v8667_v30 = vld [vmem:[#allocation149_spill] sm:$0xff]  ;;  %v8668_v31 = vld [vmem:[#allocation150_spill] sm:$0xff] }
 0x17e   :  { %884 = vmatprep.subr.mxu0 %v8611_v32  ;;  %955 = vmatprep.subr.mxu1 %v8612_v33  ;;  %v8669_v32 = vld [vmem:[#allocation151_spill] sm:$0xff]  ;;  %v8670_v33 = vld [vmem:[#allocation152_spill] sm:$0xff] }
 0x17f   :  { %885 = vmatpush2.msra.mxu0 %v8613_v34  ;;  %956 = vmatpush2.msra.mxu1 %v8614_v35  ;;  %v8671_v34 = vld [vmem:[#allocation153_spill] sm:$0xff]  ;;  %v8672_v35 = vld [vmem:[#allocation154_spill] sm:$0xff] }
 0x180   :  { %886 = vmatprep.subr.mxu0 %v8615_v36  ;;  %957 = vmatprep.subr.mxu1 %v8616_v37  ;;  %v8673_v36 = vld [vmem:[#allocation155_spill] sm:$0xff]  ;;  %v8674_v37 = vld [vmem:[#allocation156_spill] sm:$0xff] }
 0x181   :  { %887 = vmatpush2.msra.mxu0 %v8617_v38  ;;  %958 = vmatpush2.msra.mxu1 %v8618_v39  ;;  %v5122_v38 = vld [vmem:[#allocation3 + $0x1e8] sm:$0xff]  ;;  %v5125_v39 = vld [vmem:[#allocation3 + $0x1f8] sm:$0xff] }
 0x182   :  { %888 = vmatprep.subr.mxu0 %v8619_v40  ;;  %959 = vmatprep.subr.mxu1 %v8620_v41  ;;  %v103_v40 = vld [vmem:[%s7715_s5] sm:$0xf] }
 0x183   :  { %889 = vmatpush2.msra.mxu0 %v8621_v42  ;;  %960 = vmatpush2.msra.mxu1 %v8622_v43  ;;  %v8675_v41 = vld [vmem:[#allocation157_spill] sm:$0xff]  ;;  %v3238_v43 = vld [vmem:[%s7710_s0 + $0x10] sm:$0xff] }
 0x184   :  { %890 = vmatprep.subr.mxu0 %v8623_v44  ;;  %961 = vmatprep.subr.mxu1 %v8624_v45  ;;  %v5132_v42 = vrot.slane %v103_v40, %v8675_v41  ;;  %v8677_v44 = vld [vmem:[#allocation158_spill] sm:$0xff] }
 0x185   :  { %891 = vmatpush2.msra.mxu0 %v8625_v46  ;;  %962 = vmatpush2.msra.mxu1 %v8626_v47  ;;  %v5138_v45 = vrot.slane %v103_v40, %v8677_v44  ;;  %v3245_v46 = vld [vmem:[%s7710_s0 + $0x18] sm:$0xff] }
 0x186   :  { %892 = vmatprep.subr.mxu0 %v8627_v52  ;;  %963 = vmatprep.subr.mxu1 %v8628_v2  ;;  %8676 = vst [vmem:[#allocation9_spill] sm:$0xff] %v5132_v42 }
 0x187   :  { %893 = vmatpush2.msra.mxu0 %v8629_v56  ;;  %964 = vmatpush2.msra.mxu1 %v8630_v62  ;;  %8678 = vst [vmem:[#allocation10_spill] sm:$0xff] %v5138_v45 }
 0x188   :  { %894 = vmatprep.subr.mxu0 %v8631_v48  ;;  %965 = vmatprep.subr.mxu1 %v8632_v61  ;;  %v3259_v48 = vld [vmem:[%s7710_s0 + $0x28] sm:$0xff] }
 0x189   :  { %895 = vmatpush2.msra.mxu0 %v8633_v1  ;;  %966 = vmatpush2.msra.mxu1 %v8634_v59  ;;  %v5149_v59 = vrot.slane %v103_v40, %v4892_v0 }
 0x18a   :  { %896 = vmatprep.subr.mxu0 %v8635_v63  ;;  %967 = vmatprep.subr.mxu1 %v8636_v4  ;;  %v3273_v63 = vld [vmem:[%s7710_s0 + $0x38] sm:$0xff] }
 0x18b   :  { %897 = vmatpush2.msra.mxu0 %v8637_v58  ;;  %968 = vmatpush2.msra.mxu1 %v8638_v55  ;;  %8679 = vst [vmem:[#allocation11_spill] sm:$0xff] %v5149_v59  ;;  %v5156_v55 = vrot.slane %v103_v40, %v4905_v49  ;;  %v8682_v49 = vld [vmem:[#allocation160_spill] sm:$0xff] }
 0x18c   :  { %898 = vmatprep.subr.mxu0 %v8639_v3  ;;  %969 = vmatprep.subr.mxu1 %v8640_v50 }
 0x18d   :  { %899 = vmatpush2.msra.mxu0 %v8641_v53  ;;  %970 = vmatpush2.msra.mxu1 %v8642_v60  ;;  %8680 = vst [vmem:[#allocation12_spill] sm:$0xff] %v5156_v55 }
 0x18e   :  { %900 = vmatprep.subr.mxu0 %v8643_v5  ;;  %971 = vmatprep.subr.mxu1 %v8644_v6  ;;  %v672_v6 = vpop.permute.xlu0 %671 }
 0x18f   :  { %901 = vmatpush2.msra.mxu0 %v8645_v7  ;;  %972 = vmatpush2.msra.mxu1 %v8646_v8  ;;  %v8681_v8 = vld [vmem:[#allocation159_spill] sm:$0xff] }
 0x190   :  { %902 = vmatprep.subr.mxu0 %v8647_v9  ;;  %973 = vmatprep.subr.mxu1 %v8648_v10  ;;  %v674_v9 = vmul.f32 %v672_v6, %v8681_v8 }
 0x191   :  { %903 = vmatpush2.msra.mxu0 %v8649_v11  ;;  %974 = vmatpush2.msra.mxu1 %v8650_v12 }
 0x192   :  { %904 = vmatprep.subr.mxu0 %v8651_v13  ;;  %975 = vmatprep.subr.mxu1 %v8652_v14  ;;  %v675_v13 = vmul.f32 %v672_v6, %v8682_v49 }
 0x193   :  { %905 = vmatpush2.msra.mxu0 %v8653_v15  ;;  %976 = vmatpush2.msra.mxu1 %v8654_v16 }
 0x194   :  { %906 = vmatprep.subr.mxu0 %v8655_v17  ;;  %977 = vmatprep.subr.mxu1 %v8656_v18 }
 0x195   :  { %907 = vmatpush2.msra.mxu0 %v8657_v19  ;;  %978 = vmatpush2.msra.mxu1 %v8658_v20 }
 0x196   :  { %908 = vmatprep.subr.mxu0 %v8659_v21  ;;  %979 = vmatprep.subr.mxu1 %v8660_v22 }
 0x197   :  { %909 = vmatpush2.msra.mxu0 %v8661_v23  ;;  %980 = vmatpush2.msra.mxu1 %v8662_v25  ;;  %v8683_v25 = vld [vmem:[#allocation161_spill] sm:$0xff] }
 0x198   :  { %910 = vmatprep.subr.mxu0 %v8663_v26  ;;  %981 = vmatprep.subr.mxu1 %v8664_v27 }
 0x199   :  { %911 = vmatpush2.msra.mxu0 %v8665_v28  ;;  %982 = vmatpush2.msra.mxu1 %v8666_v29 }
 0x19a   :  { %912 = vmatprep.subr.mxu0 %v8667_v30  ;;  %983 = vmatprep.subr.mxu1 %v8668_v31  ;;  %v8684_v30 = vld [vmem:[#allocation162_spill] sm:$0xff] }
 0x19b   :  { %913 = vmatpush2.msra.mxu0 %v8669_v32  ;;  %984 = vmatpush2.msra.mxu1 %v8670_v33  ;;  %v677_v31 = vmul.f32 %v672_v6, %v8684_v30  ;;  %v8685_v33 = vld [vmem:[#allocation163_spill] sm:$0xff] }
 0x19c   :  { %914 = vmatprep.subr.mxu0 %v8671_v34  ;;  %985 = vmatprep.subr.mxu1 %v8672_v35  ;;  %v676_v34 = vmul.f32 %v672_v6, %v8685_v33  ;;  %v8686_v35 = vld [vmem:[#allocation164_spill] sm:$0xff] }
 0x19d   :  { %915 = vmatpush2.msra.mxu0 %v8673_v36  ;;  %986 = vmatpush2.msra.mxu1 %v8674_v37  ;;  %v5187_v6 = vld [vmem:[#allocation3 + $0x1d8] sm:$0xff] }
 0x19e   :  { %1029 = vmatprep.subr.mxu0 %v5122_v38  ;;  %1100 = vmatprep.subr.mxu1 %v5125_v39 }
 0x19f   :  { %1022 = vperm.xlu1 %3341, %v3238_v43  }
 0x1a3   :  { %1373 = vperm.xlu1 %3341, %v3245_v46  }
 0x1a7   :  { %2075 = vperm.xlu1 %3341, %v3259_v48  }
 0x1ab   :  { %2777 = vperm.xlu1 %3341, %v3273_v63  }
 0x1fc   :  { %v567_v47 = vpop.f32.mrf.mxu0  ;;  %v638_v61 = vpop.f32.mrf.mxu1 }
 0x1fd   :  { %v568_v52 = vadd.f32 %v567_v47, %v5132_v42  ;;  %v639_v53 = vadd.f32 %v638_v61, %v5156_v55 }
 0x1fe   :  { %v569_v2 = vpop.f32.mrf.mxu0  ;;  %v640_v4 = vpop.f32.mrf.mxu1 }
 0x1ff   :  { %v3228_v56 = vmul.f32 -1.442695, %v568_v52  ;;  %v570_v62 = vadd.f32 %v569_v2, %v5138_v45  ;;  %v641_v58 = vadd.f32 %v640_v4, %v5149_v59 }
 0x201   :  { %3358 = vpow2.f32 %v3228_v56  ;;  %v3229_v1 = vmul.f32 -1.442695, %v570_v62  ;;  %v3230_v3 = vmul.f32 -1.442695, %v641_v58 }
 0x203   :  { %3360 = vpow2.f32 %v3229_v1 }
 0x204   :  { %3362 = vpow2.f32 %v3230_v3 }
 0x20e   :  { %v3359_v50 = vpop.eup %3358 }
 0x20f   :  { %v646_v60 = vadd.f32 1.0, %v3359_v50 }
 0x210   :  { %v3361_v5 = vpop.eup %3360 }
 0x211   :  { %3364 = vrcp.f32 %v646_v60  ;;  %v652_v0 = vadd.f32 1.0, %v3361_v5  ;;  %v3363_v7 = vpop.eup %3362  ;;  %v5178_v5 = vld [vmem:[#allocation3 + $0x1e0] sm:$0xff] }
 0x212   :  { %3366 = vtanh.f32 %v639_v53  ;;  %v659_v15 = vadd.f32 1.0, %v3363_v7  ;;  %v5190_v7 = vld [vmem:[#allocation3 + $0x1c0] sm:$0xff] }
 0x213   :  { %3368 = vrcp.f32 %v652_v0  ;;  %v5181_v0 = vld [vmem:[#allocation3 + $0x1f0] sm:$0xff] }
 0x214   :  { %3370 = vrcp.f32 %v659_v15  ;;  %v5211_v15 = vld [vmem:[#allocation3 + $0x198] sm:$0xff] }
 0x21d   :  { %v744_v10 = vpop.f32.mrf.mxu0  ;;  %v815_v19 = vpop.f32.mrf.mxu1 }
 0x21e   :  { %v3365_v11 = vpop.eup %3364  ;;  %v820_v12 = vadd.f32 %v744_v10, %v674_v9  ;;  %v822_v37 = vadd.f32 %v815_v19, %v676_v34  ;;  %v5193_v9 = vld [vmem:[#allocation3 + $0x1d0] sm:$0xff]  ;;  %v5196_v10 = vld [vmem:[#allocation3 + $0x1a8] sm:$0xff]  ;;  %v5223_v19 = vld [vmem:[#allocation3 + $0x178] sm:$0xff] }
 0x21f   :  { %v3367_v14 = vpop.eup %3366  ;;  %v746_v16 = vpop.f32.mrf.mxu0  ;;  %v5253_v34 = vld [vmem:[#allocation3 + $0x130] sm:$0xff] }
 0x220   :  { %v3369_v17 = vpop.eup %3368  ;;  %v824_v18 = vadd.f32 %v820_v12, %v4895_v57  ;;  %v821_v20 = vadd.f32 %v746_v16, %v675_v13  ;;  %v663_v22 = vmul.f32 %v3367_v14, %v3365_v11  ;;  %v817_v29 = vpop.f32.mrf.mxu1  ;;  %v826_v44 = vadd.f32 %v822_v37, %v4918_v51  ;;  %v5199_v11 = vld [vmem:[#allocation3 + $0x1b8] sm:$0xff]  ;;  %v5202_v12 = vld [vmem:[#allocation3 + $0x1a0] sm:$0xff]  ;;  %v5205_v13 = vld [vmem:[#allocation3 + $0x1b0] sm:$0xff] }
 0x221   :  { %v662_v21 = vmul.f32 0.0, %v3369_v17  ;;  %v823_v32 = vadd.f32 %v817_v29, %v677_v31  ;;  %v3371_v41 = vpop.eup %3370  ;;  %v5208_v14 = vld [vmem:[#allocation3 + $0x188] sm:$0xff]  ;;  %v5214_v16 = vld [vmem:[#allocation3 + $0x180] sm:$0xff]  ;;  %v5217_v17 = vld [vmem:[#allocation3 + $0x190] sm:$0xff] }
 0x222   :  { %v3232_v23 = vmul.f32 -1.442695, %v824_v18  ;;  %v825_v26 = vadd.f32 %v821_v20, %v8683_v25  ;;  %v5220_v18 = vld [vmem:[#allocation3 + $0x168] sm:$0xff]  ;;  %v5226_v20 = vld [vmem:[#allocation3 + $0x160] sm:$0xff]  ;;  %v5247_v31 = vld [vmem:[#allocation3 + $0x138] sm:$0xff] }
 0x223   :  { %v5163_v27 = vadd.f32 %v663_v22, %v662_v21  ;;  %v827_v36 = vadd.f32 %v823_v32, %v8686_v35  ;;  %v5229_v21 = vld [vmem:[#allocation3 + $0x170] sm:$0xff]  ;;  %v5232_v22 = vld [vmem:[#allocation3 + $0x148] sm:$0xff]  ;;  %v5250_v32 = vld [vmem:[#allocation3 + $0x120] sm:$0xff] }
 0x224   :  { %3372 = vpow2.f32 %v3232_v23  ;;  %v3233_v28 = vmul.f32 -1.442695, %v825_v26  ;;  %v5235_v23 = vld [vmem:[#allocation3 + $0x158] sm:$0xff]  ;;  %v5238_v26 = vld [vmem:[#allocation3 + $0x140] sm:$0xff]  ;;  %v5244_v29 = vld [vmem:[#allocation3 + $0x128] sm:$0xff] }
 0x225   :  { %3374 = vtanh.f32 %v5163_v27  ;;  %v3234_v40 = vmul.f32 -1.442695, %v827_v36  ;;  %v5256_v36 = vld [vmem:[#allocation3 + $0x108] sm:$0xff]  ;;  %v5259_v37 = vld [vmem:[#allocation3 + $0x118] sm:$0xff] }
 0x226   :  { %3376 = vpow2.f32 %v3233_v28  ;;  %v5241_v28 = vld [vmem:[#allocation3 + $0x150] sm:$0xff] }
 0x227   :  { %3378 = vpow2.f32 %v3234_v40  ;;  %v5262_v40 = vld [vmem:[#allocation3 + $0x100] sm:$0xff] }
 0x231   :  { %v3373_v43 = vpop.eup %3372 }
 0x232   :  { %v3375_v46 = vpop.eup %3374  ;;  %v831_v47 = vadd.f32 1.0, %v3373_v43  ;;  %v5268_v43 = vld [vmem:[#allocation3 + $0xe8] sm:$0xff] }
 0x233   :  { %v3377_v52 = vpop.eup %3376  ;;  %v666_v2 = vmul.f32 %v3375_v46, %v3371_v41  ;;  %v5265_v41 = vld [vmem:[#allocation3 + $0x110] sm:$0xff]  ;;  %v5274_v46 = vld [vmem:[#allocation3 + $0xe0] sm:$0xff] }
 0x234   :  { %3380 = vrcp.f32 %v831_v47  ;;  %v837_v56 = vadd.f32 1.0, %v3377_v52  ;;  %v3379_v62 = vpop.eup %3378  ;;  %v5277_v47 = vld [vmem:[#allocation3 + $0xf0] sm:$0xff]  ;;  %v5280_v52 = vld [vmem:[#allocation3 + $0xc8] sm:$0xff] }
 0x235   :  { %3382 = vtanh.f32 %v826_v44  ;;  %916 = vmatprep.mubr.f32.mxu0 %v666_v2  ;;  %987 = vmatprep.mubr.f32.mxu1 %v666_v2  ;;  %v844_v63 = vadd.f32 1.0, %v3379_v62  ;;  %v5271_v44 = vld [vmem:[#allocation3 + $0xf8] sm:$0xff]  ;;  %v5289_v62 = vld [vmem:[#allocation3 + $0xd0] sm:$0xff] }
 0x236   :  { %3384 = vrcp.f32 %v837_v56  ;;  %v5283_v2 = vld [vmem:[#allocation3 + $0xd8] sm:$0xff]  ;;  %v5286_v56 = vld [vmem:[#allocation3 + $0xc0] sm:$0xff]  ;;  %8688 = vst [vmem:[#allocation14_spill] sm:$0xff] %v5289_v62 }
 0x237   :  { %3386 = vrcp.f32 %v844_v63  ;;  %8687 = vst [vmem:[#allocation13_spill] sm:$0xff] %v5286_v56  ;;  %v5301_v63 = vld [vmem:[#allocation3 + $0xb0] sm:$0xff] }
 0x238   :  { %8692 = vst [vmem:[#allocation18_spill] sm:$0xff] %v5301_v63 }
 0x241   :  { %v3381_v48 = vpop.eup %3380 }
 0x242   :  { %v3383_v61 = vpop.eup %3382 }
 0x243   :  { %v3385_v1 = vpop.eup %3384  ;;  %v848_v4 = vmul.f32 %v3383_v61, %v3381_v48  ;;  %v5292_v48 = vld [vmem:[#allocation3 + $0xa8] sm:$0xff]  ;;  %v5295_v61 = vld [vmem:[#allocation3 + $0xb8] sm:$0xff] }
 0x244   :  { %v847_v58 = vmul.f32 %v3385_v1, %v4921_v54  ;;  %v3387_v50 = vpop.eup %3386  ;;  %v5184_v54 = vld [vmem:[#allocation3 + $0x1c8] sm:$0xff]  ;;  %8689 = vst [vmem:[#allocation15_spill] sm:$0xff] %v5292_v48  ;;  %8690 = vst [vmem:[#allocation16_spill] sm:$0xff] %v5295_v61  ;;  %v5298_v1 = vld [vmem:[#allocation3 + $0xa0] sm:$0xff] }
 0x245   :  { %8691 = vst [vmem:[#allocation17_spill] sm:$0xff] %v5298_v1 }
 0x246   :  { %v5171_v3 = vadd.f32 %v848_v4, %v847_v58  ;;  %v5304_v4 = vld [vmem:[#allocation3 + $0x88] sm:$0xff]  ;;  %v5307_v58 = vld [vmem:[#allocation3 + $0x98] sm:$0xff] }
 0x247   :  { %8693 = vst [vmem:[#allocation19_spill] sm:$0xff] %v5304_v4  ;;  %8694 = vst [vmem:[#allocation20_spill] sm:$0xff] %v5307_v58 }
 0x248   :  { %3388 = vtanh.f32 %v5171_v3 }
 0x255   :  { %v3389_v53 = vpop.eup %3388 }
 0x256   :  { %v5174_v60 = vmul.f32 %v3389_v53, %v3387_v50  ;;  %v5310_v50 = vld [vmem:[#allocation3 + $0x80] sm:$0xff]  ;;  %v5313_v53 = vld [vmem:[#allocation3 + $0x90] sm:$0xff] }
 0x257   :  { %8695 = vst [vmem:[#allocation21_spill] sm:$0xff] %v5310_v50  ;;  %8696 = vst [vmem:[#allocation22_spill] sm:$0xff] %v5313_v53 }
 0x258   :  { %917 = vmatmul.mubr.f32.vlgmr.msra.gmra.mxu0 %v5174_v60  ;;  %988 = vmatmul.mubr.f32.vlgmr.msra.gmra.mxu1 %v5174_v60 }
 0x259   :  { %1030 = vmatpush1.msra.mxu0 %v5178_v5  ;;  %1101 = vmatpush1.msra.mxu1 %v5181_v0 }
 0x25a   :  { %1031 = vmatprep.subr.mxu0 %v5184_v54  ;;  %1102 = vmatprep.subr.mxu1 %v5187_v6 }
 0x25b   :  { %1032 = vmatpush1.msra.mxu0 %v5190_v7  ;;  %1103 = vmatpush1.msra.mxu1 %v5193_v9 }
 0x25c   :  { %1033 = vmatprep.subr.mxu0 %v5196_v10  ;;  %1104 = vmatprep.subr.mxu1 %v5199_v11 }
 0x25d   :  { %1034 = vmatpush1.msra.mxu0 %v5202_v12  ;;  %1105 = vmatpush1.msra.mxu1 %v5205_v13 }
 0x25e   :  { %1035 = vmatprep.subr.mxu0 %v5208_v14  ;;  %1106 = vmatprep.subr.mxu1 %v5211_v15 }
 0x25f   :  { %1036 = vmatpush1.msra.mxu0 %v5214_v16  ;;  %1107 = vmatpush1.msra.mxu1 %v5217_v17 }
 0x260   :  { %1037 = vmatprep.subr.mxu0 %v5220_v18  ;;  %1108 = vmatprep.subr.mxu1 %v5223_v19 }
 0x261   :  { %1038 = vmatpush1.msra.mxu0 %v5226_v20  ;;  %1109 = vmatpush1.msra.mxu1 %v5229_v21 }
 0x262   :  { %1039 = vmatprep.subr.mxu0 %v5232_v22  ;;  %1110 = vmatprep.subr.mxu1 %v5235_v23 }
 0x263   :  { %1040 = vmatpush1.msra.mxu0 %v5238_v26  ;;  %1111 = vmatpush1.msra.mxu1 %v5241_v28 }
 0x264   :  { %1041 = vmatprep.subr.mxu0 %v5244_v29  ;;  %1112 = vmatprep.subr.mxu1 %v5247_v31 }
 0x265   :  { %1042 = vmatpush1.msra.mxu0 %v5250_v32  ;;  %1113 = vmatpush1.msra.mxu1 %v5253_v34 }
 0x266   :  { %1043 = vmatprep.subr.mxu0 %v5256_v36  ;;  %1114 = vmatprep.subr.mxu1 %v5259_v37 }
 0x267   :  { %1044 = vmatpush1.msra.mxu0 %v5262_v40  ;;  %1115 = vmatpush1.msra.mxu1 %v5265_v41 }
 0x268   :  { %1045 = vmatprep.subr.mxu0 %v5268_v43  ;;  %1116 = vmatprep.subr.mxu1 %v5271_v44 }
 0x269   :  { %1046 = vmatpush1.msra.mxu0 %v5274_v46  ;;  %1117 = vmatpush1.msra.mxu1 %v5277_v47 }
 0x26a   :  { %1047 = vmatprep.subr.mxu0 %v5280_v52  ;;  %1118 = vmatprep.subr.mxu1 %v5283_v2 }
 0x26b   :  { %1048 = vmatpush1.msra.mxu0 %v5286_v56  ;;  %1119 = vmatpush1.msra.mxu1 %v5289_v62 }
 0x26c   :  { %1049 = vmatprep.subr.mxu0 %v5292_v48  ;;  %1120 = vmatprep.subr.mxu1 %v5295_v61 }
 0x26d   :  { %1050 = vmatpush1.msra.mxu0 %v5298_v1  ;;  %1121 = vmatpush1.msra.mxu1 %v5301_v63  ;;  %v5316_v1 = vld [vmem:[#allocation3 + $0x68] sm:$0xff]  ;;  %v5319_v63 = vld [vmem:[#allocation3 + $0x78] sm:$0xff] }
 0x26e   :  { %1051 = vmatprep.subr.mxu0 %v5304_v4  ;;  %1122 = vmatprep.subr.mxu1 %v5307_v58  ;;  %8697 = vst [vmem:[#allocation23_spill] sm:$0xff] %v5316_v1  ;;  %8698 = vst [vmem:[#allocation24_spill] sm:$0xff] %v5319_v63  ;;  %v5322_v4 = vld [vmem:[#allocation3 + $0x60] sm:$0xff]  ;;  %v5325_v58 = vld [vmem:[#allocation3 + $0x70] sm:$0xff] }
 0x26f   :  { %1052 = vmatpush1.msra.mxu0 %v5310_v50  ;;  %1123 = vmatpush1.msra.mxu1 %v5313_v53  ;;  %8699 = vst [vmem:[#allocation25_spill] sm:$0xff] %v5322_v4  ;;  %8700 = vst [vmem:[#allocation26_spill] sm:$0xff] %v5325_v58  ;;  %v5328_v50 = vld [vmem:[#allocation3 + $0x48] sm:$0xff]  ;;  %v5331_v53 = vld [vmem:[#allocation3 + $0x58] sm:$0xff] }
 0x270   :  { %1053 = vmatprep.subr.mxu0 %v5316_v1  ;;  %1124 = vmatprep.subr.mxu1 %v5319_v63  ;;  %8701 = vst [vmem:[#allocation27_spill] sm:$0xff] %v5328_v50  ;;  %8702 = vst [vmem:[#allocation28_spill] sm:$0xff] %v5331_v53  ;;  %v5334_v1 = vld [vmem:[#allocation3 + $0x40] sm:$0xff]  ;;  %v5337_v63 = vld [vmem:[#allocation3 + $0x50] sm:$0xff] }
 0x271   :  { %1054 = vmatpush1.msra.mxu0 %v5322_v4  ;;  %1125 = vmatpush1.msra.mxu1 %v5325_v58  ;;  %8703 = vst [vmem:[#allocation29_spill] sm:$0xff] %v5334_v1  ;;  %8704 = vst [vmem:[#allocation30_spill] sm:$0xff] %v5337_v63  ;;  %v5340_v4 = vld [vmem:[#allocation3 + $0x28] sm:$0xff]  ;;  %v5343_v58 = vld [vmem:[#allocation3 + $0x38] sm:$0xff] }
 0x272   :  { %1055 = vmatprep.subr.mxu0 %v5328_v50  ;;  %1126 = vmatprep.subr.mxu1 %v5331_v53  ;;  %8705 = vst [vmem:[#allocation31_spill] sm:$0xff] %v5340_v4  ;;  %8706 = vst [vmem:[#allocation32_spill] sm:$0xff] %v5343_v58  ;;  %v5346_v50 = vld [vmem:[#allocation3 + $0x20] sm:$0xff]  ;;  %v5349_v53 = vld [vmem:[#allocation3 + $0x30] sm:$0xff] }
 0x273   :  { %1056 = vmatpush1.msra.mxu0 %v5334_v1  ;;  %1127 = vmatpush1.msra.mxu1 %v5337_v63  ;;  %8707 = vst [vmem:[#allocation33_spill] sm:$0xff] %v5346_v50  ;;  %8708 = vst [vmem:[#allocation34_spill] sm:$0xff] %v5349_v53  ;;  %v5352_v1 = vld [vmem:[#allocation3 + $0x8] sm:$0xff]  ;;  %v5355_v63 = vld [vmem:[#allocation3 + $0x18] sm:$0xff] }
 0x274   :  { %1057 = vmatprep.subr.mxu0 %v5340_v4  ;;  %1128 = vmatprep.subr.mxu1 %v5343_v58  ;;  %8709 = vst [vmem:[#allocation35_spill] sm:$0xff] %v5352_v1  ;;  %8710 = vst [vmem:[#allocation36_spill] sm:$0xff] %v5355_v63  ;;  %v5358_v4 = vld [vmem:[#allocation3] sm:$0xff]  ;;  %v5362_v58 = vld [vmem:[#allocation3 + $0x10] sm:$0xff] }
 0x275   :  { %1058 = vmatpush1.msra.mxu0 %v5346_v50  ;;  %1129 = vmatpush1.msra.mxu1 %v5349_v53  ;;  %8711 = vst [vmem:[#allocation37_spill] sm:$0xff] %v5358_v4  ;;  %8712 = vst [vmem:[#allocation38_spill] sm:$0xff] %v5362_v58  ;;  %v5377_v53 = vld [vmem:[#allocation5 + $0x1f0] sm:$0xff] }
 0x276   :  { %1059 = vmatprep.subr.mxu0 %v5352_v1  ;;  %1130 = vmatprep.subr.mxu1 %v5355_v63  ;;  %v5368_v1 = vld [vmem:[#allocation5 + $0x1e8] sm:$0xff]  ;;  %v5371_v63 = vld [vmem:[#allocation5 + $0x1f8] sm:$0xff]  ;;  %8716 = vst [vmem:[#allocation42_spill] sm:$0xff] %v5377_v53 }
 0x277   :  { %1060 = vmatpush1.msra.mxu0 %v5358_v4  ;;  %1093 = vmatprep.mubr.f32.mxu0 %v8545_v24  ;;  %8713 = vst [vmem:[#allocation39_spill] sm:$0xff] %v5368_v1  ;;  %8714 = vst [vmem:[#allocation40_spill] sm:$0xff] %v5371_v63  ;;  %v5374_v4 = vld [vmem:[#allocation5 + $0x1e0] sm:$0xff] }
 0x278   :  { %1131 = vmatpush1.msra.mxu1 %v5362_v58  ;;  %1164 = vmatprep.mubr.f32.mxu1 %v8545_v24  ;;  %8715 = vst [vmem:[#allocation41_spill] sm:$0xff] %v5374_v4  ;;  %v5380_v58 = vld [vmem:[#allocation5 + $0x1c8] sm:$0xff] }
 0x279   :  { %1094 = vmatmul.mubr.f32.vlgmr.msra.gmra.mxu0 %v5174_v60  ;;  %1165 = vmatmul.mubr.f32.vlgmr.msra.gmra.mxu1 %v5174_v60  ;;  %8717 = vst [vmem:[#allocation43_spill] sm:$0xff] %v5380_v58  ;;  %v5383_v60 = vld [vmem:[#allocation5 + $0x1d8] sm:$0xff] }
 0x27a   :  { %1203 = vmatprep.subr.mxu0 %v5368_v1  ;;  %1274 = vmatprep.subr.mxu1 %v5371_v63  ;;  %8718 = vst [vmem:[#allocation44_spill] sm:$0xff] %v5383_v60  ;;  %v5386_v1 = vld [vmem:[#allocation5 + $0x1c0] sm:$0xff]  ;;  %v5389_v63 = vld [vmem:[#allocation5 + $0x1d0] sm:$0xff] }
 0x27b   :  { %1204 = vmatpush1.msra.mxu0 %v5374_v4  ;;  %1275 = vmatpush1.msra.mxu1 %v5377_v53  ;;  %8719 = vst [vmem:[#allocation45_spill] sm:$0xff] %v5386_v1  ;;  %8720 = vst [vmem:[#allocation46_spill] sm:$0xff] %v5389_v63  ;;  %v5392_v4 = vld [vmem:[#allocation5 + $0x1a8] sm:$0xff]  ;;  %v5395_v53 = vld [vmem:[#allocation5 + $0x1b8] sm:$0xff] }
 0x27c   :  { %1205 = vmatprep.subr.mxu0 %v5380_v58  ;;  %1276 = vmatprep.subr.mxu1 %v5383_v60  ;;  %8721 = vst [vmem:[#allocation47_spill] sm:$0xff] %v5392_v4  ;;  %8722 = vst [vmem:[#allocation48_spill] sm:$0xff] %v5395_v53  ;;  %v5398_v58 = vld [vmem:[#allocation5 + $0x1a0] sm:$0xff]  ;;  %v5401_v60 = vld [vmem:[#allocation5 + $0x1b0] sm:$0xff] }
 0x27d   :  { %1206 = vmatpush1.msra.mxu0 %v5386_v1  ;;  %1277 = vmatpush1.msra.mxu1 %v5389_v63  ;;  %8723 = vst [vmem:[#allocation49_spill] sm:$0xff] %v5398_v58  ;;  %8724 = vst [vmem:[#allocation50_spill] sm:$0xff] %v5401_v60  ;;  %v5404_v1 = vld [vmem:[#allocation5 + $0x188] sm:$0xff]  ;;  %v5407_v63 = vld [vmem:[#allocation5 + $0x198] sm:$0xff] }
 0x27e   :  { %1207 = vmatprep.subr.mxu0 %v5392_v4  ;;  %1278 = vmatprep.subr.mxu1 %v5395_v53  ;;  %8725 = vst [vmem:[#allocation51_spill] sm:$0xff] %v5404_v1  ;;  %8726 = vst [vmem:[#allocation52_spill] sm:$0xff] %v5407_v63  ;;  %v5410_v4 = vld [vmem:[#allocation5 + $0x180] sm:$0xff]  ;;  %v5413_v53 = vld [vmem:[#allocation5 + $0x190] sm:$0xff] }
 0x27f   :  { %1208 = vmatpush1.msra.mxu0 %v5398_v58  ;;  %1279 = vmatpush1.msra.mxu1 %v5401_v60  ;;  %8727 = vst [vmem:[#allocation53_spill] sm:$0xff] %v5410_v4  ;;  %8728 = vst [vmem:[#allocation54_spill] sm:$0xff] %v5413_v53  ;;  %v5416_v58 = vld [vmem:[#allocation5 + $0x168] sm:$0xff]  ;;  %v5419_v60 = vld [vmem:[#allocation5 + $0x178] sm:$0xff] }
 0x280   :  { %1209 = vmatprep.subr.mxu0 %v5404_v1  ;;  %1280 = vmatprep.subr.mxu1 %v5407_v63  ;;  %8729 = vst [vmem:[#allocation55_spill] sm:$0xff] %v5416_v58  ;;  %8730 = vst [vmem:[#allocation56_spill] sm:$0xff] %v5419_v60  ;;  %v5422_v1 = vld [vmem:[#allocation5 + $0x160] sm:$0xff]  ;;  %v5425_v63 = vld [vmem:[#allocation5 + $0x170] sm:$0xff] }
 0x281   :  { %1210 = vmatpush1.msra.mxu0 %v5410_v4  ;;  %1281 = vmatpush1.msra.mxu1 %v5413_v53  ;;  %8731 = vst [vmem:[#allocation57_spill] sm:$0xff] %v5422_v1  ;;  %8732 = vst [vmem:[#allocation58_spill] sm:$0xff] %v5425_v63  ;;  %v5428_v4 = vld [vmem:[#allocation5 + $0x148] sm:$0xff]  ;;  %v5431_v53 = vld [vmem:[#allocation5 + $0x158] sm:$0xff] }
 0x282   :  { %1211 = vmatprep.subr.mxu0 %v5416_v58  ;;  %1282 = vmatprep.subr.mxu1 %v5419_v60  ;;  %8733 = vst [vmem:[#allocation59_spill] sm:$0xff] %v5428_v4  ;;  %8734 = vst [vmem:[#allocation60_spill] sm:$0xff] %v5431_v53  ;;  %v5434_v58 = vld [vmem:[#allocation5 + $0x140] sm:$0xff]  ;;  %v5437_v60 = vld [vmem:[#allocation5 + $0x150] sm:$0xff] }
 0x283   :  { %1212 = vmatpush1.msra.mxu0 %v5422_v1  ;;  %1283 = vmatpush1.msra.mxu1 %v5425_v63  ;;  %8735 = vst [vmem:[#allocation61_spill] sm:$0xff] %v5434_v58  ;;  %8736 = vst [vmem:[#allocation62_spill] sm:$0xff] %v5437_v60  ;;  %v5440_v1 = vld [vmem:[#allocation5 + $0x128] sm:$0xff]  ;;  %v5443_v63 = vld [vmem:[#allocation5 + $0x138] sm:$0xff] }
 0x284   :  { %1213 = vmatprep.subr.mxu0 %v5428_v4  ;;  %1284 = vmatprep.subr.mxu1 %v5431_v53  ;;  %8737 = vst [vmem:[#allocation63_spill] sm:$0xff] %v5440_v1  ;;  %8738 = vst [vmem:[#allocation64_spill] sm:$0xff] %v5443_v63  ;;  %v5446_v4 = vld [vmem:[#allocation5 + $0x120] sm:$0xff]  ;;  %v5449_v53 = vld [vmem:[#allocation5 + $0x130] sm:$0xff] }
 0x285   :  { %1214 = vmatpush1.msra.mxu0 %v5434_v58  ;;  %1285 = vmatpush1.msra.mxu1 %v5437_v60  ;;  %8739 = vst [vmem:[#allocation65_spill] sm:$0xff] %v5446_v4  ;;  %8740 = vst [vmem:[#allocation66_spill] sm:$0xff] %v5449_v53  ;;  %v5452_v58 = vld [vmem:[#allocation5 + $0x108] sm:$0xff]  ;;  %v5455_v60 = vld [vmem:[#allocation5 + $0x118] sm:$0xff] }
 0x286   :  { %1215 = vmatprep.subr.mxu0 %v5440_v1  ;;  %1286 = vmatprep.subr.mxu1 %v5443_v63  ;;  %8741 = vst [vmem:[#allocation67_spill] sm:$0xff] %v5452_v58  ;;  %8742 = vst [vmem:[#allocation68_spill] sm:$0xff] %v5455_v60  ;;  %v5458_v1 = vld [vmem:[#allocation5 + $0x100] sm:$0xff]  ;;  %v5461_v63 = vld [vmem:[#allocation5 + $0x110] sm:$0xff] }
 0x287   :  { %1216 = vmatpush1.msra.mxu0 %v5446_v4  ;;  %1287 = vmatpush1.msra.mxu1 %v5449_v53  ;;  %8743 = vst [vmem:[#allocation69_spill] sm:$0xff] %v5458_v1  ;;  %8744 = vst [vmem:[#allocation70_spill] sm:$0xff] %v5461_v63  ;;  %v5464_v4 = vld [vmem:[#allocation5 + $0xe8] sm:$0xff]  ;;  %v5467_v53 = vld [vmem:[#allocation5 + $0xf8] sm:$0xff] }
 0x288   :  { %1217 = vmatprep.subr.mxu0 %v5452_v58  ;;  %1288 = vmatprep.subr.mxu1 %v5455_v60  ;;  %8745 = vst [vmem:[#allocation71_spill] sm:$0xff] %v5464_v4  ;;  %8746 = vst [vmem:[#allocation72_spill] sm:$0xff] %v5467_v53  ;;  %v5470_v58 = vld [vmem:[#allocation5 + $0xe0] sm:$0xff]  ;;  %v5473_v60 = vld [vmem:[#allocation5 + $0xf0] sm:$0xff] }
 0x289   :  { %1218 = vmatpush1.msra.mxu0 %v5458_v1  ;;  %1289 = vmatpush1.msra.mxu1 %v5461_v63  ;;  %8747 = vst [vmem:[#allocation73_spill] sm:$0xff] %v5470_v58  ;;  %8748 = vst [vmem:[#allocation74_spill] sm:$0xff] %v5473_v60  ;;  %v5476_v1 = vld [vmem:[#allocation5 + $0xc8] sm:$0xff]  ;;  %v5479_v63 = vld [vmem:[#allocation5 + $0xd8] sm:$0xff] }
 0x28a   :  { %1219 = vmatprep.subr.mxu0 %v5464_v4  ;;  %1290 = vmatprep.subr.mxu1 %v5467_v53  ;;  %8749 = vst [vmem:[#allocation75_spill] sm:$0xff] %v5476_v1  ;;  %8750 = vst [vmem:[#allocation76_spill] sm:$0xff] %v5479_v63  ;;  %v5482_v4 = vld [vmem:[#allocation5 + $0xc0] sm:$0xff]  ;;  %v5485_v53 = vld [vmem:[#allocation5 + $0xd0] sm:$0xff] }
 0x28b   :  { %1220 = vmatpush1.msra.mxu0 %v5470_v58  ;;  %1291 = vmatpush1.msra.mxu1 %v5473_v60  ;;  %8751 = vst [vmem:[#allocation77_spill] sm:$0xff] %v5482_v4  ;;  %8752 = vst [vmem:[#allocation78_spill] sm:$0xff] %v5485_v53  ;;  %v5488_v58 = vld [vmem:[#allocation5 + $0xa8] sm:$0xff]  ;;  %v5491_v60 = vld [vmem:[#allocation5 + $0xb8] sm:$0xff] }
 0x28c   :  { %1221 = vmatprep.subr.mxu0 %v5476_v1  ;;  %1292 = vmatprep.subr.mxu1 %v5479_v63  ;;  %8753 = vst [vmem:[#allocation79_spill] sm:$0xff] %v5488_v58  ;;  %8754 = vst [vmem:[#allocation80_spill] sm:$0xff] %v5491_v60  ;;  %v5494_v1 = vld [vmem:[#allocation5 + $0xa0] sm:$0xff]  ;;  %v5497_v63 = vld [vmem:[#allocation5 + $0xb0] sm:$0xff] }
 0x28d   :  { %1222 = vmatpush1.msra.mxu0 %v5482_v4  ;;  %1293 = vmatpush1.msra.mxu1 %v5485_v53  ;;  %8755 = vst [vmem:[#allocation81_spill] sm:$0xff] %v5494_v1  ;;  %8756 = vst [vmem:[#allocation82_spill] sm:$0xff] %v5497_v63  ;;  %v5500_v4 = vld [vmem:[#allocation5 + $0x88] sm:$0xff]  ;;  %v5503_v53 = vld [vmem:[#allocation5 + $0x98] sm:$0xff] }
 0x28e   :  { %1223 = vmatprep.subr.mxu0 %v5488_v58  ;;  %1294 = vmatprep.subr.mxu1 %v5491_v60  ;;  %8757 = vst [vmem:[#allocation83_spill] sm:$0xff] %v5500_v4  ;;  %8758 = vst [vmem:[#allocation84_spill] sm:$0xff] %v5503_v53  ;;  %v5506_v58 = vld [vmem:[#allocation5 + $0x80] sm:$0xff]  ;;  %v5509_v60 = vld [vmem:[#allocation5 + $0x90] sm:$0xff] }
 0x28f   :  { %1224 = vmatpush1.msra.mxu0 %v5494_v1  ;;  %1295 = vmatpush1.msra.mxu1 %v5497_v63  ;;  %8759 = vst [vmem:[#allocation85_spill] sm:$0xff] %v5506_v58  ;;  %8760 = vst [vmem:[#allocation86_spill] sm:$0xff] %v5509_v60  ;;  %v5512_v1 = vld [vmem:[#allocation5 + $0x68] sm:$0xff]  ;;  %v5515_v63 = vld [vmem:[#allocation5 + $0x78] sm:$0xff] }
 0x290   :  { %1225 = vmatprep.subr.mxu0 %v5500_v4  ;;  %1296 = vmatprep.subr.mxu1 %v5503_v53  ;;  %8761 = vst [vmem:[#allocation87_spill] sm:$0xff] %v5512_v1  ;;  %8762 = vst [vmem:[#allocation88_spill] sm:$0xff] %v5515_v63  ;;  %v5518_v4 = vld [vmem:[#allocation5 + $0x60] sm:$0xff]  ;;  %v5521_v53 = vld [vmem:[#allocation5 + $0x70] sm:$0xff] }
 0x291   :  { %1226 = vmatpush1.msra.mxu0 %v5506_v58  ;;  %1297 = vmatpush1.msra.mxu1 %v5509_v60  ;;  %8763 = vst [vmem:[#allocation89_spill] sm:$0xff] %v5518_v4  ;;  %8764 = vst [vmem:[#allocation90_spill] sm:$0xff] %v5521_v53  ;;  %v5524_v58 = vld [vmem:[#allocation5 + $0x48] sm:$0xff]  ;;  %v5527_v60 = vld [vmem:[#allocation5 + $0x58] sm:$0xff] }
 0x292   :  { %1227 = vmatprep.subr.mxu0 %v5512_v1  ;;  %1298 = vmatprep.subr.mxu1 %v5515_v63  ;;  %8765 = vst [vmem:[#allocation91_spill] sm:$0xff] %v5524_v58  ;;  %8766 = vst [vmem:[#allocation92_spill] sm:$0xff] %v5527_v60  ;;  %v5530_v1 = vld [vmem:[#allocation5 + $0x40] sm:$0xff]  ;;  %v5533_v63 = vld [vmem:[#allocation5 + $0x50] sm:$0xff] }
 0x293   :  { %1228 = vmatpush1.msra.mxu0 %v5518_v4  ;;  %1299 = vmatpush1.msra.mxu1 %v5521_v53  ;;  %8767 = vst [vmem:[#allocation93_spill] sm:$0xff] %v5530_v1  ;;  %8768 = vst [vmem:[#allocation94_spill] sm:$0xff] %v5533_v63  ;;  %v5536_v4 = vld [vmem:[#allocation5 + $0x28] sm:$0xff]  ;;  %v5539_v53 = vld [vmem:[#allocation5 + $0x38] sm:$0xff] }
 0x294   :  { %1229 = vmatprep.subr.mxu0 %v5524_v58  ;;  %1300 = vmatprep.subr.mxu1 %v5527_v60  ;;  %8769 = vst [vmem:[#allocation95_spill] sm:$0xff] %v5536_v4  ;;  %8770 = vst [vmem:[#allocation96_spill] sm:$0xff] %v5539_v53  ;;  %v5542_v58 = vld [vmem:[#allocation5 + $0x20] sm:$0xff]  ;;  %v5545_v60 = vld [vmem:[#allocation5 + $0x30] sm:$0xff] }
 0x295   :  { %1230 = vmatpush1.msra.mxu0 %v5530_v1  ;;  %1301 = vmatpush1.msra.mxu1 %v5533_v63  ;;  %8771 = vst [vmem:[#allocation97_spill] sm:$0xff] %v5542_v58  ;;  %8772 = vst [vmem:[#allocation98_spill] sm:$0xff] %v5545_v60  ;;  %v5548_v1 = vld [vmem:[#allocation5 + $0x8] sm:$0xff]  ;;  %v5551_v63 = vld [vmem:[#allocation5 + $0x18] sm:$0xff] }
 0x296   :  { %1231 = vmatprep.subr.mxu0 %v5536_v4  ;;  %1302 = vmatprep.subr.mxu1 %v5539_v53  ;;  %8773 = vst [vmem:[#allocation99_spill] sm:$0xff] %v5548_v1  ;;  %8774 = vst [vmem:[#allocation100_spill] sm:$0xff] %v5551_v63  ;;  %v5554_v4 = vld [vmem:[#allocation5] sm:$0xff]  ;;  %v5557_v53 = vld [vmem:[#allocation5 + $0x10] sm:$0xff] }
 0x297   :  { %1232 = vmatpush1.msra.mxu0 %v5542_v58  ;;  %1303 = vmatpush1.msra.mxu1 %v5545_v60  ;;  %8775 = vst [vmem:[#allocation101_spill] sm:$0xff] %v5554_v4  ;;  %8776 = vst [vmem:[#allocation102_spill] sm:$0xff] %v5557_v53  ;;  %v5560_v58 = vld [vmem:[#allocation5 + $0x3e8] sm:$0xff]  ;;  %v5563_v60 = vld [vmem:[#allocation5 + $0x3f8] sm:$0xff] }
 0x298   :  { %1233 = vmatprep.subr.mxu0 %v5548_v1  ;;  %1304 = vmatprep.subr.mxu1 %v5551_v63  ;;  %8777 = vst [vmem:[#allocation103_spill] sm:$0xff] %v5560_v58  ;;  %8778 = vst [vmem:[#allocation104_spill] sm:$0xff] %v5563_v60  ;;  %v5566_v1 = vld [vmem:[#allocation5 + $0x3e0] sm:$0xff]  ;;  %v5569_v63 = vld [vmem:[#allocation5 + $0x3f0] sm:$0xff] }
 0x299   :  { %1234 = vmatpush1.msra.mxu0 %v5554_v4  ;;  %1305 = vmatpush1.msra.mxu1 %v5557_v53  ;;  %8779 = vst [vmem:[#allocation105_spill] sm:$0xff] %v5566_v1  ;;  %8780 = vst [vmem:[#allocation106_spill] sm:$0xff] %v5569_v63  ;;  %v5572_v4 = vld [vmem:[#allocation5 + $0x3c8] sm:$0xff]  ;;  %v5575_v53 = vld [vmem:[#allocation5 + $0x3d8] sm:$0xff] }
 0x29a   :  { %1235 = vmatprep.subr.mxu0 %v5560_v58  ;;  %1306 = vmatprep.subr.mxu1 %v5563_v60  ;;  %8781 = vst [vmem:[#allocation107_spill] sm:$0xff] %v5572_v4  ;;  %8782 = vst [vmem:[#allocation108_spill] sm:$0xff] %v5575_v53  ;;  %v5578_v58 = vld [vmem:[#allocation5 + $0x3c0] sm:$0xff]  ;;  %v5581_v60 = vld [vmem:[#allocation5 + $0x3d0] sm:$0xff] }
 0x29b   :  { %1236 = vmatpush2.msra.mxu0 %v5566_v1  ;;  %1307 = vmatpush2.msra.mxu1 %v5569_v63  ;;  %8783 = vst [vmem:[#allocation109_spill] sm:$0xff] %v5578_v58  ;;  %8784 = vst [vmem:[#allocation110_spill] sm:$0xff] %v5581_v60  ;;  %v5584_v1 = vld [vmem:[#allocation5 + $0x3a8] sm:$0xff]  ;;  %v5587_v63 = vld [vmem:[#allocation5 + $0x3b8] sm:$0xff] }
 0x29c   :  { %1237 = vmatprep.subr.mxu0 %v5572_v4  ;;  %1308 = vmatprep.subr.mxu1 %v5575_v53  ;;  %8785 = vst [vmem:[#allocation111_spill] sm:$0xff] %v5584_v1  ;;  %8786 = vst [vmem:[#allocation112_spill] sm:$0xff] %v5587_v63  ;;  %v5590_v4 = vld [vmem:[#allocation5 + $0x3a0] sm:$0xff]  ;;  %v5593_v53 = vld [vmem:[#allocation5 + $0x3b0] sm:$0xff] }
 0x29d   :  { %1238 = vmatpush2.msra.mxu0 %v5578_v58  ;;  %1309 = vmatpush2.msra.mxu1 %v5581_v60  ;;  %8787 = vst [vmem:[#allocation113_spill] sm:$0xff] %v5590_v4  ;;  %8788 = vst [vmem:[#allocation114_spill] sm:$0xff] %v5593_v53  ;;  %v5596_v58 = vld [vmem:[#allocation5 + $0x388] sm:$0xff]  ;;  %v5599_v60 = vld [vmem:[#allocation5 + $0x398] sm:$0xff] }
 0x29e   :  { %1239 = vmatprep.subr.mxu0 %v5584_v1  ;;  %1310 = vmatprep.subr.mxu1 %v5587_v63  ;;  %8789 = vst [vmem:[#allocation115_spill] sm:$0xff] %v5596_v58  ;;  %8790 = vst [vmem:[#allocation116_spill] sm:$0xff] %v5599_v60  ;;  %v5602_v1 = vld [vmem:[#allocation5 + $0x380] sm:$0xff]  ;;  %v5605_v63 = vld [vmem:[#allocation5 + $0x390] sm:$0xff] }
 0x29f   :  { %1240 = vmatpush2.msra.mxu0 %v5590_v4  ;;  %1311 = vmatpush2.msra.mxu1 %v5593_v53  ;;  %8791 = vst [vmem:[#allocation117_spill] sm:$0xff] %v5602_v1  ;;  %8792 = vst [vmem:[#allocation118_spill] sm:$0xff] %v5605_v63  ;;  %v5608_v4 = vld [vmem:[#allocation5 + $0x368] sm:$0xff]  ;;  %v5611_v53 = vld [vmem:[#allocation5 + $0x378] sm:$0xff] }
 0x2a0   :  { %1241 = vmatprep.subr.mxu0 %v5596_v58  ;;  %1312 = vmatprep.subr.mxu1 %v5599_v60  ;;  %8793 = vst [vmem:[#allocation119_spill] sm:$0xff] %v5608_v4  ;;  %8794 = vst [vmem:[#allocation120_spill] sm:$0xff] %v5611_v53  ;;  %v5614_v58 = vld [vmem:[#allocation5 + $0x360] sm:$0xff]  ;;  %v5617_v60 = vld [vmem:[#allocation5 + $0x370] sm:$0xff] }
 0x2a1   :  { %1242 = vmatpush2.msra.mxu0 %v5602_v1  ;;  %1313 = vmatpush2.msra.mxu1 %v5605_v63  ;;  %8795 = vst [vmem:[#allocation121_spill] sm:$0xff] %v5614_v58  ;;  %8796 = vst [vmem:[#allocation122_spill] sm:$0xff] %v5617_v60  ;;  %v5620_v1 = vld [vmem:[#allocation5 + $0x348] sm:$0xff]  ;;  %v5623_v63 = vld [vmem:[#allocation5 + $0x358] sm:$0xff] }
 0x2a2   :  { %1243 = vmatprep.subr.mxu0 %v5608_v4  ;;  %1314 = vmatprep.subr.mxu1 %v5611_v53  ;;  %8797 = vst [vmem:[#allocation123_spill] sm:$0xff] %v5620_v1  ;;  %8798 = vst [vmem:[#allocation124_spill] sm:$0xff] %v5623_v63  ;;  %v5626_v4 = vld [vmem:[#allocation5 + $0x340] sm:$0xff]  ;;  %v5629_v53 = vld [vmem:[#allocation5 + $0x350] sm:$0xff] }
 0x2a3   :  { %1244 = vmatpush2.msra.mxu0 %v5614_v58  ;;  %1315 = vmatpush2.msra.mxu1 %v5617_v60  ;;  %8799 = vst [vmem:[#allocation125_spill] sm:$0xff] %v5626_v4  ;;  %8800 = vst [vmem:[#allocation126_spill] sm:$0xff] %v5629_v53  ;;  %v5632_v58 = vld [vmem:[#allocation5 + $0x328] sm:$0xff]  ;;  %v5635_v60 = vld [vmem:[#allocation5 + $0x338] sm:$0xff] }
 0x2a4   :  { %1245 = vmatprep.subr.mxu0 %v5620_v1  ;;  %1316 = vmatprep.subr.mxu1 %v5623_v63  ;;  %8801 = vst [vmem:[#allocation127_spill] sm:$0xff] %v5632_v58  ;;  %8802 = vst [vmem:[#allocation128_spill] sm:$0xff] %v5635_v60  ;;  %v5638_v1 = vld [vmem:[#allocation5 + $0x320] sm:$0xff]  ;;  %v5641_v63 = vld [vmem:[#allocation5 + $0x330] sm:$0xff] }
 0x2a5   :  { %1246 = vmatpush2.msra.mxu0 %v5626_v4  ;;  %1317 = vmatpush2.msra.mxu1 %v5629_v53  ;;  %8803 = vst [vmem:[#allocation129_spill] sm:$0xff] %v5638_v1  ;;  %8804 = vst [vmem:[#allocation130_spill] sm:$0xff] %v5641_v63  ;;  %v5644_v4 = vld [vmem:[#allocation5 + $0x308] sm:$0xff]  ;;  %v5647_v53 = vld [vmem:[#allocation5 + $0x318] sm:$0xff] }
 0x2a6   :  { %1247 = vmatprep.subr.mxu0 %v5632_v58  ;;  %1318 = vmatprep.subr.mxu1 %v5635_v60  ;;  %8805 = vst [vmem:[#allocation131_spill] sm:$0xff] %v5644_v4  ;;  %8806 = vst [vmem:[#allocation132_spill] sm:$0xff] %v5647_v53  ;;  %v5650_v58 = vld [vmem:[#allocation5 + $0x300] sm:$0xff]  ;;  %v5653_v60 = vld [vmem:[#allocation5 + $0x310] sm:$0xff] }
 0x2a7   :  { %1248 = vmatpush2.msra.mxu0 %v5638_v1  ;;  %1319 = vmatpush2.msra.mxu1 %v5641_v63  ;;  %8807 = vst [vmem:[#allocation133_spill] sm:$0xff] %v5650_v58  ;;  %8808 = vst [vmem:[#allocation134_spill] sm:$0xff] %v5653_v60  ;;  %v5656_v1 = vld [vmem:[#allocation5 + $0x2e8] sm:$0xff]  ;;  %v5659_v63 = vld [vmem:[#allocation5 + $0x2f8] sm:$0xff] }
 0x2a8   :  { %1249 = vmatprep.subr.mxu0 %v5644_v4  ;;  %1320 = vmatprep.subr.mxu1 %v5647_v53  ;;  %8809 = vst [vmem:[#allocation135_spill] sm:$0xff] %v5656_v1  ;;  %8810 = vst [vmem:[#allocation136_spill] sm:$0xff] %v5659_v63  ;;  %v5662_v4 = vld [vmem:[#allocation5 + $0x2e0] sm:$0xff]  ;;  %v5665_v53 = vld [vmem:[#allocation5 + $0x2f0] sm:$0xff] }
 0x2a9   :  { %1250 = vmatpush2.msra.mxu0 %v5650_v58  ;;  %1321 = vmatpush2.msra.mxu1 %v5653_v60  ;;  %8811 = vst [vmem:[#allocation137_spill] sm:$0xff] %v5662_v4  ;;  %8812 = vst [vmem:[#allocation138_spill] sm:$0xff] %v5665_v53  ;;  %v5668_v58 = vld [vmem:[#allocation5 + $0x2c8] sm:$0xff]  ;;  %v5671_v60 = vld [vmem:[#allocation5 + $0x2d8] sm:$0xff] }
 0x2aa   :  { %1251 = vmatprep.subr.mxu0 %v5656_v1  ;;  %1322 = vmatprep.subr.mxu1 %v5659_v63  ;;  %8813 = vst [vmem:[#allocation139_spill] sm:$0xff] %v5668_v58  ;;  %8814 = vst [vmem:[#allocation140_spill] sm:$0xff] %v5671_v60  ;;  %v5674_v1 = vld [vmem:[#allocation5 + $0x2c0] sm:$0xff]  ;;  %v5677_v63 = vld [vmem:[#allocation5 + $0x2d0] sm:$0xff] }
 0x2ab   :  { %1252 = vmatpush2.msra.mxu0 %v5662_v4  ;;  %1323 = vmatpush2.msra.mxu1 %v5665_v53  ;;  %8815 = vst [vmem:[#allocation141_spill] sm:$0xff] %v5674_v1  ;;  %8816 = vst [vmem:[#allocation142_spill] sm:$0xff] %v5677_v63  ;;  %v5680_v4 = vld [vmem:[#allocation5 + $0x2a8] sm:$0xff]  ;;  %v5683_v53 = vld [vmem:[#allocation5 + $0x2b8] sm:$0xff] }
 0x2ac   :  { %1253 = vmatprep.subr.mxu0 %v5668_v58  ;;  %1324 = vmatprep.subr.mxu1 %v5671_v60  ;;  %8817 = vst [vmem:[#allocation143_spill] sm:$0xff] %v5680_v4  ;;  %8818 = vst [vmem:[#allocation144_spill] sm:$0xff] %v5683_v53  ;;  %v5686_v58 = vld [vmem:[#allocation5 + $0x2a0] sm:$0xff]  ;;  %v5689_v60 = vld [vmem:[#allocation5 + $0x2b0] sm:$0xff] }
 0x2ad   :  { %1254 = vmatpush2.msra.mxu0 %v5674_v1  ;;  %1325 = vmatpush2.msra.mxu1 %v5677_v63  ;;  %8819 = vst [vmem:[#allocation145_spill] sm:$0xff] %v5686_v58  ;;  %8820 = vst [vmem:[#allocation146_spill] sm:$0xff] %v5689_v60  ;;  %v5692_v1 = vld [vmem:[#allocation5 + $0x288] sm:$0xff]  ;;  %v5695_v63 = vld [vmem:[#allocation5 + $0x298] sm:$0xff] }
 0x2ae   :  { %1255 = vmatprep.subr.mxu0 %v5680_v4  ;;  %1326 = vmatprep.subr.mxu1 %v5683_v53  ;;  %8821 = vst [vmem:[#allocation147_spill] sm:$0xff] %v5692_v1  ;;  %8822 = vst [vmem:[#allocation148_spill] sm:$0xff] %v5695_v63  ;;  %v5698_v4 = vld [vmem:[#allocation5 + $0x280] sm:$0xff]  ;;  %v5701_v53 = vld [vmem:[#allocation5 + $0x290] sm:$0xff] }
 0x2af   :  { %1256 = vmatpush2.msra.mxu0 %v5686_v58  ;;  %1327 = vmatpush2.msra.mxu1 %v5689_v60  ;;  %8823 = vst [vmem:[#allocation149_spill] sm:$0xff] %v5698_v4  ;;  %8824 = vst [vmem:[#allocation150_spill] sm:$0xff] %v5701_v53  ;;  %v5704_v58 = vld [vmem:[#allocation5 + $0x268] sm:$0xff]  ;;  %v5707_v60 = vld [vmem:[#allocation5 + $0x278] sm:$0xff] }
 0x2b0   :  { %1257 = vmatprep.subr.mxu0 %v5692_v1  ;;  %1328 = vmatprep.subr.mxu1 %v5695_v63  ;;  %8825 = vst [vmem:[#allocation151_spill] sm:$0xff] %v5704_v58  ;;  %8826 = vst [vmem:[#allocation152_spill] sm:$0xff] %v5707_v60  ;;  %v5710_v1 = vld [vmem:[#allocation5 + $0x260] sm:$0xff]  ;;  %v5713_v63 = vld [vmem:[#allocation5 + $0x270] sm:$0xff] }
 0x2b1   :  { %1258 = vmatpush2.msra.mxu0 %v5698_v4  ;;  %1329 = vmatpush2.msra.mxu1 %v5701_v53  ;;  %8827 = vst [vmem:[#allocation153_spill] sm:$0xff] %v5710_v1  ;;  %8828 = vst [vmem:[#allocation154_spill] sm:$0xff] %v5713_v63  ;;  %v5716_v4 = vld [vmem:[#allocation5 + $0x248] sm:$0xff]  ;;  %v5719_v53 = vld [vmem:[#allocation5 + $0x258] sm:$0xff] }
 0x2b2   :  { %1259 = vmatprep.subr.mxu0 %v5704_v58  ;;  %1330 = vmatprep.subr.mxu1 %v5707_v60  ;;  %8829 = vst [vmem:[#allocation155_spill] sm:$0xff] %v5716_v4  ;;  %8830 = vst [vmem:[#allocation156_spill] sm:$0xff] %v5719_v53  ;;  %v5722_v58 = vld [vmem:[#allocation5 + $0x240] sm:$0xff]  ;;  %v5725_v60 = vld [vmem:[#allocation5 + $0x250] sm:$0xff] }
 0x2b3   :  { %1260 = vmatpush2.msra.mxu0 %v5710_v1  ;;  %1331 = vmatpush2.msra.mxu1 %v5713_v63  ;;  %8831 = vst [vmem:[#allocation157_spill] sm:$0xff] %v5722_v58  ;;  %8832 = vst [vmem:[#allocation158_spill] sm:$0xff] %v5725_v60  ;;  %v5728_v1 = vld [vmem:[#allocation5 + $0x228] sm:$0xff]  ;;  %v5731_v63 = vld [vmem:[#allocation5 + $0x238] sm:$0xff] }
 0x2b4   :  { %1261 = vmatprep.subr.mxu0 %v5716_v4  ;;  %1332 = vmatprep.subr.mxu1 %v5719_v53  ;;  %8833 = vst [vmem:[#allocation161_spill] sm:$0xff] %v5728_v1  ;;  %8834 = vst [vmem:[#allocation162_spill] sm:$0xff] %v5731_v63  ;;  %v5734_v4 = vld [vmem:[#allocation5 + $0x220] sm:$0xff]  ;;  %v5737_v53 = vld [vmem:[#allocation5 + $0x230] sm:$0xff] }
 0x2b5   :  { %1262 = vmatpush2.msra.mxu0 %v5722_v58  ;;  %1333 = vmatpush2.msra.mxu1 %v5725_v60  ;;  %8835 = vst [vmem:[#allocation163_spill] sm:$0xff] %v5734_v4  ;;  %8836 = vst [vmem:[#allocation164_spill] sm:$0xff] %v5737_v53  ;;  %v5740_v58 = vld [vmem:[#allocation5 + $0x208] sm:$0xff]  ;;  %v5743_v60 = vld [vmem:[#allocation5 + $0x218] sm:$0xff] }
 0x2b6   :  { %1263 = vmatprep.subr.mxu0 %v5728_v1  ;;  %1334 = vmatprep.subr.mxu1 %v5731_v63  ;;  %8837 = vst [vmem:[#allocation165_spill] sm:$0xff] %v5740_v58  ;;  %8838 = vst [vmem:[#allocation166_spill] sm:$0xff] %v5743_v60  ;;  %v5746_v1 = vld [vmem:[#allocation5 + $0x200] sm:$0xff]  ;;  %v5749_v63 = vld [vmem:[#allocation5 + $0x210] sm:$0xff] }
 0x2b7   :  { %1264 = vmatpush2.msra.mxu0 %v5734_v4  ;;  %1335 = vmatpush2.msra.mxu1 %v5737_v53  ;;  %8839 = vst [vmem:[#allocation167_spill] sm:$0xff] %v5746_v1  ;;  %8840 = vst [vmem:[#allocation168_spill] sm:$0xff] %v5749_v63 }
 0x2b8   :  { %1265 = vmatprep.subr.mxu0 %v5740_v58  ;;  %1336 = vmatprep.subr.mxu1 %v5743_v60 }
 0x2b9   :  { %1266 = vmatpush2.msra.mxu0 %v5746_v1  ;;  %1337 = vmatpush2.msra.mxu1 %v5749_v63 }
 0x2ba   :  { %1380 = vmatprep.subr.mxu0 %v5122_v38  ;;  %1451 = vmatprep.subr.mxu1 %v5125_v39 }
 0x318   :  { %v918_v53 = vpop.f32.mrf.mxu0  ;;  %v989_v60 = vpop.f32.mrf.mxu1 }
 0x319   :  { %v919_v4 = vadd.f32 %v918_v53, %v5132_v42  ;;  %v990_v38 = vadd.f32 %v989_v60, %v5156_v55 }
 0x31a   :  { %v920_v58 = vpop.f32.mrf.mxu0  ;;  %v991_v1 = vpop.f32.mrf.mxu1 }
 0x31b   :  { %v3235_v24 = vmul.f32 -1.442695, %v919_v4  ;;  %v921_v50 = vadd.f32 %v920_v58, %v5138_v45  ;;  %v992_v48 = vadd.f32 %v991_v1, %v5149_v59  ;;  %v1023_v4 = vpop.permute.xlu1 %1022 }
 0x31c   :  { %v1025_v58 = vmul.f32 %v1023_v4, %v8681_v8 }
 0x31d   :  { %3390 = vpow2.f32 %v3235_v24  ;;  %v3236_v61 = vmul.f32 -1.442695, %v921_v50  ;;  %v3237_v62 = vmul.f32 -1.442695, %v992_v48 }
 0x31f   :  { %3392 = vpow2.f32 %v3236_v61  ;;  %v1026_v61 = vmul.f32 %v1023_v4, %v8682_v49  ;;  %v1028_v49 = vmul.f32 %v1023_v4, %v8684_v30 }
 0x320   :  { %3394 = vpow2.f32 %v3237_v62 }
 0x32a   :  { %v3391_v63 = vpop.eup %3390 }
 0x32b   :  { %v997_v56 = vadd.f32 1.0, %v3391_v63 }
 0x32c   :  { %v3393_v39 = vpop.eup %3392 }
 0x32d   :  { %3396 = vrcp.f32 %v997_v56  ;;  %v1003_v53 = vadd.f32 1.0, %v3393_v39  ;;  %v3395_v24 = vpop.eup %3394 }
 0x32e   :  { %3398 = vtanh.f32 %v990_v38  ;;  %v1010_v59 = vadd.f32 1.0, %v3395_v24 }
 0x32f   :  { %3400 = vrcp.f32 %v1003_v53 }
 0x330   :  { %3402 = vrcp.f32 %v1010_v59 }
 0x339   :  { %v1095_v50 = vpop.f32.mrf.mxu0  ;;  %v1166_v63 = vpop.f32.mrf.mxu1 }
 0x33a   :  { %v3397_v45 = vpop.eup %3396  ;;  %v1171_v1 = vadd.f32 %v1095_v50, %v1025_v58 }
 0x33b   :  { %v3399_v48 = vpop.eup %3398  ;;  %v1097_v42 = vpop.f32.mrf.mxu0 }
 0x33c   :  { %v3401_v60 = vpop.eup %3400  ;;  %v1175_v62 = vadd.f32 %v1171_v1, %v4895_v57  ;;  %v1172_v56 = vadd.f32 %v1097_v42, %v1026_v61  ;;  %v1014_v39 = vmul.f32 %v3399_v48, %v3397_v45  ;;  %v1168_v24 = vpop.f32.mrf.mxu1  ;;  %v1027_v42 = vmul.f32 %v1023_v4, %v8685_v33 }
 0x33d   :  { %v1013_v38 = vmul.f32 %v3401_v60, %v5163_v27  ;;  %v1174_v50 = vadd.f32 %v1168_v24, %v1028_v49  ;;  %v3403_v1 = vpop.eup %3402 }
 0x33e   :  { %v3239_v53 = vmul.f32 -1.442695, %v1175_v62  ;;  %v1176_v8 = vadd.f32 %v1172_v56, %v8683_v25  ;;  %v1173_v27 = vadd.f32 %v1166_v63, %v1027_v42 }
 0x33f   :  { %v5764_v55 = vadd.f32 %v1014_v39, %v1013_v38  ;;  %v1178_v45 = vadd.f32 %v1174_v50, %v8686_v35 }
 0x340   :  { %3404 = vpow2.f32 %v3239_v53  ;;  %v3240_v58 = vmul.f32 -1.442695, %v1176_v8  ;;  %v1177_v59 = vadd.f32 %v1173_v27, %v4918_v51 }
 0x341   :  { %3406 = vtanh.f32 %v5764_v55  ;;  %v3241_v61 = vmul.f32 -1.442695, %v1178_v45 }
 0x342   :  { %3408 = vpow2.f32 %v3240_v58 }
 0x343   :  { %3410 = vpow2.f32 %v3241_v61  ;;  %v8878_v61 = vld [vmem:[#allocation49_spill] sm:$0xff] }
 0x34d   :  { %v3405_v48 = vpop.eup %3404 }
 0x34e   :  { %v3407_v60 = vpop.eup %3406  ;;  %v1182_v62 = vadd.f32 1.0, %v3405_v48  ;;  %v8880_v48 = vld [vmem:[#allocation51_spill] sm:$0xff] }
 0x34f   :  { %v3409_v56 = vpop.eup %3408  ;;  %v1017_v8 = vmul.f32 %v3407_v60, %v3403_v1  ;;  %v8879_v1 = vld [vmem:[#allocation50_spill] sm:$0xff]  ;;  %v8882_v60 = vld [vmem:[#allocation53_spill] sm:$0xff] }
 0x350   :  { %3412 = vrcp.f32 %v1182_v62  ;;  %v1188_v39 = vadd.f32 1.0, %v3409_v56  ;;  %v3411_v49 = vpop.eup %3410  ;;  %v8883_v62 = vld [vmem:[#allocation54_spill] sm:$0xff]  ;;  %v8884_v56 = vld [vmem:[#allocation55_spill] sm:$0xff] }
 0x351   :  { %3414 = vtanh.f32 %v1177_v59  ;;  %1267 = vmatprep.mubr.f32.mxu0 %v1017_v8  ;;  %1338 = vmatprep.mubr.f32.mxu1 %v1017_v8  ;;  %v1195_v53 = vadd.f32 1.0, %v3411_v49  ;;  %v8881_v59 = vld [vmem:[#allocation52_spill] sm:$0xff]  ;;  %v8887_v49 = vld [vmem:[#allocation58_spill] sm:$0xff] }
 0x352   :  { %3416 = vrcp.f32 %v1188_v39  ;;  %v8885_v8 = vld [vmem:[#allocation56_spill] sm:$0xff]  ;;  %v8886_v39 = vld [vmem:[#allocation57_spill] sm:$0xff] }
 0x353   :  { %3418 = vrcp.f32 %v1195_v53  ;;  %v8891_v53 = vld [vmem:[#allocation62_spill] sm:$0xff] }
 0x35d   :  { %v3413_v4 = vpop.eup %3412 }
 0x35e   :  { %v3415_v38 = vpop.eup %3414 }
 0x35f   :  { %v3417_v63 = vpop.eup %3416  ;;  %v1199_v58 = vmul.f32 %v3415_v38, %v3413_v4  ;;  %v8888_v4 = vld [vmem:[#allocation59_spill] sm:$0xff]  ;;  %v8889_v38 = vld [vmem:[#allocation60_spill] sm:$0xff] }
 0x360   :  { %v1198_v24 = vmul.f32 %v3417_v63, %v5171_v3  ;;  %v3419_v42 = vpop.eup %3418  ;;  %v8841_v3 = vld [vmem:[#allocation13_spill] sm:$0xff] }
 0x361   :  { %v8890_v63 = vld [vmem:[#allocation61_spill] sm:$0xff] }
 0x362   :  { %v5771_v50 = vadd.f32 %v1199_v58, %v1198_v24  ;;  %v8892_v58 = vld [vmem:[#allocation63_spill] sm:$0xff]  ;;  %v8893_v24 = vld [vmem:[#allocation64_spill] sm:$0xff] }
 0x364   :  { %3420 = vtanh.f32 %v5771_v50 }
 0x371   :  { %v3421_v45 = vpop.eup %3420 }
 0x372   :  { %v5774_v27 = vmul.f32 %v3421_v45, %v3419_v42  ;;  %v8894_v42 = vld [vmem:[#allocation65_spill] sm:$0xff]  ;;  %v8895_v45 = vld [vmem:[#allocation66_spill] sm:$0xff] }
 0x374   :  { %1268 = vmatmul.mubr.f32.vlgmr.msra.gmra.mxu0 %v5774_v27  ;;  %1339 = vmatmul.mubr.f32.vlgmr.msra.gmra.mxu1 %v5774_v27 }
 0x375   :  { %1381 = vmatpush1.msra.mxu0 %v5178_v5  ;;  %1452 = vmatpush1.msra.mxu1 %v5181_v0  ;;  %v8842_v5 = vld [vmem:[#allocation14_spill] sm:$0xff]  ;;  %v8843_v0 = vld [vmem:[#allocation15_spill] sm:$0xff] }
 0x376   :  { %1382 = vmatprep.subr.mxu0 %v5184_v54  ;;  %1453 = vmatprep.subr.mxu1 %v5187_v6  ;;  %v8844_v54 = vld [vmem:[#allocation16_spill] sm:$0xff]  ;;  %v8845_v6 = vld [vmem:[#allocation17_spill] sm:$0xff] }
 0x377   :  { %1383 = vmatpush1.msra.mxu0 %v5190_v7  ;;  %1454 = vmatpush1.msra.mxu1 %v5193_v9  ;;  %v8846_v7 = vld [vmem:[#allocation18_spill] sm:$0xff]  ;;  %v8847_v9 = vld [vmem:[#allocation19_spill] sm:$0xff] }
 0x378   :  { %1384 = vmatprep.subr.mxu0 %v5196_v10  ;;  %1455 = vmatprep.subr.mxu1 %v5199_v11  ;;  %v8848_v10 = vld [vmem:[#allocation20_spill] sm:$0xff]  ;;  %v8849_v11 = vld [vmem:[#allocation21_spill] sm:$0xff] }
 0x379   :  { %1385 = vmatpush1.msra.mxu0 %v5202_v12  ;;  %1456 = vmatpush1.msra.mxu1 %v5205_v13  ;;  %v8850_v12 = vld [vmem:[#allocation22_spill] sm:$0xff]  ;;  %v8851_v13 = vld [vmem:[#allocation23_spill] sm:$0xff] }
 0x37a   :  { %1386 = vmatprep.subr.mxu0 %v5208_v14  ;;  %1457 = vmatprep.subr.mxu1 %v5211_v15  ;;  %v8852_v14 = vld [vmem:[#allocation24_spill] sm:$0xff]  ;;  %v8853_v15 = vld [vmem:[#allocation25_spill] sm:$0xff] }
 0x37b   :  { %1387 = vmatpush1.msra.mxu0 %v5214_v16  ;;  %1458 = vmatpush1.msra.mxu1 %v5217_v17  ;;  %v8854_v16 = vld [vmem:[#allocation26_spill] sm:$0xff]  ;;  %v8855_v17 = vld [vmem:[#allocation27_spill] sm:$0xff] }
 0x37c   :  { %1388 = vmatprep.subr.mxu0 %v5220_v18  ;;  %1459 = vmatprep.subr.mxu1 %v5223_v19  ;;  %v8856_v18 = vld [vmem:[#allocation28_spill] sm:$0xff]  ;;  %v8857_v19 = vld [vmem:[#allocation29_spill] sm:$0xff] }
 0x37d   :  { %1389 = vmatpush1.msra.mxu0 %v5226_v20  ;;  %1460 = vmatpush1.msra.mxu1 %v5229_v21  ;;  %v8858_v20 = vld [vmem:[#allocation30_spill] sm:$0xff]  ;;  %v8859_v21 = vld [vmem:[#allocation31_spill] sm:$0xff] }
 0x37e   :  { %1390 = vmatprep.subr.mxu0 %v5232_v22  ;;  %1461 = vmatprep.subr.mxu1 %v5235_v23  ;;  %v8860_v22 = vld [vmem:[#allocation32_spill] sm:$0xff]  ;;  %v8861_v23 = vld [vmem:[#allocation33_spill] sm:$0xff] }
 0x37f   :  { %1391 = vmatpush1.msra.mxu0 %v5238_v26  ;;  %1462 = vmatpush1.msra.mxu1 %v5241_v28  ;;  %v8862_v26 = vld [vmem:[#allocation34_spill] sm:$0xff]  ;;  %v8863_v28 = vld [vmem:[#allocation35_spill] sm:$0xff] }
 0x380   :  { %1392 = vmatprep.subr.mxu0 %v5244_v29  ;;  %1463 = vmatprep.subr.mxu1 %v5247_v31  ;;  %v8864_v29 = vld [vmem:[#allocation36_spill] sm:$0xff]  ;;  %v8865_v31 = vld [vmem:[#allocation37_spill] sm:$0xff] }
 0x381   :  { %1393 = vmatpush1.msra.mxu0 %v5250_v32  ;;  %1464 = vmatpush1.msra.mxu1 %v5253_v34  ;;  %v8866_v32 = vmov 0.0   ;;  %v8867_v34 = vld [vmem:[#allocation38_spill] sm:$0xff] }
 0x382   :  { %1394 = vmatprep.subr.mxu0 %v5256_v36  ;;  %1465 = vmatprep.subr.mxu1 %v5259_v37  ;;  %v8868_v36 = vld [vmem:[#allocation39_spill] sm:$0xff]  ;;  %v8869_v37 = vld [vmem:[#allocation40_spill] sm:$0xff] }
 0x383   :  { %1395 = vmatpush1.msra.mxu0 %v5262_v40  ;;  %1466 = vmatpush1.msra.mxu1 %v5265_v41  ;;  %v8870_v40 = vld [vmem:[#allocation41_spill] sm:$0xff]  ;;  %v8871_v41 = vld [vmem:[#allocation42_spill] sm:$0xff] }
 0x384   :  { %1396 = vmatprep.subr.mxu0 %v5268_v43  ;;  %1467 = vmatprep.subr.mxu1 %v5271_v44  ;;  %v8872_v43 = vld [vmem:[#allocation43_spill] sm:$0xff]  ;;  %v8873_v44 = vld [vmem:[#allocation44_spill] sm:$0xff] }
 0x385   :  { %1397 = vmatpush1.msra.mxu0 %v5274_v46  ;;  %1468 = vmatpush1.msra.mxu1 %v5277_v47  ;;  %v8874_v46 = vld [vmem:[#allocation45_spill] sm:$0xff]  ;;  %v8875_v47 = vld [vmem:[#allocation46_spill] sm:$0xff] }
 0x386   :  { %1398 = vmatprep.subr.mxu0 %v5280_v52  ;;  %1469 = vmatprep.subr.mxu1 %v5283_v2  ;;  %v8876_v52 = vld [vmem:[#allocation47_spill] sm:$0xff]  ;;  %v8877_v2 = vld [vmem:[#allocation48_spill] sm:$0xff] }
 0x387   :  { %1399 = vmatpush1.msra.mxu0 %v8841_v3  ;;  %1470 = vmatpush1.msra.mxu1 %v8842_v5  ;;  %v8897_v3 = vld [vmem:[#allocation68_spill] sm:$0xff]  ;;  %v8898_v5 = vld [vmem:[#allocation69_spill] sm:$0xff] }
 0x388   :  { %1400 = vmatprep.subr.mxu0 %v8843_v0  ;;  %1471 = vmatprep.subr.mxu1 %v8844_v54  ;;  %v8899_v0 = vld [vmem:[#allocation70_spill] sm:$0xff]  ;;  %v8900_v54 = vld [vmem:[#allocation71_spill] sm:$0xff] }
 0x389   :  { %1401 = vmatpush1.msra.mxu0 %v8845_v6  ;;  %1472 = vmatpush1.msra.mxu1 %v8846_v7  ;;  %v8901_v6 = vld [vmem:[#allocation72_spill] sm:$0xff]  ;;  %v8902_v7 = vld [vmem:[#allocation73_spill] sm:$0xff] }
 0x38a   :  { %1402 = vmatprep.subr.mxu0 %v8847_v9  ;;  %1473 = vmatprep.subr.mxu1 %v8848_v10  ;;  %v8903_v9 = vld [vmem:[#allocation74_spill] sm:$0xff]  ;;  %v8904_v10 = vld [vmem:[#allocation75_spill] sm:$0xff] }
 0x38b   :  { %1403 = vmatpush1.msra.mxu0 %v8849_v11  ;;  %1474 = vmatpush1.msra.mxu1 %v8850_v12  ;;  %v8905_v11 = vld [vmem:[#allocation76_spill] sm:$0xff]  ;;  %v8906_v12 = vld [vmem:[#allocation77_spill] sm:$0xff] }
 0x38c   :  { %1404 = vmatprep.subr.mxu0 %v8851_v13  ;;  %1475 = vmatprep.subr.mxu1 %v8852_v14  ;;  %v8907_v13 = vld [vmem:[#allocation78_spill] sm:$0xff]  ;;  %v8908_v14 = vld [vmem:[#allocation79_spill] sm:$0xff] }
 0x38d   :  { %1405 = vmatpush1.msra.mxu0 %v8853_v15  ;;  %1476 = vmatpush1.msra.mxu1 %v8854_v16  ;;  %v8909_v15 = vld [vmem:[#allocation80_spill] sm:$0xff]  ;;  %v8910_v16 = vld [vmem:[#allocation81_spill] sm:$0xff] }
 0x38e   :  { %1406 = vmatprep.subr.mxu0 %v8855_v17  ;;  %1477 = vmatprep.subr.mxu1 %v8856_v18  ;;  %v8911_v17 = vld [vmem:[#allocation82_spill] sm:$0xff]  ;;  %v8912_v18 = vld [vmem:[#allocation83_spill] sm:$0xff] }
 0x38f   :  { %1407 = vmatpush1.msra.mxu0 %v8857_v19  ;;  %1478 = vmatpush1.msra.mxu1 %v8858_v20  ;;  %v8913_v19 = vld [vmem:[#allocation84_spill] sm:$0xff]  ;;  %v8914_v20 = vld [vmem:[#allocation85_spill] sm:$0xff] }
 0x390   :  { %1408 = vmatprep.subr.mxu0 %v8859_v21  ;;  %1479 = vmatprep.subr.mxu1 %v8860_v22  ;;  %v8915_v21 = vld [vmem:[#allocation86_spill] sm:$0xff]  ;;  %v8916_v22 = vld [vmem:[#allocation87_spill] sm:$0xff] }
 0x391   :  { %1409 = vmatpush1.msra.mxu0 %v8861_v23  ;;  %1480 = vmatpush1.msra.mxu1 %v8862_v26  ;;  %v8917_v23 = vld [vmem:[#allocation88_spill] sm:$0xff]  ;;  %v8918_v26 = vld [vmem:[#allocation89_spill] sm:$0xff] }
 0x392   :  { %1410 = vmatprep.subr.mxu0 %v8863_v28  ;;  %1481 = vmatprep.subr.mxu1 %v8864_v29  ;;  %v8919_v28 = vld [vmem:[#allocation90_spill] sm:$0xff]  ;;  %v8920_v29 = vld [vmem:[#allocation91_spill] sm:$0xff] }
 0x393   :  { %1411 = vmatpush1.msra.mxu0 %v8865_v31  ;;  %1444 = vmatprep.mubr.f32.mxu0 %v8866_v32  ;;  %v8921_v31 = vld [vmem:[#allocation92_spill] sm:$0xff] }
 0x394   :  { %1482 = vmatpush1.msra.mxu1 %v8867_v34  ;;  %1515 = vmatprep.mubr.f32.mxu1 %v8866_v32  ;;  %v8922_v34 = vld [vmem:[#allocation93_spill] sm:$0xff] }
 0x395   :  { %1445 = vmatmul.mubr.f32.vlgmr.msra.gmra.mxu0 %v5774_v27  ;;  %1516 = vmatmul.mubr.f32.vlgmr.msra.gmra.mxu1 %v5774_v27  ;;  %v8896_v27 = vld [vmem:[#allocation67_spill] sm:$0xff] }
 0x396   :  { %1554 = vmatprep.subr.mxu0 %v8868_v36  ;;  %1625 = vmatprep.subr.mxu1 %v8869_v37  ;;  %v8923_v36 = vld [vmem:[#allocation94_spill] sm:$0xff]  ;;  %v8924_v37 = vld [vmem:[#allocation95_spill] sm:$0xff] }
 0x397   :  { %1555 = vmatpush1.msra.mxu0 %v8870_v40  ;;  %1626 = vmatpush1.msra.mxu1 %v8871_v41  ;;  %v8925_v40 = vld [vmem:[#allocation96_spill] sm:$0xff]  ;;  %v8926_v41 = vld [vmem:[#allocation97_spill] sm:$0xff] }
 0x398   :  { %1556 = vmatprep.subr.mxu0 %v8872_v43  ;;  %1627 = vmatprep.subr.mxu1 %v8873_v44  ;;  %v8927_v43 = vld [vmem:[#allocation98_spill] sm:$0xff]  ;;  %v8928_v44 = vld [vmem:[#allocation99_spill] sm:$0xff] }
 0x399   :  { %1557 = vmatpush1.msra.mxu0 %v8874_v46  ;;  %1628 = vmatpush1.msra.mxu1 %v8875_v47  ;;  %v8929_v46 = vld [vmem:[#allocation100_spill] sm:$0xff]  ;;  %v8930_v47 = vld [vmem:[#allocation101_spill] sm:$0xff] }
 0x39a   :  { %1558 = vmatprep.subr.mxu0 %v8876_v52  ;;  %1629 = vmatprep.subr.mxu1 %v8877_v2  ;;  %v8931_v52 = vld [vmem:[#allocation102_spill] sm:$0xff]  ;;  %v8932_v2 = vld [vmem:[#allocation103_spill] sm:$0xff] }
 0x39b   :  { %1559 = vmatpush1.msra.mxu0 %v8878_v61  ;;  %1630 = vmatpush1.msra.mxu1 %v8879_v1  ;;  %v8933_v61 = vld [vmem:[#allocation104_spill] sm:$0xff]  ;;  %v8934_v1 = vld [vmem:[#allocation105_spill] sm:$0xff] }
 0x39c   :  { %1560 = vmatprep.subr.mxu0 %v8880_v48  ;;  %1631 = vmatprep.subr.mxu1 %v8881_v59  ;;  %v8935_v48 = vld [vmem:[#allocation106_spill] sm:$0xff]  ;;  %v8936_v59 = vld [vmem:[#allocation107_spill] sm:$0xff] }
 0x39d   :  { %1561 = vmatpush1.msra.mxu0 %v8882_v60  ;;  %1632 = vmatpush1.msra.mxu1 %v8883_v62  ;;  %v8937_v60 = vld [vmem:[#allocation108_spill] sm:$0xff]  ;;  %v8938_v62 = vld [vmem:[#allocation109_spill] sm:$0xff] }
 0x39e   :  { %1562 = vmatprep.subr.mxu0 %v8884_v56  ;;  %1633 = vmatprep.subr.mxu1 %v8885_v8  ;;  %v8939_v56 = vld [vmem:[#allocation110_spill] sm:$0xff]  ;;  %v8940_v8 = vld [vmem:[#allocation111_spill] sm:$0xff] }
 0x39f   :  { %1563 = vmatpush1.msra.mxu0 %v8886_v39  ;;  %1634 = vmatpush1.msra.mxu1 %v8887_v49  ;;  %v8941_v39 = vld [vmem:[#allocation112_spill] sm:$0xff]  ;;  %v8942_v49 = vld [vmem:[#allocation113_spill] sm:$0xff] }
 0x3a0   :  { %1564 = vmatprep.subr.mxu0 %v8888_v4  ;;  %1635 = vmatprep.subr.mxu1 %v8889_v38  ;;  %v8943_v4 = vld [vmem:[#allocation114_spill] sm:$0xff]  ;;  %v8944_v38 = vld [vmem:[#allocation115_spill] sm:$0xff] }
 0x3a1   :  { %1565 = vmatpush1.msra.mxu0 %v8890_v63  ;;  %1636 = vmatpush1.msra.mxu1 %v8891_v53  ;;  %v8945_v63 = vld [vmem:[#allocation116_spill] sm:$0xff]  ;;  %v8946_v53 = vld [vmem:[#allocation117_spill] sm:$0xff] }
 0x3a2   :  { %1566 = vmatprep.subr.mxu0 %v8892_v58  ;;  %1637 = vmatprep.subr.mxu1 %v8893_v24  ;;  %v8947_v58 = vld [vmem:[#allocation118_spill] sm:$0xff]  ;;  %v8948_v24 = vld [vmem:[#allocation119_spill] sm:$0xff] }
 0x3a3   :  { %1567 = vmatpush1.msra.mxu0 %v8894_v42  ;;  %1638 = vmatpush1.msra.mxu1 %v8895_v45  ;;  %v8949_v42 = vld [vmem:[#allocation120_spill] sm:$0xff]  ;;  %v8950_v45 = vld [vmem:[#allocation121_spill] sm:$0xff] }
 0x3a4   :  { %1568 = vmatprep.subr.mxu0 %v8896_v27  ;;  %1639 = vmatprep.subr.mxu1 %v8897_v3  ;;  %v8951_v27 = vld [vmem:[#allocation122_spill] sm:$0xff]  ;;  %v8952_v3 = vld [vmem:[#allocation123_spill] sm:$0xff] }
 0x3a5   :  { %1569 = vmatpush1.msra.mxu0 %v8898_v5  ;;  %1640 = vmatpush1.msra.mxu1 %v8899_v0  ;;  %v8953_v5 = vld [vmem:[#allocation124_spill] sm:$0xff]  ;;  %v8954_v0 = vld [vmem:[#allocation125_spill] sm:$0xff] }
 0x3a6   :  { %1570 = vmatprep.subr.mxu0 %v8900_v54  ;;  %1641 = vmatprep.subr.mxu1 %v8901_v6  ;;  %v8955_v54 = vld [vmem:[#allocation126_spill] sm:$0xff]  ;;  %v8956_v6 = vld [vmem:[#allocation127_spill] sm:$0xff] }
 0x3a7   :  { %1571 = vmatpush1.msra.mxu0 %v8902_v7  ;;  %1642 = vmatpush1.msra.mxu1 %v8903_v9  ;;  %v8957_v7 = vld [vmem:[#allocation128_spill] sm:$0xff]  ;;  %v8958_v9 = vld [vmem:[#allocation129_spill] sm:$0xff] }
 0x3a8   :  { %1572 = vmatprep.subr.mxu0 %v8904_v10  ;;  %1643 = vmatprep.subr.mxu1 %v8905_v11  ;;  %v8959_v10 = vld [vmem:[#allocation130_spill] sm:$0xff]  ;;  %v8960_v11 = vld [vmem:[#allocation131_spill] sm:$0xff] }
 0x3a9   :  { %1573 = vmatpush1.msra.mxu0 %v8906_v12  ;;  %1644 = vmatpush1.msra.mxu1 %v8907_v13  ;;  %v8961_v12 = vld [vmem:[#allocation132_spill] sm:$0xff]  ;;  %v8962_v13 = vld [vmem:[#allocation133_spill] sm:$0xff] }
 0x3aa   :  { %1574 = vmatprep.subr.mxu0 %v8908_v14  ;;  %1645 = vmatprep.subr.mxu1 %v8909_v15  ;;  %v8963_v14 = vld [vmem:[#allocation134_spill] sm:$0xff]  ;;  %v8964_v15 = vld [vmem:[#allocation135_spill] sm:$0xff] }
 0x3ab   :  { %1575 = vmatpush1.msra.mxu0 %v8910_v16  ;;  %1646 = vmatpush1.msra.mxu1 %v8911_v17  ;;  %v8965_v16 = vld [vmem:[#allocation136_spill] sm:$0xff]  ;;  %v8966_v17 = vld [vmem:[#allocation137_spill] sm:$0xff] }
 0x3ac   :  { %1576 = vmatprep.subr.mxu0 %v8912_v18  ;;  %1647 = vmatprep.subr.mxu1 %v8913_v19  ;;  %v8967_v18 = vld [vmem:[#allocation138_spill] sm:$0xff]  ;;  %v8968_v19 = vld [vmem:[#allocation139_spill] sm:$0xff] }
 0x3ad   :  { %1577 = vmatpush1.msra.mxu0 %v8914_v20  ;;  %1648 = vmatpush1.msra.mxu1 %v8915_v21  ;;  %v8969_v20 = vld [vmem:[#allocation140_spill] sm:$0xff]  ;;  %v8970_v21 = vld [vmem:[#allocation141_spill] sm:$0xff] }
 0x3ae   :  { %1578 = vmatprep.subr.mxu0 %v8916_v22  ;;  %1649 = vmatprep.subr.mxu1 %v8917_v23  ;;  %v8971_v22 = vld [vmem:[#allocation142_spill] sm:$0xff]  ;;  %v8972_v23 = vld [vmem:[#allocation143_spill] sm:$0xff] }
 0x3af   :  { %1579 = vmatpush1.msra.mxu0 %v8918_v26  ;;  %1650 = vmatpush1.msra.mxu1 %v8919_v28  ;;  %v8973_v26 = vld [vmem:[#allocation144_spill] sm:$0xff]  ;;  %v8974_v28 = vld [vmem:[#allocation145_spill] sm:$0xff] }
 0x3b0   :  { %1580 = vmatprep.subr.mxu0 %v8920_v29  ;;  %1651 = vmatprep.subr.mxu1 %v8921_v31  ;;  %v8975_v29 = vld [vmem:[#allocation146_spill] sm:$0xff]  ;;  %v8976_v31 = vld [vmem:[#allocation147_spill] sm:$0xff] }
 0x3b1   :  { %1581 = vmatpush1.msra.mxu0 %v8922_v34  ;;  %1652 = vmatpush1.msra.mxu1 %v8923_v36  ;;  %v8977_v34 = vld [vmem:[#allocation148_spill] sm:$0xff]  ;;  %v8978_v36 = vld [vmem:[#allocation149_spill] sm:$0xff] }
 0x3b2   :  { %1582 = vmatprep.subr.mxu0 %v8924_v37  ;;  %1653 = vmatprep.subr.mxu1 %v8925_v40  ;;  %v8979_v37 = vld [vmem:[#allocation150_spill] sm:$0xff]  ;;  %v8980_v40 = vld [vmem:[#allocation151_spill] sm:$0xff] }
 0x3b3   :  { %1583 = vmatpush1.msra.mxu0 %v8926_v41  ;;  %1654 = vmatpush1.msra.mxu1 %v8927_v43  ;;  %v8981_v41 = vld [vmem:[#allocation152_spill] sm:$0xff]  ;;  %v8982_v43 = vld [vmem:[#allocation153_spill] sm:$0xff] }
 0x3b4   :  { %1584 = vmatprep.subr.mxu0 %v8928_v44  ;;  %1655 = vmatprep.subr.mxu1 %v8929_v46  ;;  %v8983_v44 = vld [vmem:[#allocation154_spill] sm:$0xff]  ;;  %v8984_v46 = vld [vmem:[#allocation155_spill] sm:$0xff] }
 0x3b5   :  { %1585 = vmatpush1.msra.mxu0 %v8930_v47  ;;  %1656 = vmatpush1.msra.mxu1 %v8931_v52  ;;  %v8985_v47 = vld [vmem:[#allocation156_spill] sm:$0xff]  ;;  %v8986_v52 = vld [vmem:[#allocation157_spill] sm:$0xff] }
 0x3b6   :  { %1586 = vmatprep.subr.mxu0 %v8932_v2  ;;  %1657 = vmatprep.subr.mxu1 %v8933_v61  ;;  %v8987_v2 = vld [vmem:[#allocation158_spill] sm:$0xff]  ;;  %v8988_v61 = vld [vmem:[#allocation161_spill] sm:$0xff] }
 0x3b7   :  { %1587 = vmatpush2.msra.mxu0 %v8934_v1  ;;  %1658 = vmatpush2.msra.mxu1 %v8935_v48  ;;  %v8989_v1 = vld [vmem:[#allocation162_spill] sm:$0xff]  ;;  %v8990_v48 = vld [vmem:[#allocation163_spill] sm:$0xff] }
 0x3b8   :  { %1588 = vmatprep.subr.mxu0 %v8936_v59  ;;  %1659 = vmatprep.subr.mxu1 %v8937_v60  ;;  %v8991_v59 = vld [vmem:[#allocation164_spill] sm:$0xff]  ;;  %v8992_v60 = vld [vmem:[#allocation165_spill] sm:$0xff] }
 0x3b9   :  { %1589 = vmatpush2.msra.mxu0 %v8938_v62  ;;  %1660 = vmatpush2.msra.mxu1 %v8939_v56  ;;  %v8993_v62 = vld [vmem:[#allocation166_spill] sm:$0xff]  ;;  %v8994_v56 = vld [vmem:[#allocation167_spill] sm:$0xff] }
 0x3ba   :  { %1590 = vmatprep.subr.mxu0 %v8940_v8  ;;  %1661 = vmatprep.subr.mxu1 %v8941_v39  ;;  %v8995_v8 = vld [vmem:[#allocation168_spill] sm:$0xff]  ;;  %v5972_v39 = vld [vmem:[#allocation3 + $0x1e8] sm:$0xff] }
 0x3bb   :  { %1591 = vmatpush2.msra.mxu0 %v8942_v49  ;;  %1662 = vmatpush2.msra.mxu1 %v8943_v4  ;;  %v5975_v49 = vld [vmem:[#allocation3 + $0x1f8] sm:$0xff] }
 0x3bc   :  { %1592 = vmatprep.subr.mxu0 %v8944_v38  ;;  %1663 = vmatprep.subr.mxu1 %v8945_v63  ;;  %v8996_v38 = vld [vmem:[#allocation9_spill] sm:$0xff] }
 0x3bd   :  { %1593 = vmatpush2.msra.mxu0 %v8946_v53  ;;  %1664 = vmatpush2.msra.mxu1 %v8947_v58 }
 0x3be   :  { %1594 = vmatprep.subr.mxu0 %v8948_v24  ;;  %1665 = vmatprep.subr.mxu1 %v8949_v42  ;;  %v8997_v24 = vld [vmem:[#allocation10_spill] sm:$0xff] }
 0x3bf   :  { %1595 = vmatpush2.msra.mxu0 %v8950_v45  ;;  %1666 = vmatpush2.msra.mxu1 %v8951_v27 }
 0x3c0   :  { %1596 = vmatprep.subr.mxu0 %v8952_v3  ;;  %1667 = vmatprep.subr.mxu1 %v8953_v5  ;;  %v8998_v5 = vld [vmem:[#allocation11_spill] sm:$0xff] }
 0x3c1   :  { %1597 = vmatpush2.msra.mxu0 %v8954_v0  ;;  %1668 = vmatpush2.msra.mxu1 %v8955_v54 }
 0x3c2   :  { %1598 = vmatprep.subr.mxu0 %v8956_v6  ;;  %1669 = vmatprep.subr.mxu1 %v8957_v7  ;;  %v8999_v7 = vld [vmem:[#allocation12_spill] sm:$0xff] }
 0x3c3   :  { %1599 = vmatpush2.msra.mxu0 %v8958_v9  ;;  %1670 = vmatpush2.msra.mxu1 %v8959_v10 }
 0x3c4   :  { %1600 = vmatprep.subr.mxu0 %v8960_v11  ;;  %1671 = vmatprep.subr.mxu1 %v8961_v12 }
 0x3c5   :  { %1601 = vmatpush2.msra.mxu0 %v8962_v13  ;;  %1672 = vmatpush2.msra.mxu1 %v8963_v14  ;;  %v1374_v13 = vpop.permute.xlu1 %1373 }
 0x3c6   :  { %1602 = vmatprep.subr.mxu0 %v8964_v15  ;;  %1673 = vmatprep.subr.mxu1 %v8965_v16  ;;  %v9000_v15 = vld [vmem:[#allocation159_spill] sm:$0xff] }
 0x3c7   :  { %1603 = vmatpush2.msra.mxu0 %v8966_v17  ;;  %1674 = vmatpush2.msra.mxu1 %v8967_v18  ;;  %v1376_v16 = vmul.f32 %v1374_v13, %v9000_v15 }
 0x3c8   :  { %1604 = vmatprep.subr.mxu0 %v8968_v19  ;;  %1675 = vmatprep.subr.mxu1 %v8969_v20  ;;  %v9001_v20 = vld [vmem:[#allocation160_spill] sm:$0xff] }
 0x3c9   :  { %1605 = vmatpush2.msra.mxu0 %v8970_v21  ;;  %1676 = vmatpush2.msra.mxu1 %v8971_v22  ;;  %v1377_v21 = vmul.f32 %v1374_v13, %v9001_v20 }
 0x3ca   :  { %1606 = vmatprep.subr.mxu0 %v8972_v23  ;;  %1677 = vmatprep.subr.mxu1 %v8973_v26 }
 0x3cb   :  { %1607 = vmatpush2.msra.mxu0 %v8974_v28  ;;  %1678 = vmatpush2.msra.mxu1 %v8975_v29 }
 0x3cc   :  { %1608 = vmatprep.subr.mxu0 %v8976_v31  ;;  %1679 = vmatprep.subr.mxu1 %v8977_v34 }
 0x3cd   :  { %1609 = vmatpush2.msra.mxu0 %v8978_v36  ;;  %1680 = vmatpush2.msra.mxu1 %v8979_v37 }
 0x3ce   :  { %1610 = vmatprep.subr.mxu0 %v8980_v40  ;;  %1681 = vmatprep.subr.mxu1 %v8981_v41 }
 0x3cf   :  { %1611 = vmatpush2.msra.mxu0 %v8982_v43  ;;  %1682 = vmatpush2.msra.mxu1 %v8983_v44 }
 0x3d0   :  { %1612 = vmatprep.subr.mxu0 %v8984_v46  ;;  %1683 = vmatprep.subr.mxu1 %v8985_v47  ;;  %v1379_v47 = vmul.f32 %v1374_v13, %v8684_v30 }
 0x3d1   :  { %1613 = vmatpush2.msra.mxu0 %v8986_v52  ;;  %1684 = vmatpush2.msra.mxu1 %v8987_v2  ;;  %v1378_v2 = vmul.f32 %v1374_v13, %v8685_v33  ;;  %v6011_v13 = vld [vmem:[#allocation3 + $0x1d8] sm:$0xff] }
 0x3d2   :  { %1614 = vmatprep.subr.mxu0 %v8988_v61  ;;  %1685 = vmatprep.subr.mxu1 %v8989_v1 }
 0x3d3   :  { %1615 = vmatpush2.msra.mxu0 %v8990_v48  ;;  %1686 = vmatpush2.msra.mxu1 %v8991_v59 }
 0x3d4   :  { %1616 = vmatprep.subr.mxu0 %v8992_v60  ;;  %1687 = vmatprep.subr.mxu1 %v8993_v62 }
 0x3d5   :  { %1617 = vmatpush2.msra.mxu0 %v8994_v56  ;;  %1688 = vmatpush2.msra.mxu1 %v8995_v8 }
 0x3d6   :  { %1731 = vmatprep.subr.mxu0 %v5972_v39  ;;  %1802 = vmatprep.subr.mxu1 %v5975_v49 }
 0x434   :  { %v1269_v4 = vpop.f32.mrf.mxu0  ;;  %v1340_v45 = vpop.f32.mrf.mxu1 }
 0x435   :  { %v1270_v63 = vadd.f32 %v1269_v4, %v8996_v38  ;;  %v1341_v9 = vadd.f32 %v1340_v45, %v8999_v7 }
 0x436   :  { %v1271_v53 = vpop.f32.mrf.mxu0  ;;  %v1342_v3 = vpop.f32.mrf.mxu1 }
 0x437   :  { %v3242_v58 = vmul.f32 -1.442695, %v1270_v63  ;;  %v1272_v42 = vadd.f32 %v1271_v53, %v8997_v24  ;;  %v1343_v0 = vadd.f32 %v1342_v3, %v8998_v5 }
 0x439   :  { %3422 = vpow2.f32 %v3242_v58  ;;  %v3243_v27 = vmul.f32 -1.442695, %v1272_v42  ;;  %v3244_v54 = vmul.f32 -1.442695, %v1343_v0 }
 0x43b   :  { %3424 = vpow2.f32 %v3243_v27 }
 0x43c   :  { %3426 = vpow2.f32 %v3244_v54 }
 0x446   :  { %v3423_v6 = vpop.eup %3422 }
 0x447   :  { %v1348_v10 = vadd.f32 1.0, %v3423_v6 }
 0x448   :  { %v3425_v11 = vpop.eup %3424 }
 0x449   :  { %3428 = vrcp.f32 %v1348_v10  ;;  %v1354_v12 = vadd.f32 1.0, %v3425_v11  ;;  %v3427_v14 = vpop.eup %3426  ;;  %v6002_v11 = vld [vmem:[#allocation3 + $0x1e0] sm:$0xff] }
 0x44a   :  { %3430 = vtanh.f32 %v1341_v9  ;;  %v1361_v23 = vadd.f32 1.0, %v3427_v14  ;;  %v6014_v14 = vld [vmem:[#allocation3 + $0x1c0] sm:$0xff] }
 0x44b   :  { %3432 = vrcp.f32 %v1354_v12  ;;  %v6005_v12 = vld [vmem:[#allocation3 + $0x1f0] sm:$0xff] }
 0x44c   :  { %3434 = vrcp.f32 %v1361_v23  ;;  %v6035_v23 = vld [vmem:[#allocation3 + $0x198] sm:$0xff] }
 0x455   :  { %v1446_v17 = vpop.f32.mrf.mxu0  ;;  %v1517_v31 = vpop.f32.mrf.mxu1 }
 0x456   :  { %v3429_v18 = vpop.eup %3428  ;;  %v1522_v19 = vadd.f32 %v1446_v17, %v1376_v16  ;;  %v6017_v16 = vld [vmem:[#allocation3 + $0x1d0] sm:$0xff]  ;;  %v6020_v17 = vld [vmem:[#allocation3 + $0x1a8] sm:$0xff] }
 0x457   :  { %v3431_v22 = vpop.eup %3430  ;;  %v1448_v26 = vpop.f32.mrf.mxu0 }
 0x458   :  { %v3433_v28 = vpop.eup %3432  ;;  %v1526_v29 = vadd.f32 %v1522_v19, %v4895_v57  ;;  %v1523_v34 = vadd.f32 %v1448_v26, %v1377_v21  ;;  %v1365_v36 = vmul.f32 %v3431_v22, %v3429_v18  ;;  %v1519_v46 = vpop.f32.mrf.mxu1  ;;  %v6023_v18 = vld [vmem:[#allocation3 + $0x1b8] sm:$0xff]  ;;  %v6026_v19 = vld [vmem:[#allocation3 + $0x1a0] sm:$0xff]  ;;  %v6029_v21 = vld [vmem:[#allocation3 + $0x1b0] sm:$0xff] }
 0x459   :  { %v1364_v37 = vmul.f32 %v3433_v28, %v5764_v55  ;;  %v1525_v52 = vadd.f32 %v1519_v46, %v1379_v47  ;;  %v1524_v55 = vadd.f32 %v1517_v31, %v1378_v2  ;;  %v3435_v48 = vpop.eup %3434  ;;  %v6032_v22 = vld [vmem:[#allocation3 + $0x188] sm:$0xff]  ;;  %v6038_v26 = vld [vmem:[#allocation3 + $0x180] sm:$0xff]  ;;  %v6041_v28 = vld [vmem:[#allocation3 + $0x190] sm:$0xff] }
 0x45a   :  { %v3246_v40 = vmul.f32 -1.442695, %v1526_v29  ;;  %v1527_v41 = vadd.f32 %v1523_v34, %v8683_v25  ;;  %v6044_v29 = vld [vmem:[#allocation3 + $0x168] sm:$0xff]  ;;  %v6047_v31 = vld [vmem:[#allocation3 + $0x178] sm:$0xff]  ;;  %v6050_v34 = vld [vmem:[#allocation3 + $0x160] sm:$0xff] }
 0x45b   :  { %v5987_v43 = vadd.f32 %v1365_v36, %v1364_v37  ;;  %v1529_v61 = vadd.f32 %v1525_v52, %v8686_v35  ;;  %v1528_v60 = vadd.f32 %v1524_v55, %v4918_v51  ;;  %v6053_v36 = vld [vmem:[#allocation3 + $0x170] sm:$0xff]  ;;  %v6056_v37 = vld [vmem:[#allocation3 + $0x148] sm:$0xff]  ;;  %v6071_v47 = vld [vmem:[#allocation3 + $0x138] sm:$0xff] }
 0x45c   :  { %3436 = vpow2.f32 %v3246_v40  ;;  %v3247_v44 = vmul.f32 -1.442695, %v1527_v41  ;;  %v6059_v40 = vld [vmem:[#allocation3 + $0x158] sm:$0xff]  ;;  %v6062_v41 = vld [vmem:[#allocation3 + $0x140] sm:$0xff]  ;;  %v6068_v46 = vld [vmem:[#allocation3 + $0x128] sm:$0xff] }
 0x45d   :  { %3438 = vtanh.f32 %v5987_v43  ;;  %v3248_v1 = vmul.f32 -1.442695, %v1529_v61  ;;  %v6074_v52 = vld [vmem:[#allocation3 + $0x120] sm:$0xff]  ;;  %v6077_v2 = vld [vmem:[#allocation3 + $0x130] sm:$0xff]  ;;  %v6080_v61 = vld [vmem:[#allocation3 + $0x108] sm:$0xff] }
 0x45e   :  { %3440 = vpow2.f32 %v3247_v44  ;;  %v6065_v44 = vld [vmem:[#allocation3 + $0x150] sm:$0xff]  ;;  %v6083_v55 = vld [vmem:[#allocation3 + $0x118] sm:$0xff] }
 0x45f   :  { %3442 = vpow2.f32 %v3248_v1  ;;  %v6086_v1 = vld [vmem:[#allocation3 + $0x100] sm:$0xff] }
 0x469   :  { %v3437_v59 = vpop.eup %3436 }
 0x46a   :  { %v3439_v62 = vpop.eup %3438  ;;  %v1533_v56 = vadd.f32 1.0, %v3437_v59  ;;  %v6092_v59 = vld [vmem:[#allocation3 + $0xe8] sm:$0xff] }
 0x46b   :  { %v3441_v8 = vpop.eup %3440  ;;  %v1368_v4 = vmul.f32 %v3439_v62, %v3435_v48  ;;  %v6089_v48 = vld [vmem:[#allocation3 + $0x110] sm:$0xff]  ;;  %v6098_v62 = vld [vmem:[#allocation3 + $0xe0] sm:$0xff] }
 0x46c   :  { %3444 = vrcp.f32 %v1533_v56  ;;  %v1539_v63 = vadd.f32 1.0, %v3441_v8  ;;  %v3443_v53 = vpop.eup %3442  ;;  %v6101_v56 = vld [vmem:[#allocation3 + $0xf0] sm:$0xff]  ;;  %v6104_v8 = vld [vmem:[#allocation3 + $0xc8] sm:$0xff] }
 0x46d   :  { %3446 = vtanh.f32 %v1528_v60  ;;  %1618 = vmatprep.mubr.f32.mxu0 %v1368_v4  ;;  %1689 = vmatprep.mubr.f32.mxu1 %v1368_v4  ;;  %v1546_v27 = vadd.f32 1.0, %v3443_v53  ;;  %v6095_v60 = vld [vmem:[#allocation3 + $0xf8] sm:$0xff]  ;;  %v6113_v53 = vld [vmem:[#allocation3 + $0xd0] sm:$0xff] }
 0x46e   :  { %3448 = vrcp.f32 %v1539_v63  ;;  %v6107_v4 = vld [vmem:[#allocation3 + $0xd8] sm:$0xff]  ;;  %v6110_v63 = vld [vmem:[#allocation3 + $0xc0] sm:$0xff]  ;;  %9003 = vst [vmem:[#allocation14_spill] sm:$0xff] %v6113_v53 }
 0x46f   :  { %3450 = vrcp.f32 %v1546_v27  ;;  %9002 = vst [vmem:[#allocation13_spill] sm:$0xff] %v6110_v63  ;;  %v6125_v27 = vld [vmem:[#allocation3 + $0xb0] sm:$0xff] }
 0x470   :  { %9007 = vst [vmem:[#allocation18_spill] sm:$0xff] %v6125_v27 }
 0x479   :  { %v3445_v58 = vpop.eup %3444 }
 0x47a   :  { %v3447_v42 = vpop.eup %3446 }
 0x47b   :  { %v3449_v45 = vpop.eup %3448  ;;  %v1550_v3 = vmul.f32 %v3447_v42, %v3445_v58  ;;  %v6116_v58 = vld [vmem:[#allocation3 + $0xa8] sm:$0xff]  ;;  %v6119_v42 = vld [vmem:[#allocation3 + $0xb8] sm:$0xff] }
 0x47c   :  { %v1549_v0 = vmul.f32 %v3449_v45, %v5771_v50  ;;  %v3451_v6 = vpop.eup %3450  ;;  %v6008_v50 = vld [vmem:[#allocation3 + $0x1c8] sm:$0xff]  ;;  %9004 = vst [vmem:[#allocation15_spill] sm:$0xff] %v6116_v58  ;;  %9005 = vst [vmem:[#allocation16_spill] sm:$0xff] %v6119_v42  ;;  %v6122_v45 = vld [vmem:[#allocation3 + $0xa0] sm:$0xff] }
 0x47d   :  { %9006 = vst [vmem:[#allocation17_spill] sm:$0xff] %v6122_v45 }
 0x47e   :  { %v5995_v54 = vadd.f32 %v1550_v3, %v1549_v0  ;;  %v6128_v3 = vld [vmem:[#allocation3 + $0x88] sm:$0xff]  ;;  %v6131_v0 = vld [vmem:[#allocation3 + $0x98] sm:$0xff] }
 0x47f   :  { %9008 = vst [vmem:[#allocation19_spill] sm:$0xff] %v6128_v3  ;;  %9009 = vst [vmem:[#allocation20_spill] sm:$0xff] %v6131_v0 }
 0x480   :  { %3452 = vtanh.f32 %v5995_v54 }
 0x48d   :  { %v3453_v9 = vpop.eup %3452 }
 0x48e   :  { %v5998_v10 = vmul.f32 %v3453_v9, %v3451_v6  ;;  %v6134_v6 = vld [vmem:[#allocation3 + $0x80] sm:$0xff]  ;;  %v6137_v9 = vld [vmem:[#allocation3 + $0x90] sm:$0xff] }
 0x48f   :  { %9010 = vst [vmem:[#allocation21_spill] sm:$0xff] %v6134_v6  ;;  %9011 = vst [vmem:[#allocation22_spill] sm:$0xff] %v6137_v9 }
 0x490   :  { %1619 = vmatmul.mubr.f32.vlgmr.msra.gmra.mxu0 %v5998_v10  ;;  %1690 = vmatmul.mubr.f32.vlgmr.msra.gmra.mxu1 %v5998_v10 }
 0x491   :  { %1732 = vmatpush1.msra.mxu0 %v6002_v11  ;;  %1803 = vmatpush1.msra.mxu1 %v6005_v12 }
 0x492   :  { %1733 = vmatprep.subr.mxu0 %v6008_v50  ;;  %1804 = vmatprep.subr.mxu1 %v6011_v13 }
 0x493   :  { %1734 = vmatpush1.msra.mxu0 %v6014_v14  ;;  %1805 = vmatpush1.msra.mxu1 %v6017_v16 }
 0x494   :  { %1735 = vmatprep.subr.mxu0 %v6020_v17  ;;  %1806 = vmatprep.subr.mxu1 %v6023_v18 }
 0x495   :  { %1736 = vmatpush1.msra.mxu0 %v6026_v19  ;;  %1807 = vmatpush1.msra.mxu1 %v6029_v21 }
 0x496   :  { %1737 = vmatprep.subr.mxu0 %v6032_v22  ;;  %1808 = vmatprep.subr.mxu1 %v6035_v23 }
 0x497   :  { %1738 = vmatpush1.msra.mxu0 %v6038_v26  ;;  %1809 = vmatpush1.msra.mxu1 %v6041_v28 }
 0x498   :  { %1739 = vmatprep.subr.mxu0 %v6044_v29  ;;  %1810 = vmatprep.subr.mxu1 %v6047_v31 }
 0x499   :  { %1740 = vmatpush1.msra.mxu0 %v6050_v34  ;;  %1811 = vmatpush1.msra.mxu1 %v6053_v36 }
 0x49a   :  { %1741 = vmatprep.subr.mxu0 %v6056_v37  ;;  %1812 = vmatprep.subr.mxu1 %v6059_v40 }
 0x49b   :  { %1742 = vmatpush1.msra.mxu0 %v6062_v41  ;;  %1813 = vmatpush1.msra.mxu1 %v6065_v44 }
 0x49c   :  { %1743 = vmatprep.subr.mxu0 %v6068_v46  ;;  %1814 = vmatprep.subr.mxu1 %v6071_v47 }
 0x49d   :  { %1744 = vmatpush1.msra.mxu0 %v6074_v52  ;;  %1815 = vmatpush1.msra.mxu1 %v6077_v2 }
 0x49e   :  { %1745 = vmatprep.subr.mxu0 %v6080_v61  ;;  %1816 = vmatprep.subr.mxu1 %v6083_v55 }
 0x49f   :  { %1746 = vmatpush1.msra.mxu0 %v6086_v1  ;;  %1817 = vmatpush1.msra.mxu1 %v6089_v48 }
 0x4a0   :  { %1747 = vmatprep.subr.mxu0 %v6092_v59  ;;  %1818 = vmatprep.subr.mxu1 %v6095_v60 }
 0x4a1   :  { %1748 = vmatpush1.msra.mxu0 %v6098_v62  ;;  %1819 = vmatpush1.msra.mxu1 %v6101_v56 }
 0x4a2   :  { %1749 = vmatprep.subr.mxu0 %v6104_v8  ;;  %1820 = vmatprep.subr.mxu1 %v6107_v4 }
 0x4a3   :  { %1750 = vmatpush1.msra.mxu0 %v6110_v63  ;;  %1821 = vmatpush1.msra.mxu1 %v6113_v53 }
 0x4a4   :  { %1751 = vmatprep.subr.mxu0 %v6116_v58  ;;  %1822 = vmatprep.subr.mxu1 %v6119_v42 }
 0x4a5   :  { %1752 = vmatpush1.msra.mxu0 %v6122_v45  ;;  %1823 = vmatpush1.msra.mxu1 %v6125_v27  ;;  %v6140_v45 = vld [vmem:[#allocation3 + $0x68] sm:$0xff]  ;;  %v6143_v27 = vld [vmem:[#allocation3 + $0x78] sm:$0xff] }
 0x4a6   :  { %1753 = vmatprep.subr.mxu0 %v6128_v3  ;;  %1824 = vmatprep.subr.mxu1 %v6131_v0  ;;  %9012 = vst [vmem:[#allocation23_spill] sm:$0xff] %v6140_v45  ;;  %9013 = vst [vmem:[#allocation24_spill] sm:$0xff] %v6143_v27  ;;  %v6146_v3 = vld [vmem:[#allocation3 + $0x60] sm:$0xff]  ;;  %v6149_v0 = vld [vmem:[#allocation3 + $0x70] sm:$0xff] }
 0x4a7   :  { %1754 = vmatpush1.msra.mxu0 %v6134_v6  ;;  %1825 = vmatpush1.msra.mxu1 %v6137_v9  ;;  %9014 = vst [vmem:[#allocation25_spill] sm:$0xff] %v6146_v3  ;;  %9015 = vst [vmem:[#allocation26_spill] sm:$0xff] %v6149_v0  ;;  %v6152_v6 = vld [vmem:[#allocation3 + $0x48] sm:$0xff]  ;;  %v6155_v9 = vld [vmem:[#allocation3 + $0x58] sm:$0xff] }
 0x4a8   :  { %1755 = vmatprep.subr.mxu0 %v6140_v45  ;;  %1826 = vmatprep.subr.mxu1 %v6143_v27  ;;  %9016 = vst [vmem:[#allocation27_spill] sm:$0xff] %v6152_v6  ;;  %9017 = vst [vmem:[#allocation28_spill] sm:$0xff] %v6155_v9  ;;  %v6158_v45 = vld [vmem:[#allocation3 + $0x40] sm:$0xff]  ;;  %v6161_v27 = vld [vmem:[#allocation3 + $0x50] sm:$0xff] }
 0x4a9   :  { %1756 = vmatpush1.msra.mxu0 %v6146_v3  ;;  %1827 = vmatpush1.msra.mxu1 %v6149_v0  ;;  %9018 = vst [vmem:[#allocation29_spill] sm:$0xff] %v6158_v45  ;;  %9019 = vst [vmem:[#allocation30_spill] sm:$0xff] %v6161_v27  ;;  %v6164_v3 = vld [vmem:[#allocation3 + $0x28] sm:$0xff]  ;;  %v6167_v0 = vld [vmem:[#allocation3 + $0x38] sm:$0xff] }
 0x4aa   :  { %1757 = vmatprep.subr.mxu0 %v6152_v6  ;;  %1828 = vmatprep.subr.mxu1 %v6155_v9  ;;  %9020 = vst [vmem:[#allocation31_spill] sm:$0xff] %v6164_v3  ;;  %9021 = vst [vmem:[#allocation32_spill] sm:$0xff] %v6167_v0  ;;  %v6170_v6 = vld [vmem:[#allocation3 + $0x20] sm:$0xff]  ;;  %v6173_v9 = vld [vmem:[#allocation3 + $0x30] sm:$0xff] }
 0x4ab   :  { %1758 = vmatpush1.msra.mxu0 %v6158_v45  ;;  %1829 = vmatpush1.msra.mxu1 %v6161_v27  ;;  %9022 = vst [vmem:[#allocation33_spill] sm:$0xff] %v6170_v6  ;;  %9023 = vst [vmem:[#allocation34_spill] sm:$0xff] %v6173_v9  ;;  %v6176_v45 = vld [vmem:[#allocation3 + $0x8] sm:$0xff]  ;;  %v6179_v27 = vld [vmem:[#allocation3 + $0x18] sm:$0xff] }
 0x4ac   :  { %1759 = vmatprep.subr.mxu0 %v6164_v3  ;;  %1830 = vmatprep.subr.mxu1 %v6167_v0  ;;  %9024 = vst [vmem:[#allocation35_spill] sm:$0xff] %v6176_v45  ;;  %9025 = vst [vmem:[#allocation36_spill] sm:$0xff] %v6179_v27  ;;  %v6182_v3 = vld [vmem:[#allocation3] sm:$0xff]  ;;  %v6186_v0 = vld [vmem:[#allocation3 + $0x10] sm:$0xff] }
 0x4ad   :  { %1760 = vmatpush1.msra.mxu0 %v6170_v6  ;;  %1831 = vmatpush1.msra.mxu1 %v6173_v9  ;;  %9026 = vst [vmem:[#allocation37_spill] sm:$0xff] %v6182_v3  ;;  %9027 = vst [vmem:[#allocation38_spill] sm:$0xff] %v6186_v0  ;;  %v6201_v9 = vld [vmem:[#allocation5 + $0x1f0] sm:$0xff] }
 0x4ae   :  { %1761 = vmatprep.subr.mxu0 %v6176_v45  ;;  %1832 = vmatprep.subr.mxu1 %v6179_v27  ;;  %v6192_v45 = vld [vmem:[#allocation5 + $0x1e8] sm:$0xff]  ;;  %v6195_v27 = vld [vmem:[#allocation5 + $0x1f8] sm:$0xff]  ;;  %9031 = vst [vmem:[#allocation42_spill] sm:$0xff] %v6201_v9 }
 0x4af   :  { %1762 = vmatpush1.msra.mxu0 %v6182_v3  ;;  %1795 = vmatprep.mubr.f32.mxu0 %v8866_v32  ;;  %9028 = vst [vmem:[#allocation39_spill] sm:$0xff] %v6192_v45  ;;  %9029 = vst [vmem:[#allocation40_spill] sm:$0xff] %v6195_v27  ;;  %v6198_v3 = vld [vmem:[#allocation5 + $0x1e0] sm:$0xff] }
 0x4b0   :  { %1833 = vmatpush1.msra.mxu1 %v6186_v0  ;;  %1866 = vmatprep.mubr.f32.mxu1 %v8866_v32  ;;  %9030 = vst [vmem:[#allocation41_spill] sm:$0xff] %v6198_v3  ;;  %v6204_v0 = vld [vmem:[#allocation5 + $0x1c8] sm:$0xff] }
 0x4b1   :  { %1796 = vmatmul.mubr.f32.vlgmr.msra.gmra.mxu0 %v5998_v10  ;;  %1867 = vmatmul.mubr.f32.vlgmr.msra.gmra.mxu1 %v5998_v10  ;;  %9032 = vst [vmem:[#allocation43_spill] sm:$0xff] %v6204_v0  ;;  %v6207_v10 = vld [vmem:[#allocation5 + $0x1d8] sm:$0xff] }
 0x4b2   :  { %1905 = vmatprep.subr.mxu0 %v6192_v45  ;;  %1976 = vmatprep.subr.mxu1 %v6195_v27  ;;  %9033 = vst [vmem:[#allocation44_spill] sm:$0xff] %v6207_v10  ;;  %v6210_v45 = vld [vmem:[#allocation5 + $0x1c0] sm:$0xff]  ;;  %v6213_v27 = vld [vmem:[#allocation5 + $0x1d0] sm:$0xff] }
 0x4b3   :  { %1906 = vmatpush1.msra.mxu0 %v6198_v3  ;;  %1977 = vmatpush1.msra.mxu1 %v6201_v9  ;;  %9034 = vst [vmem:[#allocation45_spill] sm:$0xff] %v6210_v45  ;;  %9035 = vst [vmem:[#allocation46_spill] sm:$0xff] %v6213_v27  ;;  %v6216_v3 = vld [vmem:[#allocation5 + $0x1a8] sm:$0xff]  ;;  %v6219_v9 = vld [vmem:[#allocation5 + $0x1b8] sm:$0xff] }
 0x4b4   :  { %1907 = vmatprep.subr.mxu0 %v6204_v0  ;;  %1978 = vmatprep.subr.mxu1 %v6207_v10  ;;  %9036 = vst [vmem:[#allocation47_spill] sm:$0xff] %v6216_v3  ;;  %9037 = vst [vmem:[#allocation48_spill] sm:$0xff] %v6219_v9  ;;  %v6222_v0 = vld [vmem:[#allocation5 + $0x1a0] sm:$0xff]  ;;  %v6225_v10 = vld [vmem:[#allocation5 + $0x1b0] sm:$0xff] }
 0x4b5   :  { %1908 = vmatpush1.msra.mxu0 %v6210_v45  ;;  %1979 = vmatpush1.msra.mxu1 %v6213_v27  ;;  %9038 = vst [vmem:[#allocation49_spill] sm:$0xff] %v6222_v0  ;;  %9039 = vst [vmem:[#allocation50_spill] sm:$0xff] %v6225_v10  ;;  %v6228_v45 = vld [vmem:[#allocation5 + $0x188] sm:$0xff]  ;;  %v6231_v27 = vld [vmem:[#allocation5 + $0x198] sm:$0xff] }
 0x4b6   :  { %1909 = vmatprep.subr.mxu0 %v6216_v3  ;;  %1980 = vmatprep.subr.mxu1 %v6219_v9  ;;  %9040 = vst [vmem:[#allocation51_spill] sm:$0xff] %v6228_v45  ;;  %9041 = vst [vmem:[#allocation52_spill] sm:$0xff] %v6231_v27  ;;  %v6234_v3 = vld [vmem:[#allocation5 + $0x180] sm:$0xff]  ;;  %v6237_v9 = vld [vmem:[#allocation5 + $0x190] sm:$0xff] }
 0x4b7   :  { %1910 = vmatpush1.msra.mxu0 %v6222_v0  ;;  %1981 = vmatpush1.msra.mxu1 %v6225_v10  ;;  %9042 = vst [vmem:[#allocation53_spill] sm:$0xff] %v6234_v3  ;;  %9043 = vst [vmem:[#allocation54_spill] sm:$0xff] %v6237_v9  ;;  %v6240_v0 = vld [vmem:[#allocation5 + $0x168] sm:$0xff]  ;;  %v6243_v10 = vld [vmem:[#allocation5 + $0x178] sm:$0xff] }
 0x4b8   :  { %1911 = vmatprep.subr.mxu0 %v6228_v45  ;;  %1982 = vmatprep.subr.mxu1 %v6231_v27  ;;  %9044 = vst [vmem:[#allocation55_spill] sm:$0xff] %v6240_v0  ;;  %9045 = vst [vmem:[#allocation56_spill] sm:$0xff] %v6243_v10  ;;  %v6246_v45 = vld [vmem:[#allocation5 + $0x160] sm:$0xff]  ;;  %v6249_v27 = vld [vmem:[#allocation5 + $0x170] sm:$0xff] }
 0x4b9   :  { %1912 = vmatpush1.msra.mxu0 %v6234_v3  ;;  %1983 = vmatpush1.msra.mxu1 %v6237_v9  ;;  %9046 = vst [vmem:[#allocation57_spill] sm:$0xff] %v6246_v45  ;;  %9047 = vst [vmem:[#allocation58_spill] sm:$0xff] %v6249_v27  ;;  %v6252_v3 = vld [vmem:[#allocation5 + $0x148] sm:$0xff]  ;;  %v6255_v9 = vld [vmem:[#allocation5 + $0x158] sm:$0xff] }
 0x4ba   :  { %1913 = vmatprep.subr.mxu0 %v6240_v0  ;;  %1984 = vmatprep.subr.mxu1 %v6243_v10  ;;  %9048 = vst [vmem:[#allocation59_spill] sm:$0xff] %v6252_v3  ;;  %9049 = vst [vmem:[#allocation60_spill] sm:$0xff] %v6255_v9  ;;  %v6258_v0 = vld [vmem:[#allocation5 + $0x140] sm:$0xff]  ;;  %v6261_v10 = vld [vmem:[#allocation5 + $0x150] sm:$0xff] }
 0x4bb   :  { %1914 = vmatpush1.msra.mxu0 %v6246_v45  ;;  %1985 = vmatpush1.msra.mxu1 %v6249_v27  ;;  %9050 = vst [vmem:[#allocation61_spill] sm:$0xff] %v6258_v0  ;;  %9051 = vst [vmem:[#allocation62_spill] sm:$0xff] %v6261_v10  ;;  %v6264_v45 = vld [vmem:[#allocation5 + $0x128] sm:$0xff]  ;;  %v6267_v27 = vld [vmem:[#allocation5 + $0x138] sm:$0xff] }
 0x4bc   :  { %1915 = vmatprep.subr.mxu0 %v6252_v3  ;;  %1986 = vmatprep.subr.mxu1 %v6255_v9  ;;  %9052 = vst [vmem:[#allocation63_spill] sm:$0xff] %v6264_v45  ;;  %9053 = vst [vmem:[#allocation64_spill] sm:$0xff] %v6267_v27  ;;  %v6270_v3 = vld [vmem:[#allocation5 + $0x120] sm:$0xff]  ;;  %v6273_v9 = vld [vmem:[#allocation5 + $0x130] sm:$0xff] }
 0x4bd   :  { %1916 = vmatpush1.msra.mxu0 %v6258_v0  ;;  %1987 = vmatpush1.msra.mxu1 %v6261_v10  ;;  %9054 = vst [vmem:[#allocation65_spill] sm:$0xff] %v6270_v3  ;;  %9055 = vst [vmem:[#allocation66_spill] sm:$0xff] %v6273_v9  ;;  %v6276_v0 = vld [vmem:[#allocation5 + $0x108] sm:$0xff]  ;;  %v6279_v10 = vld [vmem:[#allocation5 + $0x118] sm:$0xff] }
 0x4be   :  { %1917 = vmatprep.subr.mxu0 %v6264_v45  ;;  %1988 = vmatprep.subr.mxu1 %v6267_v27  ;;  %9056 = vst [vmem:[#allocation67_spill] sm:$0xff] %v6276_v0  ;;  %9057 = vst [vmem:[#allocation68_spill] sm:$0xff] %v6279_v10  ;;  %v6282_v45 = vld [vmem:[#allocation5 + $0x100] sm:$0xff]  ;;  %v6285_v27 = vld [vmem:[#allocation5 + $0x110] sm:$0xff] }
 0x4bf   :  { %1918 = vmatpush1.msra.mxu0 %v6270_v3  ;;  %1989 = vmatpush1.msra.mxu1 %v6273_v9  ;;  %9058 = vst [vmem:[#allocation69_spill] sm:$0xff] %v6282_v45  ;;  %9059 = vst [vmem:[#allocation70_spill] sm:$0xff] %v6285_v27  ;;  %v6288_v3 = vld [vmem:[#allocation5 + $0xe8] sm:$0xff]  ;;  %v6291_v9 = vld [vmem:[#allocation5 + $0xf8] sm:$0xff] }
 0x4c0   :  { %1919 = vmatprep.subr.mxu0 %v6276_v0  ;;  %1990 = vmatprep.subr.mxu1 %v6279_v10  ;;  %9060 = vst [vmem:[#allocation71_spill] sm:$0xff] %v6288_v3  ;;  %9061 = vst [vmem:[#allocation72_spill] sm:$0xff] %v6291_v9  ;;  %v6294_v0 = vld [vmem:[#allocation5 + $0xe0] sm:$0xff]  ;;  %v6297_v10 = vld [vmem:[#allocation5 + $0xf0] sm:$0xff] }
 0x4c1   :  { %1920 = vmatpush1.msra.mxu0 %v6282_v45  ;;  %1991 = vmatpush1.msra.mxu1 %v6285_v27  ;;  %9062 = vst [vmem:[#allocation73_spill] sm:$0xff] %v6294_v0  ;;  %9063 = vst [vmem:[#allocation74_spill] sm:$0xff] %v6297_v10  ;;  %v6300_v45 = vld [vmem:[#allocation5 + $0xc8] sm:$0xff]  ;;  %v6303_v27 = vld [vmem:[#allocation5 + $0xd8] sm:$0xff] }
 0x4c2   :  { %1921 = vmatprep.subr.mxu0 %v6288_v3  ;;  %1992 = vmatprep.subr.mxu1 %v6291_v9  ;;  %9064 = vst [vmem:[#allocation75_spill] sm:$0xff] %v6300_v45  ;;  %9065 = vst [vmem:[#allocation76_spill] sm:$0xff] %v6303_v27  ;;  %v6306_v3 = vld [vmem:[#allocation5 + $0xc0] sm:$0xff]  ;;  %v6309_v9 = vld [vmem:[#allocation5 + $0xd0] sm:$0xff] }
 0x4c3   :  { %1922 = vmatpush1.msra.mxu0 %v6294_v0  ;;  %1993 = vmatpush1.msra.mxu1 %v6297_v10  ;;  %9066 = vst [vmem:[#allocation77_spill] sm:$0xff] %v6306_v3  ;;  %9067 = vst [vmem:[#allocation78_spill] sm:$0xff] %v6309_v9  ;;  %v6312_v0 = vld [vmem:[#allocation5 + $0xa8] sm:$0xff]  ;;  %v6315_v10 = vld [vmem:[#allocation5 + $0xb8] sm:$0xff] }
 0x4c4   :  { %1923 = vmatprep.subr.mxu0 %v6300_v45  ;;  %1994 = vmatprep.subr.mxu1 %v6303_v27  ;;  %9068 = vst [vmem:[#allocation79_spill] sm:$0xff] %v6312_v0  ;;  %9069 = vst [vmem:[#allocation80_spill] sm:$0xff] %v6315_v10  ;;  %v6318_v45 = vld [vmem:[#allocation5 + $0xa0] sm:$0xff]  ;;  %v6321_v27 = vld [vmem:[#allocation5 + $0xb0] sm:$0xff] }
 0x4c5   :  { %1924 = vmatpush1.msra.mxu0 %v6306_v3  ;;  %1995 = vmatpush1.msra.mxu1 %v6309_v9  ;;  %9070 = vst [vmem:[#allocation81_spill] sm:$0xff] %v6318_v45  ;;  %9071 = vst [vmem:[#allocation82_spill] sm:$0xff] %v6321_v27  ;;  %v6324_v3 = vld [vmem:[#allocation5 + $0x88] sm:$0xff]  ;;  %v6327_v9 = vld [vmem:[#allocation5 + $0x98] sm:$0xff] }
 0x4c6   :  { %1925 = vmatprep.subr.mxu0 %v6312_v0  ;;  %1996 = vmatprep.subr.mxu1 %v6315_v10  ;;  %9072 = vst [vmem:[#allocation83_spill] sm:$0xff] %v6324_v3  ;;  %9073 = vst [vmem:[#allocation84_spill] sm:$0xff] %v6327_v9  ;;  %v6330_v0 = vld [vmem:[#allocation5 + $0x80] sm:$0xff]  ;;  %v6333_v10 = vld [vmem:[#allocation5 + $0x90] sm:$0xff] }
 0x4c7   :  { %1926 = vmatpush1.msra.mxu0 %v6318_v45  ;;  %1997 = vmatpush1.msra.mxu1 %v6321_v27  ;;  %9074 = vst [vmem:[#allocation85_spill] sm:$0xff] %v6330_v0  ;;  %9075 = vst [vmem:[#allocation86_spill] sm:$0xff] %v6333_v10  ;;  %v6336_v45 = vld [vmem:[#allocation5 + $0x68] sm:$0xff]  ;;  %v6339_v27 = vld [vmem:[#allocation5 + $0x78] sm:$0xff] }
 0x4c8   :  { %1927 = vmatprep.subr.mxu0 %v6324_v3  ;;  %1998 = vmatprep.subr.mxu1 %v6327_v9  ;;  %9076 = vst [vmem:[#allocation87_spill] sm:$0xff] %v6336_v45  ;;  %9077 = vst [vmem:[#allocation88_spill] sm:$0xff] %v6339_v27  ;;  %v6342_v3 = vld [vmem:[#allocation5 + $0x60] sm:$0xff]  ;;  %v6345_v9 = vld [vmem:[#allocation5 + $0x70] sm:$0xff] }
 0x4c9   :  { %1928 = vmatpush1.msra.mxu0 %v6330_v0  ;;  %1999 = vmatpush1.msra.mxu1 %v6333_v10  ;;  %9078 = vst [vmem:[#allocation89_spill] sm:$0xff] %v6342_v3  ;;  %9079 = vst [vmem:[#allocation90_spill] sm:$0xff] %v6345_v9  ;;  %v6348_v0 = vld [vmem:[#allocation5 + $0x48] sm:$0xff]  ;;  %v6351_v10 = vld [vmem:[#allocation5 + $0x58] sm:$0xff] }
 0x4ca   :  { %1929 = vmatprep.subr.mxu0 %v6336_v45  ;;  %2000 = vmatprep.subr.mxu1 %v6339_v27  ;;  %9080 = vst [vmem:[#allocation91_spill] sm:$0xff] %v6348_v0  ;;  %9081 = vst [vmem:[#allocation92_spill] sm:$0xff] %v6351_v10  ;;  %v6354_v45 = vld [vmem:[#allocation5 + $0x40] sm:$0xff]  ;;  %v6357_v27 = vld [vmem:[#allocation5 + $0x50] sm:$0xff] }
 0x4cb   :  { %1930 = vmatpush1.msra.mxu0 %v6342_v3  ;;  %2001 = vmatpush1.msra.mxu1 %v6345_v9  ;;  %9082 = vst [vmem:[#allocation93_spill] sm:$0xff] %v6354_v45  ;;  %9083 = vst [vmem:[#allocation94_spill] sm:$0xff] %v6357_v27  ;;  %v6360_v3 = vld [vmem:[#allocation5 + $0x28] sm:$0xff]  ;;  %v6363_v9 = vld [vmem:[#allocation5 + $0x38] sm:$0xff] }
 0x4cc   :  { %1931 = vmatprep.subr.mxu0 %v6348_v0  ;;  %2002 = vmatprep.subr.mxu1 %v6351_v10  ;;  %9084 = vst [vmem:[#allocation95_spill] sm:$0xff] %v6360_v3  ;;  %9085 = vst [vmem:[#allocation96_spill] sm:$0xff] %v6363_v9  ;;  %v6366_v0 = vld [vmem:[#allocation5 + $0x20] sm:$0xff]  ;;  %v6369_v10 = vld [vmem:[#allocation5 + $0x30] sm:$0xff] }
 0x4cd   :  { %1932 = vmatpush1.msra.mxu0 %v6354_v45  ;;  %2003 = vmatpush1.msra.mxu1 %v6357_v27  ;;  %9086 = vst [vmem:[#allocation97_spill] sm:$0xff] %v6366_v0  ;;  %9087 = vst [vmem:[#allocation98_spill] sm:$0xff] %v6369_v10  ;;  %v6372_v45 = vld [vmem:[#allocation5 + $0x8] sm:$0xff]  ;;  %v6375_v27 = vld [vmem:[#allocation5 + $0x18] sm:$0xff] }
 0x4ce   :  { %1933 = vmatprep.subr.mxu0 %v6360_v3  ;;  %2004 = vmatprep.subr.mxu1 %v6363_v9  ;;  %9088 = vst [vmem:[#allocation99_spill] sm:$0xff] %v6372_v45  ;;  %9089 = vst [vmem:[#allocation100_spill] sm:$0xff] %v6375_v27  ;;  %v6378_v3 = vld [vmem:[#allocation5] sm:$0xff]  ;;  %v6381_v9 = vld [vmem:[#allocation5 + $0x10] sm:$0xff] }
 0x4cf   :  { %1934 = vmatpush1.msra.mxu0 %v6366_v0  ;;  %2005 = vmatpush1.msra.mxu1 %v6369_v10  ;;  %9090 = vst [vmem:[#allocation101_spill] sm:$0xff] %v6378_v3  ;;  %9091 = vst [vmem:[#allocation102_spill] sm:$0xff] %v6381_v9  ;;  %v6384_v0 = vld [vmem:[#allocation5 + $0x3e8] sm:$0xff]  ;;  %v6387_v10 = vld [vmem:[#allocation5 + $0x3f8] sm:$0xff] }
 0x4d0   :  { %1935 = vmatprep.subr.mxu0 %v6372_v45  ;;  %2006 = vmatprep.subr.mxu1 %v6375_v27  ;;  %9092 = vst [vmem:[#allocation103_spill] sm:$0xff] %v6384_v0  ;;  %9093 = vst [vmem:[#allocation104_spill] sm:$0xff] %v6387_v10  ;;  %v6390_v45 = vld [vmem:[#allocation5 + $0x3e0] sm:$0xff]  ;;  %v6393_v27 = vld [vmem:[#allocation5 + $0x3f0] sm:$0xff] }
 0x4d1   :  { %1936 = vmatpush1.msra.mxu0 %v6378_v3  ;;  %2007 = vmatpush1.msra.mxu1 %v6381_v9  ;;  %9094 = vst [vmem:[#allocation105_spill] sm:$0xff] %v6390_v45  ;;  %9095 = vst [vmem:[#allocation106_spill] sm:$0xff] %v6393_v27  ;;  %v6396_v3 = vld [vmem:[#allocation5 + $0x3c8] sm:$0xff]  ;;  %v6399_v9 = vld [vmem:[#allocation5 + $0x3d8] sm:$0xff] }
 0x4d2   :  { %1937 = vmatprep.subr.mxu0 %v6384_v0  ;;  %2008 = vmatprep.subr.mxu1 %v6387_v10  ;;  %9096 = vst [vmem:[#allocation107_spill] sm:$0xff] %v6396_v3  ;;  %9097 = vst [vmem:[#allocation108_spill] sm:$0xff] %v6399_v9  ;;  %v6402_v0 = vld [vmem:[#allocation5 + $0x3c0] sm:$0xff]  ;;  %v6405_v10 = vld [vmem:[#allocation5 + $0x3d0] sm:$0xff] }
 0x4d3   :  { %1938 = vmatpush2.msra.mxu0 %v6390_v45  ;;  %2009 = vmatpush2.msra.mxu1 %v6393_v27  ;;  %9098 = vst [vmem:[#allocation109_spill] sm:$0xff] %v6402_v0  ;;  %9099 = vst [vmem:[#allocation110_spill] sm:$0xff] %v6405_v10  ;;  %v6408_v45 = vld [vmem:[#allocation5 + $0x3a8] sm:$0xff]  ;;  %v6411_v27 = vld [vmem:[#allocation5 + $0x3b8] sm:$0xff] }
 0x4d4   :  { %1939 = vmatprep.subr.mxu0 %v6396_v3  ;;  %2010 = vmatprep.subr.mxu1 %v6399_v9  ;;  %9100 = vst [vmem:[#allocation111_spill] sm:$0xff] %v6408_v45  ;;  %9101 = vst [vmem:[#allocation112_spill] sm:$0xff] %v6411_v27  ;;  %v6414_v3 = vld [vmem:[#allocation5 + $0x3a0] sm:$0xff]  ;;  %v6417_v9 = vld [vmem:[#allocation5 + $0x3b0] sm:$0xff] }
 0x4d5   :  { %1940 = vmatpush2.msra.mxu0 %v6402_v0  ;;  %2011 = vmatpush2.msra.mxu1 %v6405_v10  ;;  %9102 = vst [vmem:[#allocation113_spill] sm:$0xff] %v6414_v3  ;;  %9103 = vst [vmem:[#allocation114_spill] sm:$0xff] %v6417_v9  ;;  %v6420_v0 = vld [vmem:[#allocation5 + $0x388] sm:$0xff]  ;;  %v6423_v10 = vld [vmem:[#allocation5 + $0x398] sm:$0xff] }
 0x4d6   :  { %1941 = vmatprep.subr.mxu0 %v6408_v45  ;;  %2012 = vmatprep.subr.mxu1 %v6411_v27  ;;  %9104 = vst [vmem:[#allocation115_spill] sm:$0xff] %v6420_v0  ;;  %9105 = vst [vmem:[#allocation116_spill] sm:$0xff] %v6423_v10  ;;  %v6426_v45 = vld [vmem:[#allocation5 + $0x380] sm:$0xff]  ;;  %v6429_v27 = vld [vmem:[#allocation5 + $0x390] sm:$0xff] }
 0x4d7   :  { %1942 = vmatpush2.msra.mxu0 %v6414_v3  ;;  %2013 = vmatpush2.msra.mxu1 %v6417_v9  ;;  %9106 = vst [vmem:[#allocation117_spill] sm:$0xff] %v6426_v45  ;;  %9107 = vst [vmem:[#allocation118_spill] sm:$0xff] %v6429_v27  ;;  %v6432_v3 = vld [vmem:[#allocation5 + $0x368] sm:$0xff]  ;;  %v6435_v9 = vld [vmem:[#allocation5 + $0x378] sm:$0xff] }
 0x4d8   :  { %1943 = vmatprep.subr.mxu0 %v6420_v0  ;;  %2014 = vmatprep.subr.mxu1 %v6423_v10  ;;  %9108 = vst [vmem:[#allocation119_spill] sm:$0xff] %v6432_v3  ;;  %9109 = vst [vmem:[#allocation120_spill] sm:$0xff] %v6435_v9  ;;  %v6438_v0 = vld [vmem:[#allocation5 + $0x360] sm:$0xff]  ;;  %v6441_v10 = vld [vmem:[#allocation5 + $0x370] sm:$0xff] }
 0x4d9   :  { %1944 = vmatpush2.msra.mxu0 %v6426_v45  ;;  %2015 = vmatpush2.msra.mxu1 %v6429_v27  ;;  %9110 = vst [vmem:[#allocation121_spill] sm:$0xff] %v6438_v0  ;;  %9111 = vst [vmem:[#allocation122_spill] sm:$0xff] %v6441_v10  ;;  %v6444_v45 = vld [vmem:[#allocation5 + $0x348] sm:$0xff]  ;;  %v6447_v27 = vld [vmem:[#allocation5 + $0x358] sm:$0xff] }
 0x4da   :  { %1945 = vmatprep.subr.mxu0 %v6432_v3  ;;  %2016 = vmatprep.subr.mxu1 %v6435_v9  ;;  %9112 = vst [vmem:[#allocation123_spill] sm:$0xff] %v6444_v45  ;;  %9113 = vst [vmem:[#allocation124_spill] sm:$0xff] %v6447_v27  ;;  %v6450_v3 = vld [vmem:[#allocation5 + $0x340] sm:$0xff]  ;;  %v6453_v9 = vld [vmem:[#allocation5 + $0x350] sm:$0xff] }
 0x4db   :  { %1946 = vmatpush2.msra.mxu0 %v6438_v0  ;;  %2017 = vmatpush2.msra.mxu1 %v6441_v10  ;;  %9114 = vst [vmem:[#allocation125_spill] sm:$0xff] %v6450_v3  ;;  %9115 = vst [vmem:[#allocation126_spill] sm:$0xff] %v6453_v9  ;;  %v6456_v0 = vld [vmem:[#allocation5 + $0x328] sm:$0xff]  ;;  %v6459_v10 = vld [vmem:[#allocation5 + $0x338] sm:$0xff] }
 0x4dc   :  { %1947 = vmatprep.subr.mxu0 %v6444_v45  ;;  %2018 = vmatprep.subr.mxu1 %v6447_v27  ;;  %9116 = vst [vmem:[#allocation127_spill] sm:$0xff] %v6456_v0  ;;  %9117 = vst [vmem:[#allocation128_spill] sm:$0xff] %v6459_v10  ;;  %v6462_v45 = vld [vmem:[#allocation5 + $0x320] sm:$0xff]  ;;  %v6465_v27 = vld [vmem:[#allocation5 + $0x330] sm:$0xff] }
 0x4dd   :  { %1948 = vmatpush2.msra.mxu0 %v6450_v3  ;;  %2019 = vmatpush2.msra.mxu1 %v6453_v9  ;;  %9118 = vst [vmem:[#allocation129_spill] sm:$0xff] %v6462_v45  ;;  %9119 = vst [vmem:[#allocation130_spill] sm:$0xff] %v6465_v27  ;;  %v6468_v3 = vld [vmem:[#allocation5 + $0x308] sm:$0xff]  ;;  %v6471_v9 = vld [vmem:[#allocation5 + $0x318] sm:$0xff] }
 0x4de   :  { %1949 = vmatprep.subr.mxu0 %v6456_v0  ;;  %2020 = vmatprep.subr.mxu1 %v6459_v10  ;;  %9120 = vst [vmem:[#allocation131_spill] sm:$0xff] %v6468_v3  ;;  %9121 = vst [vmem:[#allocation132_spill] sm:$0xff] %v6471_v9  ;;  %v6474_v0 = vld [vmem:[#allocation5 + $0x300] sm:$0xff]  ;;  %v6477_v10 = vld [vmem:[#allocation5 + $0x310] sm:$0xff] }
 0x4df   :  { %1950 = vmatpush2.msra.mxu0 %v6462_v45  ;;  %2021 = vmatpush2.msra.mxu1 %v6465_v27  ;;  %9122 = vst [vmem:[#allocation133_spill] sm:$0xff] %v6474_v0  ;;  %9123 = vst [vmem:[#allocation134_spill] sm:$0xff] %v6477_v10  ;;  %v6480_v45 = vld [vmem:[#allocation5 + $0x2e8] sm:$0xff]  ;;  %v6483_v27 = vld [vmem:[#allocation5 + $0x2f8] sm:$0xff] }
 0x4e0   :  { %1951 = vmatprep.subr.mxu0 %v6468_v3  ;;  %2022 = vmatprep.subr.mxu1 %v6471_v9  ;;  %9124 = vst [vmem:[#allocation135_spill] sm:$0xff] %v6480_v45  ;;  %9125 = vst [vmem:[#allocation136_spill] sm:$0xff] %v6483_v27  ;;  %v6486_v3 = vld [vmem:[#allocation5 + $0x2e0] sm:$0xff]  ;;  %v6489_v9 = vld [vmem:[#allocation5 + $0x2f0] sm:$0xff] }
 0x4e1   :  { %1952 = vmatpush2.msra.mxu0 %v6474_v0  ;;  %2023 = vmatpush2.msra.mxu1 %v6477_v10  ;;  %9126 = vst [vmem:[#allocation137_spill] sm:$0xff] %v6486_v3  ;;  %9127 = vst [vmem:[#allocation138_spill] sm:$0xff] %v6489_v9  ;;  %v6492_v0 = vld [vmem:[#allocation5 + $0x2c8] sm:$0xff]  ;;  %v6495_v10 = vld [vmem:[#allocation5 + $0x2d8] sm:$0xff] }
 0x4e2   :  { %1953 = vmatprep.subr.mxu0 %v6480_v45  ;;  %2024 = vmatprep.subr.mxu1 %v6483_v27  ;;  %9128 = vst [vmem:[#allocation139_spill] sm:$0xff] %v6492_v0  ;;  %9129 = vst [vmem:[#allocation140_spill] sm:$0xff] %v6495_v10  ;;  %v6498_v45 = vld [vmem:[#allocation5 + $0x2c0] sm:$0xff]  ;;  %v6501_v27 = vld [vmem:[#allocation5 + $0x2d0] sm:$0xff] }
 0x4e3   :  { %1954 = vmatpush2.msra.mxu0 %v6486_v3  ;;  %2025 = vmatpush2.msra.mxu1 %v6489_v9  ;;  %9130 = vst [vmem:[#allocation141_spill] sm:$0xff] %v6498_v45  ;;  %9131 = vst [vmem:[#allocation142_spill] sm:$0xff] %v6501_v27  ;;  %v6504_v3 = vld [vmem:[#allocation5 + $0x2a8] sm:$0xff]  ;;  %v6507_v9 = vld [vmem:[#allocation5 + $0x2b8] sm:$0xff] }
 0x4e4   :  { %1955 = vmatprep.subr.mxu0 %v6492_v0  ;;  %2026 = vmatprep.subr.mxu1 %v6495_v10  ;;  %9132 = vst [vmem:[#allocation143_spill] sm:$0xff] %v6504_v3  ;;  %9133 = vst [vmem:[#allocation144_spill] sm:$0xff] %v6507_v9  ;;  %v6510_v0 = vld [vmem:[#allocation5 + $0x2a0] sm:$0xff]  ;;  %v6513_v10 = vld [vmem:[#allocation5 + $0x2b0] sm:$0xff] }
 0x4e5   :  { %1956 = vmatpush2.msra.mxu0 %v6498_v45  ;;  %2027 = vmatpush2.msra.mxu1 %v6501_v27  ;;  %9134 = vst [vmem:[#allocation145_spill] sm:$0xff] %v6510_v0  ;;  %9135 = vst [vmem:[#allocation146_spill] sm:$0xff] %v6513_v10  ;;  %v6516_v45 = vld [vmem:[#allocation5 + $0x288] sm:$0xff]  ;;  %v6519_v27 = vld [vmem:[#allocation5 + $0x298] sm:$0xff] }
 0x4e6   :  { %1957 = vmatprep.subr.mxu0 %v6504_v3  ;;  %2028 = vmatprep.subr.mxu1 %v6507_v9  ;;  %9136 = vst [vmem:[#allocation147_spill] sm:$0xff] %v6516_v45  ;;  %9137 = vst [vmem:[#allocation148_spill] sm:$0xff] %v6519_v27  ;;  %v6522_v3 = vld [vmem:[#allocation5 + $0x280] sm:$0xff]  ;;  %v6525_v9 = vld [vmem:[#allocation5 + $0x290] sm:$0xff] }
 0x4e7   :  { %1958 = vmatpush2.msra.mxu0 %v6510_v0  ;;  %2029 = vmatpush2.msra.mxu1 %v6513_v10  ;;  %9138 = vst [vmem:[#allocation149_spill] sm:$0xff] %v6522_v3  ;;  %9139 = vst [vmem:[#allocation150_spill] sm:$0xff] %v6525_v9  ;;  %v6528_v0 = vld [vmem:[#allocation5 + $0x268] sm:$0xff]  ;;  %v6531_v10 = vld [vmem:[#allocation5 + $0x278] sm:$0xff] }
 0x4e8   :  { %1959 = vmatprep.subr.mxu0 %v6516_v45  ;;  %2030 = vmatprep.subr.mxu1 %v6519_v27  ;;  %9140 = vst [vmem:[#allocation151_spill] sm:$0xff] %v6528_v0  ;;  %9141 = vst [vmem:[#allocation152_spill] sm:$0xff] %v6531_v10  ;;  %v6534_v45 = vld [vmem:[#allocation5 + $0x260] sm:$0xff]  ;;  %v6537_v27 = vld [vmem:[#allocation5 + $0x270] sm:$0xff] }
 0x4e9   :  { %1960 = vmatpush2.msra.mxu0 %v6522_v3  ;;  %2031 = vmatpush2.msra.mxu1 %v6525_v9  ;;  %9142 = vst [vmem:[#allocation153_spill] sm:$0xff] %v6534_v45  ;;  %9143 = vst [vmem:[#allocation154_spill] sm:$0xff] %v6537_v27  ;;  %v6540_v3 = vld [vmem:[#allocation5 + $0x248] sm:$0xff]  ;;  %v6543_v9 = vld [vmem:[#allocation5 + $0x258] sm:$0xff] }
 0x4ea   :  { %1961 = vmatprep.subr.mxu0 %v6528_v0  ;;  %2032 = vmatprep.subr.mxu1 %v6531_v10  ;;  %9144 = vst [vmem:[#allocation155_spill] sm:$0xff] %v6540_v3  ;;  %9145 = vst [vmem:[#allocation156_spill] sm:$0xff] %v6543_v9  ;;  %v6546_v0 = vld [vmem:[#allocation5 + $0x240] sm:$0xff]  ;;  %v6549_v10 = vld [vmem:[#allocation5 + $0x250] sm:$0xff] }
 0x4eb   :  { %1962 = vmatpush2.msra.mxu0 %v6534_v45  ;;  %2033 = vmatpush2.msra.mxu1 %v6537_v27  ;;  %9146 = vst [vmem:[#allocation157_spill] sm:$0xff] %v6546_v0  ;;  %9147 = vst [vmem:[#allocation158_spill] sm:$0xff] %v6549_v10  ;;  %v6552_v45 = vld [vmem:[#allocation5 + $0x228] sm:$0xff]  ;;  %v6555_v27 = vld [vmem:[#allocation5 + $0x238] sm:$0xff] }
 0x4ec   :  { %1963 = vmatprep.subr.mxu0 %v6540_v3  ;;  %2034 = vmatprep.subr.mxu1 %v6543_v9  ;;  %9148 = vst [vmem:[#allocation161_spill] sm:$0xff] %v6552_v45  ;;  %9149 = vst [vmem:[#allocation162_spill] sm:$0xff] %v6555_v27  ;;  %v6558_v3 = vld [vmem:[#allocation5 + $0x220] sm:$0xff]  ;;  %v6561_v9 = vld [vmem:[#allocation5 + $0x230] sm:$0xff] }
 0x4ed   :  { %1964 = vmatpush2.msra.mxu0 %v6546_v0  ;;  %2035 = vmatpush2.msra.mxu1 %v6549_v10  ;;  %9150 = vst [vmem:[#allocation163_spill] sm:$0xff] %v6558_v3  ;;  %9151 = vst [vmem:[#allocation164_spill] sm:$0xff] %v6561_v9  ;;  %v6564_v0 = vld [vmem:[#allocation5 + $0x208] sm:$0xff]  ;;  %v6567_v10 = vld [vmem:[#allocation5 + $0x218] sm:$0xff] }
 0x4ee   :  { %1965 = vmatprep.subr.mxu0 %v6552_v45  ;;  %2036 = vmatprep.subr.mxu1 %v6555_v27  ;;  %9152 = vst [vmem:[#allocation165_spill] sm:$0xff] %v6564_v0  ;;  %9153 = vst [vmem:[#allocation166_spill] sm:$0xff] %v6567_v10  ;;  %v6570_v45 = vld [vmem:[#allocation5 + $0x200] sm:$0xff]  ;;  %v6573_v27 = vld [vmem:[#allocation5 + $0x210] sm:$0xff] }
 0x4ef   :  { %1966 = vmatpush2.msra.mxu0 %v6558_v3  ;;  %2037 = vmatpush2.msra.mxu1 %v6561_v9  ;;  %9154 = vst [vmem:[#allocation167_spill] sm:$0xff] %v6570_v45  ;;  %9155 = vst [vmem:[#allocation168_spill] sm:$0xff] %v6573_v27 }
 0x4f0   :  { %1967 = vmatprep.subr.mxu0 %v6564_v0  ;;  %2038 = vmatprep.subr.mxu1 %v6567_v10 }
 0x4f1   :  { %1968 = vmatpush2.msra.mxu0 %v6570_v45  ;;  %2039 = vmatpush2.msra.mxu1 %v6573_v27 }
 0x4f2   :  { %2082 = vmatprep.subr.mxu0 %v5972_v39  ;;  %2153 = vmatprep.subr.mxu1 %v5975_v49 }
 0x550   :  { %v1620_v9 = vpop.f32.mrf.mxu0  ;;  %v1691_v10 = vpop.f32.mrf.mxu1 }
 0x551   :  { %v1621_v3 = vadd.f32 %v1620_v9, %v8996_v38  ;;  %v1692_v39 = vadd.f32 %v1691_v10, %v8999_v7 }
 0x552   :  { %v1622_v0 = vpop.f32.mrf.mxu0  ;;  %v1693_v45 = vpop.f32.mrf.mxu1 }
 0x553   :  { %v3249_v32 = vmul.f32 -1.442695, %v1621_v3  ;;  %v1623_v6 = vadd.f32 %v1622_v0, %v8997_v24  ;;  %v1694_v58 = vadd.f32 %v1693_v45, %v8998_v5  ;;  %v1725_v3 = vpop.permute.xlu0 %1724 }
 0x554   :  { %v1728_v45 = vmul.f32 %v1725_v3, %v9001_v20 }
 0x555   :  { %3454 = vpow2.f32 %v3249_v32  ;;  %v3250_v42 = vmul.f32 -1.442695, %v1623_v6  ;;  %v3251_v53 = vmul.f32 -1.442695, %v1694_v58  ;;  %v1727_v32 = vmul.f32 %v1725_v3, %v9000_v15 }
 0x557   :  { %3456 = vpow2.f32 %v3250_v42 }
 0x558   :  { %3458 = vpow2.f32 %v3251_v53 }
 0x562   :  { %v3455_v27 = vpop.eup %3454 }
 0x563   :  { %v1699_v63 = vadd.f32 1.0, %v3455_v27 }
 0x564   :  { %v3457_v49 = vpop.eup %3456 }
 0x565   :  { %3460 = vrcp.f32 %v1699_v63  ;;  %v1705_v9 = vadd.f32 1.0, %v3457_v49  ;;  %v3459_v0 = vpop.eup %3458 }
 0x566   :  { %3462 = vtanh.f32 %v1692_v39  ;;  %v1712_v5 = vadd.f32 1.0, %v3459_v0  ;;  %v1730_v0 = vmul.f32 %v1725_v3, %v8684_v30 }
 0x567   :  { %3464 = vrcp.f32 %v1705_v9 }
 0x568   :  { %3466 = vrcp.f32 %v1712_v5 }
 0x571   :  { %v1797_v6 = vpop.f32.mrf.mxu0  ;;  %v1868_v27 = vpop.f32.mrf.mxu1 }
 0x572   :  { %v3461_v42 = vpop.eup %3460  ;;  %v1873_v24 = vadd.f32 %v1797_v6, %v1727_v32 }
 0x573   :  { %v3463_v58 = vpop.eup %3462  ;;  %v1799_v38 = vpop.f32.mrf.mxu0 }
 0x574   :  { %v3465_v10 = vpop.eup %3464  ;;  %v1877_v53 = vadd.f32 %v1873_v24, %v4895_v57  ;;  %v1874_v63 = vadd.f32 %v1799_v38, %v1728_v45  ;;  %v1716_v49 = vmul.f32 %v3463_v58, %v3461_v42  ;;  %v1870_v6 = vpop.f32.mrf.mxu1  ;;  %v1729_v38 = vmul.f32 %v1725_v3, %v8685_v33 }
 0x575   :  { %v1715_v39 = vmul.f32 %v3465_v10, %v5987_v43  ;;  %v1876_v24 = vadd.f32 %v1870_v6, %v1730_v0  ;;  %v3467_v58 = vpop.eup %3466 }
 0x576   :  { %v3253_v9 = vmul.f32 -1.442695, %v1877_v53  ;;  %v1878_v7 = vadd.f32 %v1874_v63, %v8683_v25  ;;  %v1875_v43 = vadd.f32 %v1868_v27, %v1729_v38 }
 0x577   :  { %v6587_v15 = vadd.f32 %v1716_v49, %v1715_v39  ;;  %v1880_v42 = vadd.f32 %v1876_v24, %v8686_v35 }
 0x578   :  { %3468 = vpow2.f32 %v3253_v9  ;;  %v3254_v32 = vmul.f32 -1.442695, %v1878_v7  ;;  %v1879_v5 = vadd.f32 %v1875_v43, %v4918_v51 }
 0x579   :  { %3470 = vtanh.f32 %v6587_v15  ;;  %v3255_v45 = vmul.f32 -1.442695, %v1880_v42 }
 0x57a   :  { %3472 = vpow2.f32 %v3254_v32 }
 0x57b   :  { %3474 = vpow2.f32 %v3255_v45 }
 0x585   :  { %v3469_v10 = vpop.eup %3468 }
 0x586   :  { %v3471_v53 = vpop.eup %3470  ;;  %v1884_v63 = vadd.f32 1.0, %v3469_v10  ;;  %v9194_v10 = vld [vmem:[#allocation50_spill] sm:$0xff] }
 0x587   :  { %v3473_v7 = vpop.eup %3472  ;;  %v1719_v49 = vmul.f32 %v3471_v53, %v3467_v58  ;;  %v9193_v58 = vld [vmem:[#allocation49_spill] sm:$0xff]  ;;  %v9196_v53 = vld [vmem:[#allocation52_spill] sm:$0xff] }
 0x588   :  { %3476 = vrcp.f32 %v1884_v63  ;;  %v1890_v39 = vadd.f32 1.0, %v3473_v7  ;;  %v3475_v3 = vpop.eup %3474  ;;  %v9197_v63 = vld [vmem:[#allocation53_spill] sm:$0xff]  ;;  %v9198_v7 = vld [vmem:[#allocation54_spill] sm:$0xff] }
 0x589   :  { %3478 = vtanh.f32 %v1879_v5  ;;  %1969 = vmatprep.mubr.f32.mxu0 %v1719_v49  ;;  %2040 = vmatprep.mubr.f32.mxu1 %v1719_v49  ;;  %v1897_v6 = vadd.f32 1.0, %v3475_v3  ;;  %v9195_v5 = vld [vmem:[#allocation51_spill] sm:$0xff]  ;;  %v9201_v3 = vld [vmem:[#allocation57_spill] sm:$0xff] }
 0x58a   :  { %3480 = vrcp.f32 %v1890_v39  ;;  %v9199_v49 = vld [vmem:[#allocation55_spill] sm:$0xff]  ;;  %v9200_v39 = vld [vmem:[#allocation56_spill] sm:$0xff] }
 0x58b   :  { %3482 = vrcp.f32 %v1897_v6  ;;  %v9205_v6 = vld [vmem:[#allocation61_spill] sm:$0xff] }
 0x595   :  { %v3477_v9 = vpop.eup %3476 }
 0x596   :  { %v3479_v32 = vpop.eup %3478 }
 0x597   :  { %v3481_v27 = vpop.eup %3480  ;;  %v1901_v0 = vmul.f32 %v3479_v32, %v3477_v9  ;;  %v9202_v9 = vld [vmem:[#allocation58_spill] sm:$0xff]  ;;  %v9203_v32 = vld [vmem:[#allocation59_spill] sm:$0xff] }
 0x598   :  { %v1900_v24 = vmul.f32 %v3481_v27, %v5995_v54  ;;  %v3483_v42 = vpop.eup %3482  ;;  %v9156_v54 = vld [vmem:[#allocation13_spill] sm:$0xff]  ;;  %v9204_v27 = vld [vmem:[#allocation60_spill] sm:$0xff] }
 0x59a   :  { %v6595_v38 = vadd.f32 %v1901_v0, %v1900_v24  ;;  %v9206_v0 = vld [vmem:[#allocation62_spill] sm:$0xff]  ;;  %v9207_v24 = vld [vmem:[#allocation63_spill] sm:$0xff] }
 0x59c   :  { %3484 = vtanh.f32 %v6595_v38 }
 0x5a9   :  { %v3485_v43 = vpop.eup %3484 }
 0x5aa   :  { %v6598_v45 = vmul.f32 %v3485_v43, %v3483_v42  ;;  %v9208_v42 = vld [vmem:[#allocation64_spill] sm:$0xff]  ;;  %v9209_v43 = vld [vmem:[#allocation65_spill] sm:$0xff] }
 0x5ac   :  { %1970 = vmatmul.mubr.f32.vlgmr.msra.gmra.mxu0 %v6598_v45  ;;  %2041 = vmatmul.mubr.f32.vlgmr.msra.gmra.mxu1 %v6598_v45 }
 0x5ad   :  { %2083 = vmatpush1.msra.mxu0 %v6002_v11  ;;  %2154 = vmatpush1.msra.mxu1 %v6005_v12  ;;  %v9157_v11 = vld [vmem:[#allocation14_spill] sm:$0xff]  ;;  %v9158_v12 = vld [vmem:[#allocation15_spill] sm:$0xff] }
 0x5ae   :  { %2084 = vmatprep.subr.mxu0 %v6008_v50  ;;  %2155 = vmatprep.subr.mxu1 %v6011_v13  ;;  %v9159_v50 = vld [vmem:[#allocation16_spill] sm:$0xff]  ;;  %v9160_v13 = vld [vmem:[#allocation17_spill] sm:$0xff] }
 0x5af   :  { %2085 = vmatpush1.msra.mxu0 %v6014_v14  ;;  %2156 = vmatpush1.msra.mxu1 %v6017_v16  ;;  %v9161_v14 = vld [vmem:[#allocation18_spill] sm:$0xff]  ;;  %v9162_v16 = vld [vmem:[#allocation19_spill] sm:$0xff] }
 0x5b0   :  { %2086 = vmatprep.subr.mxu0 %v6020_v17  ;;  %2157 = vmatprep.subr.mxu1 %v6023_v18  ;;  %v9163_v17 = vld [vmem:[#allocation20_spill] sm:$0xff]  ;;  %v9164_v18 = vld [vmem:[#allocation21_spill] sm:$0xff] }
 0x5b1   :  { %2087 = vmatpush1.msra.mxu0 %v6026_v19  ;;  %2158 = vmatpush1.msra.mxu1 %v6029_v21  ;;  %v9165_v19 = vld [vmem:[#allocation22_spill] sm:$0xff]  ;;  %v9166_v21 = vld [vmem:[#allocation23_spill] sm:$0xff] }
 0x5b2   :  { %2088 = vmatprep.subr.mxu0 %v6032_v22  ;;  %2159 = vmatprep.subr.mxu1 %v6035_v23  ;;  %v9167_v22 = vld [vmem:[#allocation24_spill] sm:$0xff]  ;;  %v9168_v23 = vld [vmem:[#allocation25_spill] sm:$0xff] }
 0x5b3   :  { %2089 = vmatpush1.msra.mxu0 %v6038_v26  ;;  %2160 = vmatpush1.msra.mxu1 %v6041_v28  ;;  %v9169_v26 = vld [vmem:[#allocation26_spill] sm:$0xff]  ;;  %v9170_v28 = vld [vmem:[#allocation27_spill] sm:$0xff] }
 0x5b4   :  { %2090 = vmatprep.subr.mxu0 %v6044_v29  ;;  %2161 = vmatprep.subr.mxu1 %v6047_v31  ;;  %v9171_v29 = vld [vmem:[#allocation28_spill] sm:$0xff]  ;;  %v9172_v31 = vld [vmem:[#allocation29_spill] sm:$0xff] }
 0x5b5   :  { %2091 = vmatpush1.msra.mxu0 %v6050_v34  ;;  %2162 = vmatpush1.msra.mxu1 %v6053_v36  ;;  %v9173_v34 = vld [vmem:[#allocation30_spill] sm:$0xff]  ;;  %v9174_v36 = vld [vmem:[#allocation31_spill] sm:$0xff] }
 0x5b6   :  { %2092 = vmatprep.subr.mxu0 %v6056_v37  ;;  %2163 = vmatprep.subr.mxu1 %v6059_v40  ;;  %v9175_v37 = vld [vmem:[#allocation32_spill] sm:$0xff]  ;;  %v9176_v40 = vld [vmem:[#allocation33_spill] sm:$0xff] }
 0x5b7   :  { %2093 = vmatpush1.msra.mxu0 %v6062_v41  ;;  %2164 = vmatpush1.msra.mxu1 %v6065_v44  ;;  %v9177_v41 = vld [vmem:[#allocation34_spill] sm:$0xff]  ;;  %v9178_v44 = vld [vmem:[#allocation35_spill] sm:$0xff] }
 0x5b8   :  { %2094 = vmatprep.subr.mxu0 %v6068_v46  ;;  %2165 = vmatprep.subr.mxu1 %v6071_v47  ;;  %v9179_v46 = vld [vmem:[#allocation36_spill] sm:$0xff]  ;;  %v9180_v47 = vld [vmem:[#allocation37_spill] sm:$0xff] }
 0x5b9   :  { %2095 = vmatpush1.msra.mxu0 %v6074_v52  ;;  %2166 = vmatpush1.msra.mxu1 %v6077_v2  ;;  %v9181_v52 = vmov 0.0   ;;  %v9182_v2 = vld [vmem:[#allocation38_spill] sm:$0xff] }
 0x5ba   :  { %2096 = vmatprep.subr.mxu0 %v6080_v61  ;;  %2167 = vmatprep.subr.mxu1 %v6083_v55  ;;  %v9183_v61 = vld [vmem:[#allocation39_spill] sm:$0xff]  ;;  %v9184_v55 = vld [vmem:[#allocation40_spill] sm:$0xff] }
 0x5bb   :  { %2097 = vmatpush1.msra.mxu0 %v6086_v1  ;;  %2168 = vmatpush1.msra.mxu1 %v6089_v48  ;;  %v9185_v1 = vld [vmem:[#allocation41_spill] sm:$0xff]  ;;  %v9186_v48 = vld [vmem:[#allocation42_spill] sm:$0xff] }
 0x5bc   :  { %2098 = vmatprep.subr.mxu0 %v6092_v59  ;;  %2169 = vmatprep.subr.mxu1 %v6095_v60  ;;  %v9187_v59 = vld [vmem:[#allocation43_spill] sm:$0xff]  ;;  %v9188_v60 = vld [vmem:[#allocation44_spill] sm:$0xff] }
 0x5bd   :  { %2099 = vmatpush1.msra.mxu0 %v6098_v62  ;;  %2170 = vmatpush1.msra.mxu1 %v6101_v56  ;;  %v9189_v62 = vld [vmem:[#allocation45_spill] sm:$0xff]  ;;  %v9190_v56 = vld [vmem:[#allocation46_spill] sm:$0xff] }
 0x5be   :  { %2100 = vmatprep.subr.mxu0 %v6104_v8  ;;  %2171 = vmatprep.subr.mxu1 %v6107_v4  ;;  %v9191_v8 = vld [vmem:[#allocation47_spill] sm:$0xff]  ;;  %v9192_v4 = vld [vmem:[#allocation48_spill] sm:$0xff] }
 0x5bf   :  { %2101 = vmatpush1.msra.mxu0 %v9156_v54  ;;  %2172 = vmatpush1.msra.mxu1 %v9157_v11  ;;  %v9211_v54 = vld [vmem:[#allocation67_spill] sm:$0xff]  ;;  %v9212_v11 = vld [vmem:[#allocation68_spill] sm:$0xff] }
 0x5c0   :  { %2102 = vmatprep.subr.mxu0 %v9158_v12  ;;  %2173 = vmatprep.subr.mxu1 %v9159_v50  ;;  %v9213_v12 = vld [vmem:[#allocation69_spill] sm:$0xff]  ;;  %v9214_v50 = vld [vmem:[#allocation70_spill] sm:$0xff] }
 0x5c1   :  { %2103 = vmatpush1.msra.mxu0 %v9160_v13  ;;  %2174 = vmatpush1.msra.mxu1 %v9161_v14  ;;  %v9215_v13 = vld [vmem:[#allocation71_spill] sm:$0xff]  ;;  %v9216_v14 = vld [vmem:[#allocation72_spill] sm:$0xff] }
 0x5c2   :  { %2104 = vmatprep.subr.mxu0 %v9162_v16  ;;  %2175 = vmatprep.subr.mxu1 %v9163_v17  ;;  %v9217_v16 = vld [vmem:[#allocation73_spill] sm:$0xff]  ;;  %v9218_v17 = vld [vmem:[#allocation74_spill] sm:$0xff] }
 0x5c3   :  { %2105 = vmatpush1.msra.mxu0 %v9164_v18  ;;  %2176 = vmatpush1.msra.mxu1 %v9165_v19  ;;  %v9219_v18 = vld [vmem:[#allocation75_spill] sm:$0xff]  ;;  %v9220_v19 = vld [vmem:[#allocation76_spill] sm:$0xff] }
 0x5c4   :  { %2106 = vmatprep.subr.mxu0 %v9166_v21  ;;  %2177 = vmatprep.subr.mxu1 %v9167_v22  ;;  %v9221_v21 = vld [vmem:[#allocation77_spill] sm:$0xff]  ;;  %v9222_v22 = vld [vmem:[#allocation78_spill] sm:$0xff] }
 0x5c5   :  { %2107 = vmatpush1.msra.mxu0 %v9168_v23  ;;  %2178 = vmatpush1.msra.mxu1 %v9169_v26  ;;  %v9223_v23 = vld [vmem:[#allocation79_spill] sm:$0xff]  ;;  %v9224_v26 = vld [vmem:[#allocation80_spill] sm:$0xff] }
 0x5c6   :  { %2108 = vmatprep.subr.mxu0 %v9170_v28  ;;  %2179 = vmatprep.subr.mxu1 %v9171_v29  ;;  %v9225_v28 = vld [vmem:[#allocation81_spill] sm:$0xff]  ;;  %v9226_v29 = vld [vmem:[#allocation82_spill] sm:$0xff] }
 0x5c7   :  { %2109 = vmatpush1.msra.mxu0 %v9172_v31  ;;  %2180 = vmatpush1.msra.mxu1 %v9173_v34  ;;  %v9227_v31 = vld [vmem:[#allocation83_spill] sm:$0xff]  ;;  %v9228_v34 = vld [vmem:[#allocation84_spill] sm:$0xff] }
 0x5c8   :  { %2110 = vmatprep.subr.mxu0 %v9174_v36  ;;  %2181 = vmatprep.subr.mxu1 %v9175_v37  ;;  %v9229_v36 = vld [vmem:[#allocation85_spill] sm:$0xff]  ;;  %v9230_v37 = vld [vmem:[#allocation86_spill] sm:$0xff] }
 0x5c9   :  { %2111 = vmatpush1.msra.mxu0 %v9176_v40  ;;  %2182 = vmatpush1.msra.mxu1 %v9177_v41  ;;  %v9231_v40 = vld [vmem:[#allocation87_spill] sm:$0xff]  ;;  %v9232_v41 = vld [vmem:[#allocation88_spill] sm:$0xff] }
 0x5ca   :  { %2112 = vmatprep.subr.mxu0 %v9178_v44  ;;  %2183 = vmatprep.subr.mxu1 %v9179_v46  ;;  %v9233_v44 = vld [vmem:[#allocation89_spill] sm:$0xff]  ;;  %v9234_v46 = vld [vmem:[#allocation90_spill] sm:$0xff] }
 0x5cb   :  { %2113 = vmatpush1.msra.mxu0 %v9180_v47  ;;  %2146 = vmatprep.mubr.f32.mxu0 %v9181_v52  ;;  %v9235_v47 = vld [vmem:[#allocation91_spill] sm:$0xff] }
 0x5cc   :  { %2184 = vmatpush1.msra.mxu1 %v9182_v2  ;;  %2217 = vmatprep.mubr.f32.mxu1 %v9181_v52  ;;  %v9236_v2 = vld [vmem:[#allocation92_spill] sm:$0xff] }
 0x5cd   :  { %2147 = vmatmul.mubr.f32.vlgmr.msra.gmra.mxu0 %v6598_v45  ;;  %2218 = vmatmul.mubr.f32.vlgmr.msra.gmra.mxu1 %v6598_v45  ;;  %v9210_v45 = vld [vmem:[#allocation66_spill] sm:$0xff] }
 0x5ce   :  { %2256 = vmatprep.subr.mxu0 %v9183_v61  ;;  %2327 = vmatprep.subr.mxu1 %v9184_v55  ;;  %v9237_v61 = vld [vmem:[#allocation93_spill] sm:$0xff]  ;;  %v9238_v55 = vld [vmem:[#allocation94_spill] sm:$0xff] }
 0x5cf   :  { %2257 = vmatpush1.msra.mxu0 %v9185_v1  ;;  %2328 = vmatpush1.msra.mxu1 %v9186_v48  ;;  %v9239_v1 = vld [vmem:[#allocation95_spill] sm:$0xff]  ;;  %v9240_v48 = vld [vmem:[#allocation96_spill] sm:$0xff] }
 0x5d0   :  { %2258 = vmatprep.subr.mxu0 %v9187_v59  ;;  %2329 = vmatprep.subr.mxu1 %v9188_v60  ;;  %v9241_v59 = vld [vmem:[#allocation97_spill] sm:$0xff]  ;;  %v9242_v60 = vld [vmem:[#allocation98_spill] sm:$0xff] }
 0x5d1   :  { %2259 = vmatpush1.msra.mxu0 %v9189_v62  ;;  %2330 = vmatpush1.msra.mxu1 %v9190_v56  ;;  %v9243_v62 = vld [vmem:[#allocation99_spill] sm:$0xff]  ;;  %v9244_v56 = vld [vmem:[#allocation100_spill] sm:$0xff] }
 0x5d2   :  { %2260 = vmatprep.subr.mxu0 %v9191_v8  ;;  %2331 = vmatprep.subr.mxu1 %v9192_v4  ;;  %v9245_v8 = vld [vmem:[#allocation101_spill] sm:$0xff]  ;;  %v9246_v4 = vld [vmem:[#allocation102_spill] sm:$0xff] }
 0x5d3   :  { %2261 = vmatpush1.msra.mxu0 %v9193_v58  ;;  %2332 = vmatpush1.msra.mxu1 %v9194_v10  ;;  %v9247_v58 = vld [vmem:[#allocation103_spill] sm:$0xff]  ;;  %v9248_v10 = vld [vmem:[#allocation104_spill] sm:$0xff] }
 0x5d4   :  { %2262 = vmatprep.subr.mxu0 %v9195_v5  ;;  %2333 = vmatprep.subr.mxu1 %v9196_v53  ;;  %v9249_v5 = vld [vmem:[#allocation105_spill] sm:$0xff]  ;;  %v9250_v53 = vld [vmem:[#allocation106_spill] sm:$0xff] }
 0x5d5   :  { %2263 = vmatpush1.msra.mxu0 %v9197_v63  ;;  %2334 = vmatpush1.msra.mxu1 %v9198_v7  ;;  %v9251_v63 = vld [vmem:[#allocation107_spill] sm:$0xff]  ;;  %v9252_v7 = vld [vmem:[#allocation108_spill] sm:$0xff] }
 0x5d6   :  { %2264 = vmatprep.subr.mxu0 %v9199_v49  ;;  %2335 = vmatprep.subr.mxu1 %v9200_v39  ;;  %v9253_v49 = vld [vmem:[#allocation109_spill] sm:$0xff]  ;;  %v9254_v39 = vld [vmem:[#allocation110_spill] sm:$0xff] }
 0x5d7   :  { %2265 = vmatpush1.msra.mxu0 %v9201_v3  ;;  %2336 = vmatpush1.msra.mxu1 %v9202_v9  ;;  %v9255_v3 = vld [vmem:[#allocation111_spill] sm:$0xff]  ;;  %v9256_v9 = vld [vmem:[#allocation112_spill] sm:$0xff] }
 0x5d8   :  { %2266 = vmatprep.subr.mxu0 %v9203_v32  ;;  %2337 = vmatprep.subr.mxu1 %v9204_v27  ;;  %v9257_v32 = vld [vmem:[#allocation113_spill] sm:$0xff]  ;;  %v9258_v27 = vld [vmem:[#allocation114_spill] sm:$0xff] }
 0x5d9   :  { %2267 = vmatpush1.msra.mxu0 %v9205_v6  ;;  %2338 = vmatpush1.msra.mxu1 %v9206_v0  ;;  %v9259_v6 = vld [vmem:[#allocation115_spill] sm:$0xff]  ;;  %v9260_v0 = vld [vmem:[#allocation116_spill] sm:$0xff] }
 0x5da   :  { %2268 = vmatprep.subr.mxu0 %v9207_v24  ;;  %2339 = vmatprep.subr.mxu1 %v9208_v42  ;;  %v9261_v24 = vld [vmem:[#allocation117_spill] sm:$0xff]  ;;  %v9262_v42 = vld [vmem:[#allocation118_spill] sm:$0xff] }
 0x5db   :  { %2269 = vmatpush1.msra.mxu0 %v9209_v43  ;;  %2340 = vmatpush1.msra.mxu1 %v9210_v45  ;;  %v9263_v43 = vld [vmem:[#allocation119_spill] sm:$0xff]  ;;  %v9264_v45 = vld [vmem:[#allocation120_spill] sm:$0xff] }
 0x5dc   :  { %2270 = vmatprep.subr.mxu0 %v9211_v54  ;;  %2341 = vmatprep.subr.mxu1 %v9212_v11  ;;  %v9265_v54 = vld [vmem:[#allocation121_spill] sm:$0xff]  ;;  %v9266_v11 = vld [vmem:[#allocation122_spill] sm:$0xff] }
 0x5dd   :  { %2271 = vmatpush1.msra.mxu0 %v9213_v12  ;;  %2342 = vmatpush1.msra.mxu1 %v9214_v50  ;;  %v9267_v12 = vld [vmem:[#allocation123_spill] sm:$0xff]  ;;  %v9268_v50 = vld [vmem:[#allocation124_spill] sm:$0xff] }
 0x5de   :  { %2272 = vmatprep.subr.mxu0 %v9215_v13  ;;  %2343 = vmatprep.subr.mxu1 %v9216_v14  ;;  %v9269_v13 = vld [vmem:[#allocation125_spill] sm:$0xff]  ;;  %v9270_v14 = vld [vmem:[#allocation126_spill] sm:$0xff] }
 0x5df   :  { %2273 = vmatpush1.msra.mxu0 %v9217_v16  ;;  %2344 = vmatpush1.msra.mxu1 %v9218_v17  ;;  %v9271_v16 = vld [vmem:[#allocation127_spill] sm:$0xff]  ;;  %v9272_v17 = vld [vmem:[#allocation128_spill] sm:$0xff] }
 0x5e0   :  { %2274 = vmatprep.subr.mxu0 %v9219_v18  ;;  %2345 = vmatprep.subr.mxu1 %v9220_v19  ;;  %v9273_v18 = vld [vmem:[#allocation129_spill] sm:$0xff]  ;;  %v9274_v19 = vld [vmem:[#allocation130_spill] sm:$0xff] }
 0x5e1   :  { %2275 = vmatpush1.msra.mxu0 %v9221_v21  ;;  %2346 = vmatpush1.msra.mxu1 %v9222_v22  ;;  %v9275_v21 = vld [vmem:[#allocation131_spill] sm:$0xff]  ;;  %v9276_v22 = vld [vmem:[#allocation132_spill] sm:$0xff] }
 0x5e2   :  { %2276 = vmatprep.subr.mxu0 %v9223_v23  ;;  %2347 = vmatprep.subr.mxu1 %v9224_v26  ;;  %v9277_v23 = vld [vmem:[#allocation133_spill] sm:$0xff]  ;;  %v9278_v26 = vld [vmem:[#allocation134_spill] sm:$0xff] }
 0x5e3   :  { %2277 = vmatpush1.msra.mxu0 %v9225_v28  ;;  %2348 = vmatpush1.msra.mxu1 %v9226_v29  ;;  %v9279_v28 = vld [vmem:[#allocation135_spill] sm:$0xff]  ;;  %v9280_v29 = vld [vmem:[#allocation136_spill] sm:$0xff] }
 0x5e4   :  { %2278 = vmatprep.subr.mxu0 %v9227_v31  ;;  %2349 = vmatprep.subr.mxu1 %v9228_v34  ;;  %v9281_v31 = vld [vmem:[#allocation137_spill] sm:$0xff]  ;;  %v9282_v34 = vld [vmem:[#allocation138_spill] sm:$0xff] }
 0x5e5   :  { %2279 = vmatpush1.msra.mxu0 %v9229_v36  ;;  %2350 = vmatpush1.msra.mxu1 %v9230_v37  ;;  %v9283_v36 = vld [vmem:[#allocation139_spill] sm:$0xff]  ;;  %v9284_v37 = vld [vmem:[#allocation140_spill] sm:$0xff] }
 0x5e6   :  { %2280 = vmatprep.subr.mxu0 %v9231_v40  ;;  %2351 = vmatprep.subr.mxu1 %v9232_v41  ;;  %v9285_v40 = vld [vmem:[#allocation141_spill] sm:$0xff]  ;;  %v9286_v41 = vld [vmem:[#allocation142_spill] sm:$0xff] }
 0x5e7   :  { %2281 = vmatpush1.msra.mxu0 %v9233_v44  ;;  %2352 = vmatpush1.msra.mxu1 %v9234_v46  ;;  %v9287_v44 = vld [vmem:[#allocation143_spill] sm:$0xff]  ;;  %v9288_v46 = vld [vmem:[#allocation144_spill] sm:$0xff] }
 0x5e8   :  { %2282 = vmatprep.subr.mxu0 %v9235_v47  ;;  %2353 = vmatprep.subr.mxu1 %v9236_v2  ;;  %v9289_v47 = vld [vmem:[#allocation145_spill] sm:$0xff]  ;;  %v9290_v2 = vld [vmem:[#allocation146_spill] sm:$0xff] }
 0x5e9   :  { %2283 = vmatpush1.msra.mxu0 %v9237_v61  ;;  %2354 = vmatpush1.msra.mxu1 %v9238_v55  ;;  %v9291_v61 = vld [vmem:[#allocation147_spill] sm:$0xff]  ;;  %v9292_v55 = vld [vmem:[#allocation148_spill] sm:$0xff] }
 0x5ea   :  { %2284 = vmatprep.subr.mxu0 %v9239_v1  ;;  %2355 = vmatprep.subr.mxu1 %v9240_v48  ;;  %v9293_v1 = vld [vmem:[#allocation149_spill] sm:$0xff]  ;;  %v9294_v48 = vld [vmem:[#allocation150_spill] sm:$0xff] }
 0x5eb   :  { %2285 = vmatpush1.msra.mxu0 %v9241_v59  ;;  %2356 = vmatpush1.msra.mxu1 %v9242_v60  ;;  %v9295_v59 = vld [vmem:[#allocation151_spill] sm:$0xff]  ;;  %v9296_v60 = vld [vmem:[#allocation152_spill] sm:$0xff] }
 0x5ec   :  { %2286 = vmatprep.subr.mxu0 %v9243_v62  ;;  %2357 = vmatprep.subr.mxu1 %v9244_v56  ;;  %v9297_v62 = vld [vmem:[#allocation153_spill] sm:$0xff]  ;;  %v9298_v56 = vld [vmem:[#allocation154_spill] sm:$0xff] }
 0x5ed   :  { %2287 = vmatpush1.msra.mxu0 %v9245_v8  ;;  %2358 = vmatpush1.msra.mxu1 %v9246_v4  ;;  %v9299_v8 = vld [vmem:[#allocation155_spill] sm:$0xff]  ;;  %v9300_v4 = vld [vmem:[#allocation156_spill] sm:$0xff] }
 0x5ee   :  { %2288 = vmatprep.subr.mxu0 %v9247_v58  ;;  %2359 = vmatprep.subr.mxu1 %v9248_v10  ;;  %v9301_v58 = vld [vmem:[#allocation157_spill] sm:$0xff]  ;;  %v9302_v10 = vld [vmem:[#allocation158_spill] sm:$0xff] }
 0x5ef   :  { %2289 = vmatpush2.msra.mxu0 %v9249_v5  ;;  %2360 = vmatpush2.msra.mxu1 %v9250_v53  ;;  %v9303_v5 = vld [vmem:[#allocation161_spill] sm:$0xff]  ;;  %v9304_v53 = vld [vmem:[#allocation162_spill] sm:$0xff] }
 0x5f0   :  { %2290 = vmatprep.subr.mxu0 %v9251_v63  ;;  %2361 = vmatprep.subr.mxu1 %v9252_v7  ;;  %v9305_v63 = vld [vmem:[#allocation163_spill] sm:$0xff]  ;;  %v9306_v7 = vld [vmem:[#allocation164_spill] sm:$0xff] }
 0x5f1   :  { %2291 = vmatpush2.msra.mxu0 %v9253_v49  ;;  %2362 = vmatpush2.msra.mxu1 %v9254_v39  ;;  %v9307_v49 = vld [vmem:[#allocation165_spill] sm:$0xff]  ;;  %v9308_v39 = vld [vmem:[#allocation166_spill] sm:$0xff] }
 0x5f2   :  { %2292 = vmatprep.subr.mxu0 %v9255_v3  ;;  %2363 = vmatprep.subr.mxu1 %v9256_v9  ;;  %v9309_v3 = vld [vmem:[#allocation167_spill] sm:$0xff]  ;;  %v9310_v9 = vld [vmem:[#allocation168_spill] sm:$0xff] }
 0x5f3   :  { %2293 = vmatpush2.msra.mxu0 %v9257_v32  ;;  %2364 = vmatpush2.msra.mxu1 %v9258_v27  ;;  %v6796_v32 = vld [vmem:[#allocation3 + $0x1e8] sm:$0xff]  ;;  %v6799_v27 = vld [vmem:[#allocation3 + $0x1f8] sm:$0xff] }
 0x5f4   :  { %2294 = vmatprep.subr.mxu0 %v9259_v6  ;;  %2365 = vmatprep.subr.mxu1 %v9260_v0  ;;  %v9311_v0 = vld [vmem:[#allocation9_spill] sm:$0xff] }
 0x5f5   :  { %2295 = vmatpush2.msra.mxu0 %v9261_v24  ;;  %2366 = vmatpush2.msra.mxu1 %v9262_v42 }
 0x5f6   :  { %2296 = vmatprep.subr.mxu0 %v9263_v43  ;;  %2367 = vmatprep.subr.mxu1 %v9264_v45  ;;  %v9312_v45 = vld [vmem:[#allocation10_spill] sm:$0xff] }
 0x5f7   :  { %2297 = vmatpush2.msra.mxu0 %v9265_v54  ;;  %2368 = vmatpush2.msra.mxu1 %v9266_v11 }
 0x5f8   :  { %2298 = vmatprep.subr.mxu0 %v9267_v12  ;;  %2369 = vmatprep.subr.mxu1 %v9268_v50 }
 0x5f9   :  { %2299 = vmatpush2.msra.mxu0 %v9269_v13  ;;  %2370 = vmatpush2.msra.mxu1 %v9270_v14  ;;  %v9313_v13 = vld [vmem:[#allocation11_spill] sm:$0xff] }
 0x5fa   :  { %2300 = vmatprep.subr.mxu0 %v9271_v16  ;;  %2371 = vmatprep.subr.mxu1 %v9272_v17 }
 0x5fb   :  { %2301 = vmatpush2.msra.mxu0 %v9273_v18  ;;  %2372 = vmatpush2.msra.mxu1 %v9274_v19  ;;  %v9314_v18 = vld [vmem:[#allocation12_spill] sm:$0xff] }
 0x5fc   :  { %2302 = vmatprep.subr.mxu0 %v9275_v21  ;;  %2373 = vmatprep.subr.mxu1 %v9276_v22 }
 0x5fd   :  { %2303 = vmatpush2.msra.mxu0 %v9277_v23  ;;  %2374 = vmatpush2.msra.mxu1 %v9278_v26  ;;  %v2076_v26 = vpop.permute.xlu1 %2075 }
 0x5fe   :  { %2304 = vmatprep.subr.mxu0 %v9279_v28  ;;  %2375 = vmatprep.subr.mxu1 %v9280_v29  ;;  %v9315_v29 = vld [vmem:[#allocation159_spill] sm:$0xff] }
 0x5ff   :  { %2305 = vmatpush2.msra.mxu0 %v9281_v31  ;;  %2376 = vmatpush2.msra.mxu1 %v9282_v34  ;;  %v2078_v31 = vmul.f32 %v2076_v26, %v9315_v29 }
 0x600   :  { %2306 = vmatprep.subr.mxu0 %v9283_v36  ;;  %2377 = vmatprep.subr.mxu1 %v9284_v37 }
 0x601   :  { %2307 = vmatpush2.msra.mxu0 %v9285_v40  ;;  %2378 = vmatpush2.msra.mxu1 %v9286_v41  ;;  %v2079_v40 = vmul.f32 %v2076_v26, %v9001_v20 }
 0x602   :  { %2308 = vmatprep.subr.mxu0 %v9287_v44  ;;  %2379 = vmatprep.subr.mxu1 %v9288_v46 }
 0x603   :  { %2309 = vmatpush2.msra.mxu0 %v9289_v47  ;;  %2380 = vmatpush2.msra.mxu1 %v9290_v2 }
 0x604   :  { %2310 = vmatprep.subr.mxu0 %v9291_v61  ;;  %2381 = vmatprep.subr.mxu1 %v9292_v55 }
 0x605   :  { %2311 = vmatpush2.msra.mxu0 %v9293_v1  ;;  %2382 = vmatpush2.msra.mxu1 %v9294_v48 }
 0x606   :  { %2312 = vmatprep.subr.mxu0 %v9295_v59  ;;  %2383 = vmatprep.subr.mxu1 %v9296_v60 }
 0x607   :  { %2313 = vmatpush2.msra.mxu0 %v9297_v62  ;;  %2384 = vmatpush2.msra.mxu1 %v9298_v56 }
 0x608   :  { %2314 = vmatprep.subr.mxu0 %v9299_v8  ;;  %2385 = vmatprep.subr.mxu1 %v9300_v4  ;;  %v2081_v4 = vmul.f32 %v2076_v26, %v8684_v30 }
 0x609   :  { %2315 = vmatpush2.msra.mxu0 %v9301_v58  ;;  %2386 = vmatpush2.msra.mxu1 %v9302_v10  ;;  %v2080_v10 = vmul.f32 %v2076_v26, %v8685_v33  ;;  %v6835_v26 = vld [vmem:[#allocation3 + $0x1d8] sm:$0xff] }
 0x60a   :  { %2316 = vmatprep.subr.mxu0 %v9303_v5  ;;  %2387 = vmatprep.subr.mxu1 %v9304_v53 }
 0x60b   :  { %2317 = vmatpush2.msra.mxu0 %v9305_v63  ;;  %2388 = vmatpush2.msra.mxu1 %v9306_v7 }
 0x60c   :  { %2318 = vmatprep.subr.mxu0 %v9307_v49  ;;  %2389 = vmatprep.subr.mxu1 %v9308_v39 }
 0x60d   :  { %2319 = vmatpush2.msra.mxu0 %v9309_v3  ;;  %2390 = vmatpush2.msra.mxu1 %v9310_v9 }
 0x60e   :  { %2433 = vmatprep.subr.mxu0 %v6796_v32  ;;  %2504 = vmatprep.subr.mxu1 %v6799_v27 }
 0x66c   :  { %v1971_v6 = vpop.f32.mrf.mxu0  ;;  %v2042_v11 = vpop.f32.mrf.mxu1 }
 0x66d   :  { %v1972_v24 = vadd.f32 %v1971_v6, %v9311_v0  ;;  %v2043_v19 = vadd.f32 %v2042_v11, %v9314_v18 }
 0x66e   :  { %v1973_v42 = vpop.f32.mrf.mxu0  ;;  %v2044_v50 = vpop.f32.mrf.mxu1 }
 0x66f   :  { %v3256_v43 = vmul.f32 -1.442695, %v1972_v24  ;;  %v1974_v54 = vadd.f32 %v1973_v42, %v9312_v45  ;;  %v2045_v14 = vadd.f32 %v2044_v50, %v9313_v13 }
 0x671   :  { %3486 = vpow2.f32 %v3256_v43  ;;  %v3257_v12 = vmul.f32 -1.442695, %v1974_v54  ;;  %v3258_v16 = vmul.f32 -1.442695, %v2045_v14 }
 0x673   :  { %3488 = vpow2.f32 %v3257_v12 }
 0x674   :  { %3490 = vpow2.f32 %v3258_v16 }
 0x67e   :  { %v3487_v17 = vpop.eup %3486 }
 0x67f   :  { %v2050_v21 = vadd.f32 1.0, %v3487_v17 }
 0x680   :  { %v3489_v22 = vpop.eup %3488 }
 0x681   :  { %3492 = vrcp.f32 %v2050_v21  ;;  %v2056_v23 = vadd.f32 1.0, %v3489_v22  ;;  %v3491_v28 = vpop.eup %3490  ;;  %v6826_v22 = vld [vmem:[#allocation3 + $0x1e0] sm:$0xff] }
 0x682   :  { %3494 = vtanh.f32 %v2043_v19  ;;  %v2063_v44 = vadd.f32 1.0, %v3491_v28  ;;  %v6838_v28 = vld [vmem:[#allocation3 + $0x1c0] sm:$0xff] }
 0x683   :  { %3496 = vrcp.f32 %v2056_v23  ;;  %v6829_v23 = vld [vmem:[#allocation3 + $0x1f0] sm:$0xff] }
 0x684   :  { %3498 = vrcp.f32 %v2063_v44  ;;  %v6859_v44 = vld [vmem:[#allocation3 + $0x198] sm:$0xff] }
 0x68d   :  { %v2148_v34 = vpop.f32.mrf.mxu0  ;;  %v2219_v61 = vpop.f32.mrf.mxu1 }
 0x68e   :  { %v3493_v36 = vpop.eup %3492  ;;  %v2224_v37 = vadd.f32 %v2148_v34, %v2078_v31  ;;  %v6841_v31 = vld [vmem:[#allocation3 + $0x1d0] sm:$0xff]  ;;  %v6844_v34 = vld [vmem:[#allocation3 + $0x1a8] sm:$0xff] }
 0x68f   :  { %v3495_v41 = vpop.eup %3494  ;;  %v2150_v46 = vpop.f32.mrf.mxu0 }
 0x690   :  { %v3497_v47 = vpop.eup %3496  ;;  %v2228_v2 = vadd.f32 %v2224_v37, %v4895_v57  ;;  %v2225_v55 = vadd.f32 %v2150_v46, %v2079_v40  ;;  %v2067_v1 = vmul.f32 %v3495_v41, %v3493_v36  ;;  %v2221_v8 = vpop.f32.mrf.mxu1  ;;  %v6847_v36 = vld [vmem:[#allocation3 + $0x1b8] sm:$0xff]  ;;  %v6850_v37 = vld [vmem:[#allocation3 + $0x1a0] sm:$0xff]  ;;  %v6853_v40 = vld [vmem:[#allocation3 + $0x1b0] sm:$0xff] }
 0x691   :  { %v2066_v48 = vmul.f32 %v3497_v47, %v6587_v15  ;;  %v2227_v58 = vadd.f32 %v2221_v8, %v2081_v4  ;;  %v2226_v15 = vadd.f32 %v2219_v61, %v2080_v10  ;;  %v3499_v63 = vpop.eup %3498  ;;  %v6856_v41 = vld [vmem:[#allocation3 + $0x188] sm:$0xff]  ;;  %v6862_v46 = vld [vmem:[#allocation3 + $0x180] sm:$0xff]  ;;  %v6865_v47 = vld [vmem:[#allocation3 + $0x190] sm:$0xff] }
 0x692   :  { %v3260_v59 = vmul.f32 -1.442695, %v2228_v2  ;;  %v2229_v60 = vadd.f32 %v2225_v55, %v8683_v25  ;;  %v6868_v2 = vld [vmem:[#allocation3 + $0x168] sm:$0xff]  ;;  %v6871_v61 = vld [vmem:[#allocation3 + $0x178] sm:$0xff]  ;;  %v6874_v55 = vld [vmem:[#allocation3 + $0x160] sm:$0xff] }
 0x693   :  { %v6811_v62 = vadd.f32 %v2067_v1, %v2066_v48  ;;  %v2231_v5 = vadd.f32 %v2227_v58, %v8686_v35  ;;  %v2230_v49 = vadd.f32 %v2226_v15, %v4918_v51  ;;  %v6877_v1 = vld [vmem:[#allocation3 + $0x170] sm:$0xff]  ;;  %v6880_v48 = vld [vmem:[#allocation3 + $0x148] sm:$0xff]  ;;  %v6895_v4 = vld [vmem:[#allocation3 + $0x138] sm:$0xff] }
 0x694   :  { %3500 = vpow2.f32 %v3260_v59  ;;  %v3261_v56 = vmul.f32 -1.442695, %v2229_v60  ;;  %v6883_v59 = vld [vmem:[#allocation3 + $0x158] sm:$0xff]  ;;  %v6886_v60 = vld [vmem:[#allocation3 + $0x140] sm:$0xff]  ;;  %v6892_v8 = vld [vmem:[#allocation3 + $0x128] sm:$0xff] }
 0x695   :  { %3502 = vtanh.f32 %v6811_v62  ;;  %v3262_v53 = vmul.f32 -1.442695, %v2231_v5  ;;  %v6898_v58 = vld [vmem:[#allocation3 + $0x120] sm:$0xff]  ;;  %v6901_v10 = vld [vmem:[#allocation3 + $0x130] sm:$0xff]  ;;  %v6904_v5 = vld [vmem:[#allocation3 + $0x108] sm:$0xff] }
 0x696   :  { %3504 = vpow2.f32 %v3261_v56  ;;  %v6889_v56 = vld [vmem:[#allocation3 + $0x150] sm:$0xff]  ;;  %v6907_v15 = vld [vmem:[#allocation3 + $0x118] sm:$0xff] }
 0x697   :  { %3506 = vpow2.f32 %v3262_v53  ;;  %v6910_v53 = vld [vmem:[#allocation3 + $0x100] sm:$0xff] }
 0x6a1   :  { %v3501_v7 = vpop.eup %3500 }
 0x6a2   :  { %v3503_v39 = vpop.eup %3502  ;;  %v2235_v3 = vadd.f32 1.0, %v3501_v7  ;;  %v6916_v7 = vld [vmem:[#allocation3 + $0xe8] sm:$0xff] }
 0x6a3   :  { %v3505_v9 = vpop.eup %3504  ;;  %v2070_v6 = vmul.f32 %v3503_v39, %v3499_v63  ;;  %v6913_v63 = vld [vmem:[#allocation3 + $0x110] sm:$0xff]  ;;  %v6922_v39 = vld [vmem:[#allocation3 + $0xe0] sm:$0xff] }
 0x6a4   :  { %3508 = vrcp.f32 %v2235_v3  ;;  %v2241_v24 = vadd.f32 1.0, %v3505_v9  ;;  %v3507_v42 = vpop.eup %3506  ;;  %v6925_v3 = vld [vmem:[#allocation3 + $0xf0] sm:$0xff]  ;;  %v6928_v9 = vld [vmem:[#allocation3 + $0xc8] sm:$0xff] }
 0x6a5   :  { %3510 = vtanh.f32 %v2230_v49  ;;  %2320 = vmatprep.mubr.f32.mxu0 %v2070_v6  ;;  %2391 = vmatprep.mubr.f32.mxu1 %v2070_v6  ;;  %v2248_v12 = vadd.f32 1.0, %v3507_v42  ;;  %v6919_v49 = vld [vmem:[#allocation3 + $0xf8] sm:$0xff]  ;;  %v6937_v42 = vld [vmem:[#allocation3 + $0xd0] sm:$0xff] }
 0x6a6   :  { %3512 = vrcp.f32 %v2241_v24  ;;  %v6931_v6 = vld [vmem:[#allocation3 + $0xd8] sm:$0xff]  ;;  %v6934_v24 = vld [vmem:[#allocation3 + $0xc0] sm:$0xff]  ;;  %9317 = vst [vmem:[#allocation13_spill] sm:$0xff] %v6937_v42 }
 0x6a7   :  { %3514 = vrcp.f32 %v2248_v12  ;;  %9316 = vst [vmem:[#allocation160_spill] sm:$0xff] %v6934_v24  ;;  %v6949_v12 = vld [vmem:[#allocation3 + $0xb0] sm:$0xff] }
 0x6a8   :  { %9321 = vst [vmem:[#allocation17_spill] sm:$0xff] %v6949_v12 }
 0x6b1   :  { %v3509_v43 = vpop.eup %3508 }
 0x6b2   :  { %v3511_v54 = vpop.eup %3510 }
 0x6b3   :  { %v3513_v11 = vpop.eup %3512  ;;  %v2252_v50 = vmul.f32 %v3511_v54, %v3509_v43  ;;  %v6940_v43 = vld [vmem:[#allocation3 + $0xa8] sm:$0xff]  ;;  %v6943_v54 = vld [vmem:[#allocation3 + $0xb8] sm:$0xff] }
 0x6b4   :  { %v2251_v14 = vmul.f32 %v3513_v11, %v6595_v38  ;;  %v3515_v17 = vpop.eup %3514  ;;  %v6832_v38 = vld [vmem:[#allocation3 + $0x1c8] sm:$0xff]  ;;  %9318 = vst [vmem:[#allocation14_spill] sm:$0xff] %v6940_v43  ;;  %9319 = vst [vmem:[#allocation15_spill] sm:$0xff] %v6943_v54  ;;  %v6946_v11 = vld [vmem:[#allocation3 + $0xa0] sm:$0xff] }
 0x6b5   :  { %9320 = vst [vmem:[#allocation16_spill] sm:$0xff] %v6946_v11 }
 0x6b6   :  { %v6819_v16 = vadd.f32 %v2252_v50, %v2251_v14  ;;  %v6952_v50 = vld [vmem:[#allocation3 + $0x88] sm:$0xff]  ;;  %v6955_v14 = vld [vmem:[#allocation3 + $0x98] sm:$0xff] }
 0x6b7   :  { %9322 = vst [vmem:[#allocation18_spill] sm:$0xff] %v6952_v50  ;;  %9323 = vst [vmem:[#allocation19_spill] sm:$0xff] %v6955_v14 }
 0x6b8   :  { %3516 = vtanh.f32 %v6819_v16 }
 0x6c5   :  { %v3517_v19 = vpop.eup %3516 }
 0x6c6   :  { %v6822_v21 = vmul.f32 %v3517_v19, %v3515_v17  ;;  %v6958_v17 = vld [vmem:[#allocation3 + $0x80] sm:$0xff]  ;;  %v6961_v19 = vld [vmem:[#allocation3 + $0x90] sm:$0xff] }
 0x6c7   :  { %9324 = vst [vmem:[#allocation20_spill] sm:$0xff] %v6958_v17  ;;  %9325 = vst [vmem:[#allocation21_spill] sm:$0xff] %v6961_v19 }
 0x6c8   :  { %2321 = vmatmul.mubr.f32.vlgmr.msra.gmra.mxu0 %v6822_v21  ;;  %2392 = vmatmul.mubr.f32.vlgmr.msra.gmra.mxu1 %v6822_v21 }
 0x6c9   :  { %2434 = vmatpush1.msra.mxu0 %v6826_v22  ;;  %2505 = vmatpush1.msra.mxu1 %v6829_v23 }
 0x6ca   :  { %2435 = vmatprep.subr.mxu0 %v6832_v38  ;;  %2506 = vmatprep.subr.mxu1 %v6835_v26 }
 0x6cb   :  { %2436 = vmatpush1.msra.mxu0 %v6838_v28  ;;  %2507 = vmatpush1.msra.mxu1 %v6841_v31 }
 0x6cc   :  { %2437 = vmatprep.subr.mxu0 %v6844_v34  ;;  %2508 = vmatprep.subr.mxu1 %v6847_v36 }
 0x6cd   :  { %2438 = vmatpush1.msra.mxu0 %v6850_v37  ;;  %2509 = vmatpush1.msra.mxu1 %v6853_v40 }
 0x6ce   :  { %2439 = vmatprep.subr.mxu0 %v6856_v41  ;;  %2510 = vmatprep.subr.mxu1 %v6859_v44 }
 0x6cf   :  { %2440 = vmatpush1.msra.mxu0 %v6862_v46  ;;  %2511 = vmatpush1.msra.mxu1 %v6865_v47 }
 0x6d0   :  { %2441 = vmatprep.subr.mxu0 %v6868_v2  ;;  %2512 = vmatprep.subr.mxu1 %v6871_v61 }
 0x6d1   :  { %2442 = vmatpush1.msra.mxu0 %v6874_v55  ;;  %2513 = vmatpush1.msra.mxu1 %v6877_v1 }
 0x6d2   :  { %2443 = vmatprep.subr.mxu0 %v6880_v48  ;;  %2514 = vmatprep.subr.mxu1 %v6883_v59 }
 0x6d3   :  { %2444 = vmatpush1.msra.mxu0 %v6886_v60  ;;  %2515 = vmatpush1.msra.mxu1 %v6889_v56 }
 0x6d4   :  { %2445 = vmatprep.subr.mxu0 %v6892_v8  ;;  %2516 = vmatprep.subr.mxu1 %v6895_v4 }
 0x6d5   :  { %2446 = vmatpush1.msra.mxu0 %v6898_v58  ;;  %2517 = vmatpush1.msra.mxu1 %v6901_v10 }
 0x6d6   :  { %2447 = vmatprep.subr.mxu0 %v6904_v5  ;;  %2518 = vmatprep.subr.mxu1 %v6907_v15 }
 0x6d7   :  { %2448 = vmatpush1.msra.mxu0 %v6910_v53  ;;  %2519 = vmatpush1.msra.mxu1 %v6913_v63 }
 0x6d8   :  { %2449 = vmatprep.subr.mxu0 %v6916_v7  ;;  %2520 = vmatprep.subr.mxu1 %v6919_v49 }
 0x6d9   :  { %2450 = vmatpush1.msra.mxu0 %v6922_v39  ;;  %2521 = vmatpush1.msra.mxu1 %v6925_v3 }
 0x6da   :  { %2451 = vmatprep.subr.mxu0 %v6928_v9  ;;  %2522 = vmatprep.subr.mxu1 %v6931_v6 }
 0x6db   :  { %2452 = vmatpush1.msra.mxu0 %v6934_v24  ;;  %2523 = vmatpush1.msra.mxu1 %v6937_v42 }
 0x6dc   :  { %2453 = vmatprep.subr.mxu0 %v6940_v43  ;;  %2524 = vmatprep.subr.mxu1 %v6943_v54 }
 0x6dd   :  { %2454 = vmatpush1.msra.mxu0 %v6946_v11  ;;  %2525 = vmatpush1.msra.mxu1 %v6949_v12  ;;  %v6964_v11 = vld [vmem:[#allocation3 + $0x68] sm:$0xff]  ;;  %v6967_v12 = vld [vmem:[#allocation3 + $0x78] sm:$0xff] }
 0x6de   :  { %2455 = vmatprep.subr.mxu0 %v6952_v50  ;;  %2526 = vmatprep.subr.mxu1 %v6955_v14  ;;  %9326 = vst [vmem:[#allocation22_spill] sm:$0xff] %v6964_v11  ;;  %9327 = vst [vmem:[#allocation23_spill] sm:$0xff] %v6967_v12  ;;  %v6970_v50 = vld [vmem:[#allocation3 + $0x60] sm:$0xff]  ;;  %v6973_v14 = vld [vmem:[#allocation3 + $0x70] sm:$0xff] }
 0x6df   :  { %2456 = vmatpush1.msra.mxu0 %v6958_v17  ;;  %2527 = vmatpush1.msra.mxu1 %v6961_v19  ;;  %9328 = vst [vmem:[#allocation24_spill] sm:$0xff] %v6970_v50  ;;  %9329 = vst [vmem:[#allocation25_spill] sm:$0xff] %v6973_v14  ;;  %v6976_v17 = vld [vmem:[#allocation3 + $0x48] sm:$0xff]  ;;  %v6979_v19 = vld [vmem:[#allocation3 + $0x58] sm:$0xff] }
 0x6e0   :  { %2457 = vmatprep.subr.mxu0 %v6964_v11  ;;  %2528 = vmatprep.subr.mxu1 %v6967_v12  ;;  %9330 = vst [vmem:[#allocation26_spill] sm:$0xff] %v6976_v17  ;;  %9331 = vst [vmem:[#allocation27_spill] sm:$0xff] %v6979_v19  ;;  %v6982_v11 = vld [vmem:[#allocation3 + $0x40] sm:$0xff]  ;;  %v6985_v12 = vld [vmem:[#allocation3 + $0x50] sm:$0xff] }
 0x6e1   :  { %2458 = vmatpush1.msra.mxu0 %v6970_v50  ;;  %2529 = vmatpush1.msra.mxu1 %v6973_v14  ;;  %9332 = vst [vmem:[#allocation28_spill] sm:$0xff] %v6982_v11  ;;  %9333 = vst [vmem:[#allocation29_spill] sm:$0xff] %v6985_v12  ;;  %v6988_v50 = vld [vmem:[#allocation3 + $0x28] sm:$0xff]  ;;  %v6991_v14 = vld [vmem:[#allocation3 + $0x38] sm:$0xff] }
 0x6e2   :  { %2459 = vmatprep.subr.mxu0 %v6976_v17  ;;  %2530 = vmatprep.subr.mxu1 %v6979_v19  ;;  %9334 = vst [vmem:[#allocation30_spill] sm:$0xff] %v6988_v50  ;;  %9335 = vst [vmem:[#allocation31_spill] sm:$0xff] %v6991_v14  ;;  %v6994_v17 = vld [vmem:[#allocation3 + $0x20] sm:$0xff]  ;;  %v6997_v19 = vld [vmem:[#allocation3 + $0x30] sm:$0xff] }
 0x6e3   :  { %2460 = vmatpush1.msra.mxu0 %v6982_v11  ;;  %2531 = vmatpush1.msra.mxu1 %v6985_v12  ;;  %9336 = vst [vmem:[#allocation32_spill] sm:$0xff] %v6994_v17  ;;  %9337 = vst [vmem:[#allocation33_spill] sm:$0xff] %v6997_v19  ;;  %v7000_v11 = vld [vmem:[#allocation3 + $0x8] sm:$0xff]  ;;  %v7003_v12 = vld [vmem:[#allocation3 + $0x18] sm:$0xff] }
 0x6e4   :  { %2461 = vmatprep.subr.mxu0 %v6988_v50  ;;  %2532 = vmatprep.subr.mxu1 %v6991_v14  ;;  %9338 = vst [vmem:[#allocation34_spill] sm:$0xff] %v7000_v11  ;;  %9339 = vst [vmem:[#allocation35_spill] sm:$0xff] %v7003_v12  ;;  %v7006_v50 = vld [vmem:[#allocation3] sm:$0xff]  ;;  %v7010_v14 = vld [vmem:[#allocation3 + $0x10] sm:$0xff] }
 0x6e5   :  { %2462 = vmatpush1.msra.mxu0 %v6994_v17  ;;  %2533 = vmatpush1.msra.mxu1 %v6997_v19  ;;  %9340 = vst [vmem:[#allocation36_spill] sm:$0xff] %v7006_v50  ;;  %9341 = vst [vmem:[#allocation37_spill] sm:$0xff] %v7010_v14  ;;  %v7025_v19 = vld [vmem:[#allocation5 + $0x1f0] sm:$0xff] }
 0x6e6   :  { %2463 = vmatprep.subr.mxu0 %v7000_v11  ;;  %2534 = vmatprep.subr.mxu1 %v7003_v12  ;;  %v7016_v11 = vld [vmem:[#allocation5 + $0x1e8] sm:$0xff]  ;;  %v7019_v12 = vld [vmem:[#allocation5 + $0x1f8] sm:$0xff]  ;;  %9345 = vst [vmem:[#allocation41_spill] sm:$0xff] %v7025_v19 }
 0x6e7   :  { %2464 = vmatpush1.msra.mxu0 %v7006_v50  ;;  %2497 = vmatprep.mubr.f32.mxu0 %v9181_v52  ;;  %9342 = vst [vmem:[#allocation38_spill] sm:$0xff] %v7016_v11  ;;  %9343 = vst [vmem:[#allocation39_spill] sm:$0xff] %v7019_v12  ;;  %v7022_v50 = vld [vmem:[#allocation5 + $0x1e0] sm:$0xff] }
 0x6e8   :  { %2535 = vmatpush1.msra.mxu1 %v7010_v14  ;;  %2568 = vmatprep.mubr.f32.mxu1 %v9181_v52  ;;  %9344 = vst [vmem:[#allocation40_spill] sm:$0xff] %v7022_v50  ;;  %v7028_v14 = vld [vmem:[#allocation5 + $0x1c8] sm:$0xff] }
 0x6e9   :  { %2498 = vmatmul.mubr.f32.vlgmr.msra.gmra.mxu0 %v6822_v21  ;;  %2569 = vmatmul.mubr.f32.vlgmr.msra.gmra.mxu1 %v6822_v21  ;;  %9346 = vst [vmem:[#allocation42_spill] sm:$0xff] %v7028_v14  ;;  %v7031_v21 = vld [vmem:[#allocation5 + $0x1d8] sm:$0xff] }
 0x6ea   :  { %2607 = vmatprep.subr.mxu0 %v7016_v11  ;;  %2678 = vmatprep.subr.mxu1 %v7019_v12  ;;  %9347 = vst [vmem:[#allocation43_spill] sm:$0xff] %v7031_v21  ;;  %v7034_v11 = vld [vmem:[#allocation5 + $0x1c0] sm:$0xff]  ;;  %v7037_v12 = vld [vmem:[#allocation5 + $0x1d0] sm:$0xff] }
 0x6eb   :  { %2608 = vmatpush1.msra.mxu0 %v7022_v50  ;;  %2679 = vmatpush1.msra.mxu1 %v7025_v19  ;;  %9348 = vst [vmem:[#allocation44_spill] sm:$0xff] %v7034_v11  ;;  %9349 = vst [vmem:[#allocation45_spill] sm:$0xff] %v7037_v12  ;;  %v7040_v50 = vld [vmem:[#allocation5 + $0x1a8] sm:$0xff]  ;;  %v7043_v19 = vld [vmem:[#allocation5 + $0x1b8] sm:$0xff] }
 0x6ec   :  { %2609 = vmatprep.subr.mxu0 %v7028_v14  ;;  %2680 = vmatprep.subr.mxu1 %v7031_v21  ;;  %9350 = vst [vmem:[#allocation46_spill] sm:$0xff] %v7040_v50  ;;  %9351 = vst [vmem:[#allocation47_spill] sm:$0xff] %v7043_v19  ;;  %v7046_v14 = vld [vmem:[#allocation5 + $0x1a0] sm:$0xff]  ;;  %v7049_v21 = vld [vmem:[#allocation5 + $0x1b0] sm:$0xff] }
 0x6ed   :  { %2610 = vmatpush1.msra.mxu0 %v7034_v11  ;;  %2681 = vmatpush1.msra.mxu1 %v7037_v12  ;;  %9352 = vst [vmem:[#allocation48_spill] sm:$0xff] %v7046_v14  ;;  %9353 = vst [vmem:[#allocation49_spill] sm:$0xff] %v7049_v21  ;;  %v7052_v11 = vld [vmem:[#allocation5 + $0x188] sm:$0xff]  ;;  %v7055_v12 = vld [vmem:[#allocation5 + $0x198] sm:$0xff] }
 0x6ee   :  { %2611 = vmatprep.subr.mxu0 %v7040_v50  ;;  %2682 = vmatprep.subr.mxu1 %v7043_v19  ;;  %9354 = vst [vmem:[#allocation50_spill] sm:$0xff] %v7052_v11  ;;  %9355 = vst [vmem:[#allocation51_spill] sm:$0xff] %v7055_v12  ;;  %v7058_v50 = vld [vmem:[#allocation5 + $0x180] sm:$0xff]  ;;  %v7061_v19 = vld [vmem:[#allocation5 + $0x190] sm:$0xff] }
 0x6ef   :  { %2612 = vmatpush1.msra.mxu0 %v7046_v14  ;;  %2683 = vmatpush1.msra.mxu1 %v7049_v21  ;;  %9356 = vst [vmem:[#allocation52_spill] sm:$0xff] %v7058_v50  ;;  %9357 = vst [vmem:[#allocation53_spill] sm:$0xff] %v7061_v19  ;;  %v7064_v14 = vld [vmem:[#allocation5 + $0x168] sm:$0xff]  ;;  %v7067_v21 = vld [vmem:[#allocation5 + $0x178] sm:$0xff] }
 0x6f0   :  { %2613 = vmatprep.subr.mxu0 %v7052_v11  ;;  %2684 = vmatprep.subr.mxu1 %v7055_v12  ;;  %9358 = vst [vmem:[#allocation54_spill] sm:$0xff] %v7064_v14  ;;  %9359 = vst [vmem:[#allocation55_spill] sm:$0xff] %v7067_v21  ;;  %v7070_v11 = vld [vmem:[#allocation5 + $0x160] sm:$0xff]  ;;  %v7073_v12 = vld [vmem:[#allocation5 + $0x170] sm:$0xff] }
 0x6f1   :  { %2614 = vmatpush1.msra.mxu0 %v7058_v50  ;;  %2685 = vmatpush1.msra.mxu1 %v7061_v19  ;;  %9360 = vst [vmem:[#allocation56_spill] sm:$0xff] %v7070_v11  ;;  %9361 = vst [vmem:[#allocation57_spill] sm:$0xff] %v7073_v12  ;;  %v7076_v50 = vld [vmem:[#allocation5 + $0x148] sm:$0xff]  ;;  %v7079_v19 = vld [vmem:[#allocation5 + $0x158] sm:$0xff] }
 0x6f2   :  { %2615 = vmatprep.subr.mxu0 %v7064_v14  ;;  %2686 = vmatprep.subr.mxu1 %v7067_v21  ;;  %9362 = vst [vmem:[#allocation58_spill] sm:$0xff] %v7076_v50  ;;  %9363 = vst [vmem:[#allocation59_spill] sm:$0xff] %v7079_v19  ;;  %v7082_v14 = vld [vmem:[#allocation5 + $0x140] sm:$0xff]  ;;  %v7085_v21 = vld [vmem:[#allocation5 + $0x150] sm:$0xff] }
 0x6f3   :  { %2616 = vmatpush1.msra.mxu0 %v7070_v11  ;;  %2687 = vmatpush1.msra.mxu1 %v7073_v12  ;;  %9364 = vst [vmem:[#allocation60_spill] sm:$0xff] %v7082_v14  ;;  %9365 = vst [vmem:[#allocation61_spill] sm:$0xff] %v7085_v21  ;;  %v7088_v11 = vld [vmem:[#allocation5 + $0x128] sm:$0xff]  ;;  %v7091_v12 = vld [vmem:[#allocation5 + $0x138] sm:$0xff] }
 0x6f4   :  { %2617 = vmatprep.subr.mxu0 %v7076_v50  ;;  %2688 = vmatprep.subr.mxu1 %v7079_v19  ;;  %9366 = vst [vmem:[#allocation62_spill] sm:$0xff] %v7088_v11  ;;  %9367 = vst [vmem:[#allocation63_spill] sm:$0xff] %v7091_v12  ;;  %v7094_v50 = vld [vmem:[#allocation5 + $0x120] sm:$0xff]  ;;  %v7097_v19 = vld [vmem:[#allocation5 + $0x130] sm:$0xff] }
 0x6f5   :  { %2618 = vmatpush1.msra.mxu0 %v7082_v14  ;;  %2689 = vmatpush1.msra.mxu1 %v7085_v21  ;;  %9368 = vst [vmem:[#allocation64_spill] sm:$0xff] %v7094_v50  ;;  %9369 = vst [vmem:[#allocation65_spill] sm:$0xff] %v7097_v19  ;;  %v7100_v14 = vld [vmem:[#allocation5 + $0x108] sm:$0xff]  ;;  %v7103_v21 = vld [vmem:[#allocation5 + $0x118] sm:$0xff] }
 0x6f6   :  { %2619 = vmatprep.subr.mxu0 %v7088_v11  ;;  %2690 = vmatprep.subr.mxu1 %v7091_v12  ;;  %9370 = vst [vmem:[#allocation66_spill] sm:$0xff] %v7100_v14  ;;  %9371 = vst [vmem:[#allocation67_spill] sm:$0xff] %v7103_v21  ;;  %v7106_v11 = vld [vmem:[#allocation5 + $0x100] sm:$0xff]  ;;  %v7109_v12 = vld [vmem:[#allocation5 + $0x110] sm:$0xff] }
 0x6f7   :  { %2620 = vmatpush1.msra.mxu0 %v7094_v50  ;;  %2691 = vmatpush1.msra.mxu1 %v7097_v19  ;;  %9372 = vst [vmem:[#allocation68_spill] sm:$0xff] %v7106_v11  ;;  %9373 = vst [vmem:[#allocation69_spill] sm:$0xff] %v7109_v12  ;;  %v7112_v50 = vld [vmem:[#allocation5 + $0xe8] sm:$0xff]  ;;  %v7115_v19 = vld [vmem:[#allocation5 + $0xf8] sm:$0xff] }
 0x6f8   :  { %2621 = vmatprep.subr.mxu0 %v7100_v14  ;;  %2692 = vmatprep.subr.mxu1 %v7103_v21  ;;  %9374 = vst [vmem:[#allocation70_spill] sm:$0xff] %v7112_v50  ;;  %9375 = vst [vmem:[#allocation71_spill] sm:$0xff] %v7115_v19  ;;  %v7118_v14 = vld [vmem:[#allocation5 + $0xe0] sm:$0xff]  ;;  %v7121_v21 = vld [vmem:[#allocation5 + $0xf0] sm:$0xff] }
 0x6f9   :  { %2622 = vmatpush1.msra.mxu0 %v7106_v11  ;;  %2693 = vmatpush1.msra.mxu1 %v7109_v12  ;;  %9376 = vst [vmem:[#allocation72_spill] sm:$0xff] %v7118_v14  ;;  %9377 = vst [vmem:[#allocation73_spill] sm:$0xff] %v7121_v21  ;;  %v7124_v11 = vld [vmem:[#allocation5 + $0xc8] sm:$0xff]  ;;  %v7127_v12 = vld [vmem:[#allocation5 + $0xd8] sm:$0xff] }
 0x6fa   :  { %2623 = vmatprep.subr.mxu0 %v7112_v50  ;;  %2694 = vmatprep.subr.mxu1 %v7115_v19  ;;  %9378 = vst [vmem:[#allocation74_spill] sm:$0xff] %v7124_v11  ;;  %9379 = vst [vmem:[#allocation75_spill] sm:$0xff] %v7127_v12  ;;  %v7130_v50 = vld [vmem:[#allocation5 + $0xc0] sm:$0xff]  ;;  %v7133_v19 = vld [vmem:[#allocation5 + $0xd0] sm:$0xff] }
 0x6fb   :  { %2624 = vmatpush1.msra.mxu0 %v7118_v14  ;;  %2695 = vmatpush1.msra.mxu1 %v7121_v21  ;;  %9380 = vst [vmem:[#allocation76_spill] sm:$0xff] %v7130_v50  ;;  %9381 = vst [vmem:[#allocation77_spill] sm:$0xff] %v7133_v19  ;;  %v7136_v14 = vld [vmem:[#allocation5 + $0xa8] sm:$0xff]  ;;  %v7139_v21 = vld [vmem:[#allocation5 + $0xb8] sm:$0xff] }
 0x6fc   :  { %2625 = vmatprep.subr.mxu0 %v7124_v11  ;;  %2696 = vmatprep.subr.mxu1 %v7127_v12  ;;  %9382 = vst [vmem:[#allocation78_spill] sm:$0xff] %v7136_v14  ;;  %9383 = vst [vmem:[#allocation79_spill] sm:$0xff] %v7139_v21  ;;  %v7142_v11 = vld [vmem:[#allocation5 + $0xa0] sm:$0xff]  ;;  %v7145_v12 = vld [vmem:[#allocation5 + $0xb0] sm:$0xff] }
 0x6fd   :  { %2626 = vmatpush1.msra.mxu0 %v7130_v50  ;;  %2697 = vmatpush1.msra.mxu1 %v7133_v19  ;;  %9384 = vst [vmem:[#allocation80_spill] sm:$0xff] %v7142_v11  ;;  %9385 = vst [vmem:[#allocation81_spill] sm:$0xff] %v7145_v12  ;;  %v7148_v50 = vld [vmem:[#allocation5 + $0x88] sm:$0xff]  ;;  %v7151_v19 = vld [vmem:[#allocation5 + $0x98] sm:$0xff] }
 0x6fe   :  { %2627 = vmatprep.subr.mxu0 %v7136_v14  ;;  %2698 = vmatprep.subr.mxu1 %v7139_v21  ;;  %9386 = vst [vmem:[#allocation82_spill] sm:$0xff] %v7148_v50  ;;  %9387 = vst [vmem:[#allocation83_spill] sm:$0xff] %v7151_v19  ;;  %v7154_v14 = vld [vmem:[#allocation5 + $0x80] sm:$0xff]  ;;  %v7157_v21 = vld [vmem:[#allocation5 + $0x90] sm:$0xff] }
 0x6ff   :  { %2628 = vmatpush1.msra.mxu0 %v7142_v11  ;;  %2699 = vmatpush1.msra.mxu1 %v7145_v12  ;;  %9388 = vst [vmem:[#allocation84_spill] sm:$0xff] %v7154_v14  ;;  %9389 = vst [vmem:[#allocation85_spill] sm:$0xff] %v7157_v21  ;;  %v7160_v11 = vld [vmem:[#allocation5 + $0x68] sm:$0xff]  ;;  %v7163_v12 = vld [vmem:[#allocation5 + $0x78] sm:$0xff] }
 0x700   :  { %2629 = vmatprep.subr.mxu0 %v7148_v50  ;;  %2700 = vmatprep.subr.mxu1 %v7151_v19  ;;  %9390 = vst [vmem:[#allocation86_spill] sm:$0xff] %v7160_v11  ;;  %9391 = vst [vmem:[#allocation87_spill] sm:$0xff] %v7163_v12  ;;  %v7166_v50 = vld [vmem:[#allocation5 + $0x60] sm:$0xff]  ;;  %v7169_v19 = vld [vmem:[#allocation5 + $0x70] sm:$0xff] }
 0x701   :  { %2630 = vmatpush1.msra.mxu0 %v7154_v14  ;;  %2701 = vmatpush1.msra.mxu1 %v7157_v21  ;;  %9392 = vst [vmem:[#allocation88_spill] sm:$0xff] %v7166_v50  ;;  %9393 = vst [vmem:[#allocation89_spill] sm:$0xff] %v7169_v19  ;;  %v7172_v14 = vld [vmem:[#allocation5 + $0x48] sm:$0xff]  ;;  %v7175_v21 = vld [vmem:[#allocation5 + $0x58] sm:$0xff] }
 0x702   :  { %2631 = vmatprep.subr.mxu0 %v7160_v11  ;;  %2702 = vmatprep.subr.mxu1 %v7163_v12  ;;  %9394 = vst [vmem:[#allocation90_spill] sm:$0xff] %v7172_v14  ;;  %9395 = vst [vmem:[#allocation91_spill] sm:$0xff] %v7175_v21  ;;  %v7178_v11 = vld [vmem:[#allocation5 + $0x40] sm:$0xff]  ;;  %v7181_v12 = vld [vmem:[#allocation5 + $0x50] sm:$0xff] }
 0x703   :  { %2632 = vmatpush1.msra.mxu0 %v7166_v50  ;;  %2703 = vmatpush1.msra.mxu1 %v7169_v19  ;;  %9396 = vst [vmem:[#allocation92_spill] sm:$0xff] %v7178_v11  ;;  %9397 = vst [vmem:[#allocation93_spill] sm:$0xff] %v7181_v12  ;;  %v7184_v50 = vld [vmem:[#allocation5 + $0x28] sm:$0xff]  ;;  %v7187_v19 = vld [vmem:[#allocation5 + $0x38] sm:$0xff] }
 0x704   :  { %2633 = vmatprep.subr.mxu0 %v7172_v14  ;;  %2704 = vmatprep.subr.mxu1 %v7175_v21  ;;  %9398 = vst [vmem:[#allocation94_spill] sm:$0xff] %v7184_v50  ;;  %9399 = vst [vmem:[#allocation95_spill] sm:$0xff] %v7187_v19  ;;  %v7190_v14 = vld [vmem:[#allocation5 + $0x20] sm:$0xff]  ;;  %v7193_v21 = vld [vmem:[#allocation5 + $0x30] sm:$0xff] }
 0x705   :  { %2634 = vmatpush1.msra.mxu0 %v7178_v11  ;;  %2705 = vmatpush1.msra.mxu1 %v7181_v12  ;;  %9400 = vst [vmem:[#allocation96_spill] sm:$0xff] %v7190_v14  ;;  %9401 = vst [vmem:[#allocation97_spill] sm:$0xff] %v7193_v21  ;;  %v7196_v11 = vld [vmem:[#allocation5 + $0x8] sm:$0xff]  ;;  %v7199_v12 = vld [vmem:[#allocation5 + $0x18] sm:$0xff] }
 0x706   :  { %2635 = vmatprep.subr.mxu0 %v7184_v50  ;;  %2706 = vmatprep.subr.mxu1 %v7187_v19  ;;  %9402 = vst [vmem:[#allocation98_spill] sm:$0xff] %v7196_v11  ;;  %9403 = vst [vmem:[#allocation99_spill] sm:$0xff] %v7199_v12  ;;  %v7202_v50 = vld [vmem:[#allocation5] sm:$0xff]  ;;  %v7205_v19 = vld [vmem:[#allocation5 + $0x10] sm:$0xff] }
 0x707   :  { %2636 = vmatpush1.msra.mxu0 %v7190_v14  ;;  %2707 = vmatpush1.msra.mxu1 %v7193_v21  ;;  %9404 = vst [vmem:[#allocation100_spill] sm:$0xff] %v7202_v50  ;;  %9405 = vst [vmem:[#allocation101_spill] sm:$0xff] %v7205_v19  ;;  %v7208_v14 = vld [vmem:[#allocation5 + $0x3e8] sm:$0xff]  ;;  %v7211_v21 = vld [vmem:[#allocation5 + $0x3f8] sm:$0xff] }
 0x708   :  { %2637 = vmatprep.subr.mxu0 %v7196_v11  ;;  %2708 = vmatprep.subr.mxu1 %v7199_v12  ;;  %9406 = vst [vmem:[#allocation102_spill] sm:$0xff] %v7208_v14  ;;  %9407 = vst [vmem:[#allocation103_spill] sm:$0xff] %v7211_v21  ;;  %v7214_v11 = vld [vmem:[#allocation5 + $0x3e0] sm:$0xff]  ;;  %v7217_v12 = vld [vmem:[#allocation5 + $0x3f0] sm:$0xff] }
 0x709   :  { %2638 = vmatpush1.msra.mxu0 %v7202_v50  ;;  %2709 = vmatpush1.msra.mxu1 %v7205_v19  ;;  %9408 = vst [vmem:[#allocation104_spill] sm:$0xff] %v7214_v11  ;;  %9409 = vst [vmem:[#allocation105_spill] sm:$0xff] %v7217_v12  ;;  %v7220_v50 = vld [vmem:[#allocation5 + $0x3c8] sm:$0xff]  ;;  %v7223_v19 = vld [vmem:[#allocation5 + $0x3d8] sm:$0xff] }
 0x70a   :  { %2639 = vmatprep.subr.mxu0 %v7208_v14  ;;  %2710 = vmatprep.subr.mxu1 %v7211_v21  ;;  %9410 = vst [vmem:[#allocation106_spill] sm:$0xff] %v7220_v50  ;;  %9411 = vst [vmem:[#allocation107_spill] sm:$0xff] %v7223_v19  ;;  %v7226_v14 = vld [vmem:[#allocation5 + $0x3c0] sm:$0xff]  ;;  %v7229_v21 = vld [vmem:[#allocation5 + $0x3d0] sm:$0xff] }
 0x70b   :  { %2640 = vmatpush2.msra.mxu0 %v7214_v11  ;;  %2711 = vmatpush2.msra.mxu1 %v7217_v12  ;;  %9412 = vst [vmem:[#allocation108_spill] sm:$0xff] %v7226_v14  ;;  %9413 = vst [vmem:[#allocation109_spill] sm:$0xff] %v7229_v21  ;;  %v7232_v11 = vld [vmem:[#allocation5 + $0x3a8] sm:$0xff]  ;;  %v7235_v12 = vld [vmem:[#allocation5 + $0x3b8] sm:$0xff] }
 0x70c   :  { %2641 = vmatprep.subr.mxu0 %v7220_v50  ;;  %2712 = vmatprep.subr.mxu1 %v7223_v19  ;;  %9414 = vst [vmem:[#allocation110_spill] sm:$0xff] %v7232_v11  ;;  %9415 = vst [vmem:[#allocation111_spill] sm:$0xff] %v7235_v12  ;;  %v7238_v50 = vld [vmem:[#allocation5 + $0x3a0] sm:$0xff]  ;;  %v7241_v19 = vld [vmem:[#allocation5 + $0x3b0] sm:$0xff] }
 0x70d   :  { %2642 = vmatpush2.msra.mxu0 %v7226_v14  ;;  %2713 = vmatpush2.msra.mxu1 %v7229_v21  ;;  %9416 = vst [vmem:[#allocation112_spill] sm:$0xff] %v7238_v50  ;;  %9417 = vst [vmem:[#allocation113_spill] sm:$0xff] %v7241_v19  ;;  %v7244_v14 = vld [vmem:[#allocation5 + $0x388] sm:$0xff]  ;;  %v7247_v21 = vld [vmem:[#allocation5 + $0x398] sm:$0xff] }
 0x70e   :  { %2643 = vmatprep.subr.mxu0 %v7232_v11  ;;  %2714 = vmatprep.subr.mxu1 %v7235_v12  ;;  %9418 = vst [vmem:[#allocation114_spill] sm:$0xff] %v7244_v14  ;;  %9419 = vst [vmem:[#allocation115_spill] sm:$0xff] %v7247_v21  ;;  %v7250_v11 = vld [vmem:[#allocation5 + $0x380] sm:$0xff]  ;;  %v7253_v12 = vld [vmem:[#allocation5 + $0x390] sm:$0xff] }
 0x70f   :  { %2644 = vmatpush2.msra.mxu0 %v7238_v50  ;;  %2715 = vmatpush2.msra.mxu1 %v7241_v19  ;;  %9420 = vst [vmem:[#allocation116_spill] sm:$0xff] %v7250_v11  ;;  %9421 = vst [vmem:[#allocation117_spill] sm:$0xff] %v7253_v12  ;;  %v7256_v50 = vld [vmem:[#allocation5 + $0x368] sm:$0xff]  ;;  %v7259_v19 = vld [vmem:[#allocation5 + $0x378] sm:$0xff] }
 0x710   :  { %2645 = vmatprep.subr.mxu0 %v7244_v14  ;;  %2716 = vmatprep.subr.mxu1 %v7247_v21  ;;  %9422 = vst [vmem:[#allocation118_spill] sm:$0xff] %v7256_v50  ;;  %9423 = vst [vmem:[#allocation119_spill] sm:$0xff] %v7259_v19  ;;  %v7262_v14 = vld [vmem:[#allocation5 + $0x360] sm:$0xff]  ;;  %v7265_v21 = vld [vmem:[#allocation5 + $0x370] sm:$0xff] }
 0x711   :  { %2646 = vmatpush2.msra.mxu0 %v7250_v11  ;;  %2717 = vmatpush2.msra.mxu1 %v7253_v12  ;;  %9424 = vst [vmem:[#allocation120_spill] sm:$0xff] %v7262_v14  ;;  %9425 = vst [vmem:[#allocation121_spill] sm:$0xff] %v7265_v21  ;;  %v7268_v11 = vld [vmem:[#allocation5 + $0x348] sm:$0xff]  ;;  %v7271_v12 = vld [vmem:[#allocation5 + $0x358] sm:$0xff] }
 0x712   :  { %2647 = vmatprep.subr.mxu0 %v7256_v50  ;;  %2718 = vmatprep.subr.mxu1 %v7259_v19  ;;  %9426 = vst [vmem:[#allocation122_spill] sm:$0xff] %v7268_v11  ;;  %9427 = vst [vmem:[#allocation123_spill] sm:$0xff] %v7271_v12  ;;  %v7274_v50 = vld [vmem:[#allocation5 + $0x340] sm:$0xff]  ;;  %v7277_v19 = vld [vmem:[#allocation5 + $0x350] sm:$0xff] }
 0x713   :  { %2648 = vmatpush2.msra.mxu0 %v7262_v14  ;;  %2719 = vmatpush2.msra.mxu1 %v7265_v21  ;;  %9428 = vst [vmem:[#allocation124_spill] sm:$0xff] %v7274_v50  ;;  %9429 = vst [vmem:[#allocation125_spill] sm:$0xff] %v7277_v19  ;;  %v7280_v14 = vld [vmem:[#allocation5 + $0x328] sm:$0xff]  ;;  %v7283_v21 = vld [vmem:[#allocation5 + $0x338] sm:$0xff] }
 0x714   :  { %2649 = vmatprep.subr.mxu0 %v7268_v11  ;;  %2720 = vmatprep.subr.mxu1 %v7271_v12  ;;  %9430 = vst [vmem:[#allocation126_spill] sm:$0xff] %v7280_v14  ;;  %9431 = vst [vmem:[#allocation127_spill] sm:$0xff] %v7283_v21  ;;  %v7286_v11 = vld [vmem:[#allocation5 + $0x320] sm:$0xff]  ;;  %v7289_v12 = vld [vmem:[#allocation5 + $0x330] sm:$0xff] }
 0x715   :  { %2650 = vmatpush2.msra.mxu0 %v7274_v50  ;;  %2721 = vmatpush2.msra.mxu1 %v7277_v19  ;;  %9432 = vst [vmem:[#allocation128_spill] sm:$0xff] %v7286_v11  ;;  %9433 = vst [vmem:[#allocation129_spill] sm:$0xff] %v7289_v12  ;;  %v7292_v50 = vld [vmem:[#allocation5 + $0x308] sm:$0xff]  ;;  %v7295_v19 = vld [vmem:[#allocation5 + $0x318] sm:$0xff] }
 0x716   :  { %2651 = vmatprep.subr.mxu0 %v7280_v14  ;;  %2722 = vmatprep.subr.mxu1 %v7283_v21  ;;  %9434 = vst [vmem:[#allocation130_spill] sm:$0xff] %v7292_v50  ;;  %9435 = vst [vmem:[#allocation131_spill] sm:$0xff] %v7295_v19  ;;  %v7298_v14 = vld [vmem:[#allocation5 + $0x300] sm:$0xff]  ;;  %v7301_v21 = vld [vmem:[#allocation5 + $0x310] sm:$0xff] }
 0x717   :  { %2652 = vmatpush2.msra.mxu0 %v7286_v11  ;;  %2723 = vmatpush2.msra.mxu1 %v7289_v12  ;;  %9436 = vst [vmem:[#allocation132_spill] sm:$0xff] %v7298_v14  ;;  %9437 = vst [vmem:[#allocation133_spill] sm:$0xff] %v7301_v21  ;;  %v7304_v11 = vld [vmem:[#allocation5 + $0x2e8] sm:$0xff]  ;;  %v7307_v12 = vld [vmem:[#allocation5 + $0x2f8] sm:$0xff] }
 0x718   :  { %2653 = vmatprep.subr.mxu0 %v7292_v50  ;;  %2724 = vmatprep.subr.mxu1 %v7295_v19  ;;  %9438 = vst [vmem:[#allocation134_spill] sm:$0xff] %v7304_v11  ;;  %9439 = vst [vmem:[#allocation135_spill] sm:$0xff] %v7307_v12  ;;  %v7310_v50 = vld [vmem:[#allocation5 + $0x2e0] sm:$0xff]  ;;  %v7313_v19 = vld [vmem:[#allocation5 + $0x2f0] sm:$0xff] }
 0x719   :  { %2654 = vmatpush2.msra.mxu0 %v7298_v14  ;;  %2725 = vmatpush2.msra.mxu1 %v7301_v21  ;;  %9440 = vst [vmem:[#allocation136_spill] sm:$0xff] %v7310_v50  ;;  %9441 = vst [vmem:[#allocation137_spill] sm:$0xff] %v7313_v19  ;;  %v7316_v14 = vld [vmem:[#allocation5 + $0x2c8] sm:$0xff]  ;;  %v7319_v21 = vld [vmem:[#allocation5 + $0x2d8] sm:$0xff] }
 0x71a   :  { %2655 = vmatprep.subr.mxu0 %v7304_v11  ;;  %2726 = vmatprep.subr.mxu1 %v7307_v12  ;;  %9442 = vst [vmem:[#allocation138_spill] sm:$0xff] %v7316_v14  ;;  %9443 = vst [vmem:[#allocation139_spill] sm:$0xff] %v7319_v21  ;;  %v7322_v11 = vld [vmem:[#allocation5 + $0x2c0] sm:$0xff]  ;;  %v7325_v12 = vld [vmem:[#allocation5 + $0x2d0] sm:$0xff] }
 0x71b   :  { %2656 = vmatpush2.msra.mxu0 %v7310_v50  ;;  %2727 = vmatpush2.msra.mxu1 %v7313_v19  ;;  %9444 = vst [vmem:[#allocation140_spill] sm:$0xff] %v7322_v11  ;;  %9445 = vst [vmem:[#allocation141_spill] sm:$0xff] %v7325_v12  ;;  %v7328_v50 = vld [vmem:[#allocation5 + $0x2a8] sm:$0xff]  ;;  %v7331_v19 = vld [vmem:[#allocation5 + $0x2b8] sm:$0xff] }
 0x71c   :  { %2657 = vmatprep.subr.mxu0 %v7316_v14  ;;  %2728 = vmatprep.subr.mxu1 %v7319_v21  ;;  %9446 = vst [vmem:[#allocation142_spill] sm:$0xff] %v7328_v50  ;;  %9447 = vst [vmem:[#allocation143_spill] sm:$0xff] %v7331_v19  ;;  %v7334_v14 = vld [vmem:[#allocation5 + $0x2a0] sm:$0xff]  ;;  %v7337_v21 = vld [vmem:[#allocation5 + $0x2b0] sm:$0xff] }
 0x71d   :  { %2658 = vmatpush2.msra.mxu0 %v7322_v11  ;;  %2729 = vmatpush2.msra.mxu1 %v7325_v12  ;;  %9448 = vst [vmem:[#allocation144_spill] sm:$0xff] %v7334_v14  ;;  %9449 = vst [vmem:[#allocation145_spill] sm:$0xff] %v7337_v21  ;;  %v7340_v11 = vld [vmem:[#allocation5 + $0x288] sm:$0xff]  ;;  %v7343_v12 = vld [vmem:[#allocation5 + $0x298] sm:$0xff] }
 0x71e   :  { %2659 = vmatprep.subr.mxu0 %v7328_v50  ;;  %2730 = vmatprep.subr.mxu1 %v7331_v19  ;;  %9450 = vst [vmem:[#allocation146_spill] sm:$0xff] %v7340_v11  ;;  %9451 = vst [vmem:[#allocation147_spill] sm:$0xff] %v7343_v12  ;;  %v7346_v50 = vld [vmem:[#allocation5 + $0x280] sm:$0xff]  ;;  %v7349_v19 = vld [vmem:[#allocation5 + $0x290] sm:$0xff] }
 0x71f   :  { %2660 = vmatpush2.msra.mxu0 %v7334_v14  ;;  %2731 = vmatpush2.msra.mxu1 %v7337_v21  ;;  %9452 = vst [vmem:[#allocation148_spill] sm:$0xff] %v7346_v50  ;;  %9453 = vst [vmem:[#allocation149_spill] sm:$0xff] %v7349_v19  ;;  %v7352_v14 = vld [vmem:[#allocation5 + $0x268] sm:$0xff]  ;;  %v7355_v21 = vld [vmem:[#allocation5 + $0x278] sm:$0xff] }
 0x720   :  { %2661 = vmatprep.subr.mxu0 %v7340_v11  ;;  %2732 = vmatprep.subr.mxu1 %v7343_v12  ;;  %9454 = vst [vmem:[#allocation150_spill] sm:$0xff] %v7352_v14  ;;  %9455 = vst [vmem:[#allocation151_spill] sm:$0xff] %v7355_v21  ;;  %v7358_v11 = vld [vmem:[#allocation5 + $0x260] sm:$0xff]  ;;  %v7361_v12 = vld [vmem:[#allocation5 + $0x270] sm:$0xff] }
 0x721   :  { %2662 = vmatpush2.msra.mxu0 %v7346_v50  ;;  %2733 = vmatpush2.msra.mxu1 %v7349_v19  ;;  %9456 = vst [vmem:[#allocation152_spill] sm:$0xff] %v7358_v11  ;;  %9457 = vst [vmem:[#allocation153_spill] sm:$0xff] %v7361_v12  ;;  %v7364_v50 = vld [vmem:[#allocation5 + $0x248] sm:$0xff]  ;;  %v7367_v19 = vld [vmem:[#allocation5 + $0x258] sm:$0xff] }
 0x722   :  { %2663 = vmatprep.subr.mxu0 %v7352_v14  ;;  %2734 = vmatprep.subr.mxu1 %v7355_v21  ;;  %9458 = vst [vmem:[#allocation154_spill] sm:$0xff] %v7364_v50  ;;  %9459 = vst [vmem:[#allocation155_spill] sm:$0xff] %v7367_v19  ;;  %v7370_v14 = vld [vmem:[#allocation5 + $0x240] sm:$0xff]  ;;  %v7373_v21 = vld [vmem:[#allocation5 + $0x250] sm:$0xff] }
 0x723   :  { %2664 = vmatpush2.msra.mxu0 %v7358_v11  ;;  %2735 = vmatpush2.msra.mxu1 %v7361_v12  ;;  %9460 = vst [vmem:[#allocation156_spill] sm:$0xff] %v7370_v14  ;;  %9461 = vst [vmem:[#allocation157_spill] sm:$0xff] %v7373_v21  ;;  %v7376_v11 = vld [vmem:[#allocation5 + $0x228] sm:$0xff]  ;;  %v7379_v12 = vld [vmem:[#allocation5 + $0x238] sm:$0xff] }
 0x724   :  { %2665 = vmatprep.subr.mxu0 %v7364_v50  ;;  %2736 = vmatprep.subr.mxu1 %v7367_v19  ;;  %9462 = vst [vmem:[#allocation158_spill] sm:$0xff] %v7376_v11  ;;  %9463 = vst [vmem:[#allocation161_spill] sm:$0xff] %v7379_v12  ;;  %v7382_v50 = vld [vmem:[#allocation5 + $0x220] sm:$0xff]  ;;  %v7385_v19 = vld [vmem:[#allocation5 + $0x230] sm:$0xff] }
 0x725   :  { %2666 = vmatpush2.msra.mxu0 %v7370_v14  ;;  %2737 = vmatpush2.msra.mxu1 %v7373_v21  ;;  %9464 = vst [vmem:[#allocation162_spill] sm:$0xff] %v7382_v50  ;;  %9465 = vst [vmem:[#allocation163_spill] sm:$0xff] %v7385_v19  ;;  %v7388_v14 = vld [vmem:[#allocation5 + $0x208] sm:$0xff]  ;;  %v7391_v21 = vld [vmem:[#allocation5 + $0x218] sm:$0xff] }
 0x726   :  { %2667 = vmatprep.subr.mxu0 %v7376_v11  ;;  %2738 = vmatprep.subr.mxu1 %v7379_v12  ;;  %9466 = vst [vmem:[#allocation164_spill] sm:$0xff] %v7388_v14  ;;  %9467 = vst [vmem:[#allocation165_spill] sm:$0xff] %v7391_v21  ;;  %v7394_v11 = vld [vmem:[#allocation5 + $0x200] sm:$0xff]  ;;  %v7397_v12 = vld [vmem:[#allocation5 + $0x210] sm:$0xff] }
 0x727   :  { %2668 = vmatpush2.msra.mxu0 %v7382_v50  ;;  %2739 = vmatpush2.msra.mxu1 %v7385_v19  ;;  %9468 = vst [vmem:[#allocation166_spill] sm:$0xff] %v7394_v11  ;;  %9469 = vst [vmem:[#allocation167_spill] sm:$0xff] %v7397_v12 }
 0x728   :  { %2669 = vmatprep.subr.mxu0 %v7388_v14  ;;  %2740 = vmatprep.subr.mxu1 %v7391_v21 }
 0x729   :  { %2670 = vmatpush2.msra.mxu0 %v7394_v11  ;;  %2741 = vmatpush2.msra.mxu1 %v7397_v12 }
 0x72a   :  { %2784 = vmatprep.subr.mxu0 %v6796_v32  ;;  %2855 = vmatprep.subr.mxu1 %v6799_v27 }
 0x788   :  { %v2322_v19 = vpop.f32.mrf.mxu0  ;;  %v2393_v21 = vpop.f32.mrf.mxu1 }
 0x789   :  { %v2323_v50 = vadd.f32 %v2322_v19, %v9311_v0  ;;  %v2394_v32 = vadd.f32 %v2393_v21, %v9314_v18 }
 0x78a   :  { %v2324_v14 = vpop.f32.mrf.mxu0  ;;  %v2395_v11 = vpop.f32.mrf.mxu1 }
 0x78b   :  { %v3263_v52 = vmul.f32 -1.442695, %v2323_v50  ;;  %v2325_v17 = vadd.f32 %v2324_v14, %v9312_v45  ;;  %v2396_v43 = vadd.f32 %v2395_v11, %v9313_v13  ;;  %v2427_v50 = vpop.permute.xlu0 %2426 }
 0x78c   :  { %v2430_v11 = vmul.f32 %v2427_v50, %v9001_v20 }
 0x78d   :  { %3518 = vpow2.f32 %v3263_v52  ;;  %v3264_v54 = vmul.f32 -1.442695, %v2325_v17  ;;  %v3265_v42 = vmul.f32 -1.442695, %v2396_v43  ;;  %v2429_v52 = vmul.f32 %v2427_v50, %v9315_v29 }
 0x78f   :  { %3520 = vpow2.f32 %v3264_v54 }
 0x790   :  { %3522 = vpow2.f32 %v3265_v42 }
 0x79a   :  { %v3519_v12 = vpop.eup %3518 }
 0x79b   :  { %v2401_v24 = vadd.f32 1.0, %v3519_v12 }
 0x79c   :  { %v3521_v27 = vpop.eup %3520 }
 0x79d   :  { %3524 = vrcp.f32 %v2401_v24  ;;  %v2407_v19 = vadd.f32 1.0, %v3521_v27  ;;  %v3523_v14 = vpop.eup %3522 }
 0x79e   :  { %3526 = vtanh.f32 %v2394_v32  ;;  %v2414_v13 = vadd.f32 1.0, %v3523_v14  ;;  %v2432_v14 = vmul.f32 %v2427_v50, %v8684_v30 }
 0x79f   :  { %3528 = vrcp.f32 %v2407_v19 }
 0x7a0   :  { %3530 = vrcp.f32 %v2414_v13 }
 0x7a9   :  { %v2499_v17 = vpop.f32.mrf.mxu0  ;;  %v2570_v12 = vpop.f32.mrf.mxu1 }
 0x7aa   :  { %v3525_v54 = vpop.eup %3524  ;;  %v2575_v45 = vadd.f32 %v2499_v17, %v2429_v52 }
 0x7ab   :  { %v3527_v43 = vpop.eup %3526  ;;  %v2501_v0 = vpop.f32.mrf.mxu0 }
 0x7ac   :  { %v3529_v21 = vpop.eup %3528  ;;  %v2579_v42 = vadd.f32 %v2575_v45, %v4895_v57  ;;  %v2576_v24 = vadd.f32 %v2501_v0, %v2430_v11  ;;  %v2418_v27 = vmul.f32 %v3527_v43, %v3525_v54  ;;  %v2572_v17 = vpop.f32.mrf.mxu1  ;;  %v2431_v0 = vmul.f32 %v2427_v50, %v8685_v33 }
 0x7ad   :  { %v2417_v32 = vmul.f32 %v3529_v21, %v6811_v62  ;;  %v2578_v45 = vadd.f32 %v2572_v17, %v2432_v14  ;;  %v3531_v43 = vpop.eup %3530 }
 0x7ae   :  { %v3267_v19 = vmul.f32 -1.442695, %v2579_v42  ;;  %v2580_v18 = vadd.f32 %v2576_v24, %v8683_v25  ;;  %v2577_v62 = vadd.f32 %v2570_v12, %v2431_v0 }
 0x7af   :  { %v7411_v29 = vadd.f32 %v2418_v27, %v2417_v32  ;;  %v2582_v54 = vadd.f32 %v2578_v45, %v8686_v35 }
 0x7b0   :  { %3532 = vpow2.f32 %v3267_v19  ;;  %v3268_v52 = vmul.f32 -1.442695, %v2580_v18  ;;  %v2581_v13 = vadd.f32 %v2577_v62, %v4918_v51 }
 0x7b1   :  { %3534 = vtanh.f32 %v7411_v29  ;;  %v3269_v11 = vmul.f32 -1.442695, %v2582_v54 }
 0x7b2   :  { %3536 = vpow2.f32 %v3268_v52 }
 0x7b3   :  { %3538 = vpow2.f32 %v3269_v11 }
 0x7bd   :  { %v3533_v21 = vpop.eup %3532 }
 0x7be   :  { %v3535_v42 = vpop.eup %3534  ;;  %v2586_v24 = vadd.f32 1.0, %v3533_v21  ;;  %v9508_v21 = vld [vmem:[#allocation49_spill] sm:$0xff] }
 0x7bf   :  { %v3537_v18 = vpop.eup %3536  ;;  %v2421_v27 = vmul.f32 %v3535_v42, %v3531_v43  ;;  %v9507_v43 = vld [vmem:[#allocation48_spill] sm:$0xff]  ;;  %v9510_v42 = vld [vmem:[#allocation51_spill] sm:$0xff] }
 0x7c0   :  { %3540 = vrcp.f32 %v2586_v24  ;;  %v2592_v32 = vadd.f32 1.0, %v3537_v18  ;;  %v3539_v50 = vpop.eup %3538  ;;  %v9511_v24 = vld [vmem:[#allocation52_spill] sm:$0xff]  ;;  %v9512_v18 = vld [vmem:[#allocation53_spill] sm:$0xff] }
 0x7c1   :  { %3542 = vtanh.f32 %v2581_v13  ;;  %2671 = vmatprep.mubr.f32.mxu0 %v2421_v27  ;;  %2742 = vmatprep.mubr.f32.mxu1 %v2421_v27  ;;  %v2599_v17 = vadd.f32 1.0, %v3539_v50  ;;  %v9509_v13 = vld [vmem:[#allocation50_spill] sm:$0xff]  ;;  %v9515_v50 = vld [vmem:[#allocation56_spill] sm:$0xff] }
 0x7c2   :  { %3544 = vrcp.f32 %v2592_v32  ;;  %v9513_v27 = vld [vmem:[#allocation54_spill] sm:$0xff]  ;;  %v9514_v32 = vld [vmem:[#allocation55_spill] sm:$0xff] }
 0x7c3   :  { %3546 = vrcp.f32 %v2599_v17  ;;  %v9519_v17 = vld [vmem:[#allocation60_spill] sm:$0xff] }
 0x7cd   :  { %v3541_v19 = vpop.eup %3540 }
 0x7ce   :  { %v3543_v52 = vpop.eup %3542 }
 0x7cf   :  { %v3545_v12 = vpop.eup %3544  ;;  %v2603_v14 = vmul.f32 %v3543_v52, %v3541_v19  ;;  %v9516_v19 = vld [vmem:[#allocation57_spill] sm:$0xff]  ;;  %v9517_v52 = vld [vmem:[#allocation58_spill] sm:$0xff] }
 0x7d0   :  { %v2602_v45 = vmul.f32 %v3545_v12, %v6819_v16  ;;  %v3547_v54 = vpop.eup %3546  ;;  %v9470_v16 = vld [vmem:[#allocation160_spill] sm:$0xff]  ;;  %v9518_v12 = vld [vmem:[#allocation59_spill] sm:$0xff] }
 0x7d2   :  { %v7419_v0 = vadd.f32 %v2603_v14, %v2602_v45  ;;  %v9520_v14 = vld [vmem:[#allocation61_spill] sm:$0xff]  ;;  %v9521_v45 = vld [vmem:[#allocation62_spill] sm:$0xff] }
 0x7d4   :  { %3548 = vtanh.f32 %v7419_v0 }
 0x7e1   :  { %v3549_v62 = vpop.eup %3548 }
 0x7e2   :  { %v7422_v11 = vmul.f32 %v3549_v62, %v3547_v54  ;;  %v9522_v54 = vld [vmem:[#allocation63_spill] sm:$0xff]  ;;  %v9523_v62 = vld [vmem:[#allocation64_spill] sm:$0xff] }
 0x7e4   :  { %2672 = vmatmul.mubr.f32.vlgmr.msra.gmra.mxu0 %v7422_v11  ;;  %2743 = vmatmul.mubr.f32.vlgmr.msra.gmra.mxu1 %v7422_v11 }
 0x7e5   :  { %2785 = vmatpush1.msra.mxu0 %v6826_v22  ;;  %2856 = vmatpush1.msra.mxu1 %v6829_v23  ;;  %v9471_v22 = vld [vmem:[#allocation13_spill] sm:$0xff]  ;;  %v9472_v23 = vld [vmem:[#allocation14_spill] sm:$0xff] }
 0x7e6   :  { %2786 = vmatprep.subr.mxu0 %v6832_v38  ;;  %2857 = vmatprep.subr.mxu1 %v6835_v26  ;;  %v9473_v38 = vld [vmem:[#allocation15_spill] sm:$0xff]  ;;  %v9474_v26 = vld [vmem:[#allocation16_spill] sm:$0xff] }
 0x7e7   :  { %2787 = vmatpush1.msra.mxu0 %v6838_v28  ;;  %2858 = vmatpush1.msra.mxu1 %v6841_v31  ;;  %v9475_v28 = vld [vmem:[#allocation17_spill] sm:$0xff]  ;;  %v9476_v31 = vld [vmem:[#allocation18_spill] sm:$0xff] }
 0x7e8   :  { %2788 = vmatprep.subr.mxu0 %v6844_v34  ;;  %2859 = vmatprep.subr.mxu1 %v6847_v36  ;;  %v9477_v34 = vld [vmem:[#allocation19_spill] sm:$0xff]  ;;  %v9478_v36 = vld [vmem:[#allocation20_spill] sm:$0xff] }
 0x7e9   :  { %2789 = vmatpush1.msra.mxu0 %v6850_v37  ;;  %2860 = vmatpush1.msra.mxu1 %v6853_v40  ;;  %v9479_v37 = vld [vmem:[#allocation21_spill] sm:$0xff]  ;;  %v9480_v40 = vld [vmem:[#allocation22_spill] sm:$0xff] }
 0x7ea   :  { %2790 = vmatprep.subr.mxu0 %v6856_v41  ;;  %2861 = vmatprep.subr.mxu1 %v6859_v44  ;;  %v9481_v41 = vld [vmem:[#allocation23_spill] sm:$0xff]  ;;  %v9482_v44 = vld [vmem:[#allocation24_spill] sm:$0xff] }
 0x7eb   :  { %2791 = vmatpush1.msra.mxu0 %v6862_v46  ;;  %2862 = vmatpush1.msra.mxu1 %v6865_v47  ;;  %v9483_v46 = vld [vmem:[#allocation25_spill] sm:$0xff]  ;;  %v9484_v47 = vld [vmem:[#allocation26_spill] sm:$0xff] }
 0x7ec   :  { %2792 = vmatprep.subr.mxu0 %v6868_v2  ;;  %2863 = vmatprep.subr.mxu1 %v6871_v61  ;;  %v9485_v2 = vld [vmem:[#allocation27_spill] sm:$0xff]  ;;  %v9486_v61 = vld [vmem:[#allocation28_spill] sm:$0xff] }
 0x7ed   :  { %2793 = vmatpush1.msra.mxu0 %v6874_v55  ;;  %2864 = vmatpush1.msra.mxu1 %v6877_v1  ;;  %v9487_v55 = vld [vmem:[#allocation29_spill] sm:$0xff]  ;;  %v9488_v1 = vld [vmem:[#allocation30_spill] sm:$0xff] }
 0x7ee   :  { %2794 = vmatprep.subr.mxu0 %v6880_v48  ;;  %2865 = vmatprep.subr.mxu1 %v6883_v59  ;;  %v9489_v48 = vld [vmem:[#allocation31_spill] sm:$0xff]  ;;  %v9490_v59 = vld [vmem:[#allocation32_spill] sm:$0xff] }
 0x7ef   :  { %2795 = vmatpush1.msra.mxu0 %v6886_v60  ;;  %2866 = vmatpush1.msra.mxu1 %v6889_v56  ;;  %v9491_v60 = vld [vmem:[#allocation33_spill] sm:$0xff]  ;;  %v9492_v56 = vld [vmem:[#allocation34_spill] sm:$0xff] }
 0x7f0   :  { %2796 = vmatprep.subr.mxu0 %v6892_v8  ;;  %2867 = vmatprep.subr.mxu1 %v6895_v4  ;;  %v9493_v8 = vld [vmem:[#allocation35_spill] sm:$0xff]  ;;  %v9494_v4 = vld [vmem:[#allocation36_spill] sm:$0xff] }
 0x7f1   :  { %2797 = vmatpush1.msra.mxu0 %v6898_v58  ;;  %2868 = vmatpush1.msra.mxu1 %v6901_v10  ;;  %v9495_v58 = vmov 0.0   ;;  %v9496_v10 = vld [vmem:[#allocation37_spill] sm:$0xff] }
 0x7f2   :  { %2798 = vmatprep.subr.mxu0 %v6904_v5  ;;  %2869 = vmatprep.subr.mxu1 %v6907_v15  ;;  %v9497_v5 = vld [vmem:[#allocation38_spill] sm:$0xff]  ;;  %v9498_v15 = vld [vmem:[#allocation39_spill] sm:$0xff] }
 0x7f3   :  { %2799 = vmatpush1.msra.mxu0 %v6910_v53  ;;  %2870 = vmatpush1.msra.mxu1 %v6913_v63  ;;  %v9499_v53 = vld [vmem:[#allocation40_spill] sm:$0xff]  ;;  %v9500_v63 = vld [vmem:[#allocation41_spill] sm:$0xff] }
 0x7f4   :  { %2800 = vmatprep.subr.mxu0 %v6916_v7  ;;  %2871 = vmatprep.subr.mxu1 %v6919_v49  ;;  %v9501_v7 = vld [vmem:[#allocation42_spill] sm:$0xff]  ;;  %v9502_v49 = vld [vmem:[#allocation43_spill] sm:$0xff] }
 0x7f5   :  { %2801 = vmatpush1.msra.mxu0 %v6922_v39  ;;  %2872 = vmatpush1.msra.mxu1 %v6925_v3  ;;  %v9503_v39 = vld [vmem:[#allocation44_spill] sm:$0xff]  ;;  %v9504_v3 = vld [vmem:[#allocation45_spill] sm:$0xff] }
 0x7f6   :  { %2802 = vmatprep.subr.mxu0 %v6928_v9  ;;  %2873 = vmatprep.subr.mxu1 %v6931_v6  ;;  %v9505_v9 = vld [vmem:[#allocation46_spill] sm:$0xff]  ;;  %v9506_v6 = vld [vmem:[#allocation47_spill] sm:$0xff] }
 0x7f7   :  { %2803 = vmatpush1.msra.mxu0 %v9470_v16  ;;  %2874 = vmatpush1.msra.mxu1 %v9471_v22  ;;  %v9525_v16 = vld [vmem:[#allocation66_spill] sm:$0xff]  ;;  %v9526_v22 = vld [vmem:[#allocation67_spill] sm:$0xff] }
 0x7f8   :  { %2804 = vmatprep.subr.mxu0 %v9472_v23  ;;  %2875 = vmatprep.subr.mxu1 %v9473_v38  ;;  %v9527_v23 = vld [vmem:[#allocation68_spill] sm:$0xff]  ;;  %v9528_v38 = vld [vmem:[#allocation69_spill] sm:$0xff] }
 0x7f9   :  { %2805 = vmatpush1.msra.mxu0 %v9474_v26  ;;  %2876 = vmatpush1.msra.mxu1 %v9475_v28  ;;  %v9529_v26 = vld [vmem:[#allocation70_spill] sm:$0xff]  ;;  %v9530_v28 = vld [vmem:[#allocation71_spill] sm:$0xff] }
 0x7fa   :  { %2806 = vmatprep.subr.mxu0 %v9476_v31  ;;  %2877 = vmatprep.subr.mxu1 %v9477_v34  ;;  %v9531_v31 = vld [vmem:[#allocation72_spill] sm:$0xff]  ;;  %v9532_v34 = vld [vmem:[#allocation73_spill] sm:$0xff] }
 0x7fb   :  { %2807 = vmatpush1.msra.mxu0 %v9478_v36  ;;  %2878 = vmatpush1.msra.mxu1 %v9479_v37  ;;  %v9533_v36 = vld [vmem:[#allocation74_spill] sm:$0xff]  ;;  %v9534_v37 = vld [vmem:[#allocation75_spill] sm:$0xff] }
 0x7fc   :  { %2808 = vmatprep.subr.mxu0 %v9480_v40  ;;  %2879 = vmatprep.subr.mxu1 %v9481_v41  ;;  %v9535_v40 = vld [vmem:[#allocation76_spill] sm:$0xff]  ;;  %v9536_v41 = vld [vmem:[#allocation77_spill] sm:$0xff] }
 0x7fd   :  { %2809 = vmatpush1.msra.mxu0 %v9482_v44  ;;  %2880 = vmatpush1.msra.mxu1 %v9483_v46  ;;  %v9537_v44 = vld [vmem:[#allocation78_spill] sm:$0xff]  ;;  %v9538_v46 = vld [vmem:[#allocation79_spill] sm:$0xff] }
 0x7fe   :  { %2810 = vmatprep.subr.mxu0 %v9484_v47  ;;  %2881 = vmatprep.subr.mxu1 %v9485_v2  ;;  %v9539_v47 = vld [vmem:[#allocation80_spill] sm:$0xff]  ;;  %v9540_v2 = vld [vmem:[#allocation81_spill] sm:$0xff] }
 0x7ff   :  { %2811 = vmatpush1.msra.mxu0 %v9486_v61  ;;  %2882 = vmatpush1.msra.mxu1 %v9487_v55  ;;  %v9541_v61 = vld [vmem:[#allocation82_spill] sm:$0xff]  ;;  %v9542_v55 = vld [vmem:[#allocation83_spill] sm:$0xff] }
 0x800   :  { %2812 = vmatprep.subr.mxu0 %v9488_v1  ;;  %2883 = vmatprep.subr.mxu1 %v9489_v48  ;;  %v9543_v1 = vld [vmem:[#allocation84_spill] sm:$0xff]  ;;  %v9544_v48 = vld [vmem:[#allocation85_spill] sm:$0xff] }
 0x801   :  { %2813 = vmatpush1.msra.mxu0 %v9490_v59  ;;  %2884 = vmatpush1.msra.mxu1 %v9491_v60  ;;  %v9545_v59 = vld [vmem:[#allocation86_spill] sm:$0xff]  ;;  %v9546_v60 = vld [vmem:[#allocation87_spill] sm:$0xff] }
 0x802   :  { %2814 = vmatprep.subr.mxu0 %v9492_v56  ;;  %2885 = vmatprep.subr.mxu1 %v9493_v8  ;;  %v9547_v56 = vld [vmem:[#allocation88_spill] sm:$0xff]  ;;  %v9548_v8 = vld [vmem:[#allocation89_spill] sm:$0xff] }
 0x803   :  { %2815 = vmatpush1.msra.mxu0 %v9494_v4  ;;  %2848 = vmatprep.mubr.f32.mxu0 %v9495_v58  ;;  %v9549_v4 = vld [vmem:[#allocation90_spill] sm:$0xff] }
 0x804   :  { %2886 = vmatpush1.msra.mxu1 %v9496_v10  ;;  %2919 = vmatprep.mubr.f32.mxu1 %v9495_v58  ;;  %v9550_v10 = vld [vmem:[#allocation91_spill] sm:$0xff] }
 0x805   :  { %2849 = vmatmul.mubr.f32.vlgmr.msra.gmra.mxu0 %v7422_v11  ;;  %2920 = vmatmul.mubr.f32.vlgmr.msra.gmra.mxu1 %v7422_v11  ;;  %v9524_v11 = vld [vmem:[#allocation65_spill] sm:$0xff] }
 0x806   :  { %2958 = vmatprep.subr.mxu0 %v9497_v5  ;;  %3029 = vmatprep.subr.mxu1 %v9498_v15  ;;  %v9551_v5 = vld [vmem:[#allocation92_spill] sm:$0xff]  ;;  %v9552_v15 = vld [vmem:[#allocation93_spill] sm:$0xff] }
 0x807   :  { %2959 = vmatpush1.msra.mxu0 %v9499_v53  ;;  %3030 = vmatpush1.msra.mxu1 %v9500_v63  ;;  %v9553_v53 = vld [vmem:[#allocation94_spill] sm:$0xff]  ;;  %v9554_v63 = vld [vmem:[#allocation95_spill] sm:$0xff] }
 0x808   :  { %2960 = vmatprep.subr.mxu0 %v9501_v7  ;;  %3031 = vmatprep.subr.mxu1 %v9502_v49  ;;  %v9555_v7 = vld [vmem:[#allocation96_spill] sm:$0xff]  ;;  %v9556_v49 = vld [vmem:[#allocation97_spill] sm:$0xff] }
 0x809   :  { %2961 = vmatpush1.msra.mxu0 %v9503_v39  ;;  %3032 = vmatpush1.msra.mxu1 %v9504_v3  ;;  %v9557_v39 = vld [vmem:[#allocation98_spill] sm:$0xff]  ;;  %v9558_v3 = vld [vmem:[#allocation99_spill] sm:$0xff] }
 0x80a   :  { %2962 = vmatprep.subr.mxu0 %v9505_v9  ;;  %3033 = vmatprep.subr.mxu1 %v9506_v6  ;;  %v9559_v9 = vld [vmem:[#allocation100_spill] sm:$0xff]  ;;  %v9560_v6 = vld [vmem:[#allocation101_spill] sm:$0xff] }
 0x80b   :  { %2963 = vmatpush1.msra.mxu0 %v9507_v43  ;;  %3034 = vmatpush1.msra.mxu1 %v9508_v21  ;;  %v9561_v43 = vld [vmem:[#allocation102_spill] sm:$0xff]  ;;  %v9562_v21 = vld [vmem:[#allocation103_spill] sm:$0xff] }
 0x80c   :  { %2964 = vmatprep.subr.mxu0 %v9509_v13  ;;  %3035 = vmatprep.subr.mxu1 %v9510_v42  ;;  %v9563_v13 = vld [vmem:[#allocation104_spill] sm:$0xff]  ;;  %v9564_v42 = vld [vmem:[#allocation105_spill] sm:$0xff] }
 0x80d   :  { %2965 = vmatpush1.msra.mxu0 %v9511_v24  ;;  %3036 = vmatpush1.msra.mxu1 %v9512_v18  ;;  %v9565_v24 = vld [vmem:[#allocation106_spill] sm:$0xff]  ;;  %v9566_v18 = vld [vmem:[#allocation107_spill] sm:$0xff] }
 0x80e   :  { %2966 = vmatprep.subr.mxu0 %v9513_v27  ;;  %3037 = vmatprep.subr.mxu1 %v9514_v32  ;;  %v9567_v27 = vld [vmem:[#allocation108_spill] sm:$0xff]  ;;  %v9568_v32 = vld [vmem:[#allocation109_spill] sm:$0xff] }
 0x80f   :  { %2967 = vmatpush1.msra.mxu0 %v9515_v50  ;;  %3038 = vmatpush1.msra.mxu1 %v9516_v19  ;;  %v9569_v50 = vld [vmem:[#allocation110_spill] sm:$0xff]  ;;  %v9570_v19 = vld [vmem:[#allocation111_spill] sm:$0xff] }
 0x810   :  { %2968 = vmatprep.subr.mxu0 %v9517_v52  ;;  %3039 = vmatprep.subr.mxu1 %v9518_v12  ;;  %v9571_v52 = vld [vmem:[#allocation112_spill] sm:$0xff]  ;;  %v9572_v12 = vld [vmem:[#allocation113_spill] sm:$0xff] }
 0x811   :  { %2969 = vmatpush1.msra.mxu0 %v9519_v17  ;;  %3040 = vmatpush1.msra.mxu1 %v9520_v14  ;;  %v9573_v17 = vld [vmem:[#allocation114_spill] sm:$0xff]  ;;  %v9574_v14 = vld [vmem:[#allocation115_spill] sm:$0xff] }
 0x812   :  { %2970 = vmatprep.subr.mxu0 %v9521_v45  ;;  %3041 = vmatprep.subr.mxu1 %v9522_v54  ;;  %v9575_v45 = vld [vmem:[#allocation116_spill] sm:$0xff]  ;;  %v9576_v54 = vld [vmem:[#allocation117_spill] sm:$0xff] }
 0x813   :  { %2971 = vmatpush1.msra.mxu0 %v9523_v62  ;;  %3042 = vmatpush1.msra.mxu1 %v9524_v11  ;;  %v9577_v62 = vld [vmem:[#allocation118_spill] sm:$0xff]  ;;  %v9578_v11 = vld [vmem:[#allocation119_spill] sm:$0xff] }
 0x814   :  { %2972 = vmatprep.subr.mxu0 %v9525_v16  ;;  %3043 = vmatprep.subr.mxu1 %v9526_v22  ;;  %v9579_v16 = vld [vmem:[#allocation120_spill] sm:$0xff]  ;;  %v9580_v22 = vld [vmem:[#allocation121_spill] sm:$0xff] }
 0x815   :  { %2973 = vmatpush1.msra.mxu0 %v9527_v23  ;;  %3044 = vmatpush1.msra.mxu1 %v9528_v38  ;;  %v9581_v23 = vld [vmem:[#allocation122_spill] sm:$0xff]  ;;  %v9582_v38 = vld [vmem:[#allocation123_spill] sm:$0xff] }
 0x816   :  { %2974 = vmatprep.subr.mxu0 %v9529_v26  ;;  %3045 = vmatprep.subr.mxu1 %v9530_v28  ;;  %v9583_v26 = vld [vmem:[#allocation124_spill] sm:$0xff]  ;;  %v9584_v28 = vld [vmem:[#allocation125_spill] sm:$0xff] }
 0x817   :  { %2975 = vmatpush1.msra.mxu0 %v9531_v31  ;;  %3046 = vmatpush1.msra.mxu1 %v9532_v34  ;;  %v9585_v31 = vld [vmem:[#allocation126_spill] sm:$0xff]  ;;  %v9586_v34 = vld [vmem:[#allocation127_spill] sm:$0xff] }
 0x818   :  { %2976 = vmatprep.subr.mxu0 %v9533_v36  ;;  %3047 = vmatprep.subr.mxu1 %v9534_v37  ;;  %v9587_v36 = vld [vmem:[#allocation128_spill] sm:$0xff]  ;;  %v9588_v37 = vld [vmem:[#allocation129_spill] sm:$0xff] }
 0x819   :  { %2977 = vmatpush1.msra.mxu0 %v9535_v40  ;;  %3048 = vmatpush1.msra.mxu1 %v9536_v41  ;;  %v9589_v40 = vld [vmem:[#allocation130_spill] sm:$0xff]  ;;  %v9590_v41 = vld [vmem:[#allocation131_spill] sm:$0xff] }
 0x81a   :  { %2978 = vmatprep.subr.mxu0 %v9537_v44  ;;  %3049 = vmatprep.subr.mxu1 %v9538_v46  ;;  %v9591_v44 = vld [vmem:[#allocation132_spill] sm:$0xff]  ;;  %v9592_v46 = vld [vmem:[#allocation133_spill] sm:$0xff] }
 0x81b   :  { %2979 = vmatpush1.msra.mxu0 %v9539_v47  ;;  %3050 = vmatpush1.msra.mxu1 %v9540_v2  ;;  %v9593_v47 = vld [vmem:[#allocation134_spill] sm:$0xff]  ;;  %v9594_v2 = vld [vmem:[#allocation135_spill] sm:$0xff] }
 0x81c   :  { %2980 = vmatprep.subr.mxu0 %v9541_v61  ;;  %3051 = vmatprep.subr.mxu1 %v9542_v55  ;;  %v9595_v61 = vld [vmem:[#allocation136_spill] sm:$0xff]  ;;  %v9596_v55 = vld [vmem:[#allocation137_spill] sm:$0xff] }
 0x81d   :  { %2981 = vmatpush1.msra.mxu0 %v9543_v1  ;;  %3052 = vmatpush1.msra.mxu1 %v9544_v48  ;;  %v9597_v1 = vld [vmem:[#allocation138_spill] sm:$0xff]  ;;  %v9598_v48 = vld [vmem:[#allocation139_spill] sm:$0xff] }
 0x81e   :  { %2982 = vmatprep.subr.mxu0 %v9545_v59  ;;  %3053 = vmatprep.subr.mxu1 %v9546_v60  ;;  %v9599_v59 = vld [vmem:[#allocation140_spill] sm:$0xff]  ;;  %v9600_v60 = vld [vmem:[#allocation141_spill] sm:$0xff] }
 0x81f   :  { %2983 = vmatpush1.msra.mxu0 %v9547_v56  ;;  %3054 = vmatpush1.msra.mxu1 %v9548_v8  ;;  %v9601_v56 = vld [vmem:[#allocation142_spill] sm:$0xff]  ;;  %v9602_v8 = vld [vmem:[#allocation143_spill] sm:$0xff] }
 0x820   :  { %2984 = vmatprep.subr.mxu0 %v9549_v4  ;;  %3055 = vmatprep.subr.mxu1 %v9550_v10  ;;  %v9603_v4 = vld [vmem:[#allocation144_spill] sm:$0xff]  ;;  %v9604_v10 = vld [vmem:[#allocation145_spill] sm:$0xff] }
 0x821   :  { %2985 = vmatpush1.msra.mxu0 %v9551_v5  ;;  %3056 = vmatpush1.msra.mxu1 %v9552_v15  ;;  %v9605_v5 = vld [vmem:[#allocation146_spill] sm:$0xff]  ;;  %v9606_v15 = vld [vmem:[#allocation147_spill] sm:$0xff] }
 0x822   :  { %2986 = vmatprep.subr.mxu0 %v9553_v53  ;;  %3057 = vmatprep.subr.mxu1 %v9554_v63  ;;  %v9607_v53 = vld [vmem:[#allocation148_spill] sm:$0xff]  ;;  %v9608_v63 = vld [vmem:[#allocation149_spill] sm:$0xff] }
 0x823   :  { %2987 = vmatpush1.msra.mxu0 %v9555_v7  ;;  %3058 = vmatpush1.msra.mxu1 %v9556_v49  ;;  %v9609_v7 = vld [vmem:[#allocation150_spill] sm:$0xff]  ;;  %v9610_v49 = vld [vmem:[#allocation151_spill] sm:$0xff] }
 0x824   :  { %2988 = vmatprep.subr.mxu0 %v9557_v39  ;;  %3059 = vmatprep.subr.mxu1 %v9558_v3  ;;  %v9611_v39 = vld [vmem:[#allocation152_spill] sm:$0xff]  ;;  %v9612_v3 = vld [vmem:[#allocation153_spill] sm:$0xff] }
 0x825   :  { %2989 = vmatpush1.msra.mxu0 %v9559_v9  ;;  %3060 = vmatpush1.msra.mxu1 %v9560_v6  ;;  %v9613_v9 = vld [vmem:[#allocation154_spill] sm:$0xff]  ;;  %v9614_v6 = vld [vmem:[#allocation155_spill] sm:$0xff] }
 0x826   :  { %2990 = vmatprep.subr.mxu0 %v9561_v43  ;;  %3061 = vmatprep.subr.mxu1 %v9562_v21  ;;  %v9615_v43 = vld [vmem:[#allocation156_spill] sm:$0xff]  ;;  %v9616_v21 = vld [vmem:[#allocation157_spill] sm:$0xff] }
 0x827   :  { %2991 = vmatpush2.msra.mxu0 %v9563_v13  ;;  %3062 = vmatpush2.msra.mxu1 %v9564_v42  ;;  %v9617_v13 = vld [vmem:[#allocation158_spill] sm:$0xff]  ;;  %v9618_v42 = vld [vmem:[#allocation161_spill] sm:$0xff] }
 0x828   :  { %2992 = vmatprep.subr.mxu0 %v9565_v24  ;;  %3063 = vmatprep.subr.mxu1 %v9566_v18  ;;  %v9619_v24 = vld [vmem:[#allocation162_spill] sm:$0xff]  ;;  %v9620_v18 = vld [vmem:[#allocation163_spill] sm:$0xff] }
 0x829   :  { %2993 = vmatpush2.msra.mxu0 %v9567_v27  ;;  %3064 = vmatpush2.msra.mxu1 %v9568_v32  ;;  %v9621_v27 = vld [vmem:[#allocation164_spill] sm:$0xff]  ;;  %v9622_v32 = vld [vmem:[#allocation165_spill] sm:$0xff] }
 0x82a   :  { %2994 = vmatprep.subr.mxu0 %v9569_v50  ;;  %3065 = vmatprep.subr.mxu1 %v9570_v19  ;;  %v9623_v50 = vld [vmem:[#allocation166_spill] sm:$0xff]  ;;  %v9624_v19 = vld [vmem:[#allocation167_spill] sm:$0xff] }
 0x82b   :  { %2995 = vmatpush2.msra.mxu0 %v9571_v52  ;;  %3066 = vmatpush2.msra.mxu1 %v9572_v12  ;;  %v9625_v12 = vld [vmem:[#allocation9_spill] sm:$0xff] }
 0x82c   :  { %2996 = vmatprep.subr.mxu0 %v9573_v17  ;;  %3067 = vmatprep.subr.mxu1 %v9574_v14 }
 0x82d   :  { %2997 = vmatpush2.msra.mxu0 %v9575_v45  ;;  %3068 = vmatpush2.msra.mxu1 %v9576_v54  ;;  %v9626_v54 = vld [vmem:[#allocation10_spill] sm:$0xff] }
 0x82e   :  { %2998 = vmatprep.subr.mxu0 %v9577_v62  ;;  %3069 = vmatprep.subr.mxu1 %v9578_v11 }
 0x82f   :  { %2999 = vmatpush2.msra.mxu0 %v9579_v16  ;;  %3070 = vmatpush2.msra.mxu1 %v9580_v22 }
 0x830   :  { %3000 = vmatprep.subr.mxu0 %v9581_v23  ;;  %3071 = vmatprep.subr.mxu1 %v9582_v38  ;;  %v9627_v23 = vld [vmem:[#allocation11_spill] sm:$0xff] }
 0x831   :  { %3001 = vmatpush2.msra.mxu0 %v9583_v26  ;;  %3072 = vmatpush2.msra.mxu1 %v9584_v28 }
 0x832   :  { %3002 = vmatprep.subr.mxu0 %v9585_v31  ;;  %3073 = vmatprep.subr.mxu1 %v9586_v34  ;;  %v9628_v31 = vld [vmem:[#allocation12_spill] sm:$0xff] }
 0x833   :  { %3003 = vmatpush2.msra.mxu0 %v9587_v36  ;;  %3074 = vmatpush2.msra.mxu1 %v9588_v37 }
 0x834   :  { %3004 = vmatprep.subr.mxu0 %v9589_v40  ;;  %3075 = vmatprep.subr.mxu1 %v9590_v41  ;;  %v2778_v41 = vpop.permute.xlu1 %2777 }
 0x835   :  { %3005 = vmatpush2.msra.mxu0 %v9591_v44  ;;  %3076 = vmatpush2.msra.mxu1 %v9592_v46  ;;  %v9629_v46 = vld [vmem:[#allocation159_spill] sm:$0xff] }
 0x836   :  { %3006 = vmatprep.subr.mxu0 %v9593_v47  ;;  %3077 = vmatprep.subr.mxu1 %v9594_v2  ;;  %v2780_v47 = vmul.f32 %v2778_v41, %v9629_v46  ;;  %v3125_v46 = vld [vmem:[%s7716_s6 + $0x8] sm:$0xff] }
 0x837   :  { %3007 = vmatpush2.msra.mxu0 %v9595_v61  ;;  %3078 = vmatpush2.msra.mxu1 %v9596_v55 }
 0x838   :  { %3008 = vmatprep.subr.mxu0 %v9597_v1  ;;  %3079 = vmatprep.subr.mxu1 %v9598_v48  ;;  %v2781_v1 = vmul.f32 %v2778_v41, %v9001_v20 }
 0x839   :  { %3009 = vmatpush2.msra.mxu0 %v9599_v59  ;;  %3080 = vmatpush2.msra.mxu1 %v9600_v60 }
 0x83a   :  { %3010 = vmatprep.subr.mxu0 %v9601_v56  ;;  %3081 = vmatprep.subr.mxu1 %v9602_v8 }
 0x83b   :  { %3011 = vmatpush2.msra.mxu0 %v9603_v4  ;;  %3082 = vmatpush2.msra.mxu1 %v9604_v10 }
 0x83c   :  { %3012 = vmatprep.subr.mxu0 %v9605_v5  ;;  %3083 = vmatprep.subr.mxu1 %v9606_v15 }
 0x83d   :  { %3013 = vmatpush2.msra.mxu0 %v9607_v53  ;;  %3084 = vmatpush2.msra.mxu1 %v9608_v63 }
 0x83e   :  { %3014 = vmatprep.subr.mxu0 %v9609_v7  ;;  %3085 = vmatprep.subr.mxu1 %v9610_v49 }
 0x83f   :  { %3015 = vmatpush2.msra.mxu0 %v9611_v39  ;;  %3086 = vmatpush2.msra.mxu1 %v9612_v3  ;;  %v2783_v39 = vmul.f32 %v2778_v41, %v8684_v30  ;;  %v2782_v3 = vmul.f32 %v2778_v41, %v8685_v33  ;;  %v3127_v41 = vld [vmem:[%s7716_s6 + $0x18] sm:$0xff] }
 0x840   :  { %3016 = vmatprep.subr.mxu0 %v9613_v9  ;;  %3087 = vmatprep.subr.mxu1 %v9614_v6 }
 0x841   :  { %3017 = vmatpush2.msra.mxu0 %v9615_v43  ;;  %3088 = vmatpush2.msra.mxu1 %v9616_v21 }
 0x842   :  { %3018 = vmatprep.subr.mxu0 %v9617_v13  ;;  %3089 = vmatprep.subr.mxu1 %v9618_v42 }
 0x843   :  { %3019 = vmatpush2.msra.mxu0 %v9619_v24  ;;  %3090 = vmatpush2.msra.mxu1 %v9620_v18 }
 0x844   :  { %3020 = vmatprep.subr.mxu0 %v9621_v27  ;;  %3091 = vmatprep.subr.mxu1 %v9622_v32 }
 0x845   :  { %3021 = vmatpush2.msra.mxu0 %v9623_v50  ;;  %3092 = vmatpush2.msra.mxu1 %v9624_v19 }
 0x846   :  { %3298 = vmatprep.subr.mxu0 %v9495_v58 }
 0x8a4   :  { %v2673_v52 = vpop.f32.mrf.mxu0  ;;  %v2744_v11 = vpop.f32.mrf.mxu1 }
 0x8a5   :  { %v2674_v17 = vadd.f32 %v2673_v52, %v9625_v12  ;;  %v2745_v34 = vadd.f32 %v2744_v11, %v9628_v31  ;;  %v3138_v11 = vld [vmem:[%s7716_s6 + $0x70] sm:$0xff] }
 0x8a6   :  { %v2675_v14 = vpop.f32.mrf.mxu0  ;;  %v2746_v22 = vpop.f32.mrf.mxu1 }
 0x8a7   :  { %v3270_v45 = vmul.f32 -1.442695, %v2674_v17  ;;  %v2676_v62 = vadd.f32 %v2675_v14, %v9626_v54  ;;  %v2747_v38 = vadd.f32 %v2746_v22, %v9627_v23  ;;  %v3135_v22 = vld [vmem:[%s7716_s6 + $0x58] sm:$0xff] }
 0x8a9   :  { %3550 = vpow2.f32 %v3270_v45  ;;  %v3271_v16 = vmul.f32 -1.442695, %v2676_v62  ;;  %v3272_v26 = vmul.f32 -1.442695, %v2747_v38  ;;  %v3139_v62 = vld [vmem:[%s7716_s6 + $0x78] sm:$0xff]  ;;  %v3134_v38 = vld [vmem:[%s7716_s6 + $0x50] sm:$0xff] }
 0x8ab   :  { %3552 = vpow2.f32 %v3271_v16  ;;  %v3136_v16 = vld [vmem:[%s7716_s6 + $0x60] sm:$0xff] }
 0x8ac   :  { %3554 = vpow2.f32 %v3272_v26  ;;  %v3133_v26 = vld [vmem:[%s7716_s6 + $0x48] sm:$0xff] }
 0x8b6   :  { %v3551_v28 = vpop.eup %3550 }
 0x8b7   :  { %v2752_v36 = vadd.f32 1.0, %v3551_v28  ;;  %v3132_v28 = vld [vmem:[%s7716_s6 + $0x40] sm:$0xff] }
 0x8b8   :  { %v3553_v37 = vpop.eup %3552 }
 0x8b9   :  { %3556 = vrcp.f32 %v2752_v36  ;;  %v2758_v40 = vadd.f32 1.0, %v3553_v37  ;;  %v3555_v44 = vpop.eup %3554  ;;  %v3130_v36 = vld [vmem:[%s7716_s6 + $0x30] sm:$0xff]  ;;  %v3129_v37 = vld [vmem:[%s7716_s6 + $0x28] sm:$0xff] }
 0x8ba   :  { %3558 = vtanh.f32 %v2745_v34  ;;  %v2765_v59 = vadd.f32 1.0, %v3555_v44  ;;  %v3131_v34 = vld [vmem:[%s7716_s6 + $0x38] sm:$0xff]  ;;  %v3126_v44 = vld [vmem:[%s7716_s6 + $0x10] sm:$0xff] }
 0x8bb   :  { %3560 = vrcp.f32 %v2758_v40  ;;  %v3128_v40 = vld [vmem:[%s7716_s6 + $0x20] sm:$0xff] }
 0x8bc   :  { %3562 = vrcp.f32 %v2765_v59 }
 0x8c5   :  { %v2850_v2 = vpop.f32.mrf.mxu0  ;;  %v2921_v4 = vpop.f32.mrf.mxu1 }
 0x8c6   :  { %v3557_v61 = vpop.eup %3556  ;;  %v2926_v55 = vadd.f32 %v2850_v2, %v2780_v47  ;;  %v3124_v47 = vld [vmem:[%s7716_s6] sm:$0xff] }
 0x8c7   :  { %v3559_v48 = vpop.eup %3558  ;;  %v2852_v60 = vpop.f32.mrf.mxu0 }
 0x8c8   :  { %v3561_v56 = vpop.eup %3560  ;;  %v2930_v8 = vadd.f32 %v2926_v55, %v4895_v57  ;;  %v2927_v10 = vadd.f32 %v2852_v60, %v2781_v1  ;;  %v2769_v5 = vmul.f32 %v3559_v48, %v3557_v61  ;;  %v2923_v20 = vpop.f32.mrf.mxu1 }
 0x8c9   :  { %v2768_v15 = vmul.f32 %v3561_v56, %v7411_v29  ;;  %v2929_v57 = vadd.f32 %v2923_v20, %v2783_v39  ;;  %v2928_v29 = vadd.f32 %v2921_v4, %v2782_v3  ;;  %v3563_v43 = vpop.eup %3562 }
 0x8ca   :  { %v3274_v53 = vmul.f32 -1.442695, %v2930_v8  ;;  %v2931_v63 = vadd.f32 %v2927_v10, %v8683_v25 }
 0x8cb   :  { %v7630_v7 = vadd.f32 %v2769_v5, %v2768_v15  ;;  %v2933_v9 = vadd.f32 %v2929_v57, %v8686_v35  ;;  %v2932_v21 = vadd.f32 %v2928_v29, %v4918_v51  ;;  %v3280_v29 = vld [vmem:[#allocation2] ss:$0 sm:$0xff] }
 0x8cc   :  { %3564 = vpow2.f32 %v3274_v53  ;;  %v3275_v49 = vmul.f32 -1.442695, %v2931_v63 }
 0x8cd   :  { %3566 = vtanh.f32 %v7630_v7  ;;  %v3276_v6 = vmul.f32 -1.442695, %v2933_v9 }
 0x8ce   :  { %3568 = vpow2.f32 %v3275_v49 }
 0x8cf   :  { %3570 = vpow2.f32 %v3276_v6 }
 0x8d9   :  { %v3565_v25 = vpop.eup %3564 }
 0x8da   :  { %v3567_v13 = vpop.eup %3566  ;;  %v2937_v42 = vadd.f32 1.0, %v3565_v25 }
 0x8db   :  { %v3569_v24 = vpop.eup %3568  ;;  %v2772_v18 = vmul.f32 %v3567_v13, %v3563_v43 }
 0x8dc   :  { %3572 = vrcp.f32 %v2937_v42  ;;  %v2943_v30 = vadd.f32 1.0, %v3569_v24  ;;  %v3571_v33 = vpop.eup %3570 }
 0x8dd   :  { %3574 = vtanh.f32 %v2932_v21  ;;  %3022 = vmatprep.mubr.f32.mxu0 %v2772_v18  ;;  %3093 = vmatprep.mubr.f32.mxu1 %v2772_v18  ;;  %v2950_v50 = vadd.f32 1.0, %v3571_v33 }
 0x8de   :  { %3576 = vrcp.f32 %v2943_v30 }
 0x8df   :  { %3578 = vrcp.f32 %v2950_v50 }
 0x8e9   :  { %v3573_v27 = vpop.eup %3572 }
 0x8ea   :  { %v3575_v35 = vpop.eup %3574 }
 0x8eb   :  { %v3577_v32 = vpop.eup %3576  ;;  %v2954_v19 = vmul.f32 %v3575_v35, %v3573_v27 }
 0x8ec   :  { %v2953_v52 = vmul.f32 %v3577_v32, %v7419_v0  ;;  %v3579_v17 = vpop.eup %3578  ;;  %v3137_v0 = vld [vmem:[%s7716_s6 + $0x68] sm:$0xff] }
 0x8ee   :  { %v2955_v51 = vadd.f32 %v2954_v19, %v2953_v52 }
 0x8f0   :  { %3580 = vtanh.f32 %v2955_v51 }
 0x8fd   :  { %v3581_v14 = vpop.eup %3580 }
 0x8fe   :  { %v2957_v45 = vmul.f32 %v3581_v14, %v3579_v17 }
 0x900   :  { %3023 = vmatmul.mubr.f32.vlgmr.msra.gmra.mxu0 %v2957_v45  ;;  %3094 = vmatmul.mubr.f32.vlgmr.msra.gmra.mxu1 %v2957_v45 }
 0x901   :  { %3299 = vmatpush3.msra.mxu0 %v3139_v62  ;;  %3330 = vmatprep.mubr.msk.f32.mxu0 %vm4224_vm0, %v9495_v58 }
 0x902   :  { %3300 = vmatprep.subr.mxu0 %v9495_v58 }
 0x903   :  { %3301 = vmatpush3.msra.mxu0 %v3138_v11 }
 0x904   :  { %3302 = vmatprep.subr.mxu0 %v9495_v58 }
 0x905   :  { %3303 = vmatpush3.msra.mxu0 %v3137_v0 }
 0x906   :  { %3304 = vmatprep.subr.mxu0 %v9495_v58 }
 0x907   :  { %3305 = vmatpush3.msra.mxu0 %v3136_v16 }
 0x908   :  { %3306 = vmatprep.subr.mxu0 %v9495_v58 }
 0x909   :  { %3307 = vmatpush3.msra.mxu0 %v3135_v22 }
 0x90a   :  { %3308 = vmatprep.subr.mxu0 %v9495_v58 }
 0x90b   :  { %3309 = vmatpush3.msra.mxu0 %v3134_v38 }
 0x90c   :  { %3310 = vmatprep.subr.mxu0 %v9495_v58 }
 0x90d   :  { %3311 = vmatpush3.msra.mxu0 %v3133_v26 }
 0x90e   :  { %3312 = vmatprep.subr.mxu0 %v9495_v58 }
 0x90f   :  { %3313 = vmatpush3.msra.mxu0 %v3132_v28 }
 0x910   :  { %3314 = vmatprep.subr.mxu0 %v9495_v58 }
 0x911   :  { %3315 = vmatpush3.msra.mxu0 %v3131_v34 }
 0x912   :  { %3316 = vmatprep.subr.mxu0 %v9495_v58 }
 0x913   :  { %3317 = vmatpush3.msra.mxu0 %v3130_v36 }
 0x914   :  { %3318 = vmatprep.subr.mxu0 %v9495_v58 }
 0x915   :  { %3319 = vmatpush3.msra.mxu0 %v3129_v37 }
 0x916   :  { %3320 = vmatprep.subr.mxu0 %v9495_v58 }
 0x917   :  { %3321 = vmatpush3.msra.mxu0 %v3128_v40 }
 0x918   :  { %3322 = vmatprep.subr.mxu0 %v9495_v58 }
 0x919   :  { %3323 = vmatpush3.msra.mxu0 %v3127_v41 }
 0x91a   :  { %3324 = vmatprep.subr.mxu0 %v9495_v58 }
 0x91b   :  { %3325 = vmatpush3.msra.mxu0 %v3126_v44 }
 0x91c   :  { %3326 = vmatprep.subr.mxu0 %v9495_v58 }
 0x91d   :  { %3327 = vmatpush3.msra.mxu0 %v3125_v46 }
 0x91e   :  { %3328 = vmatprep.subr.mxu0 %v9495_v58 }
 0x91f   :  { %3329 = vmatpush3.msra.mxu0 %v3124_v47 }
 0x9c0   :  { %v3024_v2 = vpop.f32.mrf.mxu0  ;;  %v3095_v59 = vpop.f32.mrf.mxu1 }
 0x9c1   :  { %v3025_v61 = vadd.f32 %v3024_v2, %v9625_v12  ;;  %v3096_v5 = vadd.f32 %v3095_v59, %v9628_v31 }
 0x9c2   :  { %v3026_v55 = vpop.f32.mrf.mxu0  ;;  %v3097_v56 = vpop.f32.mrf.mxu1 }
 0x9c3   :  { %v3277_v1 = vmul.f32 -1.442695, %v3025_v61  ;;  %v3027_v48 = vadd.f32 %v3026_v55, %v9626_v54  ;;  %v3098_v8 = vadd.f32 %v3097_v56, %v9627_v23 }
 0x9c5   :  { %3582 = vpow2.f32 %v3277_v1  ;;  %v3278_v60 = vmul.f32 -1.442695, %v3027_v48  ;;  %v3279_v4 = vmul.f32 -1.442695, %v3098_v8 }
 0x9c7   :  { %3584 = vpow2.f32 %v3278_v60 }
 0x9c8   :  { %3586 = vpow2.f32 %v3279_v4 }
 0x9d2   :  { %v3583_v10 = vpop.eup %3582 }
 0x9d3   :  { %v3103_v58 = vadd.f32 1.0, %v3583_v10 }
 0x9d4   :  { %v3585_v15 = vpop.eup %3584 }
 0x9d5   :  { %3588 = vrcp.f32 %v3103_v58  ;;  %v3109_v12 = vadd.f32 1.0, %v3585_v15  ;;  %v3587_v53 = vpop.eup %3586 }
 0x9d6   :  { %3590 = vtanh.f32 %v3096_v5  ;;  %v3116_v20 = vadd.f32 1.0, %v3587_v53 }
 0x9d7   :  { %3592 = vrcp.f32 %v3109_v12 }
 0x9d8   :  { %3594 = vrcp.f32 %v3116_v20 }
 0x9e2   :  { %v3589_v54 = vpop.eup %3588 }
 0x9e3   :  { %v3591_v63 = vpop.eup %3590 }
 0x9e4   :  { %v3593_v49 = vpop.eup %3592  ;;  %v3120_v39 = vmul.f32 %v3591_v63, %v3589_v54 }
 0x9e5   :  { %v3119_v57 = vmul.f32 %v3593_v49, %v7630_v7  ;;  %v3595_v3 = vpop.eup %3594 }
 0x9e7   :  { %v3121_v23 = vadd.f32 %v3120_v39, %v3119_v57 }
 0x9e9   :  { %3596 = vtanh.f32 %v3121_v23 }
 0x9f6   :  { %v3597_v31 = vpop.eup %3596 }
 0x9f7   :  { %v3123_v9 = vmul.f32 %v3597_v31, %v3595_v3 }
 0x9f9   :  { %3331 = vmatmul.mubr.f32.vlgmr.msra.gmra.mxu0 %v3123_v9 }
 0xab9   :  { %v3213_v6 = vpop.f32.mrf.mxu0 }
 0xaba   :  { %v3214_v43 = vadd.f32 %v3280_v29, %v3213_v6 }
 0xabb   :  { %v3332_v25 = vpop.f32.mrf.mxu0 }
 0xabc   :  { %3218 = vst.msk [vmem:[%s7718_s8] sm:$0xff] %vm3217_vm1, %v3214_v43 }
 0xabd   :  { %3223 = vsyncpa [#allocation4], 1 }
 0xabe   :  { %3224 = vsyncpa [#allocation6], 1 }

</bundles_post_ra>
